<compile_context>
chip_gen: v6e
topology: v6e:2x2x1
jax: 0.10.0
libtpu: 0.0.40
codegen_flags: <defaults>
</compile_context>

<pallas_src>
import functools

import numpy as np
import jax
import jax.numpy as jnp
from jax.experimental import pallas as pl
from jax.experimental.pallas import tpu as pltpu

POOL_NUM = 10  # fixed by the module (FNN input dim assumes 10 pooled positions)


# --------------------------------------------------------------------------- #
# In-kernel math helpers
# --------------------------------------------------------------------------- #
def _mish(x):
    # mish(x) = x * tanh(softplus(x)); rewritten so only one transcendental (exp)
    # plus one approximate reciprocal are needed:
    #   e = exp(-|x|),  d = (1+e)^2,  w = e^2 if x>=0 else 1
    #   tanh(softplus(x)) = (d - w) / (d + w)
    e = jnp.exp(-jnp.abs(x))
    d = (1.0 + e) * (1.0 + e)
    w = jnp.where(x >= 0, e * e, jnp.ones_like(e))
    return x * (d - w) * pl.reciprocal(d + w, approx=True)


def _conv_mish_pool(x, w_big, bias, *, L, K, SF, pk, P, pad_l, pad_r):
    """One TextCNN branch, fully in registers/VMEM.

    x:      (B, L, C) f32 activations.
    w_big:  (C, K*SF) bf16 tap-packed conv weights (SF = n_filter_sizes * n_filters).
    bias:   (1, 1, SF) f32.
    Returns (B, P*SF) f32 pooled features ordered (position, filter_size, channel).
    """
    B, _, C = x.shape

    # 'same' padding folded into the kernel (never materialized in HBM).
    pieces = []
    if pad_l:
        pieces.append(jnp.zeros((B, pad_l, C), x.dtype))
    pieces.append(x)
    if pad_r:
        pieces.append(jnp.zeros((B, pad_r, C), x.dtype))
    xp = jnp.concatenate(pieces, axis=1) if len(pieces) > 1 else x
    Lp = L + K - 1

    # Single MXU matmul for all taps of all filter sizes (N = K*SF), then a
    # shift-accumulate over taps on the small (B, L, SF) result.
    z = jnp.dot(xp.reshape(B * Lp, C).astype(jnp.bfloat16), w_big,
                preferred_element_type=jnp.float32)
    z = z.reshape(B, Lp, K * SF)
    y = z[:, 0:L, 0:SF]
    for k in range(1, K):
        y = y + z[:, k:k + L, k * SF:(k + 1) * SF]
    y = _mish(y + bias)

    # MaxPool1d(pk, stride=pk) fused with the flatten: per-window max reductions
    # concatenated straight into a lane-dense (B, P*SF) feature.
    return jnp.concatenate(
        [jnp.max(y[:, p * pk:(p + 1) * pk, :], axis=1) for p in range(P)], axis=1)


# --------------------------------------------------------------------------- #
# Fused whole-forward kernel
# --------------------------------------------------------------------------- #
def _fused_forward_kernel(
    dna_ref, prot_ref,
    wcd_ref, bcd_ref, wcp_ref, bcp_ref,
    w1d_ref, w1p_ref, b1_ref,
    w2_ref, b2_ref, w3_ref, b3_ref, w4_ref, b4_ref,
    out_ref,
    *, dna_cfg, prot_cfg,
):
    feat_d = _conv_mish_pool(dna_ref[...], wcd_ref[...], bcd_ref[...], **dna_cfg)
    feat_p = _conv_mish_pool(prot_ref[...], wcp_ref[...], bcp_ref[...], **prot_cfg)

    # First FNN layer consumes the two branch features directly: the torch-order
    # feature concat is absorbed into the pre-permuted / split W1 (no transposes,
    # no concat, no HBM intermediates).
    h = jnp.dot(feat_d.astype(jnp.bfloat16), w1d_ref[...],
                preferred_element_type=jnp.float32)
    h = h + jnp.dot(feat_p.astype(jnp.bfloat16), w1p_ref[...],
                    preferred_element_type=jnp.float32)
    h = _mish(h + b1_ref[...])
    for w_ref, b_ref in ((w2_ref, b2_ref), (w3_ref, b3_ref), (w4_ref, b4_ref)):
        h = _mish(jnp.dot(h.astype(jnp.bfloat16), w_ref[...],
                          preferred_element_type=jnp.float32) + b_ref[...])
    out_ref[...] = h  # nn.Dropout layers are identity at inference.


def _full_spec(a):
    nd = a.ndim
    return pl.BlockSpec(a.shape, lambda i, _nd=nd: (0,) * _nd)


def textcnn_confusion_cap_forward(dna_data, protein_data, params):
    """Full TextCNN_confusion_cap.forward as a single Pallas call."""
    B = dna_data.shape[0]
    args = (
        dna_data, protein_data,
        params["wc_dna"], params["bc_dna"], params["wc_prot"], params["bc_prot"],
        params["w1_d"], params["w1_p"], params["b1"],
        params["w2"], params["b2"], params["w3"], params["b3"],
        params["w4"], params["b4"],
    )
    out_dim = params["w4"].shape[1]
    kernel = functools.partial(
        _fused_forward_kernel,
        dna_cfg=params["dna_cfg"], prot_cfg=params["prot_cfg"])
    return pl.pallas_call(
        kernel,
        out_shape=jax.ShapeDtypeStruct((B, out_dim), jnp.float32),
        grid=(1,),
        in_specs=[_full_spec(a) for a in args],
        out_specs=pl.BlockSpec((B, out_dim), lambda i: (0, 0)),
        compiler_params=pltpu.CompilerParams(
            dimension_semantics=("arbitrary",),
            vmem_limit_bytes=32 * 1024 * 1024,   # safe on v5e/v6e/v7x
        ),
    )(*args)


# --------------------------------------------------------------------------- #
# Parameter packing (one-time, wrapper-side layout plumbing)
# --------------------------------------------------------------------------- #
def _pack_conv_big(w_list, b_list):
    """Pack per-filter-size Conv1d weights into one tap-major (C, K*S*F) matrix.

    w_list[s]: (fs_s, C, F).  NOTE: PyTorch Conv1d stores (F, C, fs); real
    checkpoints need .permute(2, 1, 0) before packing.
    Column block k*S*F:(k+1)*S*F holds tap k of every filter size (zero where a
    filter has no tap); per-filter offsets reproduce padding='same'.
    """
    K = max(int(w.shape[0]) for w in w_list)
    S = len(w_list)
    C = int(w_list[0].shape[1])
    F = int(w_list[0].shape[2])
    packed = np.zeros((K, C, S * F), np.float32)
    for s, w in enumerate(w_list):
        fs = int(w.shape[0])
        c0 = (K - 1) // 2 - (fs - 1) // 2   # preserves each filter's 'same' left pad
        packed[c0:c0 + fs, :, s * F:(s + 1) * F] = np.asarray(w, np.float32)
    w_big = packed.transpose(1, 0, 2).reshape(C, K * S * F)
    bias = np.concatenate([np.asarray(b, np.float32) for b in b_list]).reshape(1, 1, S * F)
    return w_big, bias, K


def _permute_w1(w1, s_dna, s_prot, n_filters, pool_num):
    """Split/permute W1 rows from torch feature order (filter, channel, position)
    to the kernel's (position, filter, channel) order, per branch."""
    h = w1.shape[1]
    d0_dna = s_dna * n_filters * pool_num

    def perm(block, s):
        return (block.reshape(s, n_filters, pool_num, h)
                     .transpose(2, 0, 1, 3)
                     .reshape(pool_num * s * n_filters, h))

    return perm(w1[:d0_dna], s_dna), perm(w1[d0_dna:], s_prot)


def _init_params(key, *, n_filters, fs_dna, fs_prot, c_dna, c_prot, len_dna, len_prot):
    keys = iter(jax.random.split(key, 32))
    P = POOL_NUM

    def conv_set(fss, c):
        ws, bs = [], []
        for fs in fss:
            scale = 1.0 / np.sqrt(c * fs)
            ws.append(scale * jax.random.normal(next(keys), (fs, c, n_filters), jnp.float32))
            bs.append(0.01 * jax.random.normal(next(keys), (n_filters,), jnp.float32))
        return ws, bs

    dna_w_list, dna_b_list = conv_set(fs_dna, c_dna)
    prot_w_list, prot_b_list = conv_set(fs_prot, c_prot)

    S_d, S_p, F = len(fs_dna), len(fs_prot), n_filters
    d0 = (S_d + S_p) * F * P
    dims = (d0, 1024, 512, 256, 64)          # FNN hidden sizes fixed by the module
    fnn_torch = []
    for din, dout in zip(dims[:-1], dims[1:]):
        scale = 1.0 / np.sqrt(din)
        w = scale * jax.random.normal(next(keys), (din, dout), jnp.float32)
        b = 0.01 * jax.random.normal(next(keys), (1, dout), jnp.float32)
        fnn_torch.append((w, b))

    # ---- kernel-side packing (bf16 matmul operands, f32 biases) ----
    wc_dna, bc_dna, K_d = _pack_conv_big(dna_w_list, dna_b_list)
    wc_prot, bc_prot, K_p = _pack_conv_big(prot_w_list, prot_b_list)
    w1_d, w1_p = _permute_w1(np.asarray(fnn_torch[0][0]), S_d, S_p, F, P)

    def cfg(L, K, S):
        pk = L // P                           # torch: math.ceil(L // pool_num)
        assert L % pk == 0 and L // pk == P, \
            "demo lengths must yield exactly pool_num pooled windows"
        return dict(L=L, K=K, SF=S * F, pk=pk, P=P,
                    pad_l=(K - 1) // 2, pad_r=(K - 1) - (K - 1) // 2)

    return dict(
        # raw (torch-order) params for the reference
        dna_w_list=dna_w_list, dna_b_list=dna_b_list,
        prot_w_list=prot_w_list, prot_b_list=prot_b_list,
        fnn_torch=fnn_torch,
        # kernel-side packed params
        wc_dna=jnp.asarray(wc_dna, jnp.bfloat16), bc_dna=jnp.asarray(bc_dna, jnp.float32),
        wc_prot=jnp.asarray(wc_prot, jnp.bfloat16), bc_prot=jnp.asarray(bc_prot, jnp.float32),
        w1_d=jnp.asarray(w1_d, jnp.bfloat16), w1_p=jnp.asarray(w1_p, jnp.bfloat16),
        b1=jnp.asarray(fnn_torch[0][1], jnp.float32),
        w2=jnp.asarray(fnn_torch[1][0], jnp.bfloat16), b2=jnp.asarray(fnn_torch[1][1], jnp.float32),
        w3=jnp.asarray(fnn_torch[2][0], jnp.bfloat16), b3=jnp.asarray(fnn_torch[2][1], jnp.float32),
        w4=jnp.asarray(fnn_torch[3][0], jnp.bfloat16), b4=jnp.asarray(fnn_torch[3][1], jnp.float32),
        dna_cfg=cfg(len_dna, K_d, S_d), prot_cfg=cfg(len_prot, K_p, S_p),
    )


# --------------------------------------------------------------------------- #
# Pure-JAX reference (torch-faithful structure, same bf16-operand matmul policy)
# --------------------------------------------------------------------------- #
def _mish_ref(x):
    sp = jnp.maximum(x, 0.0) + jnp.log1p(jnp.exp(-jnp.abs(x)))
    return x * jnp.tanh(sp)


def _reference(dna_data, protein_data, params):
    def branch(x, w_list, b_list):
        B, L, _ = x.shape
        xb = x.astype(jnp.bfloat16)
        feats = []
        for w, b in zip(w_list, b_list):
            fs, _, F = w.shape
            left = (fs - 1) // 2
            xp = jnp.pad(xb, ((0, 0), (left, fs - 1 - left), (0, 0)))
            wb = w.astype(jnp.bfloat16)
            y = jnp.zeros((B, L, F), jnp.float32)
            for j in range(fs):
                y = y + jnp.einsum("blc,cf->blf", xp[:, j:j + L, :], wb[j],
                                   preferred_element_type=jnp.float32)
            y = _mish_ref(y + b[None, None, :])
            pk = L // POOL_NUM
            P = L // pk
            pooled = jnp.max(y[:, :P * pk, :].reshape(B, P, pk, F), axis=2)   # (B,P,F)
            feats.append(jnp.transpose(pooled, (0, 2, 1)).reshape(B, F * P))  # torch flatten
        return jnp.concatenate(feats, axis=1)

    dna_fea = branch(dna_data, params["dna_w_list"], params["dna_b_list"])
    prot_fea = branch(protein_data, params["prot_w_list"], params["prot_b_list"])
    h = jnp.concatenate([dna_fea, prot_fea], axis=1)
    for w, b in params["fnn_torch"]:
        h = _mish_ref(jnp.dot(h.astype(jnp.bfloat16), w.astype(jnp.bfloat16),
                              preferred_element_type=jnp.float32) + b)
    return h


# --------------------------------------------------------------------------- #
if __name__ == "__main__":
    key = jax.random.PRNGKey(0)
    k_params, k_dna, k_prot = jax.random.split(key, 3)

    # Small-but-structured shapes: lane-dense channel dims (stand-ins for 768/1280),
    # seq lengths that give exactly POOL_NUM pooled windows (as the FNN assumes).
    batch = 2
    n_filters = 16
    filter_sizes_dna = (3, 5)
    filter_sizes_protein = (3, 5)
    in_channel_dna, in_channel_protein = 128, 256
    len_dna, len_protein = 40, 50

    params = _init_params(
        k_params,
        n_filters=n_filters,
        fs_dna=filter_sizes_dna,
        fs_prot=filter_sizes_protein,
        c_dna=in_channel_dna,
        c_prot=in_channel_protein,
        len_dna=len_dna,
        len_prot=len_protein,
    )

    dna_data = jax.random.normal(k_dna, (batch, len_dna, in_channel_dna), jnp.float32)
    protein_data = jax.random.normal(
        k_prot, (batch, len_protein, in_channel_protein), jnp.float32)

    out = textcnn_confusion_cap_forward(dna_data, protein_data, params)
    out = jax.block_until_ready(out)
    assert out.shape == (batch, 64)

    ref = jax.block_until_ready(_reference(dna_data, protein_data, params))
    np.testing.assert_allclose(np.asarray(out), np.asarray(ref), rtol=1e-2, atol=1e-2)

    print("KERNEL_OK")
</pallas_src>

<mosaic_0001>
module attributes {stable_mosaic.version = 11 : i64} {
  func.func @_fused_forward_kernel(%arg0: i32, %arg1: memref<2x40x128xf32, #tpu.memory_space<vmem>>, %arg2: memref<2x50x256xf32, #tpu.memory_space<vmem>>, %arg3: memref<128x160xbf16, #tpu.memory_space<vmem>>, %arg4: memref<1x1x32xf32, #tpu.memory_space<vmem>>, %arg5: memref<256x160xbf16, #tpu.memory_space<vmem>>, %arg6: memref<1x1x32xf32, #tpu.memory_space<vmem>>, %arg7: memref<320x1024xbf16, #tpu.memory_space<vmem>>, %arg8: memref<320x1024xbf16, #tpu.memory_space<vmem>>, %arg9: memref<1x1024xf32, #tpu.memory_space<vmem>>, %arg10: memref<1024x512xbf16, #tpu.memory_space<vmem>>, %arg11: memref<1x512xf32, #tpu.memory_space<vmem>>, %arg12: memref<512x256xbf16, #tpu.memory_space<vmem>>, %arg13: memref<1x256xf32, #tpu.memory_space<vmem>>, %arg14: memref<256x64xbf16, #tpu.memory_space<vmem>>, %arg15: memref<1x64xf32, #tpu.memory_space<vmem>>, %arg16: memref<2x64xf32, #tpu.memory_space<vmem>>) attributes {dimension_semantics = [#tpu.dimension_semantics<arbitrary>], iteration_bounds = array<i64: 1>, scalar_prefetch = 0 : i64, scratch_operands = 0 : i64, tpu.core_type = #tpu.core_type<tc>, window_params = [{pipeline_mode = #tpu.pipeline_mode<synchronous>, transform_indices = @transform_0, window_bounds = array<i64: 2, 40, 128>}, {pipeline_mode = #tpu.pipeline_mode<synchronous>, transform_indices = @transform_1, window_bounds = array<i64: 2, 50, 256>}, {pipeline_mode = #tpu.pipeline_mode<synchronous>, transform_indices = @transform_2, window_bounds = array<i64: 128, 160>}, {pipeline_mode = #tpu.pipeline_mode<synchronous>, transform_indices = @transform_3, window_bounds = array<i64: 1, 1, 32>}, {pipeline_mode = #tpu.pipeline_mode<synchronous>, transform_indices = @transform_4, window_bounds = array<i64: 256, 160>}, {pipeline_mode = #tpu.pipeline_mode<synchronous>, transform_indices = @transform_5, window_bounds = array<i64: 1, 1, 32>}, {pipeline_mode = #tpu.pipeline_mode<synchronous>, transform_indices = @transform_6, window_bounds = array<i64: 320, 1024>}, {pipeline_mode = #tpu.pipeline_mode<synchronous>, transform_indices = @transform_7, window_bounds = array<i64: 320, 1024>}, {pipeline_mode = #tpu.pipeline_mode<synchronous>, transform_indices = @transform_8, window_bounds = array<i64: 1, 1024>}, {pipeline_mode = #tpu.pipeline_mode<synchronous>, transform_indices = @transform_9, window_bounds = array<i64: 1024, 512>}, {pipeline_mode = #tpu.pipeline_mode<synchronous>, transform_indices = @transform_10, window_bounds = array<i64: 1, 512>}, {pipeline_mode = #tpu.pipeline_mode<synchronous>, transform_indices = @transform_11, window_bounds = array<i64: 512, 256>}, {pipeline_mode = #tpu.pipeline_mode<synchronous>, transform_indices = @transform_12, window_bounds = array<i64: 1, 256>}, {pipeline_mode = #tpu.pipeline_mode<synchronous>, transform_indices = @transform_13, window_bounds = array<i64: 256, 64>}, {pipeline_mode = #tpu.pipeline_mode<synchronous>, transform_indices = @transform_14, window_bounds = array<i64: 1, 64>}, {pipeline_mode = #tpu.pipeline_mode<synchronous>, transform_indices = @transform_15, window_bounds = array<i64: 2, 64>}]} {
    %c0 = arith.constant 0 : index
    %c0_0 = arith.constant 0 : index
    %c0_1 = arith.constant 0 : index
    %0 = vector.load %arg1[%c0, %c0_0, %c0_1] : memref<2x40x128xf32, #tpu.memory_space<vmem>>, vector<2x40x128xf32>
    %c0_2 = arith.constant 0 : index
    %c0_3 = arith.constant 0 : index
    %1 = vector.load %arg3[%c0_2, %c0_3] : memref<128x160xbf16, #tpu.memory_space<vmem>>, vector<128x160xbf16>
    %c0_4 = arith.constant 0 : index
    %c0_5 = arith.constant 0 : index
    %c0_6 = arith.constant 0 : index
    %2 = vector.load %arg4[%c0_4, %c0_5, %c0_6] : memref<1x1x32xf32, #tpu.memory_space<vmem>>, vector<1x1x32xf32>
    %cst = arith.constant 0.000000e+00 : f32
    %3 = vector.broadcast %cst : f32 to vector<2x2x128xf32>
    %cst_7 = arith.constant 0.000000e+00 : f32
    %4 = vector.broadcast %cst_7 : f32 to vector<2x2x128xf32>
    %5 = tpu.concatenate %3, %0, %4 in 1 : vector<2x2x128xf32>, vector<2x40x128xf32>, vector<2x2x128xf32> -> vector<2x44x128xf32>
    %6 = vector.shape_cast %5 : vector<2x44x128xf32> to vector<88x128xf32>
    %7 = arith.truncf %6 : vector<88x128xf32> to vector<88x128xbf16>
    %cst_8 = arith.constant dense<0.000000e+00> : vector<88x160xf32>
    %8 = tpu.matmul %7, %1, %cst_8 {dimension_numbers = #tpu.dot_dimension_numbers<[1], [0], [0], [1], [0, 0, 1, 1], [], []>} : vector<88x128xbf16>, vector<128x160xbf16>, vector<88x160xf32> -> vector<88x160xf32>
    %9 = vector.shape_cast %8 : vector<88x160xf32> to vector<2x44x160xf32>
    %10 = vector.extract_strided_slice %9 {offsets = [0, 0, 0], sizes = [2, 40, 32], strides = [1, 1, 1]} : vector<2x44x160xf32> to vector<2x40x32xf32>
    %11 = vector.extract_strided_slice %9 {offsets = [0, 1, 32], sizes = [2, 40, 32], strides = [1, 1, 1]} : vector<2x44x160xf32> to vector<2x40x32xf32>
    %12 = arith.addf %10, %11 : vector<2x40x32xf32>
    %13 = vector.extract_strided_slice %9 {offsets = [0, 2, 64], sizes = [2, 40, 32], strides = [1, 1, 1]} : vector<2x44x160xf32> to vector<2x40x32xf32>
    %14 = arith.addf %12, %13 : vector<2x40x32xf32>
    %15 = vector.extract_strided_slice %9 {offsets = [0, 3, 96], sizes = [2, 40, 32], strides = [1, 1, 1]} : vector<2x44x160xf32> to vector<2x40x32xf32>
    %16 = arith.addf %14, %15 : vector<2x40x32xf32>
    %17 = vector.extract_strided_slice %9 {offsets = [0, 4, 128], sizes = [2, 40, 32], strides = [1, 1, 1]} : vector<2x44x160xf32> to vector<2x40x32xf32>
    %18 = arith.addf %16, %17 : vector<2x40x32xf32>
    %19 = vector.broadcast %2 : vector<1x1x32xf32> to vector<2x40x32xf32>
    %20 = arith.addf %18, %19 : vector<2x40x32xf32>
    %21 = math.absf %20 : vector<2x40x32xf32>
    %cst_9 = arith.constant 0.000000e+00 : f32
    %22 = vector.broadcast %cst_9 : f32 to vector<2x40x32xf32>
    %23 = arith.subf %22, %21 : vector<2x40x32xf32>
    %24 = math.exp %23 : vector<2x40x32xf32>
    %cst_10 = arith.constant 1.000000e+00 : f32
    %25 = vector.broadcast %cst_10 : f32 to vector<2x40x32xf32>
    %26 = arith.addf %25, %24 : vector<2x40x32xf32>
    %cst_11 = arith.constant 1.000000e+00 : f32
    %27 = vector.broadcast %cst_11 : f32 to vector<2x40x32xf32>
    %28 = arith.addf %27, %24 : vector<2x40x32xf32>
    %29 = arith.mulf %26, %28 : vector<2x40x32xf32>
    %cst_12 = arith.constant 0.000000e+00 : f32
    %30 = vector.broadcast %cst_12 : f32 to vector<2x40x32xf32>
    %31 = arith.cmpf oge, %20, %30 : vector<2x40x32xf32>
    %32 = arith.mulf %24, %24 : vector<2x40x32xf32>
    %cst_13 = arith.constant 1.000000e+00 : f32
    %33 = vector.broadcast %cst_13 : f32 to vector<2x40x32xf32>
    %34 = arith.select %31, %32, %33 : vector<2x40x32xi1>, vector<2x40x32xf32>
    %35 = arith.subf %29, %34 : vector<2x40x32xf32>
    %36 = arith.mulf %20, %35 : vector<2x40x32xf32>
    %37 = arith.addf %29, %34 : vector<2x40x32xf32>
    %38 = tpu.reciprocal %37 {approx = true} : vector<2x40x32xf32> -> vector<2x40x32xf32>
    %39 = arith.mulf %36, %38 : vector<2x40x32xf32>
    %40 = vector.extract_strided_slice %39 {offsets = [0, 0, 0], sizes = [2, 4, 32], strides = [1, 1, 1]} : vector<2x40x32xf32> to vector<2x4x32xf32>
    %cst_14 = arith.constant dense<0xFF800000> : vector<2x32xf32>
    %41 = vector.multi_reduction <maximumf>, %40, %cst_14 [1] : vector<2x4x32xf32> to vector<2x32xf32>
    %42 = vector.extract_strided_slice %39 {offsets = [0, 4, 0], sizes = [2, 4, 32], strides = [1, 1, 1]} : vector<2x40x32xf32> to vector<2x4x32xf32>
    %cst_15 = arith.constant dense<0xFF800000> : vector<2x32xf32>
    %43 = vector.multi_reduction <maximumf>, %42, %cst_15 [1] : vector<2x4x32xf32> to vector<2x32xf32>
    %44 = vector.extract_strided_slice %39 {offsets = [0, 8, 0], sizes = [2, 4, 32], strides = [1, 1, 1]} : vector<2x40x32xf32> to vector<2x4x32xf32>
    %cst_16 = arith.constant dense<0xFF800000> : vector<2x32xf32>
    %45 = vector.multi_reduction <maximumf>, %44, %cst_16 [1] : vector<2x4x32xf32> to vector<2x32xf32>
    %46 = vector.extract_strided_slice %39 {offsets = [0, 12, 0], sizes = [2, 4, 32], strides = [1, 1, 1]} : vector<2x40x32xf32> to vector<2x4x32xf32>
    %cst_17 = arith.constant dense<0xFF800000> : vector<2x32xf32>
    %47 = vector.multi_reduction <maximumf>, %46, %cst_17 [1] : vector<2x4x32xf32> to vector<2x32xf32>
    %48 = vector.extract_strided_slice %39 {offsets = [0, 16, 0], sizes = [2, 4, 32], strides = [1, 1, 1]} : vector<2x40x32xf32> to vector<2x4x32xf32>
    %cst_18 = arith.constant dense<0xFF800000> : vector<2x32xf32>
    %49 = vector.multi_reduction <maximumf>, %48, %cst_18 [1] : vector<2x4x32xf32> to vector<2x32xf32>
    %50 = vector.extract_strided_slice %39 {offsets = [0, 20, 0], sizes = [2, 4, 32], strides = [1, 1, 1]} : vector<2x40x32xf32> to vector<2x4x32xf32>
    %cst_19 = arith.constant dense<0xFF800000> : vector<2x32xf32>
    %51 = vector.multi_reduction <maximumf>, %50, %cst_19 [1] : vector<2x4x32xf32> to vector<2x32xf32>
    %52 = vector.extract_strided_slice %39 {offsets = [0, 24, 0], sizes = [2, 4, 32], strides = [1, 1, 1]} : vector<2x40x32xf32> to vector<2x4x32xf32>
    %cst_20 = arith.constant dense<0xFF800000> : vector<2x32xf32>
    %53 = vector.multi_reduction <maximumf>, %52, %cst_20 [1] : vector<2x4x32xf32> to vector<2x32xf32>
    %54 = vector.extract_strided_slice %39 {offsets = [0, 28, 0], sizes = [2, 4, 32], strides = [1, 1, 1]} : vector<2x40x32xf32> to vector<2x4x32xf32>
    %cst_21 = arith.constant dense<0xFF800000> : vector<2x32xf32>
    %55 = vector.multi_reduction <maximumf>, %54, %cst_21 [1] : vector<2x4x32xf32> to vector<2x32xf32>
    %56 = vector.extract_strided_slice %39 {offsets = [0, 32, 0], sizes = [2, 4, 32], strides = [1, 1, 1]} : vector<2x40x32xf32> to vector<2x4x32xf32>
    %cst_22 = arith.constant dense<0xFF800000> : vector<2x32xf32>
    %57 = vector.multi_reduction <maximumf>, %56, %cst_22 [1] : vector<2x4x32xf32> to vector<2x32xf32>
    %58 = vector.extract_strided_slice %39 {offsets = [0, 36, 0], sizes = [2, 4, 32], strides = [1, 1, 1]} : vector<2x40x32xf32> to vector<2x4x32xf32>
    %cst_23 = arith.constant dense<0xFF800000> : vector<2x32xf32>
    %59 = vector.multi_reduction <maximumf>, %58, %cst_23 [1] : vector<2x4x32xf32> to vector<2x32xf32>
    %60 = tpu.concatenate %41, %43, %45, %47, %49, %51, %53, %55, %57, %59 in 1 : vector<2x32xf32>, vector<2x32xf32>, vector<2x32xf32>, vector<2x32xf32>, vector<2x32xf32>, vector<2x32xf32>, vector<2x32xf32>, vector<2x32xf32>, vector<2x32xf32>, vector<2x32xf32> -> vector<2x320xf32>
    %c0_24 = arith.constant 0 : index
    %c0_25 = arith.constant 0 : index
    %c0_26 = arith.constant 0 : index
    %61 = vector.load %arg2[%c0_24, %c0_25, %c0_26] : memref<2x50x256xf32, #tpu.memory_space<vmem>>, vector<2x50x256xf32>
    %c0_27 = arith.constant 0 : index
    %c0_28 = arith.constant 0 : index
    %62 = vector.load %arg5[%c0_27, %c0_28] : memref<256x160xbf16, #tpu.memory_space<vmem>>, vector<256x160xbf16>
    %c0_29 = arith.constant 0 : index
    %c0_30 = arith.constant 0 : index
    %c0_31 = arith.constant 0 : index
    %63 = vector.load %arg6[%c0_29, %c0_30, %c0_31] : memref<1x1x32xf32, #tpu.memory_space<vmem>>, vector<1x1x32xf32>
    %cst_32 = arith.constant 0.000000e+00 : f32
    %64 = vector.broadcast %cst_32 : f32 to vector<2x2x256xf32>
    %cst_33 = arith.constant 0.000000e+00 : f32
    %65 = vector.broadcast %cst_33 : f32 to vector<2x2x256xf32>
    %66 = tpu.concatenate %64, %61, %65 in 1 : vector<2x2x256xf32>, vector<2x50x256xf32>, vector<2x2x256xf32> -> vector<2x54x256xf32>
    %67 = vector.shape_cast %66 : vector<2x54x256xf32> to vector<108x256xf32>
    %68 = arith.truncf %67 : vector<108x256xf32> to vector<108x256xbf16>
    %cst_34 = arith.constant dense<0.000000e+00> : vector<108x160xf32>
    %69 = tpu.matmul %68, %62, %cst_34 {dimension_numbers = #tpu.dot_dimension_numbers<[1], [0], [0], [1], [0, 0, 1, 1], [], []>} : vector<108x256xbf16>, vector<256x160xbf16>, vector<108x160xf32> -> vector<108x160xf32>
    %70 = vector.shape_cast %69 : vector<108x160xf32> to vector<2x54x160xf32>
    %71 = vector.extract_strided_slice %70 {offsets = [0, 0, 0], sizes = [2, 50, 32], strides = [1, 1, 1]} : vector<2x54x160xf32> to vector<2x50x32xf32>
    %72 = vector.extract_strided_slice %70 {offsets = [0, 1, 32], sizes = [2, 50, 32], strides = [1, 1, 1]} : vector<2x54x160xf32> to vector<2x50x32xf32>
    %73 = arith.addf %71, %72 : vector<2x50x32xf32>
    %74 = vector.extract_strided_slice %70 {offsets = [0, 2, 64], sizes = [2, 50, 32], strides = [1, 1, 1]} : vector<2x54x160xf32> to vector<2x50x32xf32>
    %75 = arith.addf %73, %74 : vector<2x50x32xf32>
    %76 = vector.extract_strided_slice %70 {offsets = [0, 3, 96], sizes = [2, 50, 32], strides = [1, 1, 1]} : vector<2x54x160xf32> to vector<2x50x32xf32>
    %77 = arith.addf %75, %76 : vector<2x50x32xf32>
    %78 = vector.extract_strided_slice %70 {offsets = [0, 4, 128], sizes = [2, 50, 32], strides = [1, 1, 1]} : vector<2x54x160xf32> to vector<2x50x32xf32>
    %79 = arith.addf %77, %78 : vector<2x50x32xf32>
    %80 = vector.broadcast %63 : vector<1x1x32xf32> to vector<2x50x32xf32>
    %81 = arith.addf %79, %80 : vector<2x50x32xf32>
    %82 = math.absf %81 : vector<2x50x32xf32>
    %cst_35 = arith.constant 0.000000e+00 : f32
    %83 = vector.broadcast %cst_35 : f32 to vector<2x50x32xf32>
    %84 = arith.subf %83, %82 : vector<2x50x32xf32>
    %85 = math.exp %84 : vector<2x50x32xf32>
    %cst_36 = arith.constant 1.000000e+00 : f32
    %86 = vector.broadcast %cst_36 : f32 to vector<2x50x32xf32>
    %87 = arith.addf %86, %85 : vector<2x50x32xf32>
    %cst_37 = arith.constant 1.000000e+00 : f32
    %88 = vector.broadcast %cst_37 : f32 to vector<2x50x32xf32>
    %89 = arith.addf %88, %85 : vector<2x50x32xf32>
    %90 = arith.mulf %87, %89 : vector<2x50x32xf32>
    %cst_38 = arith.constant 0.000000e+00 : f32
    %91 = vector.broadcast %cst_38 : f32 to vector<2x50x32xf32>
    %92 = arith.cmpf oge, %81, %91 : vector<2x50x32xf32>
    %93 = arith.mulf %85, %85 : vector<2x50x32xf32>
    %cst_39 = arith.constant 1.000000e+00 : f32
    %94 = vector.broadcast %cst_39 : f32 to vector<2x50x32xf32>
    %95 = arith.select %92, %93, %94 : vector<2x50x32xi1>, vector<2x50x32xf32>
    %96 = arith.subf %90, %95 : vector<2x50x32xf32>
    %97 = arith.mulf %81, %96 : vector<2x50x32xf32>
    %98 = arith.addf %90, %95 : vector<2x50x32xf32>
    %99 = tpu.reciprocal %98 {approx = true} : vector<2x50x32xf32> -> vector<2x50x32xf32>
    %100 = arith.mulf %97, %99 : vector<2x50x32xf32>
    %101 = vector.extract_strided_slice %100 {offsets = [0, 0, 0], sizes = [2, 5, 32], strides = [1, 1, 1]} : vector<2x50x32xf32> to vector<2x5x32xf32>
    %cst_40 = arith.constant dense<0xFF800000> : vector<2x32xf32>
    %102 = vector.multi_reduction <maximumf>, %101, %cst_40 [1] : vector<2x5x32xf32> to vector<2x32xf32>
    %103 = vector.extract_strided_slice %100 {offsets = [0, 5, 0], sizes = [2, 5, 32], strides = [1, 1, 1]} : vector<2x50x32xf32> to vector<2x5x32xf32>
    %cst_41 = arith.constant dense<0xFF800000> : vector<2x32xf32>
    %104 = vector.multi_reduction <maximumf>, %103, %cst_41 [1] : vector<2x5x32xf32> to vector<2x32xf32>
    %105 = vector.extract_strided_slice %100 {offsets = [0, 10, 0], sizes = [2, 5, 32], strides = [1, 1, 1]} : vector<2x50x32xf32> to vector<2x5x32xf32>
    %cst_42 = arith.constant dense<0xFF800000> : vector<2x32xf32>
    %106 = vector.multi_reduction <maximumf>, %105, %cst_42 [1] : vector<2x5x32xf32> to vector<2x32xf32>
    %107 = vector.extract_strided_slice %100 {offsets = [0, 15, 0], sizes = [2, 5, 32], strides = [1, 1, 1]} : vector<2x50x32xf32> to vector<2x5x32xf32>
    %cst_43 = arith.constant dense<0xFF800000> : vector<2x32xf32>
    %108 = vector.multi_reduction <maximumf>, %107, %cst_43 [1] : vector<2x5x32xf32> to vector<2x32xf32>
    %109 = vector.extract_strided_slice %100 {offsets = [0, 20, 0], sizes = [2, 5, 32], strides = [1, 1, 1]} : vector<2x50x32xf32> to vector<2x5x32xf32>
    %cst_44 = arith.constant dense<0xFF800000> : vector<2x32xf32>
    %110 = vector.multi_reduction <maximumf>, %109, %cst_44 [1] : vector<2x5x32xf32> to vector<2x32xf32>
    %111 = vector.extract_strided_slice %100 {offsets = [0, 25, 0], sizes = [2, 5, 32], strides = [1, 1, 1]} : vector<2x50x32xf32> to vector<2x5x32xf32>
    %cst_45 = arith.constant dense<0xFF800000> : vector<2x32xf32>
    %112 = vector.multi_reduction <maximumf>, %111, %cst_45 [1] : vector<2x5x32xf32> to vector<2x32xf32>
    %113 = vector.extract_strided_slice %100 {offsets = [0, 30, 0], sizes = [2, 5, 32], strides = [1, 1, 1]} : vector<2x50x32xf32> to vector<2x5x32xf32>
    %cst_46 = arith.constant dense<0xFF800000> : vector<2x32xf32>
    %114 = vector.multi_reduction <maximumf>, %113, %cst_46 [1] : vector<2x5x32xf32> to vector<2x32xf32>
    %115 = vector.extract_strided_slice %100 {offsets = [0, 35, 0], sizes = [2, 5, 32], strides = [1, 1, 1]} : vector<2x50x32xf32> to vector<2x5x32xf32>
    %cst_47 = arith.constant dense<0xFF800000> : vector<2x32xf32>
    %116 = vector.multi_reduction <maximumf>, %115, %cst_47 [1] : vector<2x5x32xf32> to vector<2x32xf32>
    %117 = vector.extract_strided_slice %100 {offsets = [0, 40, 0], sizes = [2, 5, 32], strides = [1, 1, 1]} : vector<2x50x32xf32> to vector<2x5x32xf32>
    %cst_48 = arith.constant dense<0xFF800000> : vector<2x32xf32>
    %118 = vector.multi_reduction <maximumf>, %117, %cst_48 [1] : vector<2x5x32xf32> to vector<2x32xf32>
    %119 = vector.extract_strided_slice %100 {offsets = [0, 45, 0], sizes = [2, 5, 32], strides = [1, 1, 1]} : vector<2x50x32xf32> to vector<2x5x32xf32>
    %cst_49 = arith.constant dense<0xFF800000> : vector<2x32xf32>
    %120 = vector.multi_reduction <maximumf>, %119, %cst_49 [1] : vector<2x5x32xf32> to vector<2x32xf32>
    %121 = tpu.concatenate %102, %104, %106, %108, %110, %112, %114, %116, %118, %120 in 1 : vector<2x32xf32>, vector<2x32xf32>, vector<2x32xf32>, vector<2x32xf32>, vector<2x32xf32>, vector<2x32xf32>, vector<2x32xf32>, vector<2x32xf32>, vector<2x32xf32>, vector<2x32xf32> -> vector<2x320xf32>
    %122 = arith.truncf %60 : vector<2x320xf32> to vector<2x320xbf16>
    %c0_50 = arith.constant 0 : index
    %c0_51 = arith.constant 0 : index
    %123 = vector.load %arg7[%c0_50, %c0_51] : memref<320x1024xbf16, #tpu.memory_space<vmem>>, vector<320x1024xbf16>
    %cst_52 = arith.constant dense<0.000000e+00> : vector<2x1024xf32>
    %124 = tpu.matmul %122, %123, %cst_52 {dimension_numbers = #tpu.dot_dimension_numbers<[1], [0], [0], [1], [0, 0, 1, 1], [], []>} : vector<2x320xbf16>, vector<320x1024xbf16>, vector<2x1024xf32> -> vector<2x1024xf32>
    %125 = arith.truncf %121 : vector<2x320xf32> to vector<2x320xbf16>
    %c0_53 = arith.constant 0 : index
    %c0_54 = arith.constant 0 : index
    %126 = vector.load %arg8[%c0_53, %c0_54] : memref<320x1024xbf16, #tpu.memory_space<vmem>>, vector<320x1024xbf16>
    %cst_55 = arith.constant dense<0.000000e+00> : vector<2x1024xf32>
    %127 = tpu.matmul %125, %126, %cst_55 {dimension_numbers = #tpu.dot_dimension_numbers<[1], [0], [0], [1], [0, 0, 1, 1], [], []>} : vector<2x320xbf16>, vector<320x1024xbf16>, vector<2x1024xf32> -> vector<2x1024xf32>
    %128 = arith.addf %124, %127 : vector<2x1024xf32>
    %c0_56 = arith.constant 0 : index
    %c0_57 = arith.constant 0 : index
    %129 = vector.load %arg9[%c0_56, %c0_57] : memref<1x1024xf32, #tpu.memory_space<vmem>>, vector<1x1024xf32>
    %130 = vector.broadcast %129 : vector<1x1024xf32> to vector<2x1024xf32>
    %131 = arith.addf %128, %130 : vector<2x1024xf32>
    %132 = math.absf %131 : vector<2x1024xf32>
    %cst_58 = arith.constant 0.000000e+00 : f32
    %133 = vector.broadcast %cst_58 : f32 to vector<2x1024xf32>
    %134 = arith.subf %133, %132 : vector<2x1024xf32>
    %135 = math.exp %134 : vector<2x1024xf32>
    %cst_59 = arith.constant 1.000000e+00 : f32
    %136 = vector.broadcast %cst_59 : f32 to vector<2x1024xf32>
    %137 = arith.addf %136, %135 : vector<2x1024xf32>
    %cst_60 = arith.constant 1.000000e+00 : f32
    %138 = vector.broadcast %cst_60 : f32 to vector<2x1024xf32>
    %139 = arith.addf %138, %135 : vector<2x1024xf32>
    %140 = arith.mulf %137, %139 : vector<2x1024xf32>
    %cst_61 = arith.constant 0.000000e+00 : f32
    %141 = vector.broadcast %cst_61 : f32 to vector<2x1024xf32>
    %142 = arith.cmpf oge, %131, %141 : vector<2x1024xf32>
    %143 = arith.mulf %135, %135 : vector<2x1024xf32>
    %cst_62 = arith.constant 1.000000e+00 : f32
    %144 = vector.broadcast %cst_62 : f32 to vector<2x1024xf32>
    %145 = arith.select %142, %143, %144 : vector<2x1024xi1>, vector<2x1024xf32>
    %146 = arith.subf %140, %145 : vector<2x1024xf32>
    %147 = arith.mulf %131, %146 : vector<2x1024xf32>
    %148 = arith.addf %140, %145 : vector<2x1024xf32>
    %149 = tpu.reciprocal %148 {approx = true} : vector<2x1024xf32> -> vector<2x1024xf32>
    %150 = arith.mulf %147, %149 : vector<2x1024xf32>
    %151 = arith.truncf %150 : vector<2x1024xf32> to vector<2x1024xbf16>
    %c0_63 = arith.constant 0 : index
    %c0_64 = arith.constant 0 : index
    %152 = vector.load %arg10[%c0_63, %c0_64] : memref<1024x512xbf16, #tpu.memory_space<vmem>>, vector<1024x512xbf16>
    %cst_65 = arith.constant dense<0.000000e+00> : vector<2x512xf32>
    %153 = tpu.matmul %151, %152, %cst_65 {dimension_numbers = #tpu.dot_dimension_numbers<[1], [0], [0], [1], [0, 0, 1, 1], [], []>} : vector<2x1024xbf16>, vector<1024x512xbf16>, vector<2x512xf32> -> vector<2x512xf32>
    %c0_66 = arith.constant 0 : index
    %c0_67 = arith.constant 0 : index
    %154 = vector.load %arg11[%c0_66, %c0_67] : memref<1x512xf32, #tpu.memory_space<vmem>>, vector<1x512xf32>
    %155 = vector.broadcast %154 : vector<1x512xf32> to vector<2x512xf32>
    %156 = arith.addf %153, %155 : vector<2x512xf32>
    %157 = math.absf %156 : vector<2x512xf32>
    %cst_68 = arith.constant 0.000000e+00 : f32
    %158 = vector.broadcast %cst_68 : f32 to vector<2x512xf32>
    %159 = arith.subf %158, %157 : vector<2x512xf32>
    %160 = math.exp %159 : vector<2x512xf32>
    %cst_69 = arith.constant 1.000000e+00 : f32
    %161 = vector.broadcast %cst_69 : f32 to vector<2x512xf32>
    %162 = arith.addf %161, %160 : vector<2x512xf32>
    %cst_70 = arith.constant 1.000000e+00 : f32
    %163 = vector.broadcast %cst_70 : f32 to vector<2x512xf32>
    %164 = arith.addf %163, %160 : vector<2x512xf32>
    %165 = arith.mulf %162, %164 : vector<2x512xf32>
    %cst_71 = arith.constant 0.000000e+00 : f32
    %166 = vector.broadcast %cst_71 : f32 to vector<2x512xf32>
    %167 = arith.cmpf oge, %156, %166 : vector<2x512xf32>
    %168 = arith.mulf %160, %160 : vector<2x512xf32>
    %cst_72 = arith.constant 1.000000e+00 : f32
    %169 = vector.broadcast %cst_72 : f32 to vector<2x512xf32>
    %170 = arith.select %167, %168, %169 : vector<2x512xi1>, vector<2x512xf32>
    %171 = arith.subf %165, %170 : vector<2x512xf32>
    %172 = arith.mulf %156, %171 : vector<2x512xf32>
    %173 = arith.addf %165, %170 : vector<2x512xf32>
    %174 = tpu.reciprocal %173 {approx = true} : vector<2x512xf32> -> vector<2x512xf32>
    %175 = arith.mulf %172, %174 : vector<2x512xf32>
    %176 = arith.truncf %175 : vector<2x512xf32> to vector<2x512xbf16>
    %c0_73 = arith.constant 0 : index
    %c0_74 = arith.constant 0 : index
    %177 = vector.load %arg12[%c0_73, %c0_74] : memref<512x256xbf16, #tpu.memory_space<vmem>>, vector<512x256xbf16>
    %cst_75 = arith.constant dense<0.000000e+00> : vector<2x256xf32>
    %178 = tpu.matmul %176, %177, %cst_75 {dimension_numbers = #tpu.dot_dimension_numbers<[1], [0], [0], [1], [0, 0, 1, 1], [], []>} : vector<2x512xbf16>, vector<512x256xbf16>, vector<2x256xf32> -> vector<2x256xf32>
    %c0_76 = arith.constant 0 : index
    %c0_77 = arith.constant 0 : index
    %179 = vector.load %arg13[%c0_76, %c0_77] : memref<1x256xf32, #tpu.memory_space<vmem>>, vector<1x256xf32>
    %180 = vector.broadcast %179 : vector<1x256xf32> to vector<2x256xf32>
    %181 = arith.addf %178, %180 : vector<2x256xf32>
    %182 = math.absf %181 : vector<2x256xf32>
    %cst_78 = arith.constant 0.000000e+00 : f32
    %183 = vector.broadcast %cst_78 : f32 to vector<2x256xf32>
    %184 = arith.subf %183, %182 : vector<2x256xf32>
    %185 = math.exp %184 : vector<2x256xf32>
    %cst_79 = arith.constant 1.000000e+00 : f32
    %186 = vector.broadcast %cst_79 : f32 to vector<2x256xf32>
    %187 = arith.addf %186, %185 : vector<2x256xf32>
    %cst_80 = arith.constant 1.000000e+00 : f32
    %188 = vector.broadcast %cst_80 : f32 to vector<2x256xf32>
    %189 = arith.addf %188, %185 : vector<2x256xf32>
    %190 = arith.mulf %187, %189 : vector<2x256xf32>
    %cst_81 = arith.constant 0.000000e+00 : f32
    %191 = vector.broadcast %cst_81 : f32 to vector<2x256xf32>
    %192 = arith.cmpf oge, %181, %191 : vector<2x256xf32>
    %193 = arith.mulf %185, %185 : vector<2x256xf32>
    %cst_82 = arith.constant 1.000000e+00 : f32
    %194 = vector.broadcast %cst_82 : f32 to vector<2x256xf32>
    %195 = arith.select %192, %193, %194 : vector<2x256xi1>, vector<2x256xf32>
    %196 = arith.subf %190, %195 : vector<2x256xf32>
    %197 = arith.mulf %181, %196 : vector<2x256xf32>
    %198 = arith.addf %190, %195 : vector<2x256xf32>
    %199 = tpu.reciprocal %198 {approx = true} : vector<2x256xf32> -> vector<2x256xf32>
    %200 = arith.mulf %197, %199 : vector<2x256xf32>
    %201 = arith.truncf %200 : vector<2x256xf32> to vector<2x256xbf16>
    %c0_83 = arith.constant 0 : index
    %c0_84 = arith.constant 0 : index
    %202 = vector.load %arg14[%c0_83, %c0_84] : memref<256x64xbf16, #tpu.memory_space<vmem>>, vector<256x64xbf16>
    %cst_85 = arith.constant dense<0.000000e+00> : vector<2x64xf32>
    %203 = tpu.matmul %201, %202, %cst_85 {dimension_numbers = #tpu.dot_dimension_numbers<[1], [0], [0], [1], [0, 0, 1, 1], [], []>} : vector<2x256xbf16>, vector<256x64xbf16>, vector<2x64xf32> -> vector<2x64xf32>
    %c0_86 = arith.constant 0 : index
    %c0_87 = arith.constant 0 : index
    %204 = vector.load %arg15[%c0_86, %c0_87] : memref<1x64xf32, #tpu.memory_space<vmem>>, vector<1x64xf32>
    %205 = vector.broadcast %204 : vector<1x64xf32> to vector<2x64xf32>
    %206 = arith.addf %203, %205 : vector<2x64xf32>
    %207 = math.absf %206 : vector<2x64xf32>
    %cst_88 = arith.constant 0.000000e+00 : f32
    %208 = vector.broadcast %cst_88 : f32 to vector<2x64xf32>
    %209 = arith.subf %208, %207 : vector<2x64xf32>
    %210 = math.exp %209 : vector<2x64xf32>
    %cst_89 = arith.constant 1.000000e+00 : f32
    %211 = vector.broadcast %cst_89 : f32 to vector<2x64xf32>
    %212 = arith.addf %211, %210 : vector<2x64xf32>
    %cst_90 = arith.constant 1.000000e+00 : f32
    %213 = vector.broadcast %cst_90 : f32 to vector<2x64xf32>
    %214 = arith.addf %213, %210 : vector<2x64xf32>
    %215 = arith.mulf %212, %214 : vector<2x64xf32>
    %cst_91 = arith.constant 0.000000e+00 : f32
    %216 = vector.broadcast %cst_91 : f32 to vector<2x64xf32>
    %217 = arith.cmpf oge, %206, %216 : vector<2x64xf32>
    %218 = arith.mulf %210, %210 : vector<2x64xf32>
    %cst_92 = arith.constant 1.000000e+00 : f32
    %219 = vector.broadcast %cst_92 : f32 to vector<2x64xf32>
    %220 = arith.select %217, %218, %219 : vector<2x64xi1>, vector<2x64xf32>
    %221 = arith.subf %215, %220 : vector<2x64xf32>
    %222 = arith.mulf %206, %221 : vector<2x64xf32>
    %223 = arith.addf %215, %220 : vector<2x64xf32>
    %224 = tpu.reciprocal %223 {approx = true} : vector<2x64xf32> -> vector<2x64xf32>
    %225 = arith.mulf %222, %224 : vector<2x64xf32>
    %c0_93 = arith.constant 0 : index
    %c0_94 = arith.constant 0 : index
    %226 = vector.load %arg16[%c0_93, %c0_94] : memref<2x64xf32, #tpu.memory_space<vmem>>, vector<2x64xf32>
    tpu.vector_store %arg16[%c0_93, %c0_94], %225 {strides = array<i32>} : memref<2x64xf32, #tpu.memory_space<vmem>>, vector<2x64xf32>,
    return
  }
  func.func @transform_0(%arg0: i32) -> (i32, i32, i32) {
    %c0_i32 = arith.constant 0 : i32
    %c0_i32_0 = arith.constant 0 : i32
    %c0_i32_1 = arith.constant 0 : i32
    %c0_i32_2 = arith.constant 0 : i32
    return %c0_i32, %c0_i32_0, %c0_i32_1 : i32, i32, i32
  }
  func.func @transform_1(%arg0: i32) -> (i32, i32, i32) {
    %c0_i32 = arith.constant 0 : i32
    %c0_i32_0 = arith.constant 0 : i32
    %c0_i32_1 = arith.constant 0 : i32
    %c0_i32_2 = arith.constant 0 : i32
    return %c0_i32, %c0_i32_0, %c0_i32_1 : i32, i32, i32
  }
  func.func @transform_2(%arg0: i32) -> (i32, i32) {
    %c0_i32 = arith.constant 0 : i32
    %c0_i32_0 = arith.constant 0 : i32
    %c0_i32_1 = arith.constant 0 : i32
    return %c0_i32, %c0_i32_0 : i32, i32
  }
  func.func @transform_3(%arg0: i32) -> (i32, i32, i32) {
    %c0_i32 = arith.constant 0 : i32
    %c0_i32_0 = arith.constant 0 : i32
    %c0_i32_1 = arith.constant 0 : i32
    %c0_i32_2 = arith.constant 0 : i32
    return %c0_i32, %c0_i32_0, %c0_i32_1 : i32, i32, i32
  }
  func.func @transform_4(%arg0: i32) -> (i32, i32) {
    %c0_i32 = arith.constant 0 : i32
    %c0_i32_0 = arith.constant 0 : i32
    %c0_i32_1 = arith.constant 0 : i32
    return %c0_i32, %c0_i32_0 : i32, i32
  }
  func.func @transform_5(%arg0: i32) -> (i32, i32, i32) {
    %c0_i32 = arith.constant 0 : i32
    %c0_i32_0 = arith.constant 0 : i32
    %c0_i32_1 = arith.constant 0 : i32
    %c0_i32_2 = arith.constant 0 : i32
    return %c0_i32, %c0_i32_0, %c0_i32_1 : i32, i32, i32
  }
  func.func @transform_6(%arg0: i32) -> (i32, i32) {
    %c0_i32 = arith.constant 0 : i32
    %c0_i32_0 = arith.constant 0 : i32
    %c0_i32_1 = arith.constant 0 : i32
    return %c0_i32, %c0_i32_0 : i32, i32
  }
  func.func @transform_7(%arg0: i32) -> (i32, i32) {
    %c0_i32 = arith.constant 0 : i32
    %c0_i32_0 = arith.constant 0 : i32
    %c0_i32_1 = arith.constant 0 : i32
    return %c0_i32, %c0_i32_0 : i32, i32
  }
  func.func @transform_8(%arg0: i32) -> (i32, i32) {
    %c0_i32 = arith.constant 0 : i32
    %c0_i32_0 = arith.constant 0 : i32
    %c0_i32_1 = arith.constant 0 : i32
    return %c0_i32, %c0_i32_0 : i32, i32
  }
  func.func @transform_9(%arg0: i32) -> (i32, i32) {
    %c0_i32 = arith.constant 0 : i32
    %c0_i32_0 = arith.constant 0 : i32
    %c0_i32_1 = arith.constant 0 : i32
    return %c0_i32, %c0_i32_0 : i32, i32
  }
  func.func @transform_10(%arg0: i32) -> (i32, i32) {
    %c0_i32 = arith.constant 0 : i32
    %c0_i32_0 = arith.constant 0 : i32
    %c0_i32_1 = arith.constant 0 : i32
    return %c0_i32, %c0_i32_0 : i32, i32
  }
  func.func @transform_11(%arg0: i32) -> (i32, i32) {
    %c0_i32 = arith.constant 0 : i32
    %c0_i32_0 = arith.constant 0 : i32
    %c0_i32_1 = arith.constant 0 : i32
    return %c0_i32, %c0_i32_0 : i32, i32
  }
  func.func @transform_12(%arg0: i32) -> (i32, i32) {
    %c0_i32 = arith.constant 0 : i32
    %c0_i32_0 = arith.constant 0 : i32
    %c0_i32_1 = arith.constant 0 : i32
    return %c0_i32, %c0_i32_0 : i32, i32
  }
  func.func @transform_13(%arg0: i32) -> (i32, i32) {
    %c0_i32 = arith.constant 0 : i32
    %c0_i32_0 = arith.constant 0 : i32
    %c0_i32_1 = arith.constant 0 : i32
    return %c0_i32, %c0_i32_0 : i32, i32
  }
  func.func @transform_14(%arg0: i32) -> (i32, i32) {
    %c0_i32 = arith.constant 0 : i32
    %c0_i32_0 = arith.constant 0 : i32
    %c0_i32_1 = arith.constant 0 : i32
    return %c0_i32, %c0_i32_0 : i32, i32
  }
  func.func @transform_15(%arg0: i32) -> (i32, i32) {
    %c0_i32 = arith.constant 0 : i32
    %c0_i32_0 = arith.constant 0 : i32
    %c0_i32_1 = arith.constant 0 : i32
    return %c0_i32, %c0_i32_0 : i32, i32
  }
}

</mosaic_0001>

<bundles_post_ra>
// kernel: tpu_custom_call.1
= control target key start
LH: loop header
LB: loop body
LE: loop exit
PB: predicated region body
PF: predicated region fallthrough
CT: control target
= control target key end

     0   :  { %20 = vsyncpa [#allocation3], 0  ;;  %s17163_s0 = inlined_call_operand.vmem [shape: f32[2,40,128], index: 0, kind: input, shape index: {}]   ;;  %s17164_s1 = inlined_call_operand.vmem [shape: f32[2,50,256], index: 1, kind: input, shape index: {}]   ;;  %s17165_s2 = inlined_call_operand.vmem [shape: bf16[128,160], index: 2, kind: input, shape index: {}]   ;;  %s17166_s3 = inlined_call_operand.vmem [shape: f32[1,1,32], index: 3, kind: input, shape index: {}]   ;;  %s17167_s4 = inlined_call_operand.vmem [shape: bf16[256,160], index: 4, kind: input, shape index: {}]   ;;  %s17168_s5 = inlined_call_operand.vmem [shape: f32[1,1,32], index: 5, kind: input, shape index: {}]   ;;  %s17169_s6 = inlined_call_operand.hbm [shape: bf16[320,1024], index: 6, kind: input, shape index: {}]   ;;  %s17170_s7 = inlined_call_operand.hbm [shape: bf16[320,1024], index: 7, kind: input, shape index: {}]   ;;  %s17171_s8 = inlined_call_operand.vmem [shape: f32[1,1024], index: 8, kind: input, shape index: {}]   ;;  %s17172_s9 = inlined_call_operand.hbm [shape: bf16[1024,512], index: 9, kind: input, shape index: {}]   ;;  %s17173_s10 = inlined_call_operand.vmem [shape: f32[1,512], index: 10, kind: input, shape index: {}]   ;;  %s17174_s11 = inlined_call_operand.vmem [shape: bf16[512,256], index: 11, kind: input, shape index: {}]   ;;  %s17175_s12 = inlined_call_operand.vmem [shape: f32[1,256], index: 12, kind: input, shape index: {}]   ;;  %s17176_s13 = inlined_call_operand.vmem [shape: bf16[256,64], index: 13, kind: input, shape index: {}]   ;;  %s17177_s14 = inlined_call_operand.vmem [shape: f32[1,64], index: 14, kind: input, shape index: {}]   ;;  %s17178_s15 = inlined_call_operand.hbm [shape: f32[2,64], index: 15, kind: output, shape index: {}]  }
   0x1   :  { %21 = vsyncpa [#allocation6], 0 }
   0x2   :  { %22 = vsyncpa [#allocation4], 0  ;;  %s12211_s18 = smov [#allocation5]   ;;  %s12212_s20 = smov [#allocation2]  }
   0x3   :  { %s52_s19 = sshll.u32 %s12211_s18, 4  ;;  %s40_s21 = sshll.u32 %s12212_s20, 4  ;;  %s53_s19 = int_to_ptr.vmem [resolvable:$true] %s52_s19  ;;  %s41_s21 = int_to_ptr.vmem [resolvable:$true] %s40_s21 }
   0x4   :  { %s12133_s22 = scalar_lea.vmem %s53_s19, 20480  ;;  %p12138_p1 = scmp.lt.s32.totalorder %s53_s19, %s53_s19 }
   0x5   :  { %p12134_p0 = scmp.ne.s32.totalorder %s53_s19, %s12133_s22  ;;  %p12139_p2 = scmp.lt.s32.totalorder %s12133_s22, %s12133_s22 }
   0x7   :  { %p12140_p3 = por %p12139_p2, %p12138_p1 }
   0x9   :  { %p12141_p4 = pnand %p12140_p3, %p12134_p0 }
   0xb   :  { %12144 = shalt.err (!%p12141_p4)
}
   0xc   :  { %s12213_s23 = smov 512   ;;  %s12214_s24 = smov 32  }
   0xd   :  { %58 = dma.hbm_to_vmem [thread:$0]  %s17170_s7, 20480, %s53_s19, [#allocation6], %s12213_s23, %s12213_s23, %s12214_s24  }
   0xe   :  { %s12153_s27 = scalar_lea.vmem %s41_s21, 20480  ;;  %p12158_p6 = scmp.lt.s32.totalorder %s41_s21, %s41_s21 }
   0xf   :  { %p12154_p5 = scmp.ne.s32.totalorder %s41_s21, %s12153_s27  ;;  %p12159_p7 = scmp.lt.s32.totalorder %s12153_s27, %s12153_s27 }
  0x11   :  { %p12160_p8 = por %p12159_p7, %p12158_p6 }
  0x13   :  { %p12161_p9 = pnand %p12160_p8, %p12154_p5 }
  0x15   :  { %12164 = shalt.err (!%p12161_p9)
}
  0x16   :  { %46 = dma.hbm_to_vmem [thread:$0]  %s17169_s6, 20480, %s41_s21, [#allocation3], %s12213_s23, %s12213_s23, %s12214_s24  }
  0x17   :  { %s12215_s30 = smov [#allocation7]  }
  0x18   :  { %s66_s16 = sshll.u32 %s12215_s30, 4  ;;  %s67_s16 = int_to_ptr.vmem [resolvable:$true] %s66_s16 }
  0x19   :  { %s12173_s17 = scalar_lea.vmem %s67_s16, 32768  ;;  %p12178_p11 = scmp.lt.s32.totalorder %s67_s16, %s67_s16 }
  0x1a   :  { %p12174_p10 = scmp.ne.s32.totalorder %s67_s16, %s12173_s17  ;;  %p12179_p12 = scmp.lt.s32.totalorder %s12173_s17, %s12173_s17 }
  0x1c   :  { %p12180_p13 = por %p12179_p12, %p12178_p11 }
  0x1e   :  { %p12181_p0 = pnand %p12180_p13, %p12174_p10 }
  0x20   :  { %12184 = shalt.err (!%p12181_p0)
}
  0x21   :  { %s12216_s7 = smov 256   ;;  %s12217_s18 = smov 16  }
  0x22   :  { %72 = dma.hbm_to_vmem [thread:$0]  %s17172_s9, 32768, %s67_s16, [#allocation6], %s12216_s7, %s12216_s7, %s12217_s18  }
  0x23   :  { %12205 = dma.done.wait [#allocation3], 20480  }
  0x24   :  { %12206 = vsyncadd [#allocation3], 4294946816 }
  0x25   :  { %12207 = dma.done.wait [#allocation6], 53248  }
  0x26   :  { %12208 = vsyncadd [#allocation6], 4294914048  ;;  %v11215_v0 = vld [vmem:[%s17167_s4 + $0x74] ss:$8 sps:$4 sm:$0xff]   ;;  %v11217_v1 = vld [vmem:[%s17167_s4 + $0x70] ss:$8 sps:$4 sm:$0xff]   ;;  %v1613_v12 = vlaneseq }
  0x27   :  { %2303 = vmatprep.subr.bf16.mxu1 %v11215_v0  ;;  %v11218_v2 = vld [vmem:[%s17167_s4 + $0x64] ss:$8 sps:$4 sm:$0xff]   ;;  %v11220_v3 = vld [vmem:[%s17167_s4 + $0x60] ss:$8 sps:$4 sm:$0xff]   ;;  %v11221_v4 = vld [vmem:[%s17167_s4 + $0x54] ss:$8 sps:$4 sm:$0xff]  }
  0x28   :  { %2304 = vmatpush1.bf16.msra.mxu1 %v11217_v1  ;;  %v11223_v5 = vld [vmem:[%s17167_s4 + $0x50] ss:$8 sps:$4 sm:$0xff]   ;;  %v11224_v6 = vld [vmem:[%s17167_s4 + $0x44] ss:$8 sps:$4 sm:$0xff]   ;;  %v11226_v7 = vld [vmem:[%s17167_s4 + $0x40] ss:$8 sps:$4 sm:$0xff]  }
  0x29   :  { %2305 = vmatprep.subr.bf16.mxu1 %v11218_v2  ;;  %v11227_v8 = vld [vmem:[%s17167_s4 + $0x34] ss:$8 sps:$4 sm:$0xff]   ;;  %v11229_v9 = vld [vmem:[%s17167_s4 + $0x30] ss:$8 sps:$4 sm:$0xff]   ;;  %v12218_v10 = vmov 1983009808  }
  0x2a   :  { %v1611_v11 = vunpack.c.l.s4 %v12218_v10  ;;  %v11230_v13 = vld [vmem:[%s17167_s4 + $0x24] ss:$8 sps:$4 sm:$0xff]   ;;  %v11232_v14 = vld [vmem:[%s17167_s4 + $0x20] ss:$8 sps:$4 sm:$0xff]   ;;  %v12350_v16 = vshrl.u32 %v1613_v12, 7  ;;  %vm130_vm0 = vcmask 1041408  }
  0x2b   :  { %v11233_v17 = vld [vmem:[%s17167_s4 + $0x14] ss:$8 sps:$4 sm:$0xff]   ;;  %v1442_v18 = vld [vmem:[%s17164_s1] sm:$0xff]  ;;  %v1443_v19 = vld [vmem:[%s17164_s1 + $0x8] sm:$0xff]  ;;  %vm1595_vm1 = vcmask 1043456   ;;  %vm723_vm2 = vcmask 1040384  }
  0x2c   :  { %2306 = vmatpush1.bf16.msra.mxu1 %v11220_v3  ;;  %v1612_v15 = vunpack.c.0.s8 %v1611_v11  ;;  %17450 = vst [vmem:[#allocation12_spill] sm:$0xff] %v12350_v16  ;;  %v1444_v20 = vld [vmem:[%s17164_s1 + $0x10] sm:$0xff]  ;;  %v1445_v21 = vld [vmem:[%s17164_s1 + $0x18] sm:$0xff]  ;;  %v1531_v22 = vrot.slane %v1442_v18, 6  ;;  %v1532_v23 = vrot.slane %v1443_v19, 6  ;;  %v1446_v28 = vld [vmem:[%s17164_s1 + $0x20] sm:$0xff] }
  0x2d   :  { %2307 = vmatprep.subr.bf16.mxu1 %v11221_v4  ;;  %v11235_v24 = vld [vmem:[%s17167_s4 + $0x10] ss:$8 sps:$4 sm:$0xff]   ;;  %v1533_v25 = vrot.slane %v1444_v20, 6  ;;  %v1535_v26 = vrot.slane %v1445_v21, 6  ;;  %v1447_v29 = vld [vmem:[%s17164_s1 + $0x28] sm:$0xff]  ;;  %v1537_v39 = vrot.slane %v1446_v28, 6 }
  0x2e   :  { %v12371_v27 = vsub.s32 %v1612_v15, %v12350_v16  ;;  %v11236_v30 = vld [vmem:[%s17167_s4 + $0x4] ss:$8 sps:$4 sm:$0xff]   ;;  %v1591_v31 = vsel %vm130_vm0, 0.0, %v1531_v22  ;;  %v1592_v32 = vsel %vm130_vm0, 0.0, %v1532_v23  ;;  %v1539_v40 = vrot.slane %v1447_v29, 6  ;;  %v1448_v47 = vld [vmem:[%s17164_s1 + $0x30] sm:$0xff] }
  0x2f   :  { %v1534_v33 = vsel %vm130_vm0, %v1531_v22, %v1533_v25  ;;  %v1536_v34 = vsel %vm130_vm0, %v1532_v23, %v1535_v26  ;;  %v1608_v35 = vcombine.low %v1591_v31, %v1592_v32  ;;  %v1609_v36 = vcombine.high %v1591_v31, %v1592_v32  ;;  %v11238_v41 = vld [vmem:[%s17167_s4] ss:$8 sps:$4 sm:$0xff]   ;;  %v11239_v44 = vld [vmem:[%s17167_s4 + $0xf4] ss:$8 sps:$4 sm:$0xff]   ;;  %v11241_v51 = vld [vmem:[%s17167_s4 + $0xf0] ss:$8 sps:$4 sm:$0xff]  }
  0x30   :  { %2308 = vmatpush1.bf16.msra.mxu1 %v11223_v5  ;;  %17451 = vst [vmem:[#allocation13_spill] sm:$0xff] %v12371_v27  ;;  %v1626_v37 = vcombine.low %v1534_v33, %v1536_v34  ;;  %v1627_v38 = vcombine.high %v1534_v33, %v1536_v34  ;;  %v1449_v48 = vld [vmem:[%s17164_s1 + $0x38] sm:$0xff]  ;;  %v11242_v52 = vld [vmem:[%s17167_s4 + $0xe4] ss:$8 sps:$4 sm:$0xff]   ;;  %v1538_v55 = vsel %vm130_vm0, %v1533_v25, %v1537_v39  ;;  %v1541_v59 = vrot.slane %v1448_v47, 6  ;;  %v12463_v29 = vld [vmem:[%s17164_s1 + $0x70] sm:$0xff] }
  0x31   :  { %2309 = vmatprep.subr.bf16.mxu1 %v11224_v6  ;;  %v1616_v42 = vrot.slane %v1608_v35, %v12371_v27  ;;  %v1623_v43 = vrot.slane %v1609_v36, %v12371_v27  ;;  %v1540_v56 = vsel %vm130_vm0, %v1535_v26, %v1539_v40  ;;  %v1543_v60 = vrot.slane %v1449_v48, 6  ;;  %v1450_v61 = vld [vmem:[%s17164_s1 + $0x40] sm:$0xff]  ;;  %v1451_v0 = vld [vmem:[%s17164_s1 + $0x48] sm:$0xff]  ;;  %v11245_v6 = vld [vmem:[%s17167_s4 + $0xd4] ss:$8 sps:$4 sm:$0xff]   ;;  %s12221_s16 = smov 96  }
  0x32   :  { %v1634_v45 = vrot.slane %v1626_v37, %v12371_v27  ;;  %v1641_v46 = vrot.slane %v1627_v38, %v12371_v27  ;;  %v11244_v1 = vld [vmem:[%s17167_s4 + $0xe0] ss:$8 sps:$4 sm:$0xff]   ;;  %v1644_v4 = vcombine.low %v1538_v55, %v1540_v56  ;;  %v1645_v5 = vcombine.high %v1538_v55, %v1540_v56  ;;  %v11248_v21 = vld [vmem:[%s17167_s4 + $0xc4] ss:$8 sps:$4 sm:$0xff]   ;;  %v12470_v33 = vld [vmem:[%s17164_s1 + $0x78] sm:$0xff]  ;;  %s12222_s25 = smov [#allocation8]  }
  0x33   :  { %v1624_v49 = vcombine.high %v1616_v42, %v1616_v42  ;;  %v1625_v50 = vcombine.high %v1623_v43, %v1623_v43  ;;  %v1542_v11 = vsel %vm130_vm0, %v1537_v39, %v1541_v59  ;;  %v1544_v12 = vsel %vm130_vm0, %v1539_v40, %v1543_v60  ;;  %v1454_v25 = vld [vmem:[%s17164_s1 + $0x60] sm:$0x3]  ;;  %v1455_v26 = vld [vmem:[%s17164_s1 + $0x68] sm:$0x3]  ;;  %v11251_v38 = vld [vmem:[%s17167_s4 + $0xb4] ss:$8 sps:$4 sm:$0xff]  }
  0x34   :  { %2310 = vmatpush1.bf16.msra.mxu1 %v11226_v7  ;;  %v1642_v53 = vcombine.high %v1634_v45, %v1634_v45  ;;  %v1643_v54 = vcombine.high %v1641_v46, %v1641_v46  ;;  %v1545_v15 = vrot.slane %v1450_v61, 6  ;;  %v1652_v18 = vrot.slane %v1644_v4, %v12371_v27  ;;  %v11250_v34 = vld [vmem:[%s17167_s4 + $0xc0] ss:$8 sps:$4 sm:$0xff]  }
  0x35   :  { %2311 = vmatprep.subr.bf16.mxu1 %v11227_v8  ;;  %v1858_v57 = vcombine.low %v1616_v42, %v1624_v49  ;;  %v1859_v58 = vcombine.low %v1623_v43, %v1625_v50  ;;  %v1659_v19 = vrot.slane %v1645_v5, %v12371_v27  ;;  %v1547_v20 = vrot.slane %v1451_v0, 6  ;;  %v11253_v49 = vld [vmem:[%s17167_s4 + $0xb0] ss:$8 sps:$4 sm:$0xff]   ;;  %v11256_v4 = vld [vmem:[%s17167_s4 + $0xa0] ss:$8 sps:$4 sm:$0xff]  }
  0x36   :  { %v1876_v62 = vcombine.low %v1634_v45, %v1642_v53  ;;  %v1877_v63 = vcombine.low %v1641_v46, %v1643_v54  ;;  %v1662_v23 = vcombine.low %v1542_v11, %v1544_v12  ;;  %v1660_v35 = vcombine.high %v1652_v18, %v1652_v18  ;;  %v11254_v53 = vld [vmem:[%s17167_s4 + $0xa4] ss:$8 sps:$4 sm:$0xff]  }
  0x37   :  { %v12420_v2 = vrot.slane %v1858_v57, %v12371_v27  ;;  %v12423_v3 = vrot.slane %v1859_v58, %v12371_v27  ;;  %v1548_v31 = vsel %vm130_vm0, %v1543_v60, %v1547_v20  ;;  %v1661_v36 = vcombine.high %v1659_v19, %v1659_v19  ;;  %v12497_v58 = vld [vmem:[%s17164_s1 + $0x80] sm:$0xff] }
  0x38   :  { %2312 = vmatpush1.bf16.msra.mxu1 %v11229_v9  ;;  %v12429_v7 = vrot.slane %v1876_v62, %v12371_v27  ;;  %v12432_v8 = vrot.slane %v1877_v63, %v12371_v27  ;;  %v1452_v9 = vld [vmem:[%s17164_s1 + $0x50] sm:$0xff]  ;;  %v1670_v39 = vrot.slane %v1662_v23, %v12371_v27  ;;  %v1555_v45 = vrot.slane %v1455_v26, 6  ;;  %v12539_v23 = vld [vmem:[%s17164_s1 + $0xa0] sm:$0xff] }
  0x39   :  { %2313 = vmatprep.subr.bf16.mxu1 %v11230_v13  ;;  %v1875_v10 = vcombine.high %v12420_v2, %v12423_v3  ;;  %v1453_v13 = vld [vmem:[%s17164_s1 + $0x58] sm:$0xff]  ;;  %v1549_v28 = vrot.slane %v1452_v9, 6  ;;  %v1557_v48 = vrot.slane %v12463_v29, 6  ;;  %v1894_v50 = vcombine.low %v1652_v18, %v1660_v35 }
  0x3a   :  { %v1551_v32 = vrot.slane %v1453_v13, 6  ;;  %v1874_v54 = vcombine.low %v12420_v2, %v12423_v3  ;;  %v1892_v55 = vcombine.low %v12429_v7, %v12432_v8  ;;  %v1678_v56 = vcombine.high %v1670_v39, %v1670_v39  ;;  %v1461_v18 = vld [vmem:[%s17164_s1 + $0x98] sm:$0xff] }
  0x3b   :  { %v1550_v37 = vsel %vm130_vm0, %v1545_v15, %v1549_v28  ;;  %v1593_v2 = vsel %vm130_vm0, 0.0, %v1557_v48  ;;  %v12516_v5 = vrot.slane %v1894_v50, %v12371_v27  ;;  %vm2727_vm3 = vcmask 1042434  }
  0x3c   :  { %2314 = vmatpush1.bf16.msra.mxu1 %v11232_v14  ;;  %v1893_v14 = vcombine.high %v12429_v7, %v12432_v8  ;;  %v1556_v63 = vsel %vm130_vm0, %v1551_v32, %v1555_v45  ;;  %v1460_v7 = vld [vmem:[%s17164_s1 + $0x90] sm:$0xff]  ;;  %v1912_v9 = vcombine.low %v1670_v39, %v1678_v56  ;;  %vm724_vm4 = vcmask 1044484   ;;  %vm2728_vm5 = vmor %vm723_vm2, %vm2727_vm3 }
  0x3d   :  { %2315 = vmatprep.subr.bf16.mxu1 %v11233_v17  ;;  %v11247_v17 = vld [vmem:[%s17167_s4 + $0xd0] ss:$8 sps:$4 sm:$0xff]   ;;  %v11257_v8 = vld [vmem:[%s17167_s4 + $0x94] ss:$8 sps:$4 sm:$0xff]   ;;  %v1563_v35 = vrot.slane %v1460_v7, 6  ;;  %vm2729_vm6 = vmor %vm2728_vm5, %vm724_vm4  ;;  %vm2730_vm7 = vcmask 1046534  }
  0x3e   :  { %v2130_v22 = vpack.c.bf16 %v1893_v14, %v1875_v10  ;;  %v1559_v14 = vrot.slane %v12497_v58, 6  ;;  %v1465_v58 = vld [vmem:[%s17164_s1 + $0xb8] sm:$0xff]  ;;  %vm12793_vm8 = vmor %vm2729_vm6, %vm2730_vm7 }
  0x40   :  { %2316 = vmatpush1.bf16.msra.mxu1 %v11235_v24  ;;  %v1663_v24 = vcombine.high %v1542_v11, %v1544_v12  ;;  %2335 = vmatprep.mubr.bf16.mxu1 %v2130_v22  ;;  %v1597_v12 = vsel %vm1595_vm1, %v1556_v63, 0.0 }
  0x41   :  { %2317 = vmatprep.subr.bf16.mxu1 %v11236_v30  ;;  %v1546_v30 = vsel %vm130_vm0, %v1541_v59, %v1545_v15  ;;  %v12502_v59 = vld [vmem:[%s17164_s1 + $0x88] sm:$0xff] }
  0x42   :  { %v1677_v40 = vrot.slane %v1663_v24, %v12371_v27  ;;  %v1680_v42 = vcombine.low %v1546_v30, %v1548_v31  ;;  %v1681_v43 = vcombine.high %v1546_v30, %v1548_v31  ;;  %v1561_v15 = vrot.slane %v12502_v59, 6  ;;  %v12544_v24 = vld [vmem:[%s17164_s1 + $0xa8] sm:$0xff] }
  0x43   :  { %v11260_v31 = vld [vmem:[%s17167_s4 + $0x84] ss:$8 sps:$4 sm:$0xff]  }
  0x44   :  { %2318 = vmatpush1.bf16.msra.mxu1 %v11238_v41  ;;  %v1552_v41 = vsel %vm130_vm0, %v1547_v20, %v1551_v32  ;;  %v1679_v57 = vcombine.high %v1677_v40, %v1677_v40  ;;  %v1688_v60 = vrot.slane %v1680_v42, %v12371_v27  ;;  %v1695_v61 = vrot.slane %v1681_v43, %v12371_v27 }
  0x45   :  { %2319 = vmatprep.subr.bf16.mxu1 %v11239_v44  ;;  %v1553_v44 = vrot.slane %v1454_v25, 6  ;;  %v1698_v46 = vcombine.low %v1550_v37, %v1552_v41  ;;  %v1699_v47 = vcombine.high %v1550_v37, %v1552_v41  ;;  %v11259_v25 = vld [vmem:[%s17167_s4 + $0x90] ss:$8 sps:$4 sm:$0xff]   ;;  %v1920_v32 = vrot.slane %v1912_v9, %v12371_v27  ;;  %v1466_v9 = vld [vmem:[%s17164_s1 + $0xc0] sm:$0xff] }
  0x46   :  { %v1913_v10 = vcombine.low %v1677_v40, %v1679_v57  ;;  %v1696_v13 = vcombine.high %v1688_v60, %v1688_v60  ;;  %v1697_v20 = vcombine.high %v1695_v61, %v1695_v61  ;;  %v1560_v37 = vsel %vm130_vm0, %v1557_v48, %v1559_v14 }
  0x47   :  { %v1554_v62 = vsel %vm130_vm0, %v1549_v28, %v1553_v44  ;;  %v1706_v0 = vrot.slane %v1698_v46, %v12371_v27  ;;  %v1565_v43 = vrot.slane %v1461_v18, 6  ;;  %v11262_v44 = vld [vmem:[%s17167_s4 + $0x80] ss:$8 sps:$4 sm:$0xff]   ;;  %v1569_v48 = vrot.slane %v12544_v24, 6 }
  0x48   :  { %2320 = vmatpush2.bf16.msra.mxu1 %v11241_v51  ;;  %v1895_v51 = vcombine.low %v1659_v19, %v1661_v36  ;;  %v1596_v11 = vsel %vm1595_vm1, %v1554_v62, 0.0  ;;  %v12534_v19 = vpack.c.bf16 %v1892_v55, %v1874_v54  ;;  %v1930_v36 = vcombine.low %v1688_v60, %v1696_v13 }
  0x49   :  { %2321 = vmatprep.subr.bf16.mxu1 %v11242_v52  ;;  %v1558_v52 = vrot.slane %v12470_v33, 6  ;;  %v1716_v29 = vcombine.low %v1596_v11, %v1597_v12  ;;  %v1717_v30 = vcombine.high %v1596_v11, %v1597_v12  ;;  %v1927_v33 = vrot.slane %v1913_v10, %v12371_v27  ;;  %v1467_v10 = vld [vmem:[%s17164_s1 + $0xc8] sm:$0xff] }
  0x4a   :  { %v1931_v40 = vcombine.low %v1695_v61, %v1697_v20  ;;  %v12577_v56 = vrot.slane %v1930_v36, %v12371_v27 }
  0x4b   :  { %v1594_v3 = vsel %vm130_vm0, 0.0, %v1558_v52  ;;  %v1724_v45 = vrot.slane %v1716_v29, %v12371_v27  ;;  %v1731_v46 = vrot.slane %v1717_v30, %v12371_v27  ;;  %v1929_v54 = vcombine.high %v1920_v32, %v1927_v33 }
  0x4c   :  { %2322 = vmatpush2.bf16.msra.mxu1 %v11244_v1  ;;  %v1713_v1 = vrot.slane %v1699_v47, %v12371_v27  ;;  %v1567_v47 = vrot.slane %v12539_v23, 6  ;;  %v1928_v55 = vcombine.low %v1920_v32, %v1927_v33  ;;  %v12583_v59 = vrot.slane %v1931_v40, %v12371_v27 }
  0x4d   :  { %2323 = vmatprep.subr.bf16.mxu1 %v11245_v6  ;;  %v12519_v6 = vrot.slane %v1895_v51, %v12371_v27  ;;  %v1564_v51 = vsel %vm130_vm0, %v1559_v14, %v1563_v35  ;;  %v1573_v14 = vrot.slane %v1465_v58, 6  ;;  %v1575_v33 = vrot.slane %v1466_v9, 6 }
  0x4e   :  { %v1715_v22 = vcombine.high %v1713_v1, %v1713_v1  ;;  %v1568_v63 = vsel %vm130_vm0, %v1563_v35, %v1567_v47  ;;  %v1947_v20 = vcombine.high %v12577_v56, %v12583_v59 }
  0x4f   :  { %v1911_v26 = vcombine.high %v12516_v5, %v12519_v6  ;;  %v1910_v28 = vcombine.low %v12516_v5, %v12519_v6 }
  0x50   :  { %2324 = vmatpush2.bf16.msra.mxu1 %v11247_v17  ;;  %v1733_v17 = vcombine.low %v1593_v2, %v1594_v3  ;;  %v1949_v42 = vcombine.low %v1713_v1, %v1715_v22 }
  0x51   :  { %2325 = vmatprep.subr.bf16.mxu1 %v11248_v21  ;;  %v1714_v21 = vcombine.high %v1706_v0, %v1706_v0  ;;  %v2132_v7 = vpack.c.bf16 %v1929_v54, %v1911_v26  ;;  %v2131_v18 = vpack.c.bf16 %v1928_v55, %v1910_v28 }
  0x52   :  { %v1741_v39 = vrot.slane %v1733_v17, %v12371_v27  ;;  %v12589_v61 = vrot.slane %v1949_v42, %v12371_v27  ;;  %v1469_v17 = vld [vmem:[%s17164_s1 + $0xd8] sm:$0x3] }
  0x53   :  { %v1948_v41 = vcombine.low %v1706_v0, %v1714_v21  ;;  %v1570_v0 = vsel %vm130_vm0, %v1565_v43, %v1569_v48 }
  0x54   :  { %2326 = vmatpush2.bf16.msra.mxu1 %v11250_v34  ;;  %v1734_v34 = vcombine.high %v1593_v2, %v1594_v3  ;;  %v1749_v57 = vcombine.high %v1741_v39, %v1741_v39  ;;  %v1732_v3 = vcombine.high %v1724_v45, %v1724_v45  ;;  %v1967_v6 = vcombine.low %v1731_v46, %v1741_v39 }
  0x55   :  { %2327 = vmatprep.subr.bf16.mxu1 %v11251_v38  ;;  %v1562_v38 = vsel %vm130_vm0, %v1558_v52, %v1561_v15  ;;  %v1566_v52 = vsel %vm130_vm0, %v1561_v15, %v1565_v43  ;;  %v12586_v60 = vrot.slane %v1948_v41, %v12371_v27  ;;  %v1787_v13 = vcombine.low %v1568_v63, %v1570_v0  ;;  %v1468_v15 = vld [vmem:[%s17164_s1 + $0xd0] sm:$0x3] }
  0x56   :  { %v1751_v50 = vcombine.low %v1560_v37, %v1562_v38  ;;  %v1752_v62 = vcombine.high %v1560_v37, %v1562_v38  ;;  %v1769_v1 = vcombine.low %v1564_v51, %v1566_v52  ;;  %v1770_v2 = vcombine.high %v1564_v51, %v1566_v52 }
  0x57   :  { %v1965_v23 = vcombine.high %v12586_v60, %v12589_v61  ;;  %v1966_v24 = vcombine.low %v1724_v45, %v1732_v3  ;;  %v1579_v37 = vrot.slane %v1468_v15, 6  ;;  %v1581_v38 = vrot.slane %v1469_v17, 6 }
  0x58   :  { %2328 = vmatpush2.bf16.msra.mxu1 %v11253_v49  ;;  %v1748_v49 = vrot.slane %v1734_v34, %v12371_v27  ;;  %v1759_v5 = vrot.slane %v1751_v50, %v12371_v27  ;;  %v1766_v12 = vrot.slane %v1752_v62, %v12371_v27  ;;  %v1777_v21 = vrot.slane %v1769_v1, %v12371_v27 }
  0x59   :  { %2329 = vmatprep.subr.bf16.mxu1 %v11254_v53  ;;  %v12574_v53 = vld [vmem:[%s17164_s1 + $0xb0] sm:$0xff]  ;;  %v1784_v22 = vrot.slane %v1770_v2, %v12371_v27  ;;  %v1577_v34 = vrot.slane %v1467_v10, 6  ;;  %v1974_v39 = vrot.slane %v1966_v24, %v12371_v27  ;;  %v1788_v41 = vcombine.high %v1568_v63, %v1570_v0 }
  0x5a   :  { %v1571_v11 = vrot.slane %v12574_v53, 6  ;;  %v1767_v29 = vcombine.high %v1759_v5, %v1759_v5  ;;  %v1768_v32 = vcombine.high %v1766_v12, %v1766_v12  ;;  %v1785_v35 = vcombine.high %v1777_v21, %v1777_v21 }
  0x5b   :  { %v1786_v36 = vcombine.high %v1784_v22, %v1784_v22  ;;  %v2134_v43 = vpack.c.bf16 %v1965_v23, %v1947_v20  ;;  %v1964_v45 = vcombine.low %v12586_v60, %v12589_v61  ;;  %v1578_v50 = vsel %vm130_vm0, %v1573_v14, %v1577_v34 }
  0x5c   :  { %2330 = vmatpush2.bf16.msra.mxu1 %v11256_v4  ;;  %v1750_v4 = vcombine.high %v1748_v49, %v1748_v49  ;;  %v1572_v30 = vsel %vm130_vm0, %v1567_v47, %v1571_v11  ;;  %v2002_v47 = vcombine.low %v1767_v29, %v1766_v12  ;;  %v2020_v51 = vcombine.low %v1785_v35, %v1784_v22 }
  0x5d   :  { %2331 = vmatprep.subr.bf16.mxu1 %v11257_v8  ;;  %v1984_v8 = vcombine.low %v1749_v57, %v1748_v49  ;;  %v1576_v49 = vsel %vm130_vm0, %v1571_v11, %v1575_v33  ;;  %v1580_v53 = vsel %vm130_vm0, %v1575_v33, %v1579_v37  ;;  %v1582_v54 = vsel %vm130_vm0, %v1577_v34, %v1581_v38 }
  0x5e   :  { %v1985_v26 = vcombine.low %v1750_v4, %v1759_v5  ;;  %v1802_v57 = vrot.slane %v1788_v41, %v12371_v27  ;;  %v1823_v60 = vcombine.low %v1576_v49, %v1578_v50  ;;  %v1598_v62 = vsel %vm1595_vm1, %v1580_v53, 0.0 }
  0x5f   :  { %v12619_v28 = vrot.slane %v1984_v8, %v12371_v27  ;;  %v1599_v63 = vsel %vm1595_vm1, %v1582_v54, 0.0  ;;  %v2010_v0 = vrot.slane %v2002_v47, %v12371_v27  ;;  %v2028_v2 = vrot.slane %v2020_v51, %v12371_v27 }
  0x60   :  { %2332 = vmatpush2.bf16.msra.mxu1 %v11259_v25  ;;  %v12616_v25 = vrot.slane %v1967_v6, %v12371_v27  ;;  %v1999_v40 = vrot.slane %v1985_v26, %v12371_v27  ;;  %v1804_v6 = vcombine.high %v1802_v57, %v1802_v57  ;;  %v1831_v9 = vrot.slane %v1823_v60, %v12371_v27  ;;  %v11271_v60 = vld [vmem:[%s17165_s2 + $0x50] ss:$8 sps:$4 sm:$0xff]  }
  0x61   :  { %2333 = vmatprep.subr.bf16.mxu1 %v11260_v31  ;;  %v1574_v31 = vsel %vm130_vm0, %v1569_v48, %v1573_v14  ;;  %v2003_v48 = vcombine.low %v1768_v32, %v1777_v21  ;;  %v1824_v10 = vcombine.high %v1576_v49, %v1578_v50  ;;  %v1841_v11 = vcombine.low %v1598_v62, %v1599_v63 }
  0x62   :  { %v1805_v42 = vcombine.low %v1572_v30, %v1574_v31  ;;  %v1806_v46 = vcombine.high %v1572_v30, %v1574_v31  ;;  %v1983_v55 = vcombine.high %v1974_v39, %v12616_v25  ;;  %v1982_v12 = vcombine.low %v1974_v39, %v12616_v25 }
  0x63   :  { %v2017_v1 = vrot.slane %v2003_v48, %v12371_v27  ;;  %v1838_v22 = vrot.slane %v1824_v10, %v12371_v27  ;;  %v1842_v23 = vcombine.high %v1598_v62, %v1599_v63  ;;  %v1849_v24 = vrot.slane %v1841_v11, %v12371_v27  ;;  %v11274_v62 = vld [vmem:[%s17165_s2 + $0x40] ss:$8 sps:$4 sm:$0xff]   ;;  %v11275_v63 = vld [vmem:[%s17165_s2 + $0x34] ss:$8 sps:$4 sm:$0xff]   ;;  %v11284_v11 = vld [vmem:[%s17165_s2 + $0x4] ss:$8 sps:$4 sm:$0xff]  }
  0x64   :  { %2334 = vmatpush2.bf16.msra.mxu1 %v11262_v44  ;;  %v1946_v44 = vcombine.low %v12577_v56, %v12583_v59  ;;  %v2001_v56 = vcombine.high %v12619_v28, %v1999_v40  ;;  %v1813_v58 = vrot.slane %v1805_v42, %v12371_v27  ;;  %v1820_v59 = vrot.slane %v1806_v46, %v12371_v27 }
  0x65   :  { %v2019_v14 = vcombine.high %v2010_v0, %v2017_v1  ;;  %v1839_v31 = vcombine.high %v1831_v9, %v1831_v9  ;;  %v1856_v33 = vrot.slane %v1842_v23, %v12371_v27  ;;  %v1857_v34 = vcombine.high %v1849_v24, %v1849_v24 }
  0x66   :  { %v2133_v61 = vpack.c.bf16 %v1964_v45, %v1946_v44  ;;  %v2136_v4 = vpack.c.bf16 %v2001_v56, %v1983_v55  ;;  %v1822_v8 = vcombine.high %v1820_v59, %v1820_v59  ;;  %v2018_v35 = vcombine.low %v2010_v0, %v2017_v1  ;;  %v11263_v55 = vld [vmem:[%s17165_s2 + $0x74] ss:$8 sps:$4 sm:$0xff]   ;;  %v11265_v56 = vld [vmem:[%s17165_s2 + $0x70] ss:$8 sps:$4 sm:$0xff]   ;;  %v11278_v1 = vld [vmem:[%s17165_s2 + $0x24] ss:$8 sps:$4 sm:$0xff]  }
  0x67   :  { %2336 = vmatmul.mubr.bf16.vlgmr.msra.gmra.mxu1 %v12534_v19  ;;  %v1795_v19 = vrot.slane %v1787_v13, %v12371_v27  ;;  %v2000_v13 = vcombine.low %v12619_v28, %v1999_v40  ;;  %v2074_v39 = vcombine.low %v1839_v31, %v1838_v22  ;;  %v2092_v41 = vcombine.low %v1857_v34, %v1856_v33  ;;  %v11277_v0 = vld [vmem:[%s17165_s2 + $0x30] ss:$8 sps:$4 sm:$0xff]   ;;  %v98_v34 = vld [vmem:[%s17163_s0 + $0x28] sm:$0xff] }
  0x68   :  { %2345 = vmatprep.mubr.bf16.mxu1 %v2132_v7  ;;  %v1821_v7 = vcombine.high %v1813_v58, %v1813_v58  ;;  %v2057_v21 = vcombine.low %v1822_v8, %v1831_v9  ;;  %279 = vmatprep.subr.bf16.mxu0 %v11263_v55 }
  0x69   :  { %v2021_v52 = vcombine.low %v1786_v36, %v1795_v19  ;;  %v1803_v5 = vcombine.high %v1795_v19, %v1795_v19  ;;  %v2135_v26 = vpack.c.bf16 %v2000_v13, %v1982_v12  ;;  %v1840_v19 = vcombine.high %v1838_v22, %v1838_v22  ;;  %280 = vmatpush1.bf16.msra.mxu0 %v11265_v56  ;;  %v11286_v12 = vld [vmem:[%s17165_s2] ss:$8 sps:$4 sm:$0xff]   ;;  %v96_v22 = vld [vmem:[%s17163_s0 + $0x18] sm:$0xff] }
  0x6a   :  { %v2056_v20 = vcombine.low %v1821_v7, %v1820_v59  ;;  %v2071_v32 = vrot.slane %v2057_v21, %v12371_v27  ;;  %v2082_v44 = vrot.slane %v2074_v39, %v12371_v27  ;;  %v2099_v46 = vrot.slane %v2092_v41, %v12371_v27  ;;  %v11269_v59 = vld [vmem:[%s17165_s2 + $0x54] ss:$8 sps:$4 sm:$0xff]   ;;  %v102_v56 = vld [vmem:[%s17163_s0 + $0x48] sm:$0xff] }
  0x6b   :  { %v2035_v3 = vrot.slane %v2021_v52, %v12371_v27  ;;  %v2038_v17 = vcombine.low %v1803_v5, %v1802_v57  ;;  %v2075_v40 = vcombine.low %v1840_v19, %v1849_v24  ;;  %v11266_v57 = vld [vmem:[%s17165_s2 + $0x64] ss:$8 sps:$4 sm:$0xff]   ;;  %v95_v21 = vld [vmem:[%s17163_s0 + $0x10] sm:$0xff]  ;;  %v136_v24 = vrot.slane %v96_v22, 6 }
  0x6c   :  { %v2064_v28 = vrot.slane %v2056_v20, %v12371_v27  ;;  %v2100_v50 = vcombine.high %v2099_v46, %v2099_v46  ;;  %281 = vmatprep.subr.bf16.mxu0 %v11266_v57  ;;  %v93_v5 = vld [vmem:[%s17163_s0] sm:$0xff]  ;;  %v134_v23 = vrot.slane %v95_v21, 6 }
  0x6d   :  { %v2037_v15 = vcombine.high %v2028_v2, %v2035_v3  ;;  %v2046_v30 = vrot.slane %v2038_v17, %v12371_v27  ;;  %v2036_v36 = vcombine.low %v2028_v2, %v2035_v3  ;;  %v2089_v45 = vrot.slane %v2075_v40, %v12371_v27  ;;  %v11280_v2 = vld [vmem:[%s17165_s2 + $0x20] ss:$8 sps:$4 sm:$0xff]   ;;  %v11281_v3 = vld [vmem:[%s17165_s2 + $0x14] ss:$8 sps:$4 sm:$0xff]  }
  0x6e   :  { %v2073_v38 = vcombine.high %v2064_v28, %v2071_v32  ;;  %v2072_v48 = vcombine.low %v2064_v28, %v2071_v32  ;;  %v131_v7 = vrot.slane %v93_v5, 6  ;;  %v97_v19 = vld [vmem:[%s17163_s0 + $0x20] sm:$0xff] }
  0x6f   :  { %2346 = vmatmul.mubr.bf16.gmra.mxu1 %v2131_v18  ;;  %v2039_v18 = vcombine.low %v1804_v6, %v1813_v58  ;;  %v2138_v29 = vpack.c.bf16 %v2037_v15, %v2019_v14  ;;  %v2137_v42 = vpack.c.bf16 %v2036_v36, %v2018_v35  ;;  %v2091_v49 = vcombine.high %v2082_v44, %v2089_v45  ;;  %v11268_v58 = vld [vmem:[%s17165_s2 + $0x60] ss:$8 sps:$4 sm:$0xff]  }
  0x70   :  { %2355 = vmatprep.mubr.bf16.mxu1 %v2134_v43  ;;  %v2090_v53 = vcombine.low %v2082_v44, %v2089_v45  ;;  %282 = vmatpush1.bf16.msra.mxu0 %v11268_v58  ;;  %v94_v6 = vld [vmem:[%s17163_s0 + $0x8] sm:$0xff]  ;;  %v153_v10 = vsel %vm130_vm0, 0.0, %v131_v7  ;;  %v138_v33 = vrot.slane %v97_v19, 6  ;;  %v140_v36 = vrot.slane %v98_v34, 6  ;;  %v100_v45 = vld [vmem:[%s17163_s0 + $0x38] sm:$0xff] }
  0x71   :  { %v2053_v25 = vrot.slane %v2039_v18, %v12371_v27  ;;  %v2142_v52 = vpack.c.bf16 %v2100_v50, %v2091_v49  ;;  %283 = vmatprep.subr.bf16.mxu0 %v11269_v59  ;;  %v132_v8 = vrot.slane %v94_v6, 6  ;;  %v161_v13 = vcombine.high %v153_v10, %v153_v10 }
  0x72   :  { %v2141_v54 = vpack.c.bf16 %v2099_v46, %v2090_v53  ;;  %v17179_v18 = vmov 0   ;;  %v139_v35 = vsel %vm130_vm0, %v136_v24, %v138_v33  ;;  %v154_v39 = vsel %vm130_vm0, 0.0, %v140_v36 }
  0x73   :  { %v2055_v37 = vcombine.high %v2046_v30, %v2053_v25  ;;  %v2054_v47 = vcombine.low %v2046_v30, %v2053_v25  ;;  %v133_v9 = vsel %vm130_vm0, %v131_v7, %v132_v8  ;;  %v171_v15 = vcombine.low %v153_v10, %v161_v13  ;;  %311 = vmatprep.mubr.bf16.mxu0 %v17179_v18 }
  0x74   :  { %284 = vmatpush1.bf16.msra.mxu0 %v11271_v60  ;;  %v162_v14 = vcombine.high %v133_v9, %v133_v9  ;;  %v147_v58 = vrot.slane %v102_v56, 6 }
  0x75   :  { %v2140_v43 = vpack.c.bf16 %v2073_v38, %v2055_v37  ;;  %v2139_v51 = vpack.c.bf16 %v2072_v48, %v2054_v47  ;;  %v155_v37 = vsel %vm130_vm0, %v138_v33, 0.0  ;;  %v165_v38 = vcombine.high %v139_v35, %v139_v35 }
  0x76   :  { %v172_v17 = vcombine.low %v133_v9, %v162_v14  ;;  %v176_v41 = vcombine.low %v155_v37, %v154_v39  ;;  %v143_v47 = vrot.slane %v100_v45, 6  ;;  %v166_v48 = vcombine.high %v154_v39, %v154_v39 }
  0x77   :  { %2356 = vmatmul.mubr.bf16.gmra.mxu1 %v2133_v61  ;;  %v11272_v61 = vld [vmem:[%s17165_s2 + $0x44] ss:$8 sps:$4 sm:$0xff]   ;;  %v175_v40 = vcombine.low %v139_v35, %v165_v38 }
  0x78   :  { %2365 = vmatprep.mubr.bf16.mxu1 %v2136_v4  ;;  %285 = vmatprep.subr.bf16.mxu0 %v11272_v61  ;;  %v11283_v4 = vld [vmem:[%s17165_s2 + $0x10] ss:$8 sps:$4 sm:$0xff]   ;;  %v193_v20 = vpack.c.bf16 %v172_v17, %v171_v15 }
  0x79   :  { %286 = vmatpush1.bf16.msra.mxu0 %v11274_v62 }
  0x7a   :  { %287 = vmatprep.subr.bf16.mxu0 %v11275_v63 }
  0x7d   :  { %288 = vmatpush1.bf16.msra.mxu0 %v11277_v0 }
  0x7e   :  { %289 = vmatprep.subr.bf16.mxu0 %v11278_v1  ;;  %v156_v1 = vsel %vm130_vm0, %v147_v58, 0.0 }
  0x7f   :  { %2366 = vmatmul.mubr.bf16.gmra.mxu1 %v2135_v26  ;;  %v135_v26 = vsel %vm130_vm0, %v132_v8, %v134_v23 }
  0x80   :  { %2375 = vmatprep.mubr.bf16.mxu1 %v2138_v29  ;;  %v137_v29 = vsel %vm130_vm0, %v134_v23, %v136_v24  ;;  %v163_v30 = vcombine.high %v135_v26, %v135_v26 }
  0x81   :  { %290 = vmatpush1.bf16.msra.mxu0 %v11280_v2  ;;  %v164_v25 = vcombine.high %v137_v29, %v137_v29 }
  0x82   :  { %291 = vmatprep.subr.bf16.mxu0 %v11281_v3  ;;  %v173_v28 = vcombine.low %v135_v26, %v163_v30 }
  0x83   :  { %v174_v31 = vcombine.low %v137_v29, %v164_v25 }
  0x85   :  { %292 = vmatpush1.bf16.msra.mxu0 %v11283_v4  ;;  %v194_v32 = vpack.c.bf16 %v174_v31, %v173_v28 }
  0x86   :  { %293 = vmatprep.subr.bf16.mxu0 %v11284_v11 }
  0x87   :  { %2376 = vmatmul.mubr.bf16.gmra.mxu1 %v2137_v42  ;;  %v195_v42 = vpack.c.bf16 %v176_v41, %v175_v40 }
  0x88   :  { %2385 = vmatprep.mubr.bf16.mxu1 %v2140_v43  ;;  %v99_v43 = vld [vmem:[%s17163_s0 + $0x30] sm:$0xff] }
  0x89   :  { %294 = vmatpush1.bf16.msra.mxu0 %v11286_v12  ;;  %v141_v44 = vrot.slane %v99_v43, 6 }
  0x8b   :  { %v142_v46 = vsel %vm130_vm0, %v140_v36, %v141_v44  ;;  %v144_v50 = vsel %vm130_vm0, %v141_v44, %v143_v47 }
  0x8c   :  { %312 = vmatmul.mubr.bf16.vlgmr.msra.gmra.mxu0 %v193_v20  ;;  %v167_v49 = vcombine.high %v142_v46, %v142_v46  ;;  %v168_v59 = vcombine.high %v144_v50, %v144_v50 }
  0x8d   :  { %321 = vmatprep.mubr.bf16.mxu0 %v17179_v18 }
  0x8f   :  { %2386 = vmatmul.mubr.bf16.gmra.mxu1 %v2139_v51  ;;  %v177_v51 = vcombine.low %v166_v48, %v142_v46 }
  0x90   :  { %2395 = vmatprep.mubr.bf16.mxu1 %v2142_v52  ;;  %v178_v52 = vcombine.low %v167_v49, %v144_v50 }
  0x92   :  { %v196_v53 = vpack.c.bf16 %v178_v52, %v177_v51 }
  0x94   :  { %322 = vmatmul.mubr.bf16.gmra.mxu0 %v194_v32 }
  0x95   :  { %331 = vmatprep.mubr.bf16.mxu0 %v17179_v18 }
  0x97   :  { %2396 = vmatmul.mubr.bf16.gmra.mxu1 %v2141_v54  ;;  %v101_v54 = vld [vmem:[%s17163_s0 + $0x40] sm:$0xff]  ;;  %s12220_s0 = smov 64  }
  0x98   :  { %v145_v55 = vrot.slane %v101_v54, 6 }
  0x9a   :  { %v146_v57 = vsel %vm130_vm0, %v143_v47, %v145_v55  ;;  %v148_v61 = vsel %vm130_vm0, %v145_v55, %v147_v58 }
  0x9b   :  { %v169_v60 = vcombine.high %v146_v57, %v146_v57  ;;  %v179_v62 = vcombine.low %v168_v59, %v146_v57  ;;  %v170_v2 = vcombine.high %v148_v61, %v148_v61 }
  0x9c   :  { %332 = vmatmul.mubr.bf16.gmra.mxu0 %v195_v42 }
  0x9d   :  { %341 = vmatprep.mubr.bf16.mxu0 %v17179_v18  ;;  %v180_v63 = vcombine.low %v169_v60, %v148_v61  ;;  %v181_v3 = vcombine.low %v170_v2, %v156_v1 }
  0x9f   :  { %v197_v0 = vpack.c.bf16 %v180_v63, %v179_v62  ;;  %v198_v4 = vpack.c.bf16 %v181_v3, %v181_v3 }
  0xa4   :  { %342 = vmatmul.mubr.bf16.gmra.mxu0 %v196_v53 }
  0xa5   :  { %351 = vmatprep.mubr.bf16.mxu0 %v17179_v18 }
  0xac   :  { %352 = vmatmul.mubr.bf16.gmra.mxu0 %v197_v0 }
  0xad   :  { %361 = vmatprep.mubr.bf16.mxu0 %v17179_v18 }
  0xb4   :  { %362 = vmatmul.mubr.bf16.gmra.mxu0 %v198_v4 }
 0x127   :  { %v12754_v5 = vpop.f32.mrf.mxu1 }
 0x129   :  { %v12756_v6 = vpop.f32.mrf.mxu1 }
 0x12a   :  { %v2435_v8 = vcombine.high %v12754_v5, %v12756_v6 }
 0x12b   :  { %v2341_v9 = vpop.f32.mrf.mxu1 }
 0x12c   :  { %v12763_v10 = vrot.slane %v2435_v8, %v12371_v27 }
 0x12d   :  { %v2343_v11 = vpop.f32.mrf.mxu1 }
 0x12e   :  { %17452 = vst [vmem:[#allocation14_spill] sm:$0xff] %v12763_v10  ;;  %v2452_v12 = vcombine.low %v2341_v9, %v2343_v11  ;;  %v2453_v13 = vcombine.high %v2341_v9, %v2343_v11  ;;  %v12767_v14 = vcombine.high %v12763_v10, %v12763_v10  ;;  %v17181_v17 = vrot.slane %v12763_v10, 7 }
 0x12f   :  { %v2347_v15 = vpop.f32.mrf.mxu1 }
 0x130   :  { %17453 = vst [vmem:[#allocation15_spill] sm:$0xff] %v12767_v14  ;;  %v12772_v20 = vrot.slane %v2452_v12, %v12371_v27  ;;  %v12775_v21 = vrot.slane %v2453_v13, %v12371_v27  ;;  %3088 = vrot.lane.b32.xlu0 %v12767_v14, %s12220_s0  ;;  %v2740_v23 = vrot.slane %v12767_v14, 7  ;;  %v2739_v26 = vrot.slane %v17181_v17, 2 }
 0x131   :  { %v2349_v22 = vpop.f32.mrf.mxu1 }
 0x132   :  { %3090 = vrot.lane.b32.xlu1 %v12772_v20, %s12220_s0  ;;  %v12791_v29 = vcombine.high %v12775_v21, %v12775_v21  ;;  %v2742_v28 = vrot.slane %v2740_v23, 2  ;;  %v2743_v31 = vrot.slane %v12772_v20, 7  ;;  %v12802_v32 = vsel %vm12793_vm8, %v2739_v26, %v2740_v23 }
 0x133   :  { %v12783_v24 = vpop.f32.mrf.mxu1  ;;  %17456 = vst [vmem:[#allocation16_spill] sm:$0xff] %v12802_v32  ;;  %v2470_v33 = vcombine.low %v2347_v15, %v2349_v22  ;;  %v2749_v36 = vrot.slane %v12775_v21, 7  ;;  %v12816_v37 = vcombine.high %v12772_v20, %v12772_v20  ;;  %v2471_v43 = vcombine.high %v2347_v15, %v2349_v22 }
 0x134   :  { %3094 = vrot.lane.b32.xlu0 %v12775_v21, %s12220_s0  ;;  %v2744_v34 = vsel %vm12793_vm8, %v2742_v28, %v2743_v31  ;;  %v2752_v41 = vrot.slane %v12791_v29, 7  ;;  %v2745_v46 = vrot.slane %v2743_v31, 2 }
 0x135   :  { %v2353_v25 = vpop.f32.mrf.mxu1  ;;  %v12821_v39 = vrot.slane %v2470_v33, %v12371_v27  ;;  %v2751_v40 = vrot.slane %v2749_v36, 2  ;;  %v2746_v47 = vrot.slane %v12816_v37, 7  ;;  %v12835_v49 = vrot.slane %v2471_v43, %v12371_v27 }
 0x136   :  { %3096 = vrot.lane.b32.xlu1 %v12791_v29, %s12220_s0  ;;  %v2754_v53 = vrot.slane %v2752_v41, 2  ;;  %v2489_v59 = vcombine.high %v12783_v24, %v2353_v25  ;;  %v2488_v63 = vcombine.low %v12783_v24, %v2353_v25 }
 0x137   :  { %v12804_v19 = vpop.f32.mrf.mxu1  ;;  %17457 = vst [vmem:[#allocation17_spill] sm:$0xff] %v12821_v39  ;;  %v2753_v45 = vsel %vm12793_vm8, %v2751_v40, %v2752_v41  ;;  %v2747_v52 = vsel %vm12793_vm8, %v2745_v46, %v2746_v47  ;;  %v2755_v54 = vrot.slane %v12821_v39, 7  ;;  %v12858_v60 = vcombine.high %v12835_v49, %v12835_v49 }
 0x138   :  { %2888 = vrot.lane.b32.xlu0 %v12802_v32, %s12221_s16  ;;  %v12866_v62 = vcombine.high %v12821_v39, %v12821_v39  ;;  %v2748_v0 = vrot.slane %v2746_v47, 2  ;;  %v12874_v2 = vrot.slane %v2489_v59, %v12371_v27  ;;  %v12882_v8 = vrot.slane %v2488_v63, %v12371_v27 }
 0x139   :  { %v12810_v35 = vpop.f32.mrf.mxu1  ;;  %v2756_v57 = vsel %vm12793_vm8, %v2754_v53, %v2755_v54  ;;  %17458 = vst [vmem:[#allocation18_spill] sm:$0xff] %v12858_v60  ;;  %v2757_v3 = vrot.slane %v2755_v54, 2  ;;  %v2764_v4 = vrot.slane %v12858_v60, 7  ;;  %v2761_v26 = vrot.slane %v12835_v49, 7 }
 0x13a   :  { %2890 = vrot.lane.b32.xlu1 %v2744_v34, %s12221_s16  ;;  %17460 = vst [vmem:[#allocation20_spill] sm:$0xff] %v12874_v2  ;;  %17461 = vst [vmem:[#allocation21_spill] sm:$0xff] %v12882_v8  ;;  %v2750_v9 = vsel %vm12793_vm8, %v2748_v0, %v2749_v36  ;;  %v2758_v11 = vrot.slane %v12866_v62, 7  ;;  %v2767_v22 = vrot.slane %v12882_v8, 7  ;;  %v2507_v28 = vcombine.high %v12804_v19, %v12810_v35 }
 0x13b   :  { %v12818_v38 = vpop.f32.mrf.mxu1  ;;  %v2766_v15 = vrot.slane %v2764_v4, 2  ;;  %v2773_v36 = vrot.slane %v12874_v2, 7  ;;  %v2506_v43 = vcombine.low %v12804_v19, %v12810_v35  ;;  %v12966_v59 = vcombine.high %v12882_v8, %v12882_v8 }
 0x13c   :  { %3092 = vrot.lane.b32.xlu0 %v12816_v37, %s12220_s0  ;;  %v2759_v13 = vsel %vm12793_vm8, %v2757_v3, %v2758_v11 }
 0x13d   :  { %v12826_v42 = vpop.f32.mrf.mxu1  ;;  %v12907_v33 = vsel %vm12793_vm8, %v2766_v15, %v2767_v22  ;;  %v2775_v46 = vrot.slane %v2773_v36, 2  ;;  %v12941_v35 = vrot.slane %v2506_v43, %v12371_v27  ;;  %17471 = vst [vmem:[#allocation31_spill] sm:$0xff] %v12966_v59 }
 0x13e   :  { %3098 = vrot.lane.b32.xlu1 %v12821_v39, %s12220_s0  ;;  %v2524_v23 = vcombine.low %v12818_v38, %v12826_v42  ;;  %17463 = vst [vmem:[#allocation23_spill] sm:$0xff] %v12907_v33 }
 0x13f   :  { %v2367_v44 = vpop.f32.mrf.mxu1  ;;  %17468 = vst [vmem:[#allocation28_spill] sm:$0xff] %v12941_v35  ;;  %v12957_v53 = vcombine.high %v12941_v35, %v12941_v35  ;;  %v2779_v54 = vrot.slane %v12941_v35, 7 }
 0x140   :  { %3294 = vrot.lane.b32.xlu0 %v2744_v34, %s12214_s24  ;;  %v12911_v34 = vcombine.high %v12874_v2, %v12874_v2  ;;  %v12915_v40 = vrot.slane %v2524_v23, %v12371_v27 }
 0x141   :  { %v2369_v48 = vpop.f32.mrf.mxu1  ;;  %17470 = vst [vmem:[#allocation30_spill] sm:$0xff] %v12957_v53  ;;  %v2782_v3 = vrot.slane %v12957_v53, 7 }
 0x142   :  { %2896 = vrot.lane.b32.xlu1 %v2753_v45, %s12221_s16  ;;  %v2543_v50 = vcombine.high %v2367_v44, %v2369_v48  ;;  %v2542_v58 = vcombine.low %v2367_v44, %v2369_v48  ;;  %17464 = vst [vmem:[#allocation24_spill] sm:$0xff] %v12911_v34  ;;  %17465 = vst [vmem:[#allocation25_spill] sm:$0xff] %v12915_v40  ;;  %v2763_v44 = vrot.slane %v2761_v26, 2  ;;  %v2776_v47 = vrot.slane %v12911_v34, 7 }
 0x143   :  { %v12838_v51 = vpop.f32.mrf.mxu1  ;;  %v2525_v48 = vcombine.high %v12818_v38, %v12826_v42  ;;  %v12938_v19 = vcombine.high %v12915_v40, %v12915_v40 }
 0x144   :  { %3102 = vrot.lane.b32.xlu0 %v12835_v49, %s12220_s0  ;;  %v12861_v61 = vrot.slane %v2542_v58, %v12371_v27  ;;  %v12896_v24 = vrot.slane %v2543_v50, %v12371_v27  ;;  %v2765_v50 = vsel %vm12793_vm8, %v2763_v44, %v2764_v4  ;;  %v2777_v38 = vsel %vm12793_vm8, %v2775_v46, %v2776_v47 }
 0x145   :  { %v12845_v55 = vpop.f32.mrf.mxu1  ;;  %17467 = vst [vmem:[#allocation27_spill] sm:$0xff] %v12938_v19  ;;  %v12951_v42 = vrot.slane %v2525_v48, %v12371_v27  ;;  %v2769_v48 = vrot.slane %v2767_v22, 2 }
 0x146   :  { %3296 = vrot.lane.b32.xlu1 %v2747_v52, %s12214_s24  ;;  %17459 = vst [vmem:[#allocation19_spill] sm:$0xff] %v12861_v61  ;;  %v12871_v1 = vcombine.high %v12861_v61, %v12861_v61  ;;  %17462 = vst [vmem:[#allocation22_spill] sm:$0xff] %v12896_v24  ;;  %v3285_v31 = vrot.slane %v12896_v24, 7  ;;  %v2561_v22 = vcombine.high %v12838_v51, %v12845_v55 }
 0x147   :  { %17469 = vst [vmem:[#allocation29_spill] sm:$0xff] %v12951_v42  ;;  %v17184_v0 = vrot.slane %v12951_v42, 7 }
 0x148   :  { %2892 = vrot.lane.b32.xlu0 %v2747_v52, %s12221_s16  ;;  %v2806_v12 = vrot.slane %v12871_v1, 7  ;;  %v17185_v52 = vrot.slane %v12938_v19, 7 }
 0x14a   :  { %2898 = vrot.lane.b32.xlu1 %v2756_v57, %s12221_s16  ;;  %v3284_v25 = vrot.slane %v2806_v12, 2  ;;  %v2796_v63 = vrot.slane %v17185_v52, 2 }
 0x14c   :  { %3300 = vrot.lane.b32.xlu0 %v2753_v45, %s12214_s24  ;;  %v12921_v41 = vsel %vm12793_vm8, %v3284_v25, %v3285_v31  ;;  %v12926_v45 = vrot.slane %v2507_v28, %v12371_v27  ;;  %v12988_v15 = vsel %vm12793_vm8, %v2796_v63, %v17184_v0  ;;  %v2760_v25 = vrot.slane %v2758_v11, 2  ;;  %v2377_v63 = vpop.f32.mrf.mxu1 }
 0x14d   :  { %17473 = vst [vmem:[#allocation33_spill] sm:$0xff] %v12988_v15  ;;  %v2784_v31 = vrot.slane %v2782_v3, 2  ;;  %v13005_v11 = vcombine.high %v12951_v42, %v12951_v42 }
 0x14e   :  { %3302 = vrot.lane.b32.xlu1 %v2756_v57, %s12214_s24  ;;  %17466 = vst [vmem:[#allocation26_spill] sm:$0xff] %v12926_v45  ;;  %v2781_v57 = vrot.slane %v2779_v54, 2  ;;  %v2785_v58 = vrot.slane %v12926_v45, 7  ;;  %v12974_v4 = vcombine.high %v12926_v45, %v12926_v45  ;;  %v2762_v43 = vsel %vm12793_vm8, %v2760_v25, %v2761_v26 }
 0x14f   :  { %17474 = vst [vmem:[#allocation34_spill] sm:$0xff] %v13005_v11  ;;  %v17183_v46 = vrot.slane %v13005_v11, 7  ;;  %v2770_v26 = vrot.slane %v12966_v59, 7  ;;  %v13034_v25 = vrot.slane %v2561_v22, %v12371_v27 }
 0x150   :  { %3100 = vrot.lane.b32.xlu0 %v12866_v62, %s12220_s0  ;;  %17472 = vst [vmem:[#allocation32_spill] sm:$0xff] %v12974_v4  ;;  %v2788_v23 = vrot.slane %v12974_v4, 7  ;;  %v2786_v44 = vsel %vm12793_vm8, %v2784_v31, %v2785_v58  ;;  %v2379_v31 = vpop.f32.mrf.mxu1 }
 0x151   :  { %17476 = vst [vmem:[#allocation36_spill] sm:$0xff] %v13034_v25  ;;  %v2579_v17 = vcombine.high %v2377_v63, %v2379_v31 }
 0x152   :  { %3110 = vrot.lane.b32.xlu1 %v12874_v2, %s12220_s0 }
 0x154   :  { %2894 = vrot.lane.b32.xlu0 %v2750_v9, %s12221_s16 }
 0x156   :  { %3304 = vrot.lane.b32.xlu1 %v2759_v13, %s12214_s24 }
 0x158   :  { %3298 = vrot.lane.b32.xlu0 %v2750_v9, %s12214_s24  ;;  %v12980_v9 = vsel %vm12793_vm8, %v2781_v57, %v2782_v3  ;;  %v2803_v57 = vrot.slane %v12861_v61, 7 }
 0x15a   :  { %2906 = vrot.lane.b32.xlu1 %v12907_v33, %s12221_s16 }
 0x15c   :  { %2900 = vrot.lane.b32.xlu0 %v2759_v13, %s12221_s16  ;;  %v2787_v13 = vrot.slane %v2785_v58, 2  ;;  %v13021_v58 = vsel %vm12793_vm8, %v2769_v48, %v2770_v26  ;;  %v2578_v48 = vcombine.low %v2377_v63, %v2379_v31 }
 0x15d   :  { %17475 = vst [vmem:[#allocation35_spill] sm:$0xff] %v13021_v58 }
 0x15e   :  { %3118 = vrot.lane.b32.xlu1 %v12926_v45, %s12220_s0  ;;  %v2789_v28 = vsel %vm12793_vm8, %v2787_v13, %v2788_v23  ;;  %v2805_v13 = vrot.slane %v2803_v57, 2 }
 0x160   :  { %3308 = vrot.lane.b32.xlu0 %v2765_v50, %s12214_s24 }
 0x162   :  { %3316 = vrot.lane.b32.xlu1 %v2777_v38, %s12214_s24 }
 0x164   :  { %2904 = vrot.lane.b32.xlu0 %v2765_v50, %s12221_s16  ;;  %v2802_v50 = vrot.slane %v17183_v46, 2 }
 0x166   :  { %3116 = vrot.lane.b32.xlu1 %v12957_v53, %s12220_s0  ;;  %v13029_v3 = vsel %vm12793_vm8, %v2802_v50, %v2803_v57  ;;  %v13049_v50 = vcombine.high %v13034_v25, %v13034_v25  ;;  %v13061_v57 = vrot.slane %v2578_v48, %v12371_v27 }
 0x168   :  { %3108 = vrot.lane.b32.xlu0 %v12966_v59, %s12220_s0  ;;  %17477 = vst [vmem:[#allocation37_spill] sm:$0xff] %v13049_v50  ;;  %17478 = vst [vmem:[#allocation38_spill] sm:$0xff] %v13061_v57 }
 0x16a   :  { %2916 = vrot.lane.b32.xlu1 %v12980_v9, %s12221_s16 }
 0x16c   :  { %3112 = vrot.lane.b32.xlu0 %v12911_v34, %s12220_s0 }
 0x16e   :  { %3324 = vrot.lane.b32.xlu1 %v2789_v28, %s12214_s24 }
 0x170   :  { %2902 = vrot.lane.b32.xlu0 %v2762_v43, %s12221_s16 }
 0x172   :  { %2918 = vrot.lane.b32.xlu1 %v2786_v44, %s12221_s16 }
 0x174   :  { %3306 = vrot.lane.b32.xlu0 %v2762_v43, %s12214_s24  ;;  %v13041_v43 = vsel %vm12793_vm8, %v2805_v13, %v2806_v12  ;;  %v2819_v13 = vrot.slane %v13049_v50, 7 }
 0x176   :  { %3322 = vrot.lane.b32.xlu1 %v2786_v44, %s12214_s24  ;;  %v2772_v44 = vrot.slane %v2770_v26, 2  ;;  %v2778_v26 = vrot.slane %v2776_v47, 2  ;;  %v13081_v47 = vcombine.high %v13061_v57, %v13061_v57  ;;  %v2821_v48 = vrot.slane %v2819_v13, 2 }
 0x178   :  { %3114 = vrot.lane.b32.xlu0 %v12941_v35, %s12220_s0  ;;  %v2774_v12 = vsel %vm12793_vm8, %v2772_v44, %v2773_v36  ;;  %v2780_v18 = vsel %vm12793_vm8, %v2778_v26, %v2779_v54  ;;  %17479 = vst [vmem:[#allocation39_spill] sm:$0xff] %v13081_v47  ;;  %v13083_v44 = vpop.f32.mrf.mxu1  ;;  %v2822_v54 = vrot.slane %v13061_v57, 7 }
 0x17a   :  { %3130 = vrot.lane.b32.xlu1 %v12861_v61, %s12220_s0  ;;  %v2383_v26 = vpop.f32.mrf.mxu1 }
 0x17b   :  { %v2597_v59 = vcombine.high %v13083_v44, %v2383_v26 }
 0x17c   :  { %2908 = vrot.lane.b32.xlu0 %v13021_v58, %s12221_s16 }
 0x17e   :  { %2930 = vrot.lane.b32.xlu1 %v13029_v3, %s12221_s16 }
 0x180   :  { %2912 = vrot.lane.b32.xlu0 %v2777_v38, %s12221_s16  ;;  %v17182_v38 = vrot.slane %v13034_v25, 7 }
 0x182   :  { %3336 = vrot.lane.b32.xlu1 %v13041_v43, %s12214_s24  ;;  %v2818_v22 = vrot.slane %v17182_v38, 2  ;;  %v2824_v38 = vrot.slane %v2822_v54, 2 }
 0x184   :  { %3120 = vrot.lane.b32.xlu0 %v12974_v4, %s12220_s0  ;;  %v13074_v36 = vsel %vm12793_vm8, %v2818_v22, %v2819_v13  ;;  %v2823_v22 = vsel %vm12793_vm8, %v2821_v48, %v2822_v54  ;;  %v2825_v48 = vrot.slane %v13081_v47, 7  ;;  %v2791_v54 = vrot.slane %v12915_v40, 7 }
 0x186   :  { %3140 = vrot.lane.b32.xlu1 %v13049_v50, %s12220_s0  ;;  %v2826_v63 = vsel %vm12793_vm8, %v2824_v38, %v2825_v48  ;;  %v2793_v7 = vrot.slane %v2791_v54, 2  ;;  %v2827_v15 = vrot.slane %v2825_v48, 2  ;;  %v17489_v48 = vrot.slane %v12951_v42, 7 }
 0x188   :  { %2910 = vrot.lane.b32.xlu0 %v2774_v12, %s12221_s16  ;;  %v2799_v32 = vrot.slane %v17489_v48, 2  ;;  %v17495_v48 = vcombine.low %v12838_v51, %v12845_v55  ;;  %v13241_v51 = vcombine.high %v12896_v24, %v12896_v24 }
 0x18a   :  { %3142 = vrot.lane.b32.xlu1 %v13061_v57, %s12220_s0  ;;  %17505 = vst [vmem:[#allocation59_spill] sm:$0xff] %v13241_v51 }
 0x18c   :  { %2914 = vrot.lane.b32.xlu0 %v2780_v18, %s12221_s16 }
 0x18e   :  { %2940 = vrot.lane.b32.xlu1 %v13074_v36, %s12221_s16 }
 0x190   :  { %3314 = vrot.lane.b32.xlu0 %v2774_v12, %s12214_s24  ;;  %v2596_v12 = vcombine.low %v13083_v44, %v2383_v26  ;;  %v10485_v44 = vld [vmem:[%s17168_s5] ss:$0 sm:$0xff] }
 0x192   :  { %3144 = vrot.lane.b32.xlu1 %v13081_v47, %s12220_s0  ;;  %v13097_v13 = vrot.slane %v2596_v12, %v12371_v27 }
 0x194   :  { %3318 = vrot.lane.b32.xlu0 %v2780_v18, %s12214_s24  ;;  %17480 = vst [vmem:[#allocation40_spill] sm:$0xff] %v13097_v13  ;;  %v13101_v18 = vrot.slane %v2579_v17, %v12371_v27  ;;  %v2790_v17 = vrot.slane %v2788_v23, 2  ;;  %v13131_v23 = vcombine.high %v13097_v13, %v13097_v13  ;;  %v2834_v0 = vrot.slane %v13097_v13, 7 }
 0x196   :  { %2942 = vrot.lane.b32.xlu1 %v2823_v22, %s12221_s16  ;;  %17481 = vst [vmem:[#allocation41_spill] sm:$0xff] %v13101_v18  ;;  %v13112_v31 = vcombine.high %v13101_v18, %v13101_v18  ;;  %v2792_v38 = vsel %vm12793_vm8, %v2790_v17, %v2791_v54  ;;  %17483 = vst [vmem:[#allocation43_spill] sm:$0xff] %v13131_v23 }
 0x198   :  { %3122 = vrot.lane.b32.xlu0 %v12915_v40, %s12220_s0  ;;  %17482 = vst [vmem:[#allocation42_spill] sm:$0xff] %v13112_v31 }
 0x19a   :  { %3346 = vrot.lane.b32.xlu1 %v2823_v22, %s12214_s24 }
 0x19c   :  { %2920 = vrot.lane.b32.xlu0 %v2789_v28, %s12221_s16 }
 0x19e   :  { %3150 = vrot.lane.b32.xlu1 %v13097_v13, %s12220_s0 }
 0x1a0   :  { %3320 = vrot.lane.b32.xlu0 %v12980_v9, %s12214_s24  ;;  %v17191_v9 = vrot.slane %v13112_v31, 7 }
 0x1a2   :  { %v3089_v28 = vpop.permute.xlu0 %3088  ;;  %2944 = vrot.lane.b32.xlu1 %v2826_v63, %s12221_s16  ;;  %v2833_v46 = vrot.slane %v17191_v9, 2  ;;  %v17485_v9 = vcombine.low %v12754_v5, %v12756_v6  ;;  %v17490_v5 = vrot.slane %v13101_v18, 7 }
 0x1a4   :  { %v3091_v22 = vpop.permute.xlu1 %3090  ;;  %3128 = vrot.lane.b32.xlu0 %v13005_v11, %s12220_s0  ;;  %v13141_v16 = vsel %vm12793_vm8, %v2833_v46, %v2834_v0  ;;  %v13152_v54 = vrot.slane %v17485_v9, %v12371_v27  ;;  %v13172_v6 = vsel %vm12793_vm8, %v2827_v15, %v17490_v5  ;;  %v13196_v5 = vrot.slane %v17495_v48, %v12371_v27 }
 0x1a5   :  { %17484 = vst [vmem:[#allocation44_spill] sm:$0xff] %v13141_v16  ;;  %17491 = vst [vmem:[#allocation47_spill] sm:$0xff] %v13172_v6 }
 0x1a6   :  { %v13121_v12 = vpop.permute.xlu0 %3094  ;;  %3348 = vrot.lane.b32.xlu1 %v2826_v63, %s12214_s24  ;;  %v2387_v63 = vpop.f32.mrf.mxu1  ;;  %17486 = vst [vmem:[#allocation45_spill] sm:$0xff] %v13152_v54  ;;  %17496 = vst [vmem:[#allocation50_spill] sm:$0xff] %v13196_v5 }
 0x1a8   :  { %v13126_v56 = vpop.permute.xlu1 %3096  ;;  %2922 = vrot.lane.b32.xlu0 %v2792_v38, %s12221_s16  ;;  %v2389_v33 = vpop.f32.mrf.mxu1 }
 0x1a9   :  { %v2615_v8 = vcombine.high %v2387_v63, %v2389_v33 }
 0x1aa   :  { %v2889_v52 = vpop.permute.xlu0 %2888  ;;  %3152 = vrot.lane.b32.xlu1 %v13131_v23, %s12220_s0 }
 0x1ac   :  { %v2891_v17 = vpop.permute.xlu1 %2890  ;;  %3326 = vrot.lane.b32.xlu0 %v2792_v38, %s12214_s24  ;;  %v17487_v38 = vrot.slane %v12938_v19, 7 }
 0x1ad   :  { %v3037_v9 = vadd.f32 %v2891_v17, %v12767_v14 }
 0x1ae   :  { %v13144_v58 = vpop.permute.xlu0 %3092  ;;  %2950 = vrot.lane.b32.xlu1 %v13141_v16, %s12221_s16  ;;  %v13158_v46 = vsel %vm12793_vm8, %v2793_v7, %v17487_v38  ;;  %v3036_v16 = vadd.f32 %v2889_v52, %v12763_v10  ;;  %v13174_v7 = vpop.f32.mrf.mxu1  ;;  %v13183_v52 = vcombine.high %v13152_v54, %v13152_v54  ;;  %v17493_v38 = vrot.slane %v13005_v11, 7 }
 0x1af   :  { %17488 = vst [vmem:[#allocation46_spill] sm:$0xff] %v13158_v46  ;;  %v2614_v11 = vcombine.low %v2387_v63, %v2389_v33 }
 0x1b0   :  { %v13164_v13 = vpop.permute.xlu1 %3098  ;;  %3328 = vrot.lane.b32.xlu0 %v13158_v46, %s12214_s24  ;;  %17492 = vst [vmem:[#allocation48_spill] sm:$0xff] %v13183_v52  ;;  %v13190_v15 = vsel %vm12793_vm8, %v2799_v32, %v17493_v38  ;;  %v13199_v46 = vrot.slane %v2597_v59, %v12371_v27  ;;  %v3236_v42 = vadd.f32 %v3089_v28, %v3036_v16  ;;  %v2836_v38 = vrot.slane %v2834_v0, 2  ;;  %v2393_v50 = vpop.f32.mrf.mxu1 }
 0x1b1   :  { %17494 = vst [vmem:[#allocation49_spill] sm:$0xff] %v13190_v15  ;;  %v3645_v32 = vcombine.high %v10485_v44, %v10485_v44  ;;  %v13213_v16 = vrot.slane %v10485_v44, %v12371_v27  ;;  %v2837_v59 = vrot.slane %v13131_v23, 7  ;;  %v3492_v28 = vrot.slane %v12772_v20, 2 }
 0x1b2   :  { %v3295_v26 = vpop.permute.xlu0 %3294  ;;  %3350 = vrot.lane.b32.xlu1 %v13172_v6, %s12214_s24  ;;  %17497 = vst [vmem:[#allocation51_spill] sm:$0xff] %v13199_v46  ;;  %v13202_v6 = vrot.slane %v2615_v8, %v12371_v27  ;;  %v3237_v8 = vadd.f32 %v3091_v22, %v3037_v9  ;;  %v13221_v0 = vpop.f32.mrf.mxu1  ;;  %v13228_v44 = vcombine.high %v13199_v46, %v13199_v46  ;;  %v2840_v23 = vrot.slane %v13199_v46, 7 }
 0x1b3   :  { %v3442_v61 = vadd.f32 %v3295_v26, %v3236_v42  ;;  %17500 = vst [vmem:[#allocation54_spill] sm:$0xff] %v13213_v16  ;;  %v13219_v42 = vcombine.high %v13196_v5, %v13196_v5  ;;  %v13232_v26 = vrot.slane %v2614_v11, %v12371_v27  ;;  %v13235_v9 = vrot.slane %v3645_v32, %v12371_v27 }
 0x1b4   :  { %17498 = vst [vmem:[#allocation52_spill] sm:$0xff] %v13202_v6  ;;  %v2897_v17 = vpop.permute.xlu1 %2896  ;;  %2928 = vrot.lane.b32.xlu0 %v13190_v15, %s12221_s16  ;;  %17502 = vst [vmem:[#allocation56_spill] sm:$0xff] %v13228_v44  ;;  %v2838_v55 = vsel %vm12793_vm8, %v2836_v38, %v2837_v59  ;;  %v3493_v15 = vrot.slane %v12816_v37, 2  ;;  %v3496_v11 = vrot.slane %v12821_v39, 2  ;;  %v2632_v22 = vcombine.low %v13174_v7, %v2393_v50 }
 0x1b5   :  { %17501 = vst [vmem:[#allocation55_spill] sm:$0xff] %v13219_v42  ;;  %17503 = vst [vmem:[#allocation57_spill] sm:$0xff] %v13232_v26  ;;  %v3592_v33 = vadd.f32 %v3492_v28, %v3442_v61  ;;  %v2633_v32 = vcombine.high %v13174_v7, %v2393_v50  ;;  %v13251_v38 = vcombine.high %v13235_v9, %v13235_v9  ;;  %v17230_v50 = vrot.slane %v13228_v44, 7 }
 0x1b6   :  { %v13206_v19 = vpop.permute.xlu0 %3102  ;;  %3162 = vrot.lane.b32.xlu1 %v13202_v6, %s12220_s0  ;;  %17504 = vst [vmem:[#allocation58_spill] sm:$0xff] %v13235_v9  ;;  %v13259_v28 = vcombine.high %v13232_v26, %v13232_v26  ;;  %v2846_v39 = vrot.slane %v13232_v26, 7  ;;  %v2839_v24 = vrot.slane %v2837_v59, 2  ;;  %v13275_v14 = vcombine.high %v13202_v6, %v13202_v6 }
 0x1b7   :  { %17499 = vst [vmem:[#allocation53_spill] sm:$0xff] %v13206_v19  ;;  %17506 = vst [vmem:[#allocation60_spill] sm:$0xff] %v13251_v38  ;;  %v13267_v40 = vadd.f32 %v13235_v9, %v3592_v33  ;;  %v13282_v59 = vrot.slane %v2633_v32, %v12371_v27  ;;  %v2845_v47 = vrot.slane %v17230_v50, 2  ;;  %v17513_v32 = vrot.slane %v13101_v18, 7 }
 0x1b8   :  { %v3297_v63 = vpop.permute.xlu1 %3296  ;;  %3132 = vrot.lane.b32.xlu0 %v12871_v1, %s12220_s0  ;;  %17507 = vst [vmem:[#allocation61_spill] sm:$0xff] %v13259_v28  ;;  %17509 = vst [vmem:[#allocation63_spill] sm:$0xff] %v13275_v14 }
 0x1b9   :  { %v3443_v48 = vadd.f32 %v3297_v63, %v3237_v8  ;;  %v3040_v8 = vadd.f32 %v2897_v17, %v12775_v21  ;;  %v13253_v63 = vpop.f32.mrf.mxu1  ;;  %17508 = vst [vmem:[#allocation62_spill] sm:$0xff] %v13267_v40  ;;  %17511 = vst [vmem:[#allocation65_spill] sm:$0xff] %v13282_v59  ;;  %v2830_v46 = vrot.slane %v17513_v32, 2  ;;  %v3718_v50 = vand.u32 2147483647, %v13267_v40 }
 0x1ba   :  { %v2893_v19 = vpop.permute.xlu0 %2892  ;;  %2952 = vrot.lane.b32.xlu1 %v2838_v55, %s12221_s16  ;;  %v2650_v33 = vcombine.low %v13221_v0, %v13253_v63  ;;  %v17516_v32 = vrot.slane %v13202_v6, 7 }
 0x1bb   :  { %v3593_v17 = vadd.f32 %v3493_v15, %v3443_v48  ;;  %v13279_v48 = vrot.slane %v2632_v22, %v12371_v27  ;;  %v3240_v7 = vadd.f32 %v13126_v56, %v3040_v8  ;;  %v17512_v22 = vrot.slane %v13219_v42, 7 }
 0x1bc   :  { %v2899_v61 = vpop.permute.xlu1 %2898  ;;  %3334 = vrot.lane.b32.xlu0 %v13029_v3, %s12214_s24  ;;  %v13301_v56 = vsel %vm12793_vm8, %v2839_v24, %v2840_v23  ;;  %v2849_v8 = vrot.slane %v13259_v28, 7  ;;  %v2854_v15 = vrot.slane %v17516_v32, 2  ;;  %v13316_v42 = vrot.slane %v2840_v23, 2 }
 0x1bd   :  { %17510 = vst [vmem:[#allocation64_spill] sm:$0xff] %v13279_v48  ;;  %v2815_v26 = vrot.slane %v17512_v22, 2  ;;  %v13297_v51 = vadd.f32 %v13251_v38, %v3593_v17  ;;  %17514 = vst [vmem:[#allocation66_spill] sm:$0xff] %v13301_v56  ;;  %v2848_v22 = vrot.slane %v2846_v39, 2  ;;  %v2855_v17 = vrot.slane %v13275_v14, 7 }
 0x1be   :  { %v13269_v3 = vpop.permute.xlu0 %3300  ;;  %3356 = vrot.lane.b32.xlu1 %v2838_v55, %s12214_s24  ;;  %v3041_v24 = vadd.f32 %v2899_v61, %v12791_v29  ;;  %v17520_v32 = vrot.slane %v13034_v25, 7  ;;  %v17522_v61 = vrot.slane %v13112_v31, 7 }
 0x1bf   :  { %vm4019_vm10 = vcmp.ge.f32.partialorder %v13297_v51, 0.0 }
 0x1c0   :  { %v3303_v55 = vpop.permute.xlu1 %3302  ;;  %3138 = vrot.lane.b32.xlu0 %v13034_v25, %s12220_s0  ;;  %v13336_v23 = vsel %vm12793_vm8, %v2830_v46, %v17522_v61  ;;  %v13350_v46 = vsel %vm12793_vm8, %v2848_v22, %v2849_v8  ;;  %v13354_v61 = vsel %vm12793_vm8, %v2854_v15, %v2855_v17  ;;  %v17243_v15 = vrot.slane %v13282_v59, 7 }
 0x1c1   :  { %v3446_v54 = vadd.f32 %v3303_v55, %v3240_v7  ;;  %v13313_v7 = vrot.slane %v2650_v33, %v12371_v27  ;;  %v13330_v33 = vsel %vm12793_vm8, %v2815_v26, %v17520_v32  ;;  %v3768_v26 = vsub.f32 0.0, %v3718_v50 }
 0x1c2   :  { %v13305_v53 = vpop.permute.xlu0 %3100  ;;  %3160 = vrot.lane.b32.xlu1 %v13259_v28, %s12220_s0  ;;  %17521 = vst [vmem:[#allocation71_spill] sm:$0xff] %v13330_v33  ;;  %v3241_v50 = vadd.f32 %v13164_v13, %v3041_v24 }
 0x1c3   :  { %17515 = vst [vmem:[#allocation67_spill] sm:$0xff] %v13305_v53  ;;  %17517 = vst [vmem:[#allocation68_spill] sm:$0xff] %v13313_v7  ;;  %v3596_v55 = vadd.f32 %v3496_v11, %v3446_v54  ;;  %v13324_v53 = vsel %vm12793_vm8, %v2845_v47, %v2846_v39  ;;  %v13340_v54 = vcombine.high %v13282_v59, %v13282_v59  ;;  %v2858_v11 = vrot.slane %v13279_v48, 7 }
 0x1c4   :  { %v13318_v40 = vpop.permute.xlu1 %3110  ;;  %2932 = vrot.lane.b32.xlu0 %v13041_v43, %s12221_s16  ;;  %17519 = vst [vmem:[#allocation70_spill] sm:$0xff] %v13324_v53  ;;  %v3719_v43 = vand.u32 2147483647, %v13297_v51  ;;  %v3038_v39 = vadd.f32 %v2893_v19, %v12772_v20  ;;  %v3820_v24 = vmul.f32 1.442695, %v3768_v26  ;;  %v13374_v47 = vcombine.high %v13213_v16, %v13213_v16 }
 0x1c5   :  { %17518 = vst [vmem:[#allocation69_spill] sm:$0xff] %v13318_v40  ;;  %17523 = vst [vmem:[#allocation72_spill] sm:$0xff] %v13340_v54  ;;  %v2857_v40 = vrot.slane %v2855_v17, 2  ;;  %v13357_v20 = vadd.f32 %v13235_v9, %v3596_v55  ;;  %v13368_v17 = vcombine.high %v13279_v48, %v13279_v48 }
 0x1c6   :  { %v2895_v32 = vpop.permute.xlu0 %2894  ;;  %2958 = vrot.lane.b32.xlu1 %v13324_v53, %s12221_s16  ;;  %v2851_v53 = vrot.slane %v2849_v8, 2  ;;  %v3769_v55 = vsub.f32 0.0, %v3719_v43  ;;  %v3238_v13 = vadd.f32 %v13144_v58, %v3038_v39  ;;  %v17525_v58 = vrot.slane %v12866_v62, 2 }
 0x1c7   :  { %v3039_v19 = vadd.f32 %v2895_v32, %v12816_v37  ;;  %17524 = vst [vmem:[#allocation73_spill] sm:$0xff] %v13368_v17  ;;  %v13380_v8 = vsel %vm12793_vm8, %v2857_v40, %v2858_v11  ;;  %v2866_v43 = vrot.slane %v17243_v15, 2  ;;  %11783 = vpow2.f32 %v3820_v24 }
 0x1c8   :  { %v3305_v60 = vpop.permute.xlu1 %3304  ;;  %3338 = vrot.lane.b32.xlu0 %v12921_v41, %s12214_s24  ;;  %v3822_v22 = vmul.f32 1.442695, %v3769_v55  ;;  %v17545_v15 = vrot.slane %v13282_v59, 7  ;;  %vm4022_vm11 = vcmp.ge.f32.partialorder %v13357_v20, 0.0 }
 0x1c9   :  { %v3239_v37 = vadd.f32 %v13121_v12, %v3039_v19  ;;  %v3447_v32 = vadd.f32 %v3305_v60, %v3241_v50  ;;  %v3722_v12 = vand.u32 2147483647, %v13357_v20  ;;  %v17527_v50 = vrot.slane %v13202_v6, 7 }
 0x1ca   :  { %v3299_v41 = vpop.permute.xlu0 %3298  ;;  %3358 = vrot.lane.b32.xlu1 %v13301_v56, %s12214_s24  ;;  %v2651_v56 = vcombine.high %v13221_v0, %v13253_v63  ;;  %11785 = vpow2.f32 %v3822_v22  ;;  %v17541_v22 = vld [vmem:[#allocation45_spill] sm:$0xff] }
 0x1cb   :  { %v3445_v60 = vadd.f32 %v13269_v3, %v3239_v37  ;;  %v3597_v39 = vadd.f32 %v17525_v58, %v3447_v32  ;;  %v3444_v26 = vadd.f32 %v3299_v41, %v3238_v13  ;;  %v13395_v40 = vsel %vm12793_vm8, %v2851_v53, %v17527_v50 }
 0x1cc   :  { %v13387_v19 = vpop.permute.xlu1 %2906  ;;  %3146 = vrot.lane.b32.xlu0 %v13101_v18, %s12220_s0  ;;  %v2867_v3 = vrot.slane %v13340_v54, 7  ;;  %v2860_v37 = vrot.slane %v2858_v11, 2  ;;  %v17528_v32 = vrot.slane %v12791_v29, 2  ;;  %v2861_v41 = vrot.slane %v13368_v17, 7  ;;  %v2401_v11 = vpop.f32.mrf.mxu1 }
 0x1cd   :  { %17526 = vst [vmem:[#allocation74_spill] sm:$0xff] %v13387_v19  ;;  %v17529_v53 = vrot.slane %v12775_v21, 2  ;;  %v17530_v29 = vrot.slane %v13183_v52, 7  ;;  %v13419_v0 = vadd.f32 %v13251_v38, %v3597_v39  ;;  %v13423_v21 = vcombine.high %v13313_v7, %v13313_v7  ;;  %v313_v18 = vpop.f32.mrf.mxu0 }
 0x1ce   :  { %v3595_v13 = vadd.f32 %v17528_v32, %v3445_v60  ;;  %v13408_v9 = vpop.permute.xlu0 %2900  ;;  %3166 = vrot.lane.b32.xlu1 %v13279_v48, %s12220_s0  ;;  %v3772_v60 = vsub.f32 0.0, %v3722_v12  ;;  %v17532_v12 = vrot.slane %v13228_v44, 7  ;;  %v17573_v44 = vld [vmem:[#allocation17_spill] sm:$0xff] }
 0x1cf   :  { %v3594_v50 = vadd.f32 %v17529_v53, %v3444_v26  ;;  %v2736_v55 = vrot.slane %v17530_v29, 2  ;;  %17531 = vst [vmem:[#allocation75_spill] sm:$0xff] %v13423_v21  ;;  %v13431_v26 = vsel %vm12793_vm8, %v2866_v43, %v2867_v3  ;;  %v2863_v53 = vrot.slane %v2861_v41, 2 }
 0x1d0   :  { %v13416_v32 = vadd.f32 %v13374_v47, %v3595_v13  ;;  %v13425_v63 = vpop.permute.xlu1 %3118  ;;  %3344 = vrot.lane.b32.xlu0 %v13074_v36, %s12214_s24  ;;  %v13439_v39 = vsel %vm12793_vm8, %v13316_v42, %v17532_v12  ;;  %v2810_v29 = vrot.slane %v13196_v5, 7  ;;  %v13444_v36 = vrot.slane %v2651_v56, %v12371_v27 }
 0x1d1   :  { %17533 = vst [vmem:[#allocation76_spill] sm:$0xff] %v13439_v39  ;;  %v13447_v43 = vadd.f32 %v13213_v16, %v3594_v50  ;;  %v13455_v42 = vsel %vm12793_vm8, %v2860_v37, %v2861_v41  ;;  %v3828_v12 = vmul.f32 1.442695, %v3772_v60  ;;  %v3723_v58 = vand.u32 2147483647, %v13419_v0  ;;  %v17539_v37 = vld [vmem:[#allocation30_spill] sm:$0xff] }
 0x1d2   :  { %v3721_v13 = vand.u32 2147483647, %v13416_v32  ;;  %17534 = vst [vmem:[#allocation77_spill] sm:$0xff] %v13444_v36  ;;  %v13449_v24 = vpop.permute.xlu0 %3308  ;;  %3170 = vrot.lane.b32.xlu1 %v13282_v59, %s12220_s0  ;;  %17535 = vst [vmem:[#allocation78_spill] sm:$0xff] %v13455_v42  ;;  %v17536_v56 = vrot.slane %v12763_v10, 7  ;;  %v17540_v60 = vrot.slane %v13183_v52, 7 }
 0x1d3   :  { %v17542_v39 = vrot.slane %v17541_v22, 9  ;;  %v2812_v57 = vrot.slane %v2810_v29, 2  ;;  %v3720_v52 = vand.u32 2147483647, %v13447_v43  ;;  %11787 = vpow2.f32 %v3828_v12 }
 0x1d4   :  { %v13463_v50 = vsel %vm12793_vm8, %v2736_v55, %v17536_v56  ;;  %v3771_v5 = vsub.f32 0.0, %v3721_v13  ;;  %v13466_v2 = vpop.permute.xlu1 %3316  ;;  %3148 = vrot.lane.b32.xlu0 %v13112_v31, %s12220_s0  ;;  %v17544_v55 = vld [vmem:[#allocation59_spill] sm:$0xff]  ;;  %v13484_v13 = vsel %vm12793_vm8, %v2863_v53, %v17545_v15  ;;  %v3773_v53 = vsub.f32 0.0, %v3723_v58 }
 0x1d5   :  { %17537 = vst [vmem:[#allocation79_spill] sm:$0xff] %v13463_v50  ;;  %17538 = vst [vmem:[#allocation80_spill] sm:$0xff] %v13466_v2  ;;  %v13477_v10 = vsel %vm12793_vm8, %v17542_v39, %v17540_v60  ;;  %v10484_v56 = vrot.slane %v17544_v55, 9  ;;  %v2403_v39 = vpop.f32.mrf.mxu1  ;;  %v17556_v58 = vld [vmem:[#allocation55_spill] sm:$0xff]  ;;  %v3770_v2 = vsub.f32 0.0, %v3720_v52  ;;  %v11784_v55 = vpop.eup %11783  ;;  %vm4023_vm12 = vcmp.ge.f32.partialorder %v13419_v0, 0.0 }
 0x1d6   :  { %17543 = vst [vmem:[#allocation81_spill] sm:$0xff] %v13477_v10  ;;  %17546 = vst [vmem:[#allocation82_spill] sm:$0xff] %v13484_v13  ;;  %v13489_v22 = vpop.permute.xlu0 %2904  ;;  %2960 = vrot.lane.b32.xlu1 %v13350_v46, %s12221_s16  ;;  %v2869_v13 = vrot.slane %v2867_v3, 2  ;;  %v3826_v19 = vmul.f32 1.442695, %v3771_v5  ;;  %v2668_v15 = vcombine.low %v2401_v11, %v2403_v39  ;;  %v13509_v3 = vcombine.high %v13444_v36, %v13444_v36  ;;  %v17567_v39 = vld [vmem:[#allocation21_spill] sm:$0xff] }
 0x1d7   :  { %17549 = vst [vmem:[#allocation83_spill] sm:$0xff] %v13489_v22  ;;  %v13503_v50 = vsel %vm12793_vm8, %v10484_v56, %v2810_v29  ;;  %v17557_v5 = vrot.slane %v17556_v58, 7  ;;  %v3830_v60 = vmul.f32 1.442695, %v3773_v53  ;;  %v17562_v10 = vrot.slane %v13313_v7, 7  ;;  %v11786_v52 = vpop.eup %11785  ;;  %v315_v53 = vpop.f32.mrf.mxu0 }
 0x1d8   :  { %v13497_v41 = vpop.permute.xlu1 %3116  ;;  %2938 = vrot.lane.b32.xlu0 %v13330_v33, %s12221_s16  ;;  %17552 = vst [vmem:[#allocation84_spill] sm:$0xff] %v13503_v50  ;;  %17555 = vst [vmem:[#allocation85_spill] sm:$0xff] %v13509_v3  ;;  %11789 = vpow2.f32 %v3826_v19  ;;  %v2879_v33 = vrot.slane %v13509_v3, 7  ;;  %v3824_v11 = vmul.f32 1.442695, %v3770_v2  ;;  %v3918_v31 = vadd.f32 1.0, %v11784_v55 }
 0x1d9   :  { %v13515_v12 = vsel %vm12793_vm8, %v2812_v57, %v17557_v5  ;;  %v13529_v57 = vsel %vm12793_vm8, %v2869_v13, %v17562_v10  ;;  %v13541_v10 = vrot.slane %v2668_v15, %v12371_v27  ;;  %v17568_v15 = vld [vmem:[#allocation31_spill] sm:$0xff]  ;;  %11791 = vpow2.f32 %v3830_v60  ;;  %v17569_v50 = vld [vmem:[#allocation57_spill] sm:$0xff]  ;;  %v17572_v19 = vld [vmem:[#allocation62_spill] sm:$0xff]  ;;  %v13587_v27 = vpop.f32.mrf.mxu0 }
 0x1da   :  { %17558 = vst [vmem:[#allocation86_spill] sm:$0xff] %v13515_v12  ;;  %v13518_v29 = vpop.permute.xlu0 %3108  ;;  %3368 = vrot.lane.b32.xlu1 %v13354_v61, %s12214_s24  ;;  %17563 = vst [vmem:[#allocation88_spill] sm:$0xff] %v13529_v57  ;;  %v4068_v48 = vmul.f32 %v11784_v55, %v11784_v55  ;;  %v3919_v12 = vadd.f32 1.0, %v11786_v52  ;;  %v17571_v5 = vrot.slane %v13444_v36, 7  ;;  %v2881_v56 = vrot.slane %v2879_v33, 2 }
 0x1db   :  { %17560 = vst [vmem:[#allocation87_spill] sm:$0xff] %v13518_v29  ;;  %17565 = vst [vmem:[#allocation89_spill] sm:$0xff] %v13541_v10  ;;  %v2882_v13 = vrot.slane %v13541_v10, 7  ;;  %vm4018_vm9 = vcmp.ge.f32.partialorder %v17572_v19, 0.0  ;;  %v4069_v55 = vmul.f32 %v11786_v52, %v11786_v52  ;;  %11793 = vpow2.f32 %v3824_v11  ;;  %v17576_v52 = vld [vmem:[#allocation47_spill] sm:$0xff] }
 0x1dc   :  { %v13533_v34 = vpop.permute.xlu1 %2916  ;;  %2948 = vrot.lane.b32.xlu0 %v13336_v23, %s12221_s16  ;;  %v2878_v60 = vrot.slane %v17571_v5, 2  ;;  %v13570_v28 = vmul.f32 %v3918_v31, %v3918_v31  ;;  %v13573_v5 = vcombine.low %v313_v18, %v315_v53  ;;  %v13575_v59 = vcombine.high %v313_v18, %v315_v53 }
 0x1dd   :  { %v13577_v25 = vsel %vm4018_vm9, %v4068_v48, 1.0  ;;  %v13585_v31 = vcombine.high %v13541_v10, %v13541_v10  ;;  %v13590_v18 = vmul.f32 %v3919_v12, %v3919_v12  ;;  %v17579_v48 = vld [vmem:[#allocation53_spill] sm:$0xff]  ;;  %v13604_v12 = vpop.f32.mrf.mxu0  ;;  %vm4021_vm13 = vcmp.ge.f32.partialorder %v13416_v32, 0.0 }
 0x1de   :  { %v13546_v6 = vpop.permute.xlu0 %3112  ;;  %3172 = vrot.lane.b32.xlu1 %v13340_v54, %s12220_s0  ;;  %17574 = vst [vmem:[#allocation62_spill] sm:$0xff] %v13573_v5  ;;  %17575 = vst [vmem:[#allocation17_spill] sm:$0xff] %v13575_v59  ;;  %v17580_v5 = vld [vmem:[#allocation67_spill] sm:$0xff]  ;;  %v13602_v22 = vsel %vm12793_vm8, %v2878_v60, %v2879_v33  ;;  %v17582_v33 = vld [vmem:[#allocation44_spill] sm:$0xff]  ;;  %v13617_v60 = vsel %vm12793_vm8, %v2881_v56, %v2882_v13  ;;  %vm4020_vm14 = vcmp.ge.f32.partialorder %v13447_v43, 0.0 }
 0x1df   :  { %17566 = vst [vmem:[#allocation90_spill] sm:$0xff] %v13546_v6  ;;  %17578 = vst [vmem:[#allocation47_spill] sm:$0xff] %v13585_v31 }
 0x1e0   :  { %v13555_v2 = vpop.permute.xlu1 %3324  ;;  %3352 = vrot.lane.b32.xlu0 %v13336_v23, %s12214_s24  ;;  %v3042_v23 = vadd.f32 %v13408_v9, %v17573_v44  ;;  %v11788_v6 = vpop.eup %11787  ;;  %v17577_v44 = vrot.slane %v13423_v21, 7  ;;  %17581 = vst [vmem:[#allocation53_spill] sm:$0xff] %v13602_v22  ;;  %17583 = vst [vmem:[#allocation67_spill] sm:$0xff] %v13617_v60 }
 0x1e2   :  { %v2903_v57 = vpop.permute.xlu0 %2902  ;;  %2966 = vrot.lane.b32.xlu1 %v13380_v8, %s12221_s16  ;;  %v2875_v9 = vrot.slane %v17577_v44, 2  ;;  %v3242_v44 = vadd.f32 %v17580_v5, %v3042_v23  ;;  %v3050_v23 = vadd.f32 %v13533_v34, %v12941_v35 }
 0x1e3   :  { %v3043_v54 = vadd.f32 %v2903_v57, %v12866_v62  ;;  %v13619_v62 = vpop.f32.mrf.mxu0 }
 0x1e4   :  { %v2919_v11 = vpop.permute.xlu1 %2918  ;;  %2946 = vrot.lane.b32.xlu0 %v17576_v52, %s12221_s16  ;;  %v13595_v52 = vsel %vm4019_vm10, %v4069_v55, 1.0  ;;  %v4072_v55 = vmul.f32 %v11788_v6, %v11788_v6  ;;  %v3250_v10 = vadd.f32 %v13497_v41, %v3050_v23  ;;  %v13672_v41 = vcombine.low %v13587_v27, %v13604_v12 }
 0x1e5   :  { %v3243_v57 = vadd.f32 %v17579_v48, %v3043_v54  ;;  %v3051_v53 = vadd.f32 %v2919_v11, %v17539_v37  ;;  %v4268_v54 = vadd.f32 %v13577_v25, %v13570_v28  ;;  %v3922_v11 = vadd.f32 1.0, %v11788_v6  ;;  %v11790_v22 = vpop.eup %11789 }
 0x1e6   :  { %v3307_v59 = vpop.permute.xlu0 %3306  ;;  %2962 = vrot.lane.b32.xlu1 %v13395_v40, %s12221_s16  ;;  %v4269_v6 = vadd.f32 %v13595_v52, %v13590_v18  ;;  %v3921_v60 = vadd.f32 1.0, %v11790_v22  ;;  %17594 = vst [vmem:[#allocation93_spill] sm:$0xff] %v13672_v41  ;;  %vm434_vm10 = vcmask 1042432  }
 0x1e7   :  { %v3449_v48 = vadd.f32 %v13449_v24, %v3243_v57  ;;  %v3251_v5 = vadd.f32 %v13425_v63, %v3051_v53  ;;  %v3448_v37 = vadd.f32 %v3307_v59, %v3242_v44  ;;  %v17584_v24 = vld [vmem:[#allocation18_spill] sm:$0xff]  ;;  %v17586_v63 = vrot.slane %v13444_v36, 7 }
 0x1e8   :  { %v3323_v29 = vpop.permute.xlu1 %3322  ;;  %3354 = vrot.lane.b32.xlu0 %v17582_v33, %s12214_s24  ;;  %v17585_v57 = vrot.slane %v17584_v24, 2  ;;  %v13631_v53 = vrot.slane %v2882_v13, 2  ;;  %v17589_v33 = vrot.slane %v13313_v7, 7  ;;  %11795 = vrcp.f32 %v4268_v54 }
 0x1e9   :  { %v13629_v59 = vsel %vm12793_vm8, %v2875_v9, %v17586_v63  ;;  %v13646_v13 = vmul.f32 %v3922_v11, %v3922_v11  ;;  %v13648_v9 = vsel %vm4022_vm11, %v4072_v55, 1.0  ;;  %v17591_v44 = vrot.slane %v12835_v49, 2 }
 0x1ea   :  { %v3599_v34 = vadd.f32 %v17585_v57, %v3449_v48  ;;  %17587 = vst [vmem:[#allocation44_spill] sm:$0xff] %v13629_v59  ;;  %v13635_v56 = vpop.permute.xlu0 %3114  ;;  %3366 = vrot.lane.b32.xlu1 %v13395_v40, %s12214_s24  ;;  %v13640_v48 = vpop.f32.mrf.mxu0  ;;  %v13644_v57 = vrot.slane %v17589_v33, 2  ;;  %v3457_v40 = vadd.f32 %v13555_v2, %v3251_v5  ;;  %11797 = vrcp.f32 %v4269_v6 }
 0x1eb   :  { %17588 = vst [vmem:[#allocation18_spill] sm:$0xff] %v13635_v56  ;;  %v11792_v59 = vpop.eup %11791  ;;  %v3598_v56 = vadd.f32 %v17591_v44, %v3448_v37  ;;  %v4071_v11 = vmul.f32 %v11790_v22, %v11790_v22  ;;  %v3456_v37 = vadd.f32 %v3323_v29, %v3250_v10  ;;  %v4272_v6 = vadd.f32 %v13648_v9, %v13646_v13 }
 0x1ec   :  { %v13651_v63 = vadd.f32 %v13374_v47, %v3599_v34  ;;  %v3131_v7 = vpop.permute.xlu1 %3130  ;;  %3158 = vrot.lane.b32.xlu0 %v17569_v50, %s12220_s0  ;;  %v327_v54 = vpop.f32.mrf.mxu0  ;;  %v17592_v34 = vrot.slane %v12974_v4, 2  ;;  %v3923_v44 = vadd.f32 1.0, %v11792_v59  ;;  %v13677_v29 = vmul.f32 %v3921_v60, %v3921_v60  ;;  %v17597_v60 = vld [vmem:[#allocation34_spill] sm:$0xff] }
 0x1ed   :  { %v13664_v2 = vadd.f32 %v13213_v16, %v3598_v56  ;;  %v11794_v22 = vpop.eup %11793  ;;  %v17596_v50 = vrot.slane %v12926_v45, 2  ;;  %vm435_vm11 = vcmask 1046532  }
 0x1ee   :  { %17590 = vst [vmem:[#allocation91_spill] sm:$0xff] %v13651_v63  ;;  %v3725_v55 = vand.u32 2147483647, %v13651_v63  ;;  %v3607_v33 = vadd.f32 %v17592_v34, %v3457_v40  ;;  %v13666_v5 = vpop.permute.xlu0 %2908  ;;  %2972 = vrot.lane.b32.xlu1 %v13431_v26, %s12221_s16  ;;  %v329_v23 = vpop.f32.mrf.mxu0  ;;  %v4073_v40 = vmul.f32 %v11792_v59, %v11792_v59  ;;  %v13689_v59 = vsel %vm4021_vm13, %v4071_v11, 1.0 }
 0x1ef   :  { %17593 = vst [vmem:[#allocation92_spill] sm:$0xff] %v13664_v2  ;;  %v3724_v34 = vand.u32 2147483647, %v13664_v2  ;;  %v3606_v41 = vadd.f32 %v17596_v50, %v3456_v37  ;;  %v3920_v2 = vadd.f32 1.0, %v11794_v22 }
 0x1f0   :  { %v3775_v56 = vsub.f32 0.0, %v3725_v55  ;;  %v13680_v10 = vadd.f32 %v13374_v47, %v3607_v33  ;;  %v2931_v4 = vpop.permute.xlu1 %2930  ;;  %3164 = vrot.lane.b32.xlu0 %v13275_v14, %s12220_s0  ;;  %v333_v35 = vpop.f32.mrf.mxu0  ;;  %v13694_v33 = vcombine.high %v13587_v27, %v13604_v12  ;;  %v4070_v27 = vmul.f32 %v11794_v22, %v11794_v22 }
 0x1f1   :  { %v3057_v63 = vadd.f32 %v2931_v4, %v17597_v60  ;;  %v3774_v50 = vsub.f32 0.0, %v3724_v34  ;;  %v13698_v37 = vadd.f32 %v13213_v16, %v3606_v41  ;;  %v13708_v4 = vsel %vm4023_vm12, %v4073_v40, 1.0 }
 0x1f2   :  { %17595 = vst [vmem:[#allocation94_spill] sm:$0xff] %v13680_v10  ;;  %v3834_v55 = vmul.f32 1.442695, %v3775_v56  ;;  %17598 = vst [vmem:[#allocation95_spill] sm:$0xff] %v13694_v33  ;;  %v3733_v45 = vand.u32 2147483647, %v13680_v10  ;;  %v13700_v14 = vpop.permute.xlu0 %2912  ;;  %3372 = vrot.lane.b32.xlu1 %v13455_v42, %s12214_s24  ;;  %v335_v11 = vpop.f32.mrf.mxu0  ;;  %v13704_v56 = vmul.f32 %v3923_v44, %v3923_v44  ;;  %v4271_v34 = vadd.f32 %v13689_v59, %v13677_v29 }
 0x1f3   :  { %v3257_v12 = vadd.f32 %v3131_v7, %v3057_v63  ;;  %v3832_v33 = vmul.f32 1.442695, %v3774_v50  ;;  %v3732_v44 = vand.u32 2147483647, %v13698_v37  ;;  %v13717_v40 = vcombine.low %v13619_v62, %v13640_v48 }
 0x1f4   :  { %11799 = vpow2.f32 %v3834_v55  ;;  %v3783_v41 = vsub.f32 0.0, %v3733_v45  ;;  %v3337_v10 = vpop.permute.xlu1 %3336  ;;  %2964 = vrot.lane.b32.xlu0 %v13354_v61, %s12221_s16  ;;  %v337_v16 = vpop.f32.mrf.mxu0  ;;  %v13721_v7 = vcombine.high %v13619_v62, %v13640_v48  ;;  %v13723_v63 = vmul.f32 %v3920_v2, %v3920_v2 }
 0x1f5   :  { %v3463_v42 = vadd.f32 %v3337_v10, %v3257_v12  ;;  %17599 = vst [vmem:[#allocation96_spill] sm:$0xff] %v13717_v40  ;;  %11801 = vpow2.f32 %v3832_v33  ;;  %v13729_v61 = vcombine.low %v327_v54, %v329_v23  ;;  %v17602_v55 = vrot.slane %v12871_v1, 2  ;;  %v11796_v48 = vpop.eup %11795 }
 0x1f6   :  { %17600 = vst [vmem:[#allocation97_spill] sm:$0xff] %v13721_v7  ;;  %v3850_v45 = vmul.f32 1.442695, %v3783_v41  ;;  %v13725_v22 = vpop.permute.xlu0 %3120  ;;  %3376 = vrot.lane.b32.xlu1 %v13431_v26, %s12214_s24  ;;  %v339_v10 = vpop.f32.mrf.mxu0  ;;  %v13733_v12 = vcombine.high %v327_v54, %v329_v23  ;;  %v13735_v40 = vcombine.low %v333_v35, %v335_v11  ;;  %v13737_v62 = vcombine.high %v333_v35, %v335_v11 }
 0x1f7   :  { %17601 = vst [vmem:[#allocation98_spill] sm:$0xff] %v13729_v61  ;;  %v3613_v50 = vadd.f32 %v17602_v55, %v3463_v42  ;;  %v4168_v2 = vsub.f32 %v13570_v28, %v13577_v25  ;;  %v4169_v33 = vsub.f32 %v13590_v18, %v13595_v52  ;;  %v13745_v26 = vsel %vm4020_vm14, %v4070_v27, 1.0  ;;  %v11798_v28 = vpop.eup %11797  ;;  %vm14121_vm14 = vmor %vm434_vm10, %vm435_vm11 }
 0x1f8   :  { %17603 = vst [vmem:[#allocation99_spill] sm:$0xff] %v13733_v12  ;;  %17604 = vst [vmem:[#allocation100_spill] sm:$0xff] %v13735_v40  ;;  %v13747_v41 = vpop.permute.xlu1 %3140  ;;  %3364 = vrot.lane.b32.xlu0 %v13350_v46, %s12214_s24  ;;  %v13751_v1 = vcombine.low %v337_v16, %v339_v10  ;;  %v343_v35 = vpop.f32.mrf.mxu0  ;;  %11803 = vpow2.f32 %v3850_v45  ;;  %v3782_v42 = vsub.f32 0.0, %v3732_v44  ;;  %v13756_v25 = vcombine.high %v337_v16, %v339_v10 }
 0x1f9   :  { %17605 = vst [vmem:[#allocation101_spill] sm:$0xff] %v13737_v62  ;;  %v13754_v54 = vadd.f32 %v13251_v38, %v3613_v50  ;;  %11805 = vrcp.f32 %v4272_v6  ;;  %v4273_v18 = vadd.f32 %v13708_v4, %v13704_v56  ;;  %v4270_v27 = vadd.f32 %v13745_v26, %v13723_v63 }
 0x1fa   :  { %17606 = vst [vmem:[#allocation102_spill] sm:$0xff] %v13751_v1  ;;  %17607 = vst [vmem:[#allocation103_spill] sm:$0xff] %v13756_v25  ;;  %v2911_v52 = vpop.permute.xlu0 %2910  ;;  %3180 = vrot.lane.b32.xlu1 %v13509_v3, %s12220_s0  ;;  %v345_v46 = vpop.f32.mrf.mxu0  ;;  %11807 = vrcp.f32 %v4271_v34  ;;  %v4219_v6 = vmul.f32 %v4169_v33, %v13297_v51  ;;  %v4218_v11 = vmul.f32 %v4168_v2, %v17572_v19  ;;  %v3848_v23 = vmul.f32 1.442695, %v3782_v42  ;;  %v17610_v25 = vld [vmem:[#allocation69_spill] sm:$0xff]  ;;  %v17613_v2 = vld [vmem:[#allocation80_spill] sm:$0xff] }
 0x1fb   :  { %v3047_v16 = vadd.f32 %v2911_v52, %v17568_v15  ;;  %v13767_v44 = vcombine.low %v343_v35, %v345_v46  ;;  %v3739_v45 = vand.u32 2147483647, %v13754_v54  ;;  %v13775_v55 = vcombine.high %v343_v35, %v345_v46  ;;  %v17611_v35 = vld [vmem:[#allocation82_spill] sm:$0xff] }
 0x1fc   :  { %v13771_v10 = vpop.permute.xlu1 %3142  ;;  %3168 = vrot.lane.b32.xlu0 %v13368_v17, %s12220_s0  ;;  %v347_v50 = vpop.f32.mrf.mxu0  ;;  %v3046_v52 = vadd.f32 %v13666_v5, %v17567_v39  ;;  %v4369_v33 = vmul.f32 %v11798_v28, %v4219_v6  ;;  %v4172_v15 = vsub.f32 %v13646_v13, %v13648_v9  ;;  %11809 = vrcp.f32 %v4273_v18  ;;  %v17619_v6 = vld [vmem:[#allocation74_spill] sm:$0xff] }
 0x1fd   :  { %17608 = vst [vmem:[#allocation104_spill] sm:$0xff] %v13767_v44  ;;  %17609 = vst [vmem:[#allocation105_spill] sm:$0xff] %v13775_v55  ;;  %v3247_v51 = vadd.f32 %v17610_v25, %v3047_v16  ;;  %v13789_v19 = vmul.f32 %v11796_v48, %v4218_v11  ;;  %11811 = vrcp.f32 %v4270_v27  ;;  %v17614_v42 = vrot.slane %v13585_v31, 7  ;;  %v17637_v17 = vld [vmem:[#allocation54_spill] sm:$0xff] }
 0x1fe   :  { %v13784_v3 = vpop.permute.xlu0 %2914  ;;  %2970 = vrot.lane.b32.xlu1 %v17611_v35, %s12221_s16  ;;  %v349_v46 = vpop.f32.mrf.mxu0  ;;  %v3789_v9 = vsub.f32 0.0, %v3739_v45  ;;  %v17615_v28 = vrot.slane %v13423_v21, 7  ;;  %v13816_v45 = vadd.f32 %v17619_v6, %v17584_v24  ;;  %11813 = vpow2.f32 %v3848_v23  ;;  %v17627_v23 = vld [vmem:[#allocation13_spill] sm:$0xff] }
 0x1ff   :  { %17612 = vst [vmem:[#allocation69_spill] sm:$0xff] %v13789_v19  ;;  %v3453_v5 = vadd.f32 %v17613_v2, %v3247_v51  ;;  %v13797_v13 = vsel %vm12793_vm8, %v13631_v53, %v17614_v42  ;;  %v13808_v18 = vcombine.low %v347_v50, %v349_v46  ;;  %v13810_v11 = vcombine.high %v347_v50, %v349_v46  ;;  %v17622_v2 = vld [vmem:[#allocation83_spill] sm:$0xff]  ;;  %v17624_v46 = vld [vmem:[#allocation24_spill] sm:$0xff] }
 0x200   :  { %v2941_v25 = vpop.permute.xlu1 %2940  ;;  %3370 = vrot.lane.b32.xlu0 %v13380_v8, %s12214_s24  ;;  %v13806_v48 = vsel %vm12793_vm8, %v13644_v57, %v17615_v28  ;;  %v353_v27 = vpop.f32.mrf.mxu0  ;;  %v4173_v53 = vsub.f32 %v13704_v56, %v13708_v4  ;;  %17620 = vst [vmem:[#allocation74_spill] sm:$0xff] %v13816_v45  ;;  %v17621_v8 = vld [vmem:[#allocation87_spill] sm:$0xff]  ;;  %v4475_v30 = vcombine.low %v13789_v19, %v4369_v33  ;;  %v17625_v42 = vrot.slane %v17624_v46, 2  ;;  %v17626_v56 = vld [vmem:[#allocation76_spill] sm:$0xff] }
 0x201   :  { %17616 = vst [vmem:[#allocation82_spill] sm:$0xff] %v13806_v48  ;;  %17617 = vst [vmem:[#allocation80_spill] sm:$0xff] %v13808_v18  ;;  %v11800_v16 = vpop.eup %11799  ;;  %v3246_v51 = vadd.f32 %v17621_v8, %v3046_v52  ;;  %v4222_v57 = vmul.f32 %v4172_v15, %v13357_v20  ;;  %v13823_v50 = vadd.f32 %v17622_v2, %v12835_v49  ;;  %v3862_v2 = vmul.f32 1.442695, %v3789_v9 }
 0x202   :  { %17618 = vst [vmem:[#allocation106_spill] sm:$0xff] %v13810_v11  ;;  %v3603_v28 = vadd.f32 %v17625_v42, %v3453_v5  ;;  %v3315_v34 = vpop.permute.xlu0 %3314  ;;  %2956 = vrot.lane.b32.xlu1 %v17626_v56, %s12221_s16  ;;  %v355_v4 = vpop.f32.mrf.mxu0  ;;  %v4171_v33 = vsub.f32 %v13677_v29, %v13689_v59  ;;  %v3925_v49 = vadd.f32 1.0, %v11800_v16  ;;  %v4075_v8 = vmul.f32 %v11800_v16, %v11800_v16  ;;  %v17629_v59 = vld [vmem:[#allocation20_spill] sm:$0xff]  ;;  %v17636_v11 = vld [vmem:[#allocation78_spill] sm:$0xff] }
 0x203   :  { %17623 = vst [vmem:[#allocation87_spill] sm:$0xff] %v13823_v50  ;;  %v11802_v6 = vpop.eup %11801  ;;  %v3452_v20 = vadd.f32 %v3315_v34, %v3246_v51  ;;  %v13833_v15 = vcombine.low %v353_v27, %v355_v4  ;;  %v13845_v52 = vmul.f32 %v4173_v53, %v13419_v0  ;;  %v17630_v34 = vrot.slane %v17629_v59, 2  ;;  %v17632_v0 = vld [vmem:[#allocation79_spill] sm:$0xff] }
 0x204   :  { %v13836_v5 = vadd.f32 %v13374_v47, %v3603_v28  ;;  %v13838_v42 = vpop.permute.xlu1 %3144  ;;  %3178 = vrot.lane.b32.xlu0 %v13444_v36, %s12220_s0  ;;  %v13842_v60 = vpop.f32.mrf.mxu0  ;;  %v3924_v29 = vadd.f32 1.0, %v11802_v6  ;;  %v13849_v19 = vcombine.high %v353_v27, %v355_v4  ;;  %v13852_v16 = vrot.slane %v4475_v30, %v17627_v23  ;;  %v17633_v4 = vld [vmem:[#allocation91_spill] sm:$0xff]  ;;  %v17634_v30 = vld [vmem:[#allocation92_spill] sm:$0xff] }
 0x205   :  { %17628 = vst [vmem:[#allocation83_spill] sm:$0xff] %v13833_v15  ;;  %v3602_v51 = vadd.f32 %v17630_v34, %v3452_v20  ;;  %v11804_v9 = vpop.eup %11803  ;;  %v4170_v28 = vsub.f32 %v13723_v63, %v13745_v26  ;;  %v4074_v45 = vmul.f32 %v11802_v6, %v11802_v6  ;;  %v3048_v50 = vadd.f32 %v13700_v14, %v17629_v59  ;;  %v17635_v14 = vld [vmem:[#allocation36_spill] sm:$0xff] }
 0x206   :  { %17631 = vst [vmem:[#allocation24_spill] sm:$0xff] %v13849_v19  ;;  %v3319_v31 = vpop.permute.xlu0 %3318  ;;  %2886 = vrot.lane.b32.xlu1 %v17632_v0, %s12221_s16  ;;  %v13860_v53 = vpop.f32.mrf.mxu0  ;;  %v4221_v27 = vmul.f32 %v4171_v33, %v13416_v32  ;;  %vm4025_vm15 = vcmp.ge.f32.partialorder %v17633_v4, 0.0  ;;  %vm4024_vm1 = vcmp.ge.f32.partialorder %v17634_v30, 0.0  ;;  %v3729_v34 = vand.u32 2147483647, %v13836_v5 }
 0x207   :  { %v11806_v20 = vpop.eup %11805  ;;  %v13866_v26 = vmul.f32 %v3925_v49, %v3925_v49  ;;  %v13868_v6 = vsel %vm4025_vm15, %v4075_v8, 1.0  ;;  %11815 = vpow2.f32 %v3862_v2  ;;  %v3062_v59 = vadd.f32 %v2941_v25, %v17635_v14  ;;  %v17638_v25 = vld [vmem:[#allocation90_spill] sm:$0xff] }
 0x208   :  { %v11808_v63 = vpop.eup %11807  ;;  %v2943_v36 = vpop.permute.xlu1 %2942  ;;  %2968 = vrot.lane.b32.xlu0 %v17636_v11, %s12221_s16  ;;  %v3933_v32 = vadd.f32 1.0, %v11804_v9  ;;  %v13875_v33 = vmul.f32 %v3924_v29, %v3924_v29  ;;  %v3779_v40 = vsub.f32 0.0, %v3729_v34  ;;  %v13878_v55 = vadd.f32 %v17637_v17, %v3602_v51  ;;  %v17639_v11 = vld [vmem:[#allocation88_spill] sm:$0xff] }
 0x209   :  { %v13873_v18 = vpop.f32.mrf.mxu0  ;;  %v4372_v49 = vmul.f32 %v11806_v20, %v4222_v57  ;;  %v4220_v8 = vmul.f32 %v4170_v28, %v13447_v43  ;;  %v13883_v2 = vsel %vm4024_vm1, %v4074_v45, 1.0  ;;  %v3248_v14 = vadd.f32 %v17638_v25, %v3048_v50  ;;  %v11810_v34 = vpop.eup %11809  ;;  %v17640_v28 = vld [vmem:[#allocation94_spill] sm:$0xff] }
 0x20a   :  { %v13886_v12 = vpop.permute.xlu0 %3122  ;;  %3378 = vrot.lane.b32.xlu1 %v17639_v11, %s12214_s24  ;;  %v4371_v44 = vmul.f32 %v11808_v63, %v4221_v27  ;;  %v4083_v51 = vmul.f32 %v11804_v9, %v11804_v9  ;;  %v3842_v19 = vmul.f32 1.442695, %v3779_v40  ;;  %v3728_v57 = vand.u32 2147483647, %v13878_v55  ;;  %v11812_v43 = vpop.eup %11811 }
 0x20b   :  { %v13890_v29 = vpop.f32.mrf.mxu0  ;;  %v4275_v45 = vadd.f32 %v13868_v6, %v13866_v26  ;;  %vm4033_vm3 = vcmp.ge.f32.partialorder %v17640_v28, 0.0  ;;  %v3454_v50 = vadd.f32 %v3319_v31, %v3248_v14  ;;  %v3262_v20 = vadd.f32 %v13747_v41, %v3062_v59  ;;  %v11814_v63 = vpop.eup %11813  ;;  %v17641_v31 = vld [vmem:[#allocation28_spill] sm:$0xff] }
 0x20c   :  { %v3347_v25 = vpop.permute.xlu1 %3346  ;;  %3374 = vrot.lane.b32.xlu0 %v17611_v35, %s12214_s24  ;;  %v13899_v61 = vmul.f32 %v3933_v32, %v3933_v32  ;;  %v4274_v40 = vadd.f32 %v13883_v2, %v13875_v33  ;;  %v3049_v9 = vadd.f32 %v13784_v3, %v17624_v46  ;;  %v3778_v27 = vsub.f32 0.0, %v3728_v57  ;;  %v17643_v35 = vld [vmem:[#allocation89_spill] sm:$0xff] }
 0x20d   :  { %v367_v15 = vpop.f32.mrf.mxu0  ;;  %vm4032_vm5 = vcmp.ge.f32.partialorder %v13698_v37, 0.0  ;;  %11817 = vpow2.f32 %v3842_v19  ;;  %v17642_v41 = vrot.slane %v17641_v31, 2  ;;  %v3468_v59 = vadd.f32 %v3347_v25, %v3262_v20  ;;  %v17646_v25 = vld [vmem:[#allocation38_spill] sm:$0xff] }
 0x20e   :  { %v2921_v21 = vpop.permute.xlu0 %2920  ;;  %3182 = vrot.lane.b32.xlu1 %v17643_v35, %s12220_s0  ;;  %v13912_v15 = vcombine.low %v13842_v60, %v13860_v53  ;;  %v4530_v7 = vcombine.low %v4371_v44, %v4372_v49  ;;  %v13915_v3 = vmul.f32 %v11810_v34, %v13845_v52  ;;  %v4370_v46 = vmul.f32 %v11812_v43, %v4220_v8  ;;  %v17648_v44 = vld [vmem:[#allocation66_spill] sm:$0xff] }
 0x20f   :  { %v3604_v14 = vadd.f32 %v17642_v41, %v3454_v50  ;;  %v368_v32 = vpop.f32.mrf.mxu0  ;;  %v13919_v19 = vsel %vm4033_vm3, %v4083_v51, 1.0  ;;  %11819 = vrcp.f32 %v4275_v45  ;;  %v3840_v57 = vmul.f32 1.442695, %v3778_v27  ;;  %v17645_v50 = vld [vmem:[#allocation58_spill] sm:$0xff] }
 0x210   :  { %17644 = vst [vmem:[#allocation76_spill] sm:$0xff] %v13912_v15  ;;  %v17647_v31 = vrot.slane %v17646_v25, 2  ;;  %v13926_v35 = vpop.permute.xlu1 %3150  ;;  %2954 = vrot.lane.b32.xlu0 %v17648_v44, %s12221_s16  ;;  %11821 = vrcp.f32 %v4274_v40  ;;  %v3932_v52 = vadd.f32 1.0, %v11814_v63  ;;  %v17649_v49 = vld [vmem:[#allocation18_spill] sm:$0xff]  ;;  %v13933_v34 = vcombine.high %v13842_v60, %v13860_v53  ;;  %v17653_v44 = vld [vmem:[#allocation81_spill] sm:$0xff] }
 0x211   :  { %v13922_v20 = vadd.f32 %v17645_v50, %v3604_v14  ;;  %v3249_v8 = vadd.f32 %v17649_v49, %v3049_v9  ;;  %v4283_v51 = vadd.f32 %v13919_v19, %v13899_v61  ;;  %11823 = vpow2.f32 %v3840_v57  ;;  %v17651_v14 = vld [vmem:[#allocation53_spill] sm:$0xff] }
 0x212   :  { %v3618_v41 = vadd.f32 %v17647_v31, %v3468_v59  ;;  %17650 = vst [vmem:[#allocation13_spill] sm:$0xff] %v13933_v34  ;;  %v3321_v27 = vpop.permute.xlu0 %3320  ;;  %2980 = vrot.lane.b32.xlu1 %v17651_v14, %s12221_s16  ;;  %v4544_v40 = vrot.slane %v13915_v3, %v17627_v23  ;;  %v4082_v9 = vmul.f32 %v11814_v63, %v11814_v63  ;;  %v17652_v59 = vld [vmem:[#allocation37_spill] sm:$0xff]  ;;  %vm4039_vm6 = vcmp.ge.f32.partialorder %v13754_v54, 0.0 }
 0x213   :  { %v3730_v43 = vand.u32 2147483647, %v13922_v20  ;;  %v3063_v60 = vadd.f32 %v2943_v36, %v17652_v59  ;;  %v3455_v53 = vadd.f32 %v3321_v27, %v3249_v8  ;;  %v4537_v32 = vrot.slane %v4530_v7, %v17627_v23  ;;  %v17655_v8 = vld [vmem:[#allocation30_spill] sm:$0xff] }
 0x214   :  { %v13939_v45 = vadd.f32 %v13251_v38, %v3618_v41  ;;  %v2945_v41 = vpop.permute.xlu1 %2944  ;;  %2884 = vrot.lane.b32.xlu0 %v17653_v44, %s12221_s16  ;;  %v13953_v49 = vcombine.low %v13873_v18, %v13890_v29  ;;  %v11816_v34 = vpop.eup %11815  ;;  %v4489_v63 = vrot.slane %v4370_v46, %v17627_v23  ;;  %v4175_v36 = vsub.f32 %v13866_v26, %v13868_v6  ;;  %v17657_v44 = vld [vmem:[#allocation86_spill] sm:$0xff] }
 0x215   :  { %v3780_v57 = vsub.f32 0.0, %v3730_v43  ;;  %v13958_v7 = vmul.f32 %v3932_v52, %v3932_v52  ;;  %v17656_v43 = vrot.slane %v17655_v8, 2  ;;  %11825 = vrcp.f32 %v4283_v51 }
 0x216   :  { %v3744_v31 = vand.u32 2147483647, %v13939_v45  ;;  %17654 = vst [vmem:[#allocation20_spill] sm:$0xff] %v13953_v49  ;;  %v13962_v48 = vpop.permute.xlu0 %3128  ;;  %2936 = vrot.lane.b32.xlu1 %v17657_v44, %s12221_s16  ;;  %v13968_v11 = vcombine.high %v13873_v18, %v13890_v29  ;;  %v4174_v26 = vsub.f32 %v13875_v33, %v13883_v2  ;;  %v4132_v6 = vsel %vm4032_vm5, %v4082_v9, 1.0  ;;  %v17659_v33 = vld [vmem:[#allocation26_spill] sm:$0xff] }
 0x217   :  { %v3605_v27 = vadd.f32 %v17656_v43, %v3455_v53  ;;  %v3844_v15 = vmul.f32 1.442695, %v3780_v57  ;;  %v3263_v52 = vadd.f32 %v13771_v10, %v3063_v60  ;;  %v4183_v51 = vsub.f32 %v13899_v61, %v13919_v19  ;;  %v17663_v60 = vld [vmem:[#allocation39_spill] sm:$0xff]  ;;  %v17665_v43 = vld [vmem:[#allocation44_spill] sm:$0xff] }
 0x218   :  { %v3794_v59 = vsub.f32 0.0, %v3744_v31  ;;  %17658 = vst [vmem:[#allocation79_spill] sm:$0xff] %v13968_v11  ;;  %v3939_v53 = vadd.f32 1.0, %v11816_v34  ;;  %v3349_v31 = vpop.permute.xlu1 %3348  ;;  %3384 = vrot.lane.b32.xlu0 %v17651_v14, %s12214_s24  ;;  %v4089_v18 = vmul.f32 %v11816_v34, %v11816_v34  ;;  %v3052_v2 = vadd.f32 %v2921_v21, %v17659_v33 }
 0x219   :  { %v13975_v46 = vadd.f32 %v13251_v38, %v3605_v27  ;;  %11827 = vpow2.f32 %v3844_v15  ;;  %v3469_v9 = vadd.f32 %v3349_v31, %v3263_v52  ;;  %v13984_v8 = vcombine.low %v4537_v32, %v4544_v40  ;;  %v17666_v52 = vld [vmem:[#allocation32_spill] sm:$0xff] }
 0x21a   :  { %v3872_v57 = vmul.f32 1.442695, %v3794_v59  ;;  %v13987_v10 = vcombine.low %v13852_v16, %v4489_v63  ;;  %v4225_v61 = vmul.f32 %v4175_v36, %v17633_v4  ;;  %v4282_v15 = vadd.f32 %v4132_v6, %v13958_v7  ;;  %v2923_v19 = vpop.permute.xlu0 %2922  ;;  %v17662_v59 = vld [vmem:[#allocation67_spill] sm:$0xff]  ;;  %v11818_v14 = vpop.eup %11817 }
 0x21b   :  { %v3731_v29 = vand.u32 2147483647, %v13975_v46  ;;  %17660 = vst [vmem:[#allocation91_spill] sm:$0xff] %v13984_v8  ;;  %2982 = vrot.lane.b32.xlu1 %v17662_v59, %s12221_s16  ;;  %v4224_v34 = vmul.f32 %v4174_v26, %v17634_v30  ;;  %vm4029_vm7 = vcmp.ge.f32.partialorder %v13836_v5, 0.0  ;;  %v17664_v40 = vrot.slane %v17663_v60, 2  ;;  %v17679_v8 = vld [vmem:[#allocation48_spill] sm:$0xff] }
 0x21c   :  { %17661 = vst [vmem:[#allocation92_spill] sm:$0xff] %v13987_v10  ;;  %v4233_v16 = vmul.f32 %v4183_v51, %v17640_v28  ;;  %v4182_v63 = vsub.f32 %v13958_v7, %v4132_v6  ;;  %v3989_v4 = vmul.f32 %v3939_v53, %v3939_v53  ;;  %11829 = vpow2.f32 %v3872_v57  ;;  %v13999_v36 = vpop.permute.xlu1 %3152  ;;  %2978 = vrot.lane.b32.xlu0 %v17665_v43, %s12221_s16  ;;  %v11820_v27 = vpop.eup %11819  ;;  %v17682_v60 = vld [vmem:[#allocation14_spill] sm:$0xff] }
 0x21d   :  { %v3781_v21 = vsub.f32 0.0, %v3731_v29  ;;  %v3619_v32 = vadd.f32 %v17664_v40, %v3469_v9  ;;  %v4139_v30 = vsel %vm4039_vm6, %v4089_v18, 1.0  ;;  %v3053_v31 = vadd.f32 %v2923_v19, %v17666_v52  ;;  %v11822_v29 = vpop.eup %11821 }
 0x21e   :  { %v3252_v33 = vadd.f32 %v13725_v22, %v3052_v2  ;;  %11831 = vrcp.f32 %v4282_v15  ;;  %v3929_v28 = vadd.f32 1.0, %v11818_v14  ;;  %vm4028_vm8 = vcmp.ge.f32.partialorder %v13878_v55, 0.0  ;;  %v3327_v6 = vpop.permute.xlu0 %3326  ;;  %v11824_v51 = vpop.eup %11823 }
 0x21f   :  { %v3846_v26 = vmul.f32 1.442695, %v3781_v21  ;;  %v14009_v7 = vadd.f32 %v17637_v17, %v3619_v32  ;;  %3386 = vrot.lane.b32.xlu1 %v17662_v59, %s12214_s24  ;;  %v4079_v53 = vmul.f32 %v11818_v14, %v11818_v14  ;;  %v3064_v57 = vadd.f32 %v2945_v41, %v17646_v25  ;;  %v17667_v21 = vld [vmem:[#allocation84_spill] sm:$0xff]  ;;  %v17668_v59 = vld [vmem:[#allocation25_spill] sm:$0xff] }
 0x220   :  { %v3458_v18 = vadd.f32 %v3327_v6, %v3252_v33  ;;  %v14014_v9 = vmul.f32 %v11820_v27, %v4225_v61  ;;  %v4189_v22 = vsub.f32 %v3989_v4, %v4139_v30  ;;  %v4289_v2 = vadd.f32 %v4139_v30, %v3989_v4  ;;  %v2951_v19 = vpop.permute.xlu1 %2950  ;;  %2934 = vrot.lane.b32.xlu0 %v17667_v21, %s12221_s16 }
 0x221   :  { %11833 = vpow2.f32 %v3846_v26  ;;  %v3745_v15 = vand.u32 2147483647, %v14009_v7  ;;  %v4374_v40 = vmul.f32 %v11822_v29, %v4224_v34  ;;  %v14020_v32 = vmul.f32 %v4182_v63, %v13698_v37 }
 0x222   :  { %v17669_v14 = vrot.slane %v17668_v59, 2  ;;  %v3253_v25 = vadd.f32 %v13886_v12, %v3053_v31  ;;  %v14025_v41 = vmul.f32 %v3929_v28, %v3929_v28  ;;  %v3928_v61 = vadd.f32 1.0, %v11824_v51  ;;  %v3329_v30 = vpop.permute.xlu0 %3328  ;;  %v11826_v52 = vpop.eup %11825 }
 0x223   :  { %v4078_v27 = vmul.f32 %v11824_v51, %v11824_v51  ;;  %v3795_v4 = vsub.f32 0.0, %v3745_v15  ;;  %3388 = vrot.lane.b32.xlu1 %v13797_v13, %s12214_s24  ;;  %v14031_v34 = vsel %vm4029_vm7, %v4079_v53, 1.0  ;;  %vm4030_vm9 = vcmp.ge.f32.partialorder %v13922_v20, 0.0  ;;  %v17670_v53 = vld [vmem:[#allocation27_spill] sm:$0xff] }
 0x224   :  { %v3608_v26 = vadd.f32 %v17669_v14, %v3458_v18  ;;  %v3459_v12 = vadd.f32 %v3329_v30, %v3253_v25  ;;  %v3264_v63 = vadd.f32 %v13838_v42, %v3064_v57  ;;  %v14041_v33 = vmul.f32 %v4189_v22, %v13754_v54  ;;  %v3351_v29 = vpop.permute.xlu1 %3350  ;;  %3104 = vrot.lane.b32.xlu0 %v17584_v24, %s12220_s0 }
 0x225   :  { %11835 = vrcp.f32 %v4289_v2  ;;  %v3874_v13 = vmul.f32 1.442695, %v3795_v4  ;;  %v4582_v6 = vcombine.low %v13915_v3, %v4374_v40  ;;  %v17671_v18 = vrot.slane %v17670_v53, 2  ;;  %v17673_v40 = vld [vmem:[#allocation41_spill] sm:$0xff] }
 0x226   :  { %v14035_v37 = vadd.f32 %v17645_v50, %v3608_v26  ;;  %v11828_v28 = vpop.eup %11827  ;;  %v3470_v57 = vadd.f32 %v3351_v29, %v3264_v63  ;;  %v4279_v54 = vadd.f32 %v14031_v34, %v14025_v41  ;;  %v14051_v22 = vmul.f32 %v3928_v61, %v3928_v61  ;;  %v2929_v3 = vpop.permute.xlu0 %2928 }
 0x227   :  { %v3609_v42 = vadd.f32 %v17671_v18, %v3459_v12  ;;  %v14055_v2 = vsel %vm4028_vm8, %v4078_v27, 1.0  ;;  %v14057_v24 = vmul.f32 %v11826_v52, %v4233_v16  ;;  %3106 = vrot.lane.b32.xlu1 %v17567_v39, %s12220_s0  ;;  %11837 = vpow2.f32 %v3874_v13  ;;  %v17676_v16 = vld [vmem:[#allocation51_spill] sm:$0xff] }
 0x228   :  { %v3734_v51 = vand.u32 2147483647, %v14035_v37  ;;  %v17674_v14 = vrot.slane %v17673_v40, 2  ;;  %v3930_v25 = vadd.f32 1.0, %v11828_v28  ;;  %v4080_v61 = vmul.f32 %v11828_v28, %v11828_v28  ;;  %v14067_v27 = vpop.permute.xlu1 %3162  ;;  %3154 = vrot.lane.b32.xlu0 %v17676_v16, %s12220_s0 }
 0x229   :  { %17672 = vst [vmem:[#allocation78_spill] sm:$0xff] %v14057_v24  ;;  %v14062_v21 = vadd.f32 %v13251_v38, %v3609_v42  ;;  %vm4031_vm12 = vcmp.ge.f32.partialorder %v13975_v46, 0.0  ;;  %17675 = vst [vmem:[#allocation54_spill] sm:$0xff] %v14067_v27  ;;  %v11830_v30 = vpop.eup %11829  ;;  %vm4044_vm13 = vcmp.ge.f32.partialorder %v13939_v45, 0.0  ;;  %v466_v13 = vrot.slane %v13751_v1, 5  ;;  %v17677_v42 = vld [vmem:[#allocation56_spill] sm:$0xff] }
 0x22a   :  { %v3784_v15 = vsub.f32 0.0, %v3734_v51  ;;  %v3620_v26 = vadd.f32 %v17674_v14, %v3470_v57  ;;  %v4589_v29 = vrot.slane %v4582_v6, %v17627_v23  ;;  %11839 = vrcp.f32 %v4279_v54  ;;  %v14083_v18 = vpop.permute.xlu0 %3132  ;;  %v17681_v27 = vld [vmem:[#allocation29_spill] sm:$0xff] }
 0x22b   :  { %v3735_v12 = vand.u32 2147483647, %v14062_v21  ;;  %v4278_v28 = vadd.f32 %v14055_v2, %v14051_v22  ;;  %3156 = vrot.lane.b32.xlu1 %v17677_v42, %s12220_s0  ;;  %v11832_v57 = vpop.eup %11831  ;;  %v14089_v54 = vmul.f32 %v3930_v25, %v3930_v25  ;;  %v14093_v4 = vsel %vm4030_vm9, %v4080_v61, 1.0  ;;  %vm14361_vm9 = vmor %vm723_vm2, %vm724_vm4 }
 0x22c   :  { %v3852_v52 = vmul.f32 1.442695, %v3784_v15  ;;  %v14075_v63 = vadd.f32 %v13374_v47, %v3620_v26  ;;  %v17678_v15 = vld [vmem:[#allocation42_spill] sm:$0xff]  ;;  %v3944_v51 = vadd.f32 1.0, %v11830_v30  ;;  %v2953_v59 = vpop.permute.xlu1 %2952  ;;  %3084 = vrot.lane.b32.xlu0 %v17679_v8, %s12220_s0  ;;  %v17680_v39 = vrot.slane %v13737_v62, 5 }
 0x22d   :  { %v3067_v14 = vadd.f32 %v2951_v19, %v17678_v15  ;;  %v3785_v26 = vsub.f32 0.0, %v3735_v12  ;;  %v14100_v15 = vmul.f32 %v11832_v57, %v14020_v32  ;;  %v4094_v25 = vmul.f32 %v11830_v30, %v11830_v30 }
 0x22e   :  { %11841 = vpow2.f32 %v3852_v52  ;;  %v3746_v31 = vand.u32 2147483647, %v14075_v63  ;;  %v11834_v6 = vpop.eup %11833  ;;  %v465_v52 = vrot.slane %v17680_v39, 4  ;;  %v3056_v61 = vadd.f32 %v2929_v3, %v17681_v27  ;;  %v3335_v43 = vpop.permute.xlu0 %3334 }
 0x22f   :  { %v3931_v10 = vadd.f32 1.0, %v11834_v6  ;;  %v4081_v19 = vmul.f32 %v11834_v6, %v11834_v6  ;;  %v3854_v12 = vmul.f32 1.442695, %v3785_v26  ;;  %11843 = vrcp.f32 %v4278_v28  ;;  %3086 = vrot.lane.b32.xlu1 %v17682_v60, %s12220_s0  ;;  %v17698_v60 = vld [vmem:[#allocation70_spill] sm:$0xff] }
 0x230   :  { %v3796_v38 = vsub.f32 0.0, %v3746_v31  ;;  %v3267_v31 = vadd.f32 %v13926_v35, %v3067_v14  ;;  %v4179_v32 = vsub.f32 %v14025_v41, %v14031_v34  ;;  %v4280_v30 = vadd.f32 %v14093_v4, %v14089_v54  ;;  %v3357_v57 = vpop.permute.xlu1 %3356 }
 0x231   :  { %v14105_v40 = vmul.f32 %v3931_v10, %v3931_v10  ;;  %v14109_v39 = vsel %vm4031_vm12, %v4081_v19, 1.0  ;;  %11845 = vpow2.f32 %v3854_v12  ;;  %v3256_v28 = vadd.f32 %v13962_v48, %v3056_v61  ;;  %v17683_v10 = vld [vmem:[#allocation50_spill] sm:$0xff] }
 0x232   :  { %v3876_v3 = vmul.f32 1.442695, %v3796_v38  ;;  %3134 = vrot.lane.b32.xlu0 %v17683_v10, %s12220_s0  ;;  %v17684_v26 = vmov 0  ;;  %v11836_v35 = vpop.eup %11835  ;;  %v17687_v41 = vrot.slane %v14014_v9, %v17627_v23  ;;  %v14130_v14 = vmul.f32 %v3944_v51, %v3944_v51  ;;  %v14139_v61 = vpop.permute.xlu0 %3138 }
 0x233   :  { %v17685_v26 = vsel %vm14121_vm14, 4294967295, %v17684_v26  ;;  %v3473_v38 = vadd.f32 %v3357_v57, %v3267_v31  ;;  %v14135_v6 = vsel %vm4044_vm13, %v4094_v25, 1.0  ;;  %v4281_v19 = vadd.f32 %v14109_v39, %v14105_v40  ;;  %3136 = vrot.lane.b32.xlu1 %v17556_v58, %s12220_s0 }
 0x234   :  { %17686 = vst [vmem:[#allocation90_spill] sm:$0xff] %v17685_v26  ;;  %v14128_v34 = vcombine.low %v4589_v29, %v17687_v41  ;;  %11847 = vpow2.f32 %v3876_v3  ;;  %v3462_v12 = vadd.f32 %v3335_v43, %v3256_v28  ;;  %v4178_v9 = vsub.f32 %v14051_v22, %v14055_v2  ;;  %v17689_v29 = vld [vmem:[#allocation43_spill] sm:$0xff]  ;;  %v11838_v57 = vpop.eup %11837  ;;  %v14157_v22 = vpop.permute.xlu1 %3160 }
 0x235   :  { %vm4045_vm15 = vcmp.ge.f32.partialorder %v14009_v7, 0.0  ;;  %v17690_v51 = vrot.slane %v17689_v29, 2  ;;  %v14150_v25 = vsel %vm14121_vm14, %v465_v52, %v466_v13  ;;  %v4229_v43 = vmul.f32 %v4179_v32, %v13836_v5  ;;  %v17691_v28 = vld [vmem:[#allocation19_spill] sm:$0xff] }
 0x236   :  { %17688 = vst [vmem:[#allocation94_spill] sm:$0xff] %v14128_v34  ;;  %v4180_v3 = vsub.f32 %v14089_v54, %v14093_v4  ;;  %11849 = vrcp.f32 %v4280_v30  ;;  %v17692_v41 = vrot.slane %v17691_v28, 2  ;;  %v17693_v2 = vld [vmem:[#allocation23_spill] sm:$0xff]  ;;  %v4294_v13 = vadd.f32 %v14135_v6, %v14130_v14  ;;  %v2933_v32 = vpop.permute.xlu0 %2932 }
 0x237   :  { %v3623_v31 = vadd.f32 %v17690_v51, %v3473_v38  ;;  %3310 = vrot.lane.b32.xlu0 %v17693_v2, %s12214_s24  ;;  %v14162_v38 = vmul.f32 %v11836_v35, %v14041_v33  ;;  %v3945_v52 = vadd.f32 1.0, %v11838_v57  ;;  %11851 = vrcp.f32 %v4281_v19  ;;  %v17695_v30 = vld [vmem:[#allocation35_spill] sm:$0xff]  ;;  %v11840_v35 = vpop.eup %11839 }
 0x238   :  { %v3612_v48 = vadd.f32 %v17692_v41, %v3462_v12  ;;  %v4095_v4 = vmul.f32 %v11838_v57, %v11838_v57  ;;  %3312 = vrot.lane.b32.xlu1 %v17695_v30, %s12214_s24  ;;  %v17696_v12 = vrot.slane %v13953_v49, 5  ;;  %v4228_v51 = vmul.f32 %v4178_v9, %v13878_v55 }
 0x239   :  { %17694 = vst [vmem:[#allocation28_spill] sm:$0xff] %v14162_v38  ;;  %v14167_v5 = vadd.f32 %v17637_v17, %v3623_v31  ;;  %vm4034_vm1 = vcmp.ge.f32.partialorder %v14035_v37, 0.0  ;;  %v17697_v31 = vld [vmem:[#allocation40_spill] sm:$0xff]  ;;  %v4194_v2 = vsub.f32 %v14130_v14, %v14135_v6  ;;  %vm4035_vm3 = vcmp.ge.f32.partialorder %v14062_v21, 0.0 }
 0x23a   :  { %v14170_v54 = vadd.f32 %v17645_v50, %v3612_v48  ;;  %v14176_v33 = vrot.slane %v17696_v12, 4  ;;  %v3068_v41 = vadd.f32 %v2953_v59, %v17697_v31  ;;  %v14183_v48 = vmul.f32 %v4180_v3, %v13922_v20  ;;  %v14189_v12 = vpop.permute.xlu1 %2958  ;;  %v3339_v34 = vpop.permute.xlu0 %3338 }
 0x23b   :  { %v3749_v19 = vand.u32 2147483647, %v14167_v5  ;;  %v11842_v57 = vpop.eup %11841  ;;  %3360 = vrot.lane.b32.xlu0 %v17626_v56, %s12214_s24  ;;  %11853 = vrcp.f32 %v4294_v13  ;;  %v14193_v55 = vmul.f32 %v3945_v52, %v3945_v52  ;;  %v14197_v20 = vsel %vm4045_vm15, %v4095_v4, 1.0 }
 0x23c   :  { %v3738_v30 = vand.u32 2147483647, %v14170_v54  ;;  %v3934_v59 = vadd.f32 1.0, %v11842_v57  ;;  %v4084_v9 = vmul.f32 %v11842_v57, %v11842_v57  ;;  %vm4046_vm5 = vcmp.ge.f32.partialorder %v14075_v63, 0.0  ;;  %3362 = vrot.lane.b32.xlu1 %v17698_v60, %s12214_s24  ;;  %v11844_v56 = vpop.eup %11843 }
 0x23d   :  { %v3799_v6 = vsub.f32 0.0, %v3749_v19  ;;  %v3058_v3 = vadd.f32 %v2933_v32, %v17691_v28  ;;  %v14203_v13 = vmul.f32 %v11840_v35, %v4229_v43  ;;  %v3268_v4 = vadd.f32 %v13999_v36, %v3068_v41 }
 0x23e   :  { %v3788_v14 = vsub.f32 0.0, %v3738_v30  ;;  %v14205_v52 = vmul.f32 %v3934_v59, %v3934_v59  ;;  %v14209_v57 = vsel %vm4034_vm1, %v4084_v9, 1.0  ;;  %v11846_v10 = vpop.eup %11845  ;;  %v4181_v19 = vsub.f32 %v14105_v40, %v14109_v39  ;;  %v3359_v30 = vpop.permute.xlu1 %3358  ;;  %v17699_v9 = vld [vmem:[#allocation16_spill] sm:$0xff] }
 0x23f   :  { %v3882_v32 = vmul.f32 1.442695, %v3799_v6  ;;  %3290 = vrot.lane.b32.xlu0 %v17632_v0, %s12214_s24  ;;  %v497_v60 = vrot.slane %v13968_v11, 5  ;;  %v4295_v43 = vadd.f32 %v14197_v20, %v14193_v55  ;;  %v3935_v59 = vadd.f32 1.0, %v11846_v10  ;;  %v14222_v39 = vpop.permute.xlu0 %3146 }
 0x240   :  { %v3860_v28 = vmul.f32 1.442695, %v3788_v14  ;;  %v4284_v35 = vadd.f32 %v14209_v57, %v14205_v52  ;;  %v4085_v36 = vmul.f32 %v11846_v10, %v11846_v10  ;;  %v3258_v41 = vadd.f32 %v14083_v18, %v3058_v3  ;;  %3292 = vrot.lane.b32.xlu1 %v17699_v9, %s12214_s24 }
 0x241   :  { %v3474_v40 = vadd.f32 %v3359_v30, %v3268_v4  ;;  %v11848_v14 = vpop.eup %11847  ;;  %v14227_v6 = vmul.f32 %v11844_v56, %v4228_v51  ;;  %v14229_v29 = vmul.f32 %v3935_v59, %v3935_v59  ;;  %v17701_v56 = vrot.slane %v17676_v16, 2 }
 0x242   :  { %11855 = vpow2.f32 %v3860_v28  ;;  %v14233_v10 = vsel %vm4035_vm3, %v4085_v36, 1.0  ;;  %v3946_v28 = vadd.f32 1.0, %v11848_v14  ;;  %v4096_v18 = vmul.f32 %v11848_v14, %v11848_v14  ;;  %v14235_v4 = vpop.permute.xlu1 %3166 }
 0x243   :  { %17700 = vst [vmem:[#allocation58_spill] sm:$0xff] %v14227_v6  ;;  %11857 = vrcp.f32 %v4284_v35  ;;  %v3464_v3 = vadd.f32 %v3339_v34, %v3258_v41  ;;  %3340 = vrot.lane.b32.xlu0 %v17657_v44, %s12214_s24  ;;  %v11850_v30 = vpop.eup %11849  ;;  %v4285_v51 = vadd.f32 %v14233_v10, %v14229_v29  ;;  %v3624_v35 = vadd.f32 %v17701_v56, %v3474_v40  ;;  %v14248_v9 = vpop.permute.xlu0 %3344  ;;  %v17704_v44 = vld [vmem:[#allocation71_spill] sm:$0xff] }
 0x244   :  { %11859 = vpow2.f32 %v3882_v32  ;;  %vm579_vm6 = vcmask 1045508   ;;  %v4244_v59 = vmul.f32 %v4194_v2, %v13939_v45  ;;  %v14244_v36 = vmul.f32 %v3946_v28, %v3946_v28  ;;  %v17702_v32 = vld [vmem:[#allocation22_spill] sm:$0xff]  ;;  %3342 = vrot.lane.b32.xlu1 %v17704_v44, %s12214_s24  ;;  %v11852_v14 = vpop.eup %11851 }
 0x245   :  { %11861 = vrcp.f32 %v4295_v43  ;;  %v17703_v34 = vrot.slane %v17702_v32, 2  ;;  %v610_v43 = vrot.slane %v13751_v1, 6  ;;  %v4688_v0 = vcombine.low %v14227_v6, %v14203_v13  ;;  %v17707_v13 = vld [vmem:[#allocation46_spill] sm:$0xff]  ;;  %vm14280_vm7 = vmor %vm130_vm0, %vm579_vm6 }
 0x246   :  { %v14257_v40 = vsel %vm4046_vm5, %v4096_v18, 1.0  ;;  %v14260_v45 = vadd.f32 %v13374_v47, %v3624_v35  ;;  %v17705_v2 = vrot.slane %v13737_v62, 6  ;;  %v4231_v56 = vmul.f32 %v4181_v19, %v13975_v46 }
 0x247   :  { %v3614_v41 = vadd.f32 %v17703_v34, %v3464_v3  ;;  %v4380_v3 = vmul.f32 %v11850_v30, %v14183_v48  ;;  %v14269_v34 = vpop.permute.xlu1 %3170  ;;  %2924 = vrot.lane.b32.xlu0 %v17707_v13, %s12221_s16  ;;  %v14276_v18 = vsel %vm14121_vm14, %v14176_v33, %v497_v60  ;;  %11863 = vrcp.f32 %v4285_v51  ;;  %v17710_v51 = vld [vmem:[#allocation33_spill] sm:$0xff] }
 0x248   :  { %v609_v28 = vrot.slane %v17705_v2, 4  ;;  %17706 = vst [vmem:[#allocation38_spill] sm:$0xff] %v14269_v34  ;;  %v3750_v46 = vand.u32 2147483647, %v14260_v45  ;;  %v641_v19 = vrot.slane %v13968_v11, 6  ;;  %v11854_v30 = vpop.eup %11853  ;;  %v4381_v44 = vmul.f32 %v11852_v14, %v4231_v56  ;;  %v14292_v2 = vpop.permute.xlu0 %3148  ;;  %2926 = vrot.lane.b32.xlu1 %v17710_v51, %s12221_s16 }
 0x249   :  { %v14267_v32 = vadd.f32 %v17637_v17, %v3614_v41  ;;  %v4296_v33 = vadd.f32 %v14257_v40, %v14244_v36  ;;  %v4695_v13 = vrot.slane %v4688_v0, %v17627_v23  ;;  %v4195_v48 = vsub.f32 %v14193_v55, %v14197_v20  ;;  %v17711_v0 = vld [vmem:[#allocation88_spill] sm:$0xff] }
 0x24a   :  { %v3800_v8 = vsub.f32 0.0, %v3750_v46  ;;  %v14301_v41 = vsel %vm14280_vm7, %v609_v28, %v610_v43  ;;  %v4702_v14 = vrot.slane %v4380_v3, %v17627_v23  ;;  %vm4038_vm0 = vcmp.ge.f32.partialorder %v14170_v54, 0.0 }
 0x24b   :  { %v3740_v60 = vand.u32 2147483647, %v14267_v32  ;;  %v14307_v56 = vadd.f32 %v14189_v12, %v17677_v42  ;;  %v2961_v16 = vpop.permute.xlu1 %2960  ;;  %2974 = vrot.lane.b32.xlu0 %v17711_v0, %s12221_s16  ;;  %v4184_v55 = vsub.f32 %v14205_v52, %v14209_v57  ;;  %v4185_v20 = vsub.f32 %v14229_v29, %v14233_v10 }
 0x24c   :  { %v3884_v43 = vmul.f32 1.442695, %v3800_v8  ;;  %v17712_v28 = vrot.slane %v13953_v49, 6  ;;  %v4742_v46 = vcombine.low %v4381_v44, %v14100_v15  ;;  %11865 = vrcp.f32 %v4296_v33  ;;  %v2939_v42 = vpop.permute.xlu0 %2938 }
 0x24d   :  { %v3790_v6 = vsub.f32 0.0, %v3740_v60  ;;  %v17713_v60 = vld [vmem:[#allocation82_spill] sm:$0xff]  ;;  %v17343_v0 = vrot.slane %v13737_v62, 7  ;;  %v14321_v38 = vmul.f32 %v11854_v30, %v4244_v59  ;;  %v4245_v52 = vmul.f32 %v4195_v48, %v14009_v7 }
 0x24e   :  { %v640_v3 = vrot.slane %v17712_v28, 4  ;;  %2976 = vrot.lane.b32.xlu1 %v17713_v60, %s12221_s16  ;;  %11867 = vpow2.f32 %v3884_v43  ;;  %v3061_v8 = vadd.f32 %v2939_v42, %v17556_v58  ;;  %v14325_v57 = vcombine.low %v4695_v13, %v4702_v14  ;;  %v17716_v14 = vld [vmem:[#allocation97_spill] sm:$0xff] }
 0x24f   :  { %v3864_v12 = vmul.f32 1.442695, %v3790_v6  ;;  %v11856_v34 = vpop.eup %11855  ;;  %v4196_v15 = vsub.f32 %v14244_v36, %v14257_v40  ;;  %vm4049_vm8 = vcmp.ge.f32.partialorder %v14167_v5, 0.0  ;;  %v14330_v10 = vpop.permute.xlu1 %3368  ;;  %3124 = vrot.lane.b32.xlu0 %v17670_v53, %s12220_s0  ;;  %v4234_v7 = vmul.f32 %v4184_v55, %v14035_v37 }
 0x250   :  { %v11858_v29 = vpop.eup %11857  ;;  %17714 = vst [vmem:[#allocation66_spill] sm:$0xff] %v14325_v57  ;;  %v3938_v6 = vadd.f32 1.0, %v11856_v34  ;;  %v4235_v42 = vmul.f32 %v4185_v20, %v14062_v21  ;;  %v4088_v48 = vmul.f32 %v11856_v34, %v11856_v34  ;;  %v3261_v30 = vadd.f32 %v14139_v61, %v3061_v8  ;;  %v2949_v40 = vpop.permute.xlu0 %2948  ;;  %v17725_v21 = vld [vmem:[#allocation75_spill] sm:$0xff] }
 0x251   :  { %11869 = vpow2.f32 %v3864_v12  ;;  %v11860_v59 = vpop.eup %11859  ;;  %v14338_v36 = vrot.slane %v4742_v46, %v17627_v23  ;;  %v14344_v33 = vsel %vm14280_vm7, %v640_v3, %v641_v19  ;;  %v754_v37 = vrot.slane %v17343_v0, 4  ;;  %v17717_v19 = vld [vmem:[#allocation68_spill] sm:$0xff] }
 0x252   :  { %v11862_v44 = vpop.eup %11861  ;;  %3126 = vrot.lane.b32.xlu1 %v17681_v27, %s12220_s0  ;;  %v4384_v34 = vmul.f32 %v11858_v29, %v4234_v7  ;;  %v3467_v61 = vadd.f32 %v14248_v9, %v3261_v30  ;;  %v755_v13 = vrot.slane %v13751_v1, 7  ;;  %v14353_v20 = vmul.f32 %v4196_v15, %v14075_v63  ;;  %v17722_v29 = vld [vmem:[#allocation37_spill] sm:$0xff] }
 0x253   :  { %17715 = vst [vmem:[#allocation18_spill] sm:$0xff] %v14338_v36  ;;  %v3988_v43 = vmul.f32 %v3938_v6, %v3938_v6  ;;  %v3949_v28 = vadd.f32 1.0, %v11860_v59  ;;  %v14355_v46 = vpop.permute.xlu1 %3172  ;;  %3174 = vrot.lane.b32.xlu0 %v17717_v19, %s12220_s0  ;;  %v17718_v3 = vmov 0  ;;  %v786_v9 = vrot.slane %v13968_v11, 7  ;;  %v17724_v30 = vld [vmem:[#allocation57_spill] sm:$0xff]  ;;  %v17727_v11 = vld [vmem:[#allocation98_spill] sm:$0xff] }
 0x254   :  { %v17719_v3 = vsel %vm14361_vm9, 4294967295, %v17718_v3  ;;  %v14366_v12 = vmul.f32 %v11862_v44, %v4245_v52  ;;  %v4138_v63 = vsel %vm4038_vm0, %v4088_v48, 1.0  ;;  %v4099_v8 = vmul.f32 %v11860_v59, %v11860_v59  ;;  %v11864_v7 = vpop.eup %11863  ;;  %v3353_v55 = vpop.permute.xlu0 %3352  ;;  %v17728_v44 = vld [vmem:[#allocation83_spill] sm:$0xff] }
 0x255   :  { %17720 = vst [vmem:[#allocation53_spill] sm:$0xff] %v17719_v3  ;;  %v17723_v15 = vrot.slane %v17722_v29, 2  ;;  %v3072_v0 = vadd.f32 %v2961_v16, %v17724_v30  ;;  %v17726_v1 = vrot.slane %v13953_v49, 7  ;;  %v17354_v27 = vrot.slane %v17728_v44, 5 }
 0x256   :  { %17721 = vst [vmem:[#allocation81_spill] sm:$0xff] %v14366_v12  ;;  %3176 = vrot.lane.b32.xlu1 %v17725_v21, %s12220_s0  ;;  %v4794_v48 = vcombine.low %v14057_v24, %v4384_v34  ;;  %v17729_v16 = vrot.slane %v17716_v14, 5  ;;  %v4288_v36 = vadd.f32 %v4138_v63, %v3988_v43  ;;  %v3999_v49 = vmul.f32 %v3949_v28, %v3949_v28  ;;  %v17732_v28 = vld [vmem:[#allocation24_spill] sm:$0xff]  ;;  %v17733_v34 = vld [vmem:[#allocation39_spill] sm:$0xff] }
 0x257   :  { %v3617_v6 = vadd.f32 %v17723_v15, %v3467_v61  ;;  %v785_v62 = vrot.slane %v17726_v1, 4  ;;  %v14385_v61 = vsel %vm14361_vm9, %v754_v37, %v755_v13  ;;  %v4188_v15 = vsub.f32 %v3988_v43, %v4138_v63  ;;  %v17730_v1 = vld [vmem:[#allocation41_spill] sm:$0xff]  ;;  %v2967_v52 = vpop.permute.xlu1 %2966  ;;  %3330 = vrot.lane.b32.xlu0 %v17710_v51, %s12214_s24  ;;  %v17736_v63 = vld [vmem:[#allocation44_spill] sm:$0xff] }
 0x258   :  { %v453_v29 = vrot.slane %v17729_v16, 4  ;;  %v3066_v53 = vadd.f32 %v2949_v40, %v17730_v1  ;;  %v4149_v37 = vsel %vm4049_vm8, %v4099_v8, 1.0  ;;  %vm4050_vm2 = vcmp.ge.f32.partialorder %v14260_v45, 0.0  ;;  %v2947_v16 = vpop.permute.xlu0 %2946  ;;  %v17731_v43 = vld [vmem:[#allocation49_spill] sm:$0xff] }
 0x259   :  { %v14381_v59 = vadd.f32 %v17645_v50, %v3617_v6  ;;  %v4385_v6 = vmul.f32 %v11864_v7, %v4235_v42  ;;  %v3272_v40 = vadd.f32 %v14157_v22, %v3072_v0  ;;  %v14403_v51 = vsel %vm14361_vm9, %v785_v62, %v786_v9  ;;  %v11866_v8 = vpop.eup %11865 }
 0x25a   :  { %3332 = vrot.lane.b32.xlu1 %v17731_v43, %s12214_s24  ;;  %v484_v42 = vrot.slane %v17354_v27, 4  ;;  %v4801_v7 = vrot.slane %v4794_v48, %v17627_v23  ;;  %v3065_v24 = vadd.f32 %v2947_v16, %v17733_v34  ;;  %v17734_v58 = vrot.slane %v17727_v11, 5 }
 0x25b   :  { %v3743_v13 = vand.u32 2147483647, %v14381_v59  ;;  %v11868_v0 = vpop.eup %11867  ;;  %v14417_v62 = vmul.f32 %v4188_v15, %v14170_v54  ;;  %11871 = vrcp.f32 %v4288_v36  ;;  %v4199_v9 = vsub.f32 %v3999_v49, %v4149_v37  ;;  %v2963_v43 = vpop.permute.xlu1 %2962  ;;  %3380 = vrot.lane.b32.xlu0 %v17713_v60, %s12214_s24  ;;  %v17735_v54 = vld [vmem:[#allocation61_spill] sm:$0xff] }
 0x25c   :  { %v14414_v22 = vsel %vm14121_vm14, %v453_v29, %v17734_v58  ;;  %vm4040_vm4 = vcmp.ge.f32.partialorder %v14267_v32, 0.0  ;;  %v3266_v48 = vadd.f32 %v14292_v2, %v3066_v53  ;;  %v4299_v16 = vadd.f32 %v4149_v37, %v3999_v49  ;;  %v3355_v36 = vpop.permute.xlu0 %3354  ;;  %v17738_v53 = vld [vmem:[#allocation17_spill] sm:$0xff] }
 0x25d   :  { %v3793_v1 = vsub.f32 0.0, %v3743_v13  ;;  %v4808_v13 = vrot.slane %v4385_v6, %v17627_v23  ;;  %v3265_v29 = vadd.f32 %v14222_v39, %v3065_v24  ;;  %v3950_v27 = vadd.f32 1.0, %v11868_v0 }
 0x25e   :  { %v11870_v34 = vpop.eup %11869  ;;  %v3073_v15 = vadd.f32 %v2963_v43, %v17735_v54  ;;  %3382 = vrot.lane.b32.xlu1 %v17736_v63, %s12214_s24  ;;  %v17737_v3 = vrot.slane %v17732_v28, 5  ;;  %v14436_v49 = vmul.f32 %v11866_v8, %v14353_v20  ;;  %v4100_v6 = vmul.f32 %v11868_v0, %v11868_v0 }
 0x25f   :  { %v3870_v58 = vmul.f32 1.442695, %v3793_v1  ;;  %v3471_v24 = vadd.f32 %v3353_v55, %v3265_v29  ;;  %v14439_v39 = vmul.f32 %v4199_v9, %v14167_v5  ;;  %v3940_v37 = vadd.f32 1.0, %v11870_v34  ;;  %v17740_v1 = vld [vmem:[#allocation54_spill] sm:$0xff]  ;;  %v3367_v30 = vpop.permute.xlu1 %3366  ;;  %517 = vrot.lane.b32.xlu0 %v14150_v25, %s12221_s16 }
 0x260   :  { %v14432_v60 = vsel %vm14121_vm14, %v484_v42, %v17737_v3  ;;  %17739 = vst [vmem:[#allocation30_spill] sm:$0xff] %v14436_v49  ;;  %v3273_v63 = vadd.f32 %v17740_v1, %v3073_v15  ;;  %v3472_v43 = vadd.f32 %v3355_v36, %v3266_v48  ;;  %v4090_v3 = vmul.f32 %v11870_v34, %v11870_v34  ;;  %v17741_v42 = vld [vmem:[#allocation42_spill] sm:$0xff]  ;;  %v17744_v48 = vld [vmem:[#allocation93_spill] sm:$0xff] }
 0x261   :  { %11873 = vpow2.f32 %v3870_v58  ;;  %v17742_v2 = vrot.slane %v17741_v42, 2  ;;  %v3478_v8 = vadd.f32 %v3367_v30, %v3272_v40  ;;  %v14446_v0 = vmul.f32 %v3950_v27, %v3950_v27  ;;  %v3159_v58 = vpop.permute.xlu0 %3158  ;;  %v17746_v30 = vld [vmem:[#allocation52_spill] sm:$0xff] }
 0x262   :  { %11875 = vrcp.f32 %v4299_v16  ;;  %v3479_v55 = vadd.f32 %v14330_v10, %v3273_v63  ;;  %v17743_v5 = vrot.slane %v17697_v31, 2  ;;  %537 = vrot.lane.b32.xlu1 %v14276_v18, %s12221_s16  ;;  %v14454_v25 = vcombine.low %v4801_v7, %v4808_v13  ;;  %v17748_v16 = vld [vmem:[#allocation63_spill] sm:$0xff] }
 0x263   :  { %v3621_v20 = vadd.f32 %v17742_v2, %v3471_v24  ;;  %v14458_v34 = vsel %vm4050_vm2, %v4100_v6, 1.0  ;;  %v17747_v10 = vrot.slane %v17746_v30, 2  ;;  %v14465_v31 = vmul.f32 %v3940_v37, %v3940_v37  ;;  %v14470_v2 = vpop.permute.xlu1 %2972  ;;  %661 = vrot.lane.b32.xlu0 %v14301_v41, %s12220_s0  ;;  %v17751_v37 = vld [vmem:[#allocation60_spill] sm:$0xff] }
 0x264   :  { %v3622_v9 = vadd.f32 %v17743_v5, %v3472_v43  ;;  %17745 = vst [vmem:[#allocation86_spill] sm:$0xff] %v14454_v25  ;;  %v3075_v15 = vadd.f32 %v2967_v52, %v17748_v16  ;;  %v17749_v18 = vrot.slane %v17748_v16, 2  ;;  %v17750_v7 = vrot.slane %v17738_v53, 5 }
 0x265   :  { %v14461_v27 = vadd.f32 %v17645_v50, %v3621_v20  ;;  %v3628_v40 = vadd.f32 %v17747_v10, %v3478_v8  ;;  %v14478_v6 = vsel %vm4040_vm4, %v4090_v3, 1.0  ;;  %v4300_v63 = vadd.f32 %v14458_v34, %v14446_v0  ;;  %v14492_v43 = vpop.permute.xlu0 %3164  ;;  %v17753_v20 = vld [vmem:[#allocation104_spill] sm:$0xff]  ;;  %v17754_v10 = vld [vmem:[#allocation99_spill] sm:$0xff] }
 0x266   :  { %v3629_v36 = vadd.f32 %v17749_v18, %v3479_v55  ;;  %v441_v13 = vrot.slane %v17750_v7, 4  ;;  %v14482_v1 = vadd.f32 %v17751_v37, %v3622_v9  ;;  %681 = vrot.lane.b32.xlu1 %v14344_v33, %s12220_s0  ;;  %v17752_v3 = vrot.slane %v17727_v11, 5  ;;  %v17755_v7 = vld [vmem:[#allocation105_spill] sm:$0xff] }
 0x267   :  { %v3747_v24 = vand.u32 2147483647, %v14461_v27  ;;  %v14485_v52 = vadd.f32 %v13374_v47, %v3628_v40  ;;  %v4290_v16 = vadd.f32 %v14478_v6, %v14465_v31  ;;  %v3373_v33 = vpop.permute.xlu1 %3372  ;;  %806 = vrot.lane.b32.xlu0 %v14385_v61, %s12214_s24  ;;  %v17756_v57 = vrot.slane %v17744_v48, 5 }
 0x268   :  { %v14490_v41 = vadd.f32 %v17645_v50, %v3629_v36  ;;  %v456_v42 = vrot.slane %v17752_v3, 4  ;;  %v3748_v5 = vand.u32 2147483647, %v14482_v1  ;;  %v3275_v36 = vadd.f32 %v14235_v4, %v3075_v15 }
 0x269   :  { %v3797_v55 = vsub.f32 0.0, %v3747_v24  ;;  %v3754_v9 = vand.u32 2147483647, %v14485_v52  ;;  %v473_v3 = vrot.slane %v17755_v7, 5  ;;  %v11872_v24 = vpop.eup %11871  ;;  %v443_v40 = vsel %vm14121_vm14, %v441_v13, %v17756_v57  ;;  %v2965_v21 = vpop.permute.xlu0 %2964 }
 0x26a   :  { %v3755_v18 = vand.u32 2147483647, %v14490_v41  ;;  %v3798_v29 = vsub.f32 0.0, %v3748_v5  ;;  %11877 = vrcp.f32 %v4300_v63  ;;  %v3481_v49 = vadd.f32 %v3373_v33, %v3275_v36  ;;  %826 = vrot.lane.b32.xlu1 %v14403_v51, %s12214_s24  ;;  %v17758_v63 = vld [vmem:[#allocation73_spill] sm:$0xff] }
 0x26b   :  { %v3878_v8 = vmul.f32 1.442695, %v3797_v55  ;;  %v3804_v25 = vsub.f32 0.0, %v3754_v9  ;;  %v17757_v4 = vrot.slane %v17753_v20, 5  ;;  %v4190_v15 = vsub.f32 %v14465_v31, %v14478_v6  ;;  %v14523_v33 = vpop.permute.xlu1 %3376  ;;  %509 = vrot.lane.b32.xlu0 %v14414_v22, %s12221_s16 }
 0x26c   :  { %v3805_v12 = vsub.f32 0.0, %v3755_v18  ;;  %v4200_v55 = vsub.f32 %v14446_v0, %v14458_v34  ;;  %v3880_v5 = vmul.f32 1.442695, %v3798_v29  ;;  %v17759_v18 = vrot.slane %v17758_v63, 2  ;;  %v17763_v34 = vld [vmem:[#allocation76_spill] sm:$0xff] }
 0x26d   :  { %v472_v61 = vrot.slane %v17757_v4, 4  ;;  %11879 = vpow2.f32 %v3878_v8  ;;  %v3892_v13 = vmul.f32 1.442695, %v3804_v25  ;;  %v3271_v31 = vadd.f32 %v3159_v58, %v14307_v56 }
 0x26e   :  { %v11874_v9 = vpop.eup %11873  ;;  %11881 = vrcp.f32 %v4290_v16  ;;  %v3894_v57 = vmul.f32 1.442695, %v3805_v12  ;;  %v3631_v36 = vadd.f32 %v17759_v18, %v3481_v49  ;;  %v14529_v29 = vmul.f32 %v11872_v24, %v14417_v62  ;;  %v3365_v49 = vpop.permute.xlu0 %3364  ;;  %529 = vrot.lane.b32.xlu1 %v14432_v60, %s12221_s16  ;;  %v17772_v18 = vld [vmem:[#allocation38_spill] sm:$0xff] }
 0x26f   :  { %v3943_v51 = vadd.f32 1.0, %v11874_v9  ;;  %v4093_v4 = vmul.f32 %v11874_v9, %v11874_v9  ;;  %11883 = vpow2.f32 %v3880_v5  ;;  %v11876_v0 = vpop.eup %11875  ;;  %vm4043_vm10 = vcmp.ge.f32.partialorder %v14381_v59, 0.0  ;;  %v14547_v24 = vpop.permute.xlu1 %3180  ;;  %501 = vrot.lane.b32.xlu0 %v443_v40, %s12221_s16 }
 0x270   :  { %17760 = vst [vmem:[#allocation26_spill] sm:$0xff] %v14529_v29  ;;  %11885 = vpow2.f32 %v3894_v57  ;;  %v14533_v12 = vadd.f32 %v17637_v17, %v3631_v36  ;;  %v3477_v22 = vadd.f32 %v3365_v49, %v3271_v31  ;;  %v17761_v25 = vrot.slane %v17754_v10, 5  ;;  %v17769_v49 = vld [vmem:[#allocation100_spill] sm:$0xff] }
 0x271   :  { %v17762_v58 = vrot.slane %v17732_v28, 5  ;;  %v488_v6 = vrot.slane %v17763_v34, 5  ;;  %v14544_v8 = vmul.f32 %v3943_v51, %v3943_v51  ;;  %11887 = vpow2.f32 %v3892_v13 }
 0x272   :  { %v458_v56 = vsel %vm14121_vm14, %v456_v42, %v17761_v25  ;;  %v3757_v16 = vand.u32 2147483647, %v14533_v12  ;;  %v474_v60 = vsel %vm14121_vm14, %v472_v61, %v473_v3  ;;  %v14553_v5 = vmul.f32 %v4190_v15, %v14267_v32  ;;  %v14564_v40 = vpop.permute.xlu0 %3168  ;;  %v17767_v15 = vld [vmem:[#allocation95_spill] sm:$0xff] }
 0x273   :  { %v487_v62 = vrot.slane %v17762_v58, 4  ;;  %v4250_v42 = vmul.f32 %v4200_v55, %v14260_v45  ;;  %v14558_v9 = vsel %vm4043_vm10, %v4093_v4, 1.0  ;;  %v17764_v57 = vrot.slane %v17735_v54, 2  ;;  %511 = vrot.lane.b32.xlu1 %v458_v56, %s12221_s16  ;;  %v2971_v58 = vpop.permute.xlu1 %2970  ;;  %521 = vrot.lane.b32.xlu0 %v474_v60, %s12221_s16 }
 0x274   :  { %v3807_v51 = vsub.f32 0.0, %v3757_v16  ;;  %v17766_v32 = vrot.slane %v17744_v48, 5  ;;  %v17358_v45 = vrot.slane %v17767_v15, 5  ;;  %vm4047_vm11 = vcmp.ge.f32.partialorder %v14461_v27, 0.0 }
 0x275   :  { %v3627_v13 = vadd.f32 %v17764_v57, %v3477_v22  ;;  %v489_v54 = vsel %vm14121_vm14, %v487_v62, %v488_v6  ;;  %v17768_v4 = vmov %v17761_v25  ;;  %v4293_v25 = vadd.f32 %v14558_v9, %v14544_v8  ;;  %v17770_v57 = vld [vmem:[#allocation80_spill] sm:$0xff] }
 0x276   :  { %v444_v61 = vrot.slane %v17766_v32, 4  ;;  %v459_v31 = vrot.slane %v17768_v4, 4  ;;  %v3898_v56 = vmul.f32 1.442695, %v3807_v51  ;;  %v475_v16 = vrot.slane %v473_v3, 4  ;;  %v3371_v22 = vpop.permute.xlu0 %3370  ;;  %v17771_v51 = vld [vmem:[#allocation13_spill] sm:$0xff] }
 0x277   :  { %v14572_v55 = vadd.f32 %v17637_v17, %v3627_v13  ;;  %v14584_v13 = vmul.f32 %v11876_v0, %v14439_v39  ;;  %v3074_v62 = vadd.f32 %v2965_v21, %v17746_v30  ;;  %v3077_v4 = vadd.f32 %v2971_v58, %v17758_v63  ;;  %531 = vrot.lane.b32.xlu1 %v489_v54, %s12221_s16  ;;  %v11878_v39 = vpop.eup %11877 }
 0x278   :  { %11889 = vpow2.f32 %v3898_v56  ;;  %v446_v3 = vsel %vm14121_vm14, %v444_v61, %v17358_v45  ;;  %v490_v60 = vrot.slane %v488_v6, 4  ;;  %v17773_v30 = vrot.slane %v17769_v49, 5  ;;  %v14603_v6 = vpop.permute.xlu1 %2956 }
 0x279   :  { %v3753_v36 = vand.u32 2147483647, %v14572_v55  ;;  %v3277_v21 = vadd.f32 %v17772_v18, %v3077_v4  ;;  %11891 = vrcp.f32 %v4293_v25  ;;  %vm4055_vm12 = vcmp.ge.f32.partialorder %v14490_v41, 0.0  ;;  %503 = vrot.lane.b32.xlu0 %v446_v3, %s12221_s16 }
 0x27a   :  { %v461_v63 = vsel %vm14121_vm14, %v459_v31, %v17773_v30  ;;  %v11880_v54 = vpop.eup %11879  ;;  %vm4048_vm13 = vcmp.ge.f32.partialorder %v14482_v1, 0.0  ;;  %v14611_v45 = vmul.f32 %v11878_v39, %v4250_v42  ;;  %v4193_v56 = vsub.f32 %v14544_v8, %v14558_v9  ;;  %v14616_v3 = vpop.permute.xlu0 %3178 }
 0x27b   :  { %v3803_v0 = vsub.f32 0.0, %v3753_v36  ;;  %v17774_v36 = vrot.slane %v17770_v57, 5  ;;  %v11882_v61 = vpop.eup %11881  ;;  %v3947_v58 = vadd.f32 1.0, %v11880_v54  ;;  %v4097_v31 = vmul.f32 %v11880_v54, %v11880_v54  ;;  %513 = vrot.lane.b32.xlu1 %v461_v63, %s12221_s16 }
 0x27c   :  { %v3483_v30 = vadd.f32 %v14523_v33, %v3277_v21  ;;  %v11884_v25 = vpop.eup %11883  ;;  %v3274_v32 = vadd.f32 %v14492_v43, %v3074_v62  ;;  %v17776_v39 = vrot.slane %v17716_v14, 6  ;;  %v14631_v9 = vpop.permute.xlu1 %2886  ;;  %v17363_v62 = vrot.slane %v17727_v11, 6 }
 0x27d   :  { %v477_v18 = vsel %vm14121_vm14, %v475_v16, %v17774_v36  ;;  %v3890_v4 = vmul.f32 1.442695, %v3803_v0  ;;  %v17775_v16 = vrot.slane %v17771_v51, 5  ;;  %v11886_v0 = vpop.eup %11885  ;;  %v14623_v36 = vmul.f32 %v3947_v58, %v3947_v58 }
 0x27e   :  { %v3948_v33 = vadd.f32 1.0, %v11884_v25  ;;  %v4098_v42 = vmul.f32 %v11884_v25, %v11884_v25  ;;  %v597_v21 = vrot.slane %v17776_v39, 4  ;;  %v14629_v43 = vsel %vm4047_vm11, %v4097_v31, 1.0  ;;  %523 = vrot.lane.b32.xlu0 %v477_v18, %s12221_s16  ;;  %v17777_v25 = vld [vmem:[#allocation72_spill] sm:$0xff]  ;;  %v2969_v51 = vpop.permute.xlu0 %2968 }
 0x27f   :  { %v492_v54 = vsel %vm14121_vm14, %v490_v60, %v17775_v16  ;;  %v3955_v8 = vadd.f32 1.0, %v11886_v0  ;;  %11893 = vpow2.f32 %v3890_v4  ;;  %v11888_v60 = vpop.eup %11887  ;;  %v4105_v63 = vmul.f32 %v11886_v0, %v11886_v0  ;;  %v17780_v4 = vld [vmem:[#allocation65_spill] sm:$0xff] }
 0x280   :  { %v14635_v58 = vmul.f32 %v3948_v33, %v3948_v33  ;;  %v17778_v16 = vrot.slane %v17777_v25, 2  ;;  %v3480_v39 = vadd.f32 %v3371_v22, %v3274_v32  ;;  %v14640_v14 = vmul.f32 %v11882_v61, %v14553_v5  ;;  %533 = vrot.lane.b32.xlu1 %v492_v54, %s12221_s16  ;;  %v3379_v54 = vpop.permute.xlu1 %3378 }
 0x281   :  { %v14644_v31 = vsel %vm4048_vm13, %v4098_v42, 1.0  ;;  %v3078_v18 = vadd.f32 %v14470_v2, %v17780_v4  ;;  %v17365_v0 = vrot.slane %v17728_v44, 6  ;;  %v4297_v22 = vadd.f32 %v14629_v43, %v14623_v36 }
 0x282   :  { %v3633_v29 = vadd.f32 %v17778_v16, %v3483_v30  ;;  %17779 = vst [vmem:[#allocation67_spill] sm:$0xff] %v14640_v14  ;;  %vm4054_vm15 = vcmp.ge.f32.partialorder %v14485_v52, 0.0  ;;  %v599_v5 = vsel %vm14280_vm7, %v597_v21, %v17363_v62  ;;  %v4243_v2 = vmul.f32 %v4193_v56, %v14381_v59  ;;  %v17781_v59 = vld [vmem:[#allocation64_spill] sm:$0xff]  ;;  %v3375_v33 = vpop.permute.xlu0 %3374 }
 0x283   :  { %v14660_v32 = vmul.f32 %v3955_v8, %v3955_v8  ;;  %v3954_v61 = vadd.f32 1.0, %v11888_v60  ;;  %v4104_v30 = vmul.f32 %v11888_v60, %v11888_v60  ;;  %653 = vrot.lane.b32.xlu0 %v599_v5, %s12220_s0  ;;  %v14665_v42 = vsel %vm4055_vm12, %v4105_v63, 1.0 }
 0x284   :  { %v4298_v16 = vadd.f32 %v14644_v31, %v14635_v58  ;;  %vm4057_vm1 = vcmp.ge.f32.partialorder %v14533_v12, 0.0  ;;  %v14671_v21 = vadd.f32 %v17645_v50, %v3633_v29  ;;  %v17782_v56 = vrot.slane %v17781_v59, 2 }
 0x285   :  { %v3278_v5 = vadd.f32 %v14355_v46, %v3078_v18  ;;  %v628_v63 = vrot.slane %v17365_v0, 4  ;;  %v11890_v49 = vpop.eup %11889  ;;  %v4197_v7 = vsub.f32 %v14623_v36, %v14629_v43  ;;  %11895 = vrcp.f32 %v4297_v22  ;;  %v14697_v36 = vpop.permute.xlu1 %3182 }
 0x286   :  { %v3630_v8 = vadd.f32 %v17782_v56, %v3480_v39  ;;  %vm4053_vm3 = vcmp.ge.f32.partialorder %v14572_v55, 0.0  ;;  %v3759_v29 = vand.u32 2147483647, %v14671_v21  ;;  %v17783_v39 = vrot.slane %v17767_v15, 5  ;;  %v11892_v43 = vpop.eup %11891 }
 0x287   :  { %v4305_v46 = vadd.f32 %v14665_v42, %v14660_v32  ;;  %v4198_v18 = vsub.f32 %v14635_v58, %v14644_v31  ;;  %v14691_v0 = vmul.f32 %v3954_v61, %v3954_v61  ;;  %v14695_v60 = vsel %vm4054_vm15, %v4104_v30, 1.0  ;;  %v14707_v61 = vpop.permute.xlu0 %2954 }
 0x288   :  { %v447_v56 = vrot.slane %v17783_v39, 4  ;;  %11897 = vrcp.f32 %v4298_v16  ;;  %v3809_v22 = vsub.f32 0.0, %v3759_v29  ;;  %v14700_v62 = vadd.f32 %v17751_v37, %v3630_v8 }
 0x289   :  { %v3076_v39 = vadd.f32 %v2969_v51, %v17781_v59  ;;  %v3957_v14 = vadd.f32 1.0, %v11890_v49  ;;  %v4107_v44 = vmul.f32 %v11890_v49, %v11890_v49  ;;  %v3484_v15 = vadd.f32 %v3379_v54, %v3278_v5  ;;  %v17787_v59 = vld [vmem:[#allocation96_spill] sm:$0xff] }
 0x28a   :  { %v17784_v58 = vrot.slane %v17732_v28, 6  ;;  %v4205_v30 = vsub.f32 %v14660_v32, %v14665_v42  ;;  %v3902_v16 = vmul.f32 1.442695, %v3809_v22  ;;  %v3756_v29 = vand.u32 2147483647, %v14700_v62 }
 0x28b   :  { %v3276_v8 = vadd.f32 %v14564_v40, %v3076_v39  ;;  %v14714_v51 = vmul.f32 %v11892_v43, %v4243_v2  ;;  %11899 = vrcp.f32 %v4305_v46  ;;  %v17786_v49 = vrot.slane %v17717_v19, 2  ;;  %v14727_v43 = vpop.permute.xlu0 %2884 }
 0x28c   :  { %v630_v31 = vsel %vm14280_vm7, %v628_v63, %v17784_v58  ;;  %v17370_v5 = vrot.slane %v17787_v59, 5  ;;  %v2981_v63 = vpop.permute.xlu1 %2980  ;;  %v11894_v58 = vpop.eup %11893  ;;  %v4304_v32 = vadd.f32 %v14695_v60, %v14691_v0  ;;  %11901 = vpow2.f32 %v3902_v16 }
 0x28d   :  { %673 = vrot.lane.b32.xlu1 %v630_v31, %s12220_s0  ;;  %17785 = vst [vmem:[#allocation32_spill] sm:$0xff] %v14714_v51  ;;  %v3634_v54 = vadd.f32 %v17786_v49, %v3484_v15  ;;  %v3806_v42 = vsub.f32 0.0, %v3756_v29  ;;  %v3482_v22 = vadd.f32 %v3375_v33, %v3276_v8  ;;  %v14721_v20 = vmul.f32 %v3957_v14, %v3957_v14  ;;  %v17790_v8 = vld [vmem:[#allocation106_spill] sm:$0xff] }
 0x28e   :  { %v14725_v40 = vsel %vm4057_vm1, %v4107_v44, 1.0  ;;  %v3953_v2 = vadd.f32 1.0, %v11894_v58  ;;  %v4103_v46 = vmul.f32 %v11894_v58, %v11894_v58  ;;  %v17788_v31 = vrot.slane %v17780_v4, 2 }
 0x28f   :  { %v3896_v15 = vmul.f32 1.442695, %v3806_v42  ;;  %v14730_v39 = vadd.f32 %v17751_v37, %v3634_v54  ;;  %v449_v14 = vsel %vm14121_vm14, %v447_v56, %v17370_v5  ;;  %v17789_v16 = vrot.slane %v17770_v57, 5  ;;  %v17791_v56 = vld [vmem:[#allocation51_spill] sm:$0xff] }
 0x290   :  { %v3632_v49 = vadd.f32 %v17788_v31, %v3482_v22  ;;  %v14738_v33 = vmul.f32 %v3953_v2, %v3953_v2  ;;  %v14742_v44 = vsel %vm4053_vm3, %v4103_v46, 1.0  ;;  %505 = vrot.lane.b32.xlu0 %v449_v14, %s12221_s16  ;;  %v17373_v54 = vrot.slane %v17790_v8, 5  ;;  %v14748_v4 = vpop.permute.xlu1 %2936 }
 0x291   :  { %v478_v29 = vrot.slane %v17789_v16, 4  ;;  %v4204_v58 = vsub.f32 %v14691_v0, %v14695_v60  ;;  %11903 = vpow2.f32 %v3896_v15  ;;  %v14754_v42 = vadd.f32 %v14603_v6, %v17791_v56  ;;  %v3385_v60 = vpop.permute.xlu0 %3384 }
 0x292   :  { %v3760_v22 = vand.u32 2147483647, %v14730_v39  ;;  %v4307_v2 = vadd.f32 %v14725_v40, %v14721_v20  ;;  %v4303_v46 = vadd.f32 %v14742_v44, %v14738_v33  ;;  %v14762_v31 = vadd.f32 %v13374_v47, %v3632_v49  ;;  %v11896_v16 = vpop.eup %11895 }
 0x293   :  { %v480_v0 = vsel %vm14121_vm14, %v478_v29, %v17373_v54  ;;  %v4247_v6 = vmul.f32 %v4197_v7, %v14461_v27  ;;  %v4248_v15 = vmul.f32 %v4198_v18, %v14482_v1  ;;  %11905 = vrcp.f32 %v4304_v32  ;;  %v17792_v18 = vld [vmem:[#allocation48_spill] sm:$0xff]  ;;  %v17794_v54 = vld [vmem:[#allocation43_spill] sm:$0xff] }
 0x294   :  { %v3810_v14 = vsub.f32 0.0, %v3760_v22  ;;  %525 = vrot.lane.b32.xlu1 %v480_v0, %s12221_s16  ;;  %v4255_v49 = vmul.f32 %v4205_v30, %v14490_v41  ;;  %11907 = vrcp.f32 %v4303_v46  ;;  %v3758_v5 = vand.u32 2147483647, %v14762_v31  ;;  %v2983_v26 = vpop.permute.xlu1 %2982  ;;  %v17793_v30 = vld [vmem:[#allocation77_spill] sm:$0xff] }
 0x295   :  { %v14778_v27 = vmul.f32 %v4204_v58, %v14485_v52  ;;  %vm4059_vm5 = vcmp.ge.f32.partialorder %v14671_v21, 0.0  ;;  %v11898_v7 = vpop.eup %11897  ;;  %11909 = vrcp.f32 %v4307_v2  ;;  %v14783_v32 = vadd.f32 %v14631_v9, %v17792_v18  ;;  %v2979_v46 = vpop.permute.xlu0 %2978 }
 0x296   :  { %v3904_v1 = vmul.f32 1.442695, %v3810_v14  ;;  %v3808_v41 = vsub.f32 0.0, %v3758_v5  ;;  %v3082_v22 = vadd.f32 %v2981_v63, %v17793_v30  ;;  %v4207_v0 = vsub.f32 %v14721_v20, %v14725_v40 }
 0x297   :  { %v14790_v52 = vadd.f32 %v14707_v61, %v17794_v54  ;;  %v17375_v58 = vrot.slane %v17738_v53, 6  ;;  %v4397_v14 = vmul.f32 %v11896_v16, %v4247_v6  ;;  %v4203_v2 = vsub.f32 %v14738_v33, %v14742_v44  ;;  %v17796_v6 = vld [vmem:[#allocation85_spill] sm:$0xff] }
 0x298   :  { %11911 = vpow2.f32 %v3904_v1  ;;  %v3900_v9 = vmul.f32 1.442695, %v3808_v41  ;;  %v17795_v5 = vrot.slane %v17727_v11, 6  ;;  %v3387_v63 = vpop.permute.xlu1 %3386  ;;  %v11900_v56 = vpop.eup %11899  ;;  %v4398_v29 = vmul.f32 %v11898_v7, %v4248_v15  ;;  %v17797_v1 = vld [vmem:[#allocation75_spill] sm:$0xff] }
 0x299   :  { %v585_v20 = vrot.slane %v17375_v58, 4  ;;  %v17376_v40 = vrot.slane %v17744_v48, 6  ;;  %v17377_v61 = vrot.slane %v17754_v10, 6  ;;  %v11902_v54 = vpop.eup %11901  ;;  %v3083_v16 = vadd.f32 %v2983_v26, %v17796_v6  ;;  %v14804_v41 = vpop.permute.xlu0 %2934 }
 0x29a   :  { %v600_v18 = vrot.slane %v17795_v5, 4  ;;  %11913 = vpow2.f32 %v3900_v9  ;;  %v3081_v33 = vadd.f32 %v2979_v46, %v17797_v1  ;;  %v3282_v44 = vadd.f32 %v14547_v24, %v3082_v22  ;;  %v17798_v9 = vld [vmem:[#allocation30_spill] sm:$0xff] }
 0x29b   :  { %v3959_v5 = vadd.f32 1.0, %v11902_v54  ;;  %v4109_v8 = vmul.f32 %v11902_v54, %v11902_v54  ;;  %v587_v15 = vsel %vm14280_vm7, %v585_v20, %v17376_v40  ;;  %v4546_v26 = vcombine.low %v17798_v9, %v4397_v14 }
 0x29c   :  { %v602_v7 = vsel %vm14280_vm7, %v600_v18, %v17377_v61  ;;  %vm4056_vm6 = vcmp.ge.f32.partialorder %v14700_v62, 0.0  ;;  %645 = vrot.lane.b32.xlu0 %v587_v15, %s12220_s0  ;;  %v3281_v24 = vadd.f32 %v14616_v3, %v3081_v33  ;;  %v3488_v22 = vadd.f32 %v3387_v63, %v3282_v44  ;;  %v3389_v46 = vpop.permute.xlu1 %3388 }
 0x29d   :  { %655 = vrot.lane.b32.xlu1 %v602_v7, %s12220_s0  ;;  %v14819_v54 = vmul.f32 %v11900_v56, %v4255_v49  ;;  %v4598_v20 = vcombine.low %v4398_v29, %v14584_v13  ;;  %v14823_v58 = vmul.f32 %v4207_v0, %v14533_v12  ;;  %v14825_v18 = vmul.f32 %v3959_v5, %v3959_v5  ;;  %v17799_v7 = vld [vmem:[#allocation89_spill] sm:$0xff]  ;;  %v14834_v56 = vpop.permute.xlu0 %3104 }
 0x29e   :  { %v11904_v14 = vpop.eup %11903  ;;  %v14829_v9 = vsel %vm4059_vm5, %v4109_v8, 1.0  ;;  %v3487_v15 = vadd.f32 %v3385_v60, %v3281_v24  ;;  %v17800_v40 = vrot.slane %v17799_v7, 2  ;;  %v3283_v63 = vadd.f32 %v14697_v36, %v3083_v16 }
 0x29f   :  { %v4253_v13 = vmul.f32 %v4203_v2, %v14572_v55  ;;  %v3956_v49 = vadd.f32 1.0, %v11904_v14  ;;  %v4106_v12 = vmul.f32 %v11904_v14, %v11904_v14  ;;  %vm4060_vm0 = vcmp.ge.f32.partialorder %v14730_v39, 0.0 }
 0x2a0   :  { %v3638_v3 = vadd.f32 %v17800_v40, %v3488_v22  ;;  %v11906_v0 = vpop.eup %11905  ;;  %v4553_v33 = vrot.slane %v4546_v26, %v17627_v23  ;;  %v17801_v8 = vrot.slane %v17796_v6, 2  ;;  %v3489_v40 = vadd.f32 %v3389_v46, %v3283_v63  ;;  %v14844_v5 = vpop.permute.xlu1 %3106  ;;  %v17802_v63 = vld [vmem:[#allocation47_spill] sm:$0xff] }
 0x2a1   :  { %vm4509_vm8 = vcmask 259073   ;;  %v11908_v36 = vpop.eup %11907  ;;  %v4605_v55 = vrot.slane %v4598_v20, %v17627_v23  ;;  %v4309_v2 = vadd.f32 %v14829_v9, %v14825_v18  ;;  %v14849_v16 = vmul.f32 %v3956_v49, %v3956_v49  ;;  %v14862_v20 = vpop.permute.xlu0 %3154 }
 0x2a2   :  { %v3637_v44 = vadd.f32 %v17801_v8, %v3487_v15  ;;  %v14842_v60 = vadd.f32 %v17751_v37, %v3638_v3  ;;  %v14853_v26 = vsel %vm4056_vm6, %v4106_v12, 1.0  ;;  %v4560_v24 = vrot.slane %v4398_v29, %v17627_v23  ;;  %v11910_v14 = vpop.eup %11909 }
 0x2a3   :  { %v4404_v15 = vmul.f32 %v11906_v0, %v14778_v27  ;;  %v14865_v7 = vmul.f32 %v11908_v36, %v4253_v13  ;;  %v4306_v3 = vadd.f32 %v14853_v26, %v14849_v16  ;;  %v17803_v49 = vrot.slane %v17802_v63, 2  ;;  %v17806_v63 = vld [vmem:[#allocation50_spill] sm:$0xff] }
 0x2a4   :  { %v14859_v22 = vadd.f32 %v17645_v50, %v3637_v44  ;;  %v3764_v46 = vand.u32 2147483647, %v14842_v60  ;;  %v14871_v29 = vcombine.low %v4553_v33, %v4560_v24  ;;  %vm4058_vm2 = vcmp.ge.f32.partialorder %v14762_v31, 0.0  ;;  %v17804_v44 = vld [vmem:[#allocation45_spill] sm:$0xff]  ;;  %v3157_v27 = vpop.permute.xlu1 %3156 }
 0x2a5   :  { %v3639_v12 = vadd.f32 %v17803_v49, %v3489_v40  ;;  %v11912_v8 = vpop.eup %11911  ;;  %v14876_v61 = vadd.f32 %v14727_v43, %v17804_v44  ;;  %v17805_v13 = vrot.slane %v14611_v45, %v17627_v23  ;;  %11915 = vrcp.f32 %v4309_v2  ;;  %v3085_v44 = vpop.permute.xlu0 %3084 }
 0x2a6   :  { %v3763_v6 = vand.u32 2147483647, %v14859_v22  ;;  %v3960_v36 = vadd.f32 1.0, %v11912_v8  ;;  %v4110_v40 = vmul.f32 %v11912_v8, %v11912_v8  ;;  %v14886_v33 = vadd.f32 %v14748_v4, %v17806_v63 }
 0x2a7   :  { %v14882_v0 = vcombine.low %v4605_v55, %v17805_v13  ;;  %v3814_v49 = vsub.f32 0.0, %v3764_v46  ;;  %v14889_v43 = vadd.f32 %v17637_v17, %v3639_v12  ;;  %v11914_v53 = vpop.eup %11913  ;;  %v4704_v59 = vcombine.low %v14865_v7, %v4404_v15  ;;  %v17807_v12 = vld [vmem:[#allocation59_spill] sm:$0xff] }
 0x2a8   :  { %v3813_v24 = vsub.f32 0.0, %v3763_v6  ;;  %11917 = vrcp.f32 %v4306_v3  ;;  %v4010_v45 = vmul.f32 %v3960_v36, %v3960_v36  ;;  %v4160_v55 = vsel %vm4060_vm0, %v4110_v40, 1.0  ;;  %v3087_v4 = vpop.permute.xlu1 %3086 }
 0x2a9   :  { %v3958_v2 = vadd.f32 1.0, %v11914_v53  ;;  %v4108_v8 = vmul.f32 %v11914_v53, %v11914_v53  ;;  %v3912_v11 = vmul.f32 1.442695, %v3814_v49  ;;  %v4209_v6 = vsub.f32 %v14825_v18, %v14829_v9  ;;  %v3135_v36 = vpop.permute.xlu0 %3134  ;;  %v17809_v9 = vld [vmem:[#allocation92_spill] sm:$0xff] }
 0x2aa   :  { %v3910_v13 = vmul.f32 1.442695, %v3813_v24  ;;  %v4310_v46 = vadd.f32 %v4160_v55, %v4010_v45  ;;  %v3059_v63 = vadd.f32 %v14804_v41, %v17807_v12  ;;  %v3765_v57 = vand.u32 2147483647, %v14889_v43 }
 0x2ab   :  { %v4008_v15 = vmul.f32 %v3958_v2, %v3958_v2  ;;  %v4158_v3 = vsel %vm4058_vm2, %v4108_v8, 1.0  ;;  %v17808_v53 = vcombine.low %v14714_v51, %v14321_v38  ;;  %v14906_v24 = vmul.f32 %v11910_v14, %v14823_v58  ;;  %v17810_v58 = vld [vmem:[#allocation87_spill] sm:$0xff] }
 0x2ac   :  { %11919 = vpow2.f32 %v3910_v13  ;;  %v4206_v18 = vsub.f32 %v14849_v16, %v14853_v26  ;;  %v3815_v41 = vsub.f32 0.0, %v3765_v57  ;;  %v4510_v49 = vsel %vm4509_vm8, %v17809_v9, -inf  ;;  %v3137_v12 = vpop.permute.xlu1 %3136  ;;  %v17811_v16 = vld [vmem:[#allocation81_spill] sm:$0xff] }
 0x2ad   :  { %v4498_v40 = vrot.slane %v17808_v53, %v17627_v23  ;;  %v4711_v2 = vrot.slane %v4704_v59, %v17627_v23  ;;  %v4308_v8 = vadd.f32 %v4158_v3, %v4008_v15  ;;  %11921 = vpow2.f32 %v3912_v11  ;;  %v3311_v57 = vpop.permute.xlu0 %3310 }
 0x2ae   :  { %v14913_v13 = vadd.f32 %v3135_v36, %v3059_v63  ;;  %v4259_v38 = vmul.f32 %v4209_v6, %v14671_v21  ;;  %11923 = vrcp.f32 %v4310_v46  ;;  %v3914_v53 = vmul.f32 1.442695, %v3815_v41  ;;  %v17813_v63 = vld [vmem:[#allocation74_spill] sm:$0xff] }
 0x2af   :  { %v3244_v14 = vadd.f32 %v14834_v56, %v17810_v58  ;;  %v4210_v51 = vsub.f32 %v4010_v45, %v4160_v55  ;;  %11925 = vrcp.f32 %v4308_v8  ;;  %v17812_v26 = vrot.slane %v17811_v16, %v17627_v23  ;;  %v17815_v41 = vld [vmem:[#allocation66_spill] sm:$0xff] }
 0x2b0   :  { %v4511_v59 = vrot.slane %v4510_v49, 4  ;;  %v4666_v11 = vrot.slane %v14865_v7, %v17627_v23  ;;  %11927 = vpow2.f32 %v3914_v53  ;;  %v3245_v21 = vadd.f32 %v14844_v5, %v17813_v63  ;;  %v3313_v56 = vpop.permute.xlu1 %3312  ;;  %v17816_v5 = vld [vmem:[#allocation21_spill] sm:$0xff] }
 0x2b1   :  { %v4506_v9 = vcombine.low %v4498_v40, %v17812_v26  ;;  %v3450_v6 = vadd.f32 %v3311_v57, %v3244_v14  ;;  %v4256_v46 = vmul.f32 %v4206_v18, %v14700_v62  ;;  %v4208_v36 = vsub.f32 %v4008_v15, %v4158_v3  ;;  %v3361_v18 = vpop.permute.xlu0 %3360  ;;  %v17818_v26 = vld [vmem:[#allocation31_spill] sm:$0xff] }
 0x2b2   :  { %v17814_v45 = vrot.slane %v14819_v54, %v17627_v23  ;;  %v4722_v40 = vsel %vm4509_vm8, %v17815_v41, -inf  ;;  %vm4063_vm4 = vcmp.ge.f32.partialorder %v14859_v22, 0.0  ;;  %v3269_v8 = vadd.f32 %v14862_v20, %v14790_v52  ;;  %v11916_v15 = vpop.eup %11915 }
 0x2b3   :  { %v3270_v53 = vadd.f32 %v3157_v27, %v14754_v42  ;;  %v17817_v58 = vrot.slane %v17816_v5, 2  ;;  %v3451_v62 = vadd.f32 %v3313_v56, %v3245_v21  ;;  %v4260_v3 = vmul.f32 %v4210_v51, %v14730_v39 }
 0x2b4   :  { %v4719_v55 = vcombine.low %v4711_v2, %v17814_v45  ;;  %v3234_v54 = vadd.f32 %v3085_v44, %v14876_v61  ;;  %v4512_v2 = vmax.f32 %v4510_v49, %v4511_v59  ;;  %v4517_v57 = vsel %vm4509_vm8, %v4506_v9, -inf  ;;  %v3363_v39 = vpop.permute.xlu1 %3362 }
 0x2b5   :  { %v3600_v14 = vadd.f32 %v17817_v58, %v3450_v6  ;;  %v17819_v52 = vrot.slane %v17818_v26, 2  ;;  %v3475_v42 = vadd.f32 %v3361_v18, %v3269_v8  ;;  %v4723_v27 = vrot.slane %v4722_v40, 4  ;;  %v11918_v63 = vpop.eup %11917 }
 0x2b6   :  { %v4258_v21 = vmul.f32 %v4208_v36, %v14762_v31  ;;  %v14947_v6 = vadd.f32 %v3087_v4, %v14783_v32  ;;  %v14950_v51 = vadd.f32 %v3137_v12, %v14886_v33  ;;  %v4729_v61 = vsel %vm4509_vm8, %v4719_v55, -inf  ;;  %v17820_v31 = vld [vmem:[#allocation56_spill] sm:$0xff]  ;;  %v3291_v36 = vpop.permute.xlu0 %3290 }
 0x2b7   :  { %v14941_v16 = vadd.f32 %v17645_v50, %v3600_v14  ;;  %v3601_v20 = vadd.f32 %v17819_v52, %v3451_v62  ;;  %v14953_v44 = vmul.f32 %v11916_v15, %v4259_v38  ;;  %vm4456_vm10 = vcmask 258048  }
 0x2b8   :  { %vm4064_vm11 = vcmp.ge.f32.partialorder %v14842_v60, 0.0  ;;  %v17821_v59 = vrot.slane %v17820_v31, 2  ;;  %v3476_v4 = vadd.f32 %v3363_v39, %v3270_v53  ;;  %v4513_v33 = vrot.slane %v4512_v2, 2  ;;  %v17822_v53 = vld [vmem:[#allocation91_spill] sm:$0xff] }
 0x2b9   :  { %v3726_v49 = vand.u32 2147483647, %v14941_v16  ;;  %v14957_v9 = vadd.f32 %v17751_v37, %v3601_v20  ;;  %v4518_v12 = vrot.slane %v4517_v57, 4  ;;  %v11920_v56 = vpop.eup %11919  ;;  %v14963_v55 = vmax.f32 %v4722_v40, %v4723_v27 }
 0x2ba   :  { %v3625_v32 = vadd.f32 %v17821_v59, %v3475_v42  ;;  %v4730_v41 = vrot.slane %v4729_v61, 4  ;;  %v4406_v8 = vmul.f32 %v11918_v63, %v4256_v46  ;;  %v3963_v5 = vadd.f32 1.0, %v11920_v56  ;;  %v11922_v62 = vpop.eup %11921 }
 0x2bb   :  { %v3776_v45 = vsub.f32 0.0, %v3726_v49  ;;  %v3727_v38 = vand.u32 2147483647, %v14957_v9  ;;  %v4113_v58 = vmul.f32 %v11920_v56, %v11920_v56  ;;  %v14970_v26 = vsel %vm4456_vm10, %v17822_v53, -inf  ;;  %v11924_v40 = vpop.eup %11923  ;;  %v3293_v49 = vpop.permute.xlu1 %3292 }
 0x2bc   :  { %v14966_v14 = vadd.f32 %v17645_v50, %v3625_v32  ;;  %v14974_v52 = vsel %vm4456_vm10, %v14871_v29, -inf  ;;  %v4013_v20 = vmul.f32 %v3963_v5, %v3963_v5  ;;  %v3964_v42 = vadd.f32 1.0, %v11922_v62  ;;  %v11926_v27 = vpop.eup %11925 }
 0x2bd   :  { %v3836_v15 = vmul.f32 1.442695, %v3776_v45  ;;  %v3777_v18 = vsub.f32 0.0, %v3727_v38  ;;  %v4163_v46 = vsel %vm4063_vm4, %v4113_v58, 1.0  ;;  %vm4065_vm12 = vcmp.ge.f32.partialorder %v14889_v43, 0.0  ;;  %v11928_v59 = vpop.eup %11927  ;;  %v3341_v38 = vpop.permute.xlu0 %3340 }
 0x2be   :  { %v14979_v50 = vmax.f32 %v4512_v2, %v4513_v33  ;;  %v4114_v63 = vmul.f32 %v11922_v62, %v11922_v62  ;;  %v4519_v31 = vmax.f32 %v4517_v57, %v4518_v12  ;;  %v4758_v29 = vcombine.low %v4406_v8, %v14906_v24  ;;  %v17823_v62 = vld [vmem:[#allocation57_spill] sm:$0xff] }
 0x2bf   :  { %11929 = vpow2.f32 %v3836_v15  ;;  %v3838_v39 = vmul.f32 1.442695, %v3777_v18  ;;  %v4408_v32 = vmul.f32 %v11926_v27, %v4258_v21  ;;  %v3751_v56 = vand.u32 2147483647, %v14966_v14 }
 0x2c0   :  { %v4725_v45 = vrot.slane %v14963_v55, 2  ;;  %v14984_v5 = vmul.f32 %v11924_v40, %v4260_v3  ;;  %v4213_v58 = vsub.f32 %v4013_v20, %v4163_v46  ;;  %v4313_v2 = vadd.f32 %v4163_v46, %v4013_v20 }
 0x2c1   :  { %11931 = vpow2.f32 %v3838_v39  ;;  %v4014_v33 = vmul.f32 %v3964_v42, %v3964_v42  ;;  %v17824_v15 = vrot.slane %v17823_v62, 2  ;;  %v3440_v53 = vadd.f32 %v3291_v36, %v3234_v54 }
 0x2c2   :  { %v4731_v57 = vmax.f32 %v4729_v61, %v4730_v41  ;;  %v4164_v24 = vsel %vm4064_vm11, %v4114_v63, 1.0  ;;  %v3965_v21 = vadd.f32 1.0, %v11928_v59  ;;  %v4115_v12 = vmul.f32 %v11928_v59, %v11928_v59  ;;  %v14999_v61 = vpop.permute.xlu1 %3342  ;;  %v17825_v63 = vld [vmem:[#allocation14_spill] sm:$0xff] }
 0x2c3   :  { %v3626_v18 = vadd.f32 %v17824_v15, %v3476_v4  ;;  %v4515_v8 = vrot.slane %v14979_v50, 1  ;;  %v4765_v27 = vrot.slane %v4758_v29, %v17627_v23  ;;  %v4772_v3 = vrot.slane %v4408_v32, %v17627_v23  ;;  %v15007_v29 = vpop.permute.xlu0 %2924 }
 0x2c4   :  { %v3801_v40 = vsub.f32 0.0, %v3751_v56  ;;  %v4520_v20 = vrot.slane %v4519_v31, 2  ;;  %v4824_v46 = vrot.slane %v14984_v5, %v17627_v23  ;;  %v4810_v4 = vcombine.low %v4408_v32, %v14953_v44 }
 0x2c5   :  { %v14997_v54 = vmul.f32 %v4213_v58, %v14859_v22  ;;  %11933 = vrcp.f32 %v4313_v2  ;;  %v4314_v36 = vadd.f32 %v4164_v24, %v4014_v33  ;;  %vm4026_vm13 = vcmp.ge.f32.partialorder %v14941_v16, 0.0 }
 0x2c6   :  { %v3886_v41 = vmul.f32 1.442695, %v3801_v40  ;;  %v15003_v42 = vadd.f32 %v17751_v37, %v3626_v18  ;;  %v17826_v39 = vrot.slane %v17825_v63, 2  ;;  %v4214_v56 = vsub.f32 %v4014_v33, %v4164_v24  ;;  %v17827_v33 = vld [vmem:[#allocation15_spill] sm:$0xff] }
 0x2c7   :  { %v15009_v44 = vmul.f32 %v3965_v21, %v3965_v21  ;;  %v15013_v22 = vsel %vm4065_vm12, %v4115_v12, 1.0  ;;  %v3441_v32 = vadd.f32 %v3293_v49, %v14947_v6  ;;  %v15016_v58 = vcombine.low %v4765_v27, %v4772_v3  ;;  %v2975_v63 = vpop.permute.xlu0 %2974 }
 0x2c8   :  { %v3590_v59 = vadd.f32 %v17826_v39, %v3440_v53  ;;  %vm4027_vm15 = vcmp.ge.f32.partialorder %v14957_v9, 0.0  ;;  %11935 = vpow2.f32 %v3886_v41  ;;  %v3752_v37 = vand.u32 2147483647, %v15003_v42  ;;  %v15035_v41 = vpop.permute.xlu1 %2926 }
 0x2c9   :  { %vm1379_vm1 = vcmask 1041409   ;;  %v17828_v62 = vrot.slane %v17827_v33, 2  ;;  %v4521_v18 = vmax.f32 %v4519_v31, %v4520_v20  ;;  %v4726_v53 = vmax.f32 %v14963_v55, %v4725_v45 }
 0x2ca   :  { %v15021_v2 = vadd.f32 %v17637_v17, %v3590_v59  ;;  %v4732_v24 = vrot.slane %v4731_v57, 2  ;;  %11937 = vrcp.f32 %v4314_v36  ;;  %v3802_v6 = vsub.f32 0.0, %v3752_v37 }
 0x2cb   :  { %v3591_v15 = vadd.f32 %v17828_v62, %v3441_v32  ;;  %v3465_v21 = vadd.f32 %v3341_v38, %v14913_v13  ;;  %v4817_v12 = vrot.slane %v4810_v4, %v17627_v23  ;;  %v15030_v27 = vmul.f32 %v4214_v56, %v14842_v60  ;;  %v17829_v32 = vld [vmem:[#allocation55_spill] sm:$0xff] }
 0x2cc   :  { %v3716_v49 = vand.u32 2147483647, %v15021_v2  ;;  %v4522_v40 = vrot.slane %v4521_v18, 1  ;;  %v11930_v31 = vpop.eup %11929  ;;  %v4215_v55 = vsub.f32 %v15009_v44, %v15013_v22  ;;  %v3888_v45 = vmul.f32 1.442695, %v3802_v6 }
 0x2cd   :  { %v15033_v3 = vadd.f32 %v13374_v47, %v3591_v15  ;;  %v4733_v36 = vmax.f32 %v4731_v57, %v4732_v24  ;;  %v3926_v13 = vadd.f32 1.0, %v11930_v31  ;;  %v4076_v38 = vmul.f32 %v11930_v31, %v11930_v31 }
 0x2ce   :  { %v3766_v20 = vsub.f32 0.0, %v3716_v49  ;;  %v4727_v60 = vrot.slane %v4726_v53, 1  ;;  %v11932_v39 = vpop.eup %11931  ;;  %11939 = vpow2.f32 %v3888_v45  ;;  %v4523_v56 = vmax.f32 %v4521_v18, %v4522_v40 }
 0x2cf   :  { %v3717_v4 = vand.u32 2147483647, %v15033_v3  ;;  %v17830_v37 = vrot.slane %v17829_v32, 2  ;;  %v15042_v62 = vmul.f32 %v3926_v13, %v3926_v13  ;;  %v15046_v15 = vsel %vm4026_vm13, %v4076_v38, 1.0 }
 0x2d0   :  { %v3816_v59 = vmul.f32 1.442695, %v3766_v20  ;;  %v3927_v57 = vadd.f32 1.0, %v11932_v39  ;;  %v4077_v24 = vmul.f32 %v11932_v39, %v11932_v39  ;;  %vm4051_vm3 = vcmp.ge.f32.partialorder %v14966_v14, 0.0  ;;  %v15062_v20 = vpop.permute.xlu1 %2976  ;;  %v3125_v39 = vpop.permute.xlu0 %3124 }
 0x2d1   :  { %v3615_v33 = vadd.f32 %v17830_v37, %v3465_v21  ;;  %v4315_v6 = vadd.f32 %v15013_v22, %v15009_v44  ;;  %v3767_v49 = vsub.f32 0.0, %v3717_v4  ;;  %v4734_v31 = vrot.slane %v4733_v36, 1 }
 0x2d2   :  { %11941 = vpow2.f32 %v3816_v59  ;;  %v4276_v18 = vadd.f32 %v15046_v15, %v15042_v62  ;;  %v15053_v21 = vmul.f32 %v3927_v57, %v3927_v57  ;;  %v15057_v40 = vsel %vm4027_vm15, %v4077_v24, 1.0  ;;  %v11934_v13 = vpop.eup %11933 }
 0x2d3   :  { %v4516_v45 = vmax.f32 %v14979_v50, %v4515_v8  ;;  %v3818_v44 = vmul.f32 1.442695, %v3767_v49  ;;  %v4728_v22 = vmax.f32 %v4726_v53, %v4727_v60  ;;  %v4735_v38 = vmax.f32 %v4733_v36, %v4734_v31 }
 0x2d4   :  { %v15065_v4 = vadd.f32 %v17637_v17, %v3615_v33  ;;  %v15070_v59 = vcombine.low %v4817_v12, %v4824_v46  ;;  %11943 = vrcp.f32 %v4276_v18  ;;  %v3466_v50 = vadd.f32 %v14999_v61, %v14950_v51  ;;  %v17831_v33 = vld [vmem:[#allocation36_spill] sm:$0xff] }
 0x2d5   :  { %v4954_v32 = vsel %vm1379_vm1, %v4523_v56, %v4516_v45  ;;  %v4277_v8 = vadd.f32 %v15057_v40, %v15053_v21  ;;  %11945 = vpow2.f32 %v3818_v44  ;;  %v4976_v53 = vsel %vm1379_vm1, %v4735_v38, %v4728_v22  ;;  %v11936_v60 = vpop.eup %11935  ;;  %v17834_v45 = vld [vmem:[#allocation27_spill] sm:$0xff] }
 0x2d6   :  { %v3741_v36 = vand.u32 2147483647, %v15065_v4  ;;  %v15080_v37 = vmul.f32 %v4215_v55, %v14889_v43  ;;  %11947 = vrcp.f32 %v4315_v6  ;;  %vm4052_vm5 = vcmp.ge.f32.partialorder %v15003_v42, 0.0  ;;  %v17833_v55 = vld [vmem:[#allocation25_spill] sm:$0xff]  ;;  %v3127_v6 = vpop.permute.xlu1 %3126 }
 0x2d7   :  { %v11185_v5 = vpack.i.bf16 %v4954_v32, %v4976_v53  ;;  %11949 = vrcp.f32 %v4277_v8  ;;  %v3951_v46 = vadd.f32 1.0, %v11936_v60  ;;  %v4101_v12 = vmul.f32 %v11936_v60, %v11936_v60  ;;  %v11938_v61 = vpop.eup %11937 }
 0x2d8   :  { %v3791_v51 = vsub.f32 0.0, %v3741_v36  ;;  %v15084_v56 = vmul.f32 %v11934_v13, %v14997_v54  ;;  %vm4016_vm6 = vcmp.ge.f32.partialorder %v15021_v2, 0.0  ;;  %v17832_v57 = vrot.slane %v17831_v33, 2  ;;  %v3175_v13 = vpop.permute.xlu0 %3174 }
 0x2d9   :  { %11186 = vrot.lane.b32.xlu0 %v11185_v5, %s12214_s24  ;;  %v3054_v24 = vadd.f32 %v15007_v29, %v17833_v55  ;;  %v4001_v49 = vmul.f32 %v3951_v46, %v3951_v46  ;;  %v4151_v31 = vsel %vm4051_vm3, %v4101_v12, 1.0  ;;  %v3055_v54 = vadd.f32 %v15035_v41, %v17834_v45  ;;  %v17835_v12 = vld [vmem:[#allocation78_spill] sm:$0xff] }
 0x2da   :  { %v3616_v43 = vadd.f32 %v17832_v57, %v3466_v50  ;;  %v3866_v18 = vmul.f32 1.442695, %v3791_v51  ;;  %v4176_v44 = vsub.f32 %v15042_v62, %v15046_v15  ;;  %v3079_v38 = vadd.f32 %v2975_v63, %v17777_v25 }
 0x2db   :  { %v15102_v32 = vadd.f32 %v3125_v39, %v3054_v24  ;;  %v15105_v29 = vmul.f32 %v11938_v61, %v15030_v27  ;;  %v4301_v50 = vadd.f32 %v4151_v31, %v4001_v49  ;;  %v15107_v8 = vadd.f32 %v3127_v6, %v3055_v54  ;;  %v11940_v53 = vpop.eup %11939 }
 0x2dc   :  { %v15099_v22 = vadd.f32 %v13374_v47, %v3616_v43  ;;  %11951 = vpow2.f32 %v3866_v18  ;;  %v4177_v41 = vsub.f32 %v15053_v21, %v15057_v40  ;;  %v15112_v15 = vadd.f32 %v3175_v13, %v3079_v38  ;;  %v17837_v40 = vld [vmem:[#allocation18_spill] sm:$0xff]  ;;  %v3177_v13 = vpop.permute.xlu1 %3176 }
 0x2dd   :  { %v4565_v36 = vrot.slane %v14970_v26, 4  ;;  %v4201_v25 = vsub.f32 %v4001_v49, %v4151_v31  ;;  %11953 = vrcp.f32 %v4301_v50  ;;  %v3952_v63 = vadd.f32 1.0, %v11940_v53 }
 0x2de   :  { %v3742_v62 = vand.u32 2147483647, %v15099_v22  ;;  %v4102_v39 = vmul.f32 %v11940_v53, %v11940_v53  ;;  %vm4017_vm0 = vcmp.ge.f32.partialorder %v15033_v3, 0.0  ;;  %v4572_v46 = vrot.slane %v14974_v52, 4 }
 0x2df   :  { %v11942_v27 = vpop.eup %11941  ;;  %v4566_v5 = vmax.f32 %v14970_v26, %v4565_v36  ;;  %v17836_v21 = vrot.slane %v17835_v12, %v17627_v23  ;;  %v4002_v61 = vmul.f32 %v3952_v63, %v3952_v63  ;;  %v4226_v55 = vmul.f32 %v4176_v44, %v14941_v16 }
 0x2e0   :  { %v3792_v60 = vsub.f32 0.0, %v3742_v62  ;;  %v4152_v33 = vsel %vm4052_vm5, %v4102_v39, 1.0  ;;  %v3916_v57 = vadd.f32 1.0, %v11942_v27  ;;  %v4066_v43 = vmul.f32 %v11942_v27, %v11942_v27 }
 0x2e1   :  { %v4757_v51 = vcombine.low %v17837_v40, %v17836_v21  ;;  %v4567_v6 = vrot.slane %v4566_v5, 2  ;;  %v4573_v49 = vmax.f32 %v14974_v52, %v4572_v46  ;;  %v11944_v26 = vpop.eup %11943  ;;  %v4227_v31 = vmul.f32 %v4177_v41, %v14957_v9 }
 0x2e2   :  { %v3868_v24 = vmul.f32 1.442695, %v3792_v60  ;;  %v4302_v18 = vadd.f32 %v4152_v33, %v4002_v61  ;;  %v3966_v45 = vmul.f32 %v3916_v57, %v3916_v57  ;;  %v4116_v54 = vsel %vm4016_vm6, %v4066_v43, 1.0  ;;  %v11946_v38 = vpop.eup %11945 }
 0x2e3   :  { %vm4041_vm2 = vcmp.ge.f32.partialorder %v15065_v4, 0.0  ;;  %v4568_v50 = vmax.f32 %v4566_v5, %v4567_v6  ;;  %v4574_v53 = vrot.slane %v4573_v49, 2  ;;  %v4776_v16 = vsel %vm4456_vm10, %v4757_v51, -inf  ;;  %v15131_v44 = vpop.eup %11947 }
 0x2e4   :  { %11955 = vpow2.f32 %v3868_v24  ;;  %v4251_v52 = vmul.f32 %v4201_v25, %v14966_v14  ;;  %v4266_v9 = vadd.f32 %v4116_v54, %v3966_v45  ;;  %v3080_v41 = vadd.f32 %v15062_v20, %v17717_v19  ;;  %v11950_v62 = vpop.eup %11949 }
 0x2e5   :  { %11957 = vrcp.f32 %v4302_v18  ;;  %v4202_v36 = vsub.f32 %v4002_v61, %v4152_v33  ;;  %v3917_v63 = vadd.f32 1.0, %v11946_v38  ;;  %v4067_v39 = vmul.f32 %v11946_v38, %v11946_v38  ;;  %v15142_v61 = vpop.permute.xlu0 %3330  ;;  %v15144_v33 = vpop.permute.xlu1 %3332  ;;  %v17838_v38 = vld [vmem:[#allocation58_spill] sm:$0xff] }
 0x2e6   :  { %v4575_v27 = vmax.f32 %v4573_v49, %v4574_v53  ;;  %v4376_v60 = vmul.f32 %v11944_v26, %v4226_v55  ;;  %v4377_v46 = vmul.f32 %v11950_v62, %v4227_v31  ;;  %v4166_v5 = vsub.f32 %v3966_v45, %v4116_v54 }
 0x2e7   :  { %v4777_v12 = vrot.slane %v4776_v16, 4  ;;  %11959 = vrcp.f32 %v4266_v9  ;;  %v3967_v21 = vmul.f32 %v3917_v63, %v3917_v63  ;;  %v4117_v40 = vsel %vm4017_vm0, %v4067_v39, 1.0 }
 0x2e8   :  { %v4569_v14 = vrot.slane %v4568_v50, 1  ;;  %v4636_v25 = vcombine.low %v4376_v60, %v4377_v46  ;;  %v4783_v19 = vsel %vm4456_vm10, %v15016_v58, -inf  ;;  %v15140_v20 = vadd.f32 %v3177_v13, %v3080_v41  ;;  %v17840_v60 = vld [vmem:[#allocation94_spill] sm:$0xff] }
 0x2e9   :  { %v4778_v51 = vmax.f32 %v4776_v16, %v4777_v12  ;;  %v11952_v57 = vpop.eup %11951  ;;  %v4167_v43 = vsub.f32 %v3967_v21, %v4117_v40  ;;  %v4267_v55 = vadd.f32 %v4117_v40, %v3967_v21  ;;  %v4576_v24 = vrot.slane %v4575_v27, 1  ;;  %v15166_v21 = vpop.permute.xlu0 %3380 }
 0x2ea   :  { %v4784_v6 = vrot.slane %v4783_v19, 4  ;;  %v4643_v49 = vrot.slane %v4636_v25, %v17627_v23  ;;  %v3941_v26 = vadd.f32 1.0, %v11952_v57  ;;  %v4091_v31 = vmul.f32 %v11952_v57, %v11952_v57  ;;  %v11954_v45 = vpop.eup %11953  ;;  %v15168_v40 = vpop.permute.xlu1 %3382 }
 0x2eb   :  { %vm4042_vm4 = vcmp.ge.f32.partialorder %v15099_v22, 0.0  ;;  %v4779_v18 = vrot.slane %v4778_v51, 2  ;;  %v4252_v58 = vmul.f32 %v4202_v36, %v15003_v42  ;;  %v4216_v54 = vmul.f32 %v4166_v5, %v15021_v2 }
 0x2ec   :  { %11961 = vrcp.f32 %v4267_v55  ;;  %v4785_v13 = vmax.f32 %v4783_v19, %v4784_v6  ;;  %v17839_v53 = vrot.slane %v17838_v38, %v17627_v23  ;;  %v15155_v9 = vmul.f32 %v3941_v26, %v3941_v26 }
 0x2ed   :  { %v15159_v41 = vsel %vm4041_vm2, %v4091_v31, 1.0  ;;  %v4570_v62 = vmax.f32 %v4568_v50, %v4569_v14  ;;  %v4780_v63 = vmax.f32 %v4778_v51, %v4779_v18  ;;  %v4616_v42 = vsel %vm4509_vm8, %v17840_v60, -inf  ;;  %v17841_v14 = vld [vmem:[#allocation86_spill] sm:$0xff] }
 0x2ee   :  { %v15153_v16 = vcombine.low %v4643_v49, %v17839_v53  ;;  %v4786_v39 = vrot.slane %v4785_v13, 2  ;;  %v4623_v2 = vsel %vm4509_vm8, %v14882_v0, -inf  ;;  %v4217_v36 = vmul.f32 %v4167_v43, %v15033_v3 }
 0x2ef   :  { %v4577_v46 = vmax.f32 %v4575_v27, %v4576_v24  ;;  %v4617_v5 = vrot.slane %v4616_v42, 4  ;;  %v4624_v12 = vrot.slane %v4623_v2, 4  ;;  %v4401_v25 = vmul.f32 %v11954_v45, %v4251_v52 }
 0x2f0   :  { %v4781_v19 = vrot.slane %v4780_v63, 1  ;;  %v4787_v50 = vmax.f32 %v4785_v13, %v4786_v39  ;;  %v4828_v51 = vsel %vm4509_vm8, %v17841_v14, -inf  ;;  %v4291_v55 = vadd.f32 %v15159_v41, %v15155_v9 }
 0x2f1   :  { %v11956_v57 = vpop.eup %11955  ;;  %v4618_v0 = vmax.f32 %v4616_v42, %v4617_v5  ;;  %v4625_v6 = vmax.f32 %v4623_v2, %v4624_v12  ;;  %v4835_v3 = vsel %vm4509_vm8, %v15070_v59, -inf  ;;  %v4829_v45 = vrot.slane %v4828_v51, 4  ;;  %v15179_v12 = vpop.permute.xlu0 %517 }
 0x2f2   :  { %v11958_v27 = vpop.eup %11957  ;;  %v3942_v43 = vadd.f32 1.0, %v11956_v57  ;;  %v4092_v24 = vmul.f32 %v11956_v57, %v11956_v57  ;;  %v4782_v49 = vmax.f32 %v4780_v63, %v4781_v19  ;;  %v4788_v26 = vrot.slane %v4787_v50, 1  ;;  %v15181_v63 = vpop.permute.xlu1 %537 }
 0x2f3   :  { %v4402_v52 = vmul.f32 %v11958_v27, %v4252_v58  ;;  %v4619_v31 = vrot.slane %v4618_v0, 2  ;;  %v4626_v18 = vrot.slane %v4625_v6, 2  ;;  %v4836_v39 = vrot.slane %v4835_v3, 4 }
 0x2f4   :  { %v3992_v13 = vmul.f32 %v3942_v43, %v3942_v43  ;;  %v4142_v38 = vsel %vm4042_vm4, %v4092_v24, 1.0  ;;  %v4789_v53 = vmax.f32 %v4787_v50, %v4788_v26  ;;  %v11960_v60 = vpop.eup %11959  ;;  %v4960_v2 = vsel %vm1379_vm1, %v4577_v46, %v4570_v62 }
 0x2f5   :  { %v4652_v42 = vcombine.low %v4401_v25, %v4402_v52  ;;  %v4620_v59 = vmax.f32 %v4618_v0, %v4619_v31  ;;  %v4627_v5 = vmax.f32 %v4625_v6, %v4626_v18  ;;  %11963 = vrcp.f32 %v4291_v55  ;;  %v17843_v52 = vld [vmem:[#allocation29_spill] sm:$0xff] }
 0x2f6   :  { %v4292_v58 = vadd.f32 %v4142_v38, %v3992_v13  ;;  %v4982_v19 = vsel %vm1379_vm1, %v4789_v53, %v4782_v49  ;;  %v4830_v14 = vmax.f32 %v4828_v51, %v4829_v45  ;;  %v4191_v50 = vsub.f32 %v15155_v9, %v15159_v41  ;;  %v15202_v45 = vpop.permute.xlu0 %661 }
 0x2f7   :  { %v4659_v57 = vrot.slane %v4652_v42, %v17627_v23  ;;  %v11190_v27 = vpack.i.bf16 %v4960_v2, %v4982_v19  ;;  %v4628_v25 = vrot.slane %v4627_v5, 1  ;;  %v4366_v43 = vmul.f32 %v11960_v60, %v4216_v54  ;;  %v17845_v42 = vld [vmem:[#allocation34_spill] sm:$0xff] }
 0x2f8   :  { %11965 = vrcp.f32 %v4292_v58  ;;  %v4831_v62 = vrot.slane %v4830_v14, 2  ;;  %v4837_v46 = vmax.f32 %v4835_v3, %v4836_v39  ;;  %v4192_v6 = vsub.f32 %v3992_v13, %v4142_v38  ;;  %v15204_v13 = vpop.permute.xlu1 %681 }
 0x2f9   :  { %v11962_v0 = vpop.eup %11961  ;;  %v15190_v55 = vcombine.low %v4659_v57, %v4666_v11  ;;  %11191 = vrot.lane.b32.xlu1 %v11190_v27, %s12220_s0  ;;  %v4621_v51 = vrot.slane %v4620_v59, 1  ;;  %v3460_v24 = vadd.f32 %v15142_v61, %v15102_v32  ;;  %v17842_v54 = vrot.slane %v17732_v28, 6  ;;  %v17848_v27 = vld [vmem:[#allocation69_spill] sm:$0xff] }
 0x2fa   :  { %v4367_v9 = vmul.f32 %v11962_v0, %v4217_v36  ;;  %v4832_v41 = vmax.f32 %v4830_v14, %v4831_v62  ;;  %v4838_v49 = vrot.slane %v4837_v46, 2  ;;  %v4629_v3 = vmax.f32 %v4627_v5, %v4628_v25  ;;  %v17847_v14 = vld [vmem:[#allocation104_spill] sm:$0xff] }
 0x2fb   :  { %v631_v26 = vrot.slane %v17842_v54, 4  ;;  %v17844_v31 = vrot.slane %v17843_v52, 2  ;;  %v632_v7 = vrot.slane %v17763_v34, 6  ;;  %v3461_v11 = vadd.f32 %v15144_v33, %v15107_v8 }
 0x2fc   :  { %v15208_v32 = vmul.f32 %v15131_v44, %v15080_v37  ;;  %v4422_v61 = vcombine.low %v4366_v43, %v4367_v9  ;;  %v4833_v36 = vrot.slane %v4832_v41, 1  ;;  %v4839_v38 = vmax.f32 %v4837_v46, %v4838_v49  ;;  %v15239_v9 = vpop.permute.xlu1 %826 }
 0x2fd   :  { %v3610_v18 = vadd.f32 %v17844_v31, %v3460_v24  ;;  %v4622_v53 = vmax.f32 %v4620_v59, %v4621_v51  ;;  %v633_v60 = vsel %vm14280_vm7, %v631_v26, %v632_v7  ;;  %v17846_v8 = vrot.slane %v17845_v42, 2  ;;  %v15237_v24 = vpop.permute.xlu0 %806 }
 0x2fe   :  { %v4429_v2 = vrot.slane %v4422_v61, %v17627_v23  ;;  %v4241_v5 = vmul.f32 %v4191_v50, %v15065_v4  ;;  %v4242_v37 = vmul.f32 %v4192_v6, %v15099_v22  ;;  %v4840_v44 = vrot.slane %v4839_v38, 1  ;;  %675 = vrot.lane.b32.xlu1 %v633_v60, %s12220_s0  ;;  %v17850_v22 = vld [vmem:[#allocation105_spill] sm:$0xff] }
 0x2ff   :  { %v15211_v39 = vadd.f32 %v17637_v17, %v3610_v18  ;;  %v3611_v33 = vadd.f32 %v17846_v8, %v3461_v11  ;;  %v4966_v59 = vsel %vm1379_vm1, %v4629_v3, %v4622_v53  ;;  %v17385_v57 = vrot.slane %v17847_v14, 6  ;;  %v17852_v3 = vld [vmem:[#allocation100_spill] sm:$0xff] }
 0x300   :  { %v17849_v25 = vrot.slane %v17848_v27, %v17627_v23  ;;  %v4834_v4 = vmax.f32 %v4832_v41, %v4833_v36  ;;  %v4841_v50 = vmax.f32 %v4839_v38, %v4840_v44  ;;  %v617_v62 = vrot.slane %v17850_v22, 6  ;;  %v17855_v27 = vld [vmem:[#allocation13_spill] sm:$0xff] }
 0x301   :  { %v3736_v58 = vand.u32 2147483647, %v15211_v39  ;;  %v15224_v19 = vadd.f32 %v13374_v47, %v3611_v33  ;;  %v3535_v6 = vrot.slane %v17797_v1, 2  ;;  %v3485_v51 = vadd.f32 %v15166_v21, %v15112_v15  ;;  %v17854_v33 = vld [vmem:[#allocation95_spill] sm:$0xff] }
 0x302   :  { %v15230_v43 = vcombine.low %v4429_v2, %v17849_v25  ;;  %v4988_v49 = vsel %vm1379_vm1, %v4841_v50, %v4834_v4  ;;  %v616_v41 = vrot.slane %v17385_v57, 4  ;;  %v17851_v54 = vrot.slane %v17754_v10, 6  ;;  %v11964_v31 = vpop.eup %11963  ;;  %v15266_v4 = vpop.permute.xlu0 %509 }
 0x303   :  { %v3786_v46 = vsub.f32 0.0, %v3736_v58  ;;  %v3737_v0 = vand.u32 2147483647, %v15224_v19  ;;  %v17387_v52 = vrot.slane %v17852_v3, 6  ;;  %v11195_v18 = vpack.i.bf16 %v4966_v59, %v4988_v49  ;;  %v17857_v49 = vld [vmem:[#allocation20_spill] sm:$0xff] }
 0x304   :  { %v603_v26 = vrot.slane %v17851_v54, 4  ;;  %v3635_v61 = vadd.f32 %v3535_v6, %v3485_v51  ;;  %v3536_v21 = vrot.slane %v17793_v30, 2  ;;  %v3486_v36 = vadd.f32 %v15168_v40, %v15140_v20  ;;  %v17858_v54 = vld [vmem:[#allocation83_spill] sm:$0xff] }
 0x305   :  { %v3856_v1 = vmul.f32 1.442695, %v3786_v46  ;;  %v3787_v11 = vsub.f32 0.0, %v3737_v0  ;;  %v17853_v38 = vrot.slane %v17744_v48, 6  ;;  %v11966_v60 = vpop.eup %11965  ;;  %11196 = vrot.lane.b32.xlu0 %v11195_v18, %s12221_s16  ;;  %v589_v2 = vrot.slane %v17854_v33, 6  ;;  %v17856_v0 = vld [vmem:[#allocation101_spill] sm:$0xff] }
 0x306   :  { %v605_v15 = vsel %vm14280_vm7, %v603_v26, %v17387_v52  ;;  %v15258_v8 = vadd.f32 %v17637_v17, %v3635_v61  ;;  %v4391_v44 = vmul.f32 %v11964_v31, %v4241_v5  ;;  %v4392_v30 = vmul.f32 %v11966_v60, %v4242_v37  ;;  %v15268_v17 = vpop.permute.xlu1 %529  ;;  %v17859_v61 = vld [vmem:[#allocation32_spill] sm:$0xff] }
 0x307   :  { %v588_v53 = vrot.slane %v17853_v38, 4  ;;  %11967 = vpow2.f32 %v3856_v1  ;;  %v3858_v42 = vmul.f32 1.442695, %v3787_v11  ;;  %657 = vrot.lane.b32.xlu1 %v605_v15, %s12220_s0  ;;  %v3636_v59 = vadd.f32 %v3536_v21, %v3486_v36  ;;  %v10450_v11 = vld [vmem:[%s17166_s3] ss:$0 sm:$0xff]  ;;  %v17861_v38 = vld [vmem:[#allocation97_spill] sm:$0xff] }
 0x308   :  { %v634_v58 = vrot.slane %v632_v7, 4  ;;  %v4916_v20 = vcombine.low %v15084_v56, %v15105_v29  ;;  %v3761_v40 = vand.u32 2147483647, %v15258_v8  ;;  %v17386_v25 = vrot.slane %v17855_v27, 6 }
 0x309   :  { %11969 = vpow2.f32 %v3858_v42  ;;  %v4930_v50 = vrot.slane %v15208_v32, %v17627_v23  ;;  %v4438_v46 = vcombine.low %v4391_v44, %v4392_v30  ;;  %v618_v5 = vsel %vm14280_vm7, %v616_v41, %v617_v62  ;;  %v17863_v42 = vld [vmem:[#allocation102_spill] sm:$0xff]  ;;  %v15311_v30 = vpop.permute.xlu0 %501 }
 0x30a   :  { %v15275_v7 = vadd.f32 %v13374_v47, %v3636_v59  ;;  %665 = vrot.lane.b32.xlu0 %v618_v5, %s12220_s0  ;;  %v3811_v29 = vsub.f32 0.0, %v3761_v40  ;;  %v590_v37 = vsel %vm14280_vm7, %v588_v53, %v589_v2  ;;  %v568_v6 = vadd.f32 %v15179_v12, %v17856_v0  ;;  %v15313_v59 = vpop.permute.xlu1 %511 }
 0x30b   :  { %v636_v32 = vsel %vm14280_vm7, %v634_v58, %v17386_v25  ;;  %v4445_v51 = vrot.slane %v4438_v46, %v17627_v23  ;;  %v578_v41 = vadd.f32 %v15181_v63, %v17857_v49  ;;  %v17383_v26 = vrot.slane %v17858_v54, 7 }
 0x30c   :  { %v3762_v47 = vand.u32 2147483647, %v15275_v7  ;;  %677 = vrot.lane.b32.xlu1 %v636_v32, %s12220_s0  ;;  %v3906_v31 = vmul.f32 1.442695, %v3811_v29  ;;  %v619_v18 = vrot.slane %v617_v62, 4  ;;  %v712_v12 = vadd.f32 %v15202_v45, %v568_v6  ;;  %v17862_v45 = vld [vmem:[#allocation80_spill] sm:$0xff] }
 0x30d   :  { %v17388_v1 = vrot.slane %v17732_v28, 7  ;;  %v17860_v15 = vrot.slane %v17859_v61, %v17627_v23  ;;  %v773_v63 = vrot.slane %v17383_v26, 4  ;;  %v17384_v53 = vrot.slane %v17861_v38, 7  ;;  %v17867_v6 = vld [vmem:[#allocation28_spill] sm:$0xff] }
 0x30e   :  { %v3812_v36 = vsub.f32 0.0, %v3762_v47  ;;  %11971 = vpow2.f32 %v3906_v31  ;;  %647 = vrot.lane.b32.xlu0 %v590_v37, %s12220_s0  ;;  %v17390_v62 = vrot.slane %v17862_v45, 6  ;;  %v722_v60 = vadd.f32 %v15204_v13, %v578_v41  ;;  %v17866_v37 = vld [vmem:[#allocation26_spill] sm:$0xff] }
 0x30f   :  { %v15302_v21 = vcombine.low %v4445_v51, %v17860_v15  ;;  %v877_v44 = vrot.slane %v17863_v42, 4  ;;  %v775_v46 = vsel %vm14361_vm9, %v773_v63, %v17388_v1  ;;  %v15319_v5 = vcombine.high %v10450_v11, %v10450_v11 }
 0x310   :  { %v3908_v58 = vmul.f32 1.442695, %v3812_v36  ;;  %v857_v29 = vadd.f32 %v15237_v24, %v712_v12  ;;  %v621_v13 = vsel %vm14280_vm7, %v619_v18, %v17390_v62  ;;  %818 = vrot.lane.b32.xlu1 %v775_v46, %s12214_s24  ;;  %v17868_v32 = vcombine.low %v17866_v37, %v17867_v6  ;;  %v17869_v12 = vld [vmem:[#allocation79_spill] sm:$0xff]  ;;  %v15350_v6 = vpop.permute.xlu1 %531 }
 0x311   :  { %17865 = vst [vmem:[#allocation84_spill] sm:$0xff] %v15319_v5  ;;  %v4923_v47 = vrot.slane %v4916_v20, %v17627_v23  ;;  %v867_v41 = vadd.f32 %v15239_v9, %v722_v60  ;;  %v742_v24 = vrot.slane %v17384_v53, 4  ;;  %v887_v11 = vrot.slane %v17869_v12, 4  ;;  %v17870_v18 = vld [vmem:[#allocation67_spill] sm:$0xff]  ;;  %v17872_v9 = vld [vmem:[#allocation98_spill] sm:$0xff] }
 0x312   :  { %v4907_v51 = vrot.slane %v17868_v32, %v17627_v23  ;;  %11973 = vpow2.f32 %v3908_v58  ;;  %v917_v31 = vadd.f32 %v877_v44, %v857_v29  ;;  %vm4036_vm11 = vcmp.ge.f32.partialorder %v15211_v39, 0.0  ;;  %667 = vrot.lane.b32.xlu0 %v621_v13, %s12220_s0  ;;  %v15348_v13 = vpop.permute.xlu0 %521 }
 0x313   :  { %v17871_v61 = vrot.slane %v17870_v18, %v17627_v23  ;;  %v4931_v36 = vcombine.low %v4923_v47, %v4930_v50  ;;  %vm4037_vm12 = vcmp.ge.f32.partialorder %v15224_v19, 0.0  ;;  %v17389_v20 = vrot.slane %v17872_v9, 7 }
 0x314   :  { %v11968_v63 = vpop.eup %11967  ;;  %v15344_v60 = vadd.f32 %v15319_v5, %v917_v31  ;;  %v927_v42 = vadd.f32 %v887_v11, %v867_v41  ;;  %vm4062_vm13 = vcmp.ge.f32.partialorder %v15275_v7, 0.0  ;;  %vm1236_vm5 = vcmask 257024  }
 0x315   :  { %v4915_v15 = vcombine.low %v4907_v51, %v17871_v61  ;;  %v3936_v44 = vadd.f32 1.0, %v11968_v63  ;;  %v4086_v58 = vmul.f32 %v11968_v63, %v11968_v63  ;;  %v4941_v29 = vsel %vm4509_vm8, %v4931_v36, -inf }
 0x316   :  { %v11970_v50 = vpop.eup %11969  ;;  %v744_v32 = vsel %vm14361_vm9, %v742_v24, %v17389_v20  ;;  %v965_v51 = vand.u32 2147483647, %v15344_v60  ;;  %v4942_v41 = vrot.slane %v4941_v29, 4  ;;  %v15365_v63 = vadd.f32 %v15319_v5, %v927_v42 }
 0x317   :  { %v4934_v46 = vsel %vm4509_vm8, %v4915_v15, -inf  ;;  %v15357_v31 = vmul.f32 %v3936_v44, %v3936_v44  ;;  %v15361_v12 = vsel %vm4036_vm11, %v4086_v58, 1.0  ;;  %v3937_v11 = vadd.f32 1.0, %v11970_v50  ;;  %798 = vrot.lane.b32.xlu0 %v744_v32, %s12214_s24 }
 0x318   :  { %v4935_v47 = vrot.slane %v4934_v46, 4  ;;  %v4087_v18 = vmul.f32 %v11970_v50, %v11970_v50  ;;  %v985_v61 = vsub.f32 0.0, %v965_v51  ;;  %v4943_v36 = vmax.f32 %v4941_v29, %v4942_v41  ;;  %v17873_v29 = vld [vmem:[#allocation96_spill] sm:$0xff]  ;;  %v15383_v41 = vpop.permute.xlu1 %513 }
 0x319   :  { %v4286_v24 = vadd.f32 %v15361_v12, %v15357_v31  ;;  %v15369_v26 = vmul.f32 %v3937_v11, %v3937_v11  ;;  %v975_v32 = vand.u32 2147483647, %v15365_v63  ;;  %v591_v42 = vrot.slane %v589_v2, 4  ;;  %17874 = vst [vmem:[#allocation19_spill] sm:$0xff] %v15383_v41 }
 0x31a   :  { %v4936_v15 = vmax.f32 %v4934_v46, %v4935_v47  ;;  %v15373_v44 = vsel %vm4037_vm12, %v4087_v18, 1.0  ;;  %v1014_v58 = vmul.f32 1.442695, %v985_v61  ;;  %v4944_v50 = vrot.slane %v4943_v36, 2  ;;  %v15381_v47 = vpop.permute.xlu0 %503 }
 0x31b   :  { %11975 = vrcp.f32 %v4286_v24  ;;  %v4287_v46 = vadd.f32 %v15373_v44, %v15369_v26  ;;  %v11972_v11 = vpop.eup %11971  ;;  %v995_v57 = vsub.f32 0.0, %v975_v32  ;;  %vm4061_vm8 = vcmp.ge.f32.partialorder %v15258_v8, 0.0 }
 0x31c   :  { %v4937_v53 = vrot.slane %v4936_v15, 2  ;;  %11977 = vpow2.f32 %v1014_v58  ;;  %v4945_v61 = vmax.f32 %v4943_v36, %v4944_v50  ;;  %v3961_v25 = vadd.f32 1.0, %v11972_v11  ;;  %v15403_v41 = vpop.permute.xlu1 %533 }
 0x31d   :  { %11979 = vrcp.f32 %v4287_v46  ;;  %v4111_v24 = vmul.f32 %v11972_v11, %v11972_v11  ;;  %v1034_v20 = vmul.f32 1.442695, %v995_v57  ;;  %v17875_v58 = vrot.slane %v17873_v29, 6  ;;  %v17877_v11 = vld [vmem:[#allocation106_spill] sm:$0xff]  ;;  %17879 = vst [vmem:[#allocation35_spill] sm:$0xff] %v15403_v41 }
 0x31e   :  { %v4938_v18 = vmax.f32 %v4936_v15, %v4937_v53  ;;  %v4946_v1 = vrot.slane %v4945_v61, 1  ;;  %v15386_v62 = vmul.f32 %v3961_v25, %v3961_v25  ;;  %v17876_v25 = vrot.slane %v17862_v45, 6  ;;  %v15401_v5 = vpop.permute.xlu0 %523 }
 0x31f   :  { %v11974_v2 = vpop.eup %11973  ;;  %v15388_v51 = vsel %vm4061_vm8, %v4111_v24, 1.0  ;;  %v593_v53 = vsel %vm14280_vm7, %v591_v42, %v17875_v58  ;;  %11981 = vpow2.f32 %v1034_v20  ;;  %v17395_v24 = vrot.slane %v17877_v11, 6  ;;  %17878 = vst [vmem:[#allocation23_spill] sm:$0xff] %v15401_v5 }
 0x320   :  { %v4939_v52 = vrot.slane %v4938_v18, 1  ;;  %v3962_v15 = vadd.f32 1.0, %v11974_v2  ;;  %v4112_v36 = vmul.f32 %v11974_v2, %v11974_v2  ;;  %v4947_v32 = vmax.f32 %v4945_v61, %v4946_v1  ;;  %649 = vrot.lane.b32.xlu0 %v593_v53, %s12220_s0  ;;  %v17880_v1 = vld [vmem:[#allocation17_spill] sm:$0xff] }
 0x321   :  { %v4311_v57 = vadd.f32 %v15388_v51, %v15386_v62  ;;  %v622_v46 = vrot.slane %v17876_v25, 4  ;;  %v4186_v61 = vsub.f32 %v15357_v31, %v15361_v12  ;;  %v4187_v20 = vsub.f32 %v15369_v26, %v15373_v44 }
 0x322   :  { %v4940_v50 = vmax.f32 %v4938_v18, %v4939_v52  ;;  %v4012_v42 = vmul.f32 %v3962_v15, %v3962_v15  ;;  %v4162_v58 = vsel %vm4062_vm13, %v4112_v36, 1.0  ;;  %v17393_v18 = vrot.slane %v17880_v1, 7  ;;  %v654_v44 = vpop.permute.xlu0 %653 }
 0x323   :  { %11983 = vrcp.f32 %v4311_v57  ;;  %v731_v15 = vrot.slane %v17744_v48, 7  ;;  %v17881_v36 = vrot.slane %v17872_v9, 7  ;;  %v17394_v25 = vrot.slane %v17847_v14, 7  ;;  %v674_v57 = vpop.permute.xlu1 %673 }
 0x324   :  { %v4998_v52 = vsel %vm1379_vm1, %v4947_v32, %v4940_v50  ;;  %v4312_v2 = vadd.f32 %v4162_v58, %v4012_v42  ;;  %v730_v53 = vrot.slane %v17393_v18, 4  ;;  %v746_v32 = vrot.slane %v17754_v10, 7 }
 0x325   :  { %4999 = vrot.lane.b32.xlu1 %v4998_v52, %s12214_s24  ;;  %v745_v50 = vrot.slane %v17881_v36, 4  ;;  %v624_v26 = vsel %vm14280_vm7, %v622_v46, %v17395_v24  ;;  %v761_v12 = vrot.slane %v17394_v25, 4  ;;  %v4237_v36 = vmul.f32 %v4187_v20, %v15224_v19 }
 0x326   :  { %11985 = vrcp.f32 %v4312_v2  ;;  %v732_v31 = vsel %vm14361_vm9, %v730_v53, %v731_v15  ;;  %v4236_v2 = vmul.f32 %v4186_v61, %v15211_v39  ;;  %vm1085_vm15 = vcmp.ge.f32.partialorder %v15344_v60, 0.0 }
 0x327   :  { %790 = vrot.lane.b32.xlu0 %v732_v31, %s12214_s24  ;;  %v762_v46 = vrot.slane %v17850_v22, 7  ;;  %v4211_v53 = vsub.f32 %v15386_v62, %v15388_v51  ;;  %v17882_v31 = vrot.slane %v17732_v28, 7  ;;  %v733_v24 = vrot.slane %v731_v15, 4 }
 0x328   :  { %v11976_v52 = vpop.eup %11975  ;;  %v734_v61 = vrot.slane %v17854_v33, 7  ;;  %v4212_v62 = vsub.f32 %v4012_v42, %v4162_v58  ;;  %v777_v51 = vrot.slane %v17763_v34, 7  ;;  %vm1095_vm3 = vcmp.ge.f32.partialorder %v15365_v63, 0.0 }
 0x329   :  { %669 = vrot.lane.b32.xlu1 %v624_v26, %s12220_s0  ;;  %v11978_v18 = vpop.eup %11977  ;;  %v747_v26 = vsel %vm14361_vm9, %v745_v50, %v746_v32  ;;  %v776_v25 = vrot.slane %v17882_v31, 4  ;;  %v763_v19 = vsel %vm14361_vm9, %v761_v12, %v762_v46  ;;  %v15442_v20 = vmul.f32 %v11976_v52, %v4236_v2  ;;  %v15464_v12 = vpop.permute.xlu0 %505 }
 0x32a   :  { %v11980_v41 = vpop.eup %11979  ;;  %v1045_v5 = vadd.f32 1.0, %v11978_v18  ;;  %v1105_v39 = vmul.f32 %v11978_v18, %v11978_v18  ;;  %v564_v50 = vadd.f32 %v15266_v4, %v17861_v38  ;;  %v574_v42 = vadd.f32 %v15268_v17, %v17858_v54  ;;  %17883 = vst [vmem:[#allocation40_spill] sm:$0xff] %v15464_v12  ;;  %v15466_v52 = vpop.permute.xlu1 %525 }
 0x32b   :  { %v15444_v22 = vmul.f32 %v11980_v41, %v4237_v36  ;;  %810 = vrot.lane.b32.xlu0 %v763_v19, %s12214_s24  ;;  %v778_v58 = vsel %vm14361_vm9, %v776_v25, %v777_v51  ;;  %17884 = vst [vmem:[#allocation70_spill] sm:$0xff] %v15466_v52  ;;  %v735_v4 = vsel %vm14361_vm9, %v733_v24, %v734_v61  ;;  %v764_v31 = vrot.slane %v762_v46, 4 }
 0x32c   :  { %v15449_v15 = vmul.f32 %v1045_v5, %v1045_v5  ;;  %v15453_v18 = vsel %vm1085_vm15, %v1105_v39, 1.0  ;;  %v748_v5 = vrot.slane %v746_v32, 4  ;;  %v11982_v2 = vpop.eup %11981  ;;  %v4261_v17 = vmul.f32 %v4211_v53, %v15258_v8 }
 0x32d   :  { %800 = vrot.lane.b32.xlu1 %v747_v26, %s12214_s24  ;;  %v4262_v39 = vmul.f32 %v4212_v62, %v15275_v7  ;;  %v1055_v25 = vadd.f32 1.0, %v11982_v2  ;;  %v1115_v32 = vmul.f32 %v11982_v2, %v11982_v2  ;;  %v765_v19 = vrot.slane %v17862_v45, 7  ;;  %v646_v2 = vpop.permute.xlu0 %645  ;;  %v5295_v45 = vld [vmem:[#allocation5 + $0x3c0] sm:$0xff] }
 0x32e   :  { %v1185_v36 = vadd.f32 %v15453_v18, %v15449_v15  ;;  %v779_v41 = vrot.slane %v777_v51, 4  ;;  %v17398_v52 = vrot.slane %v17855_v27, 7  ;;  %v15479_v12 = vadd.f32 %v654_v44, %v564_v50 }
 0x32f   :  { %792 = vrot.lane.b32.xlu0 %v735_v4, %s12214_s24  ;;  %v15481_v26 = vmul.f32 %v1055_v25, %v1055_v25  ;;  %v15485_v8 = vsel %vm1095_vm3, %v1115_v32, 1.0  ;;  %v736_v7 = vrot.slane %v734_v61, 4  ;;  %v17397_v46 = vrot.slane %v17873_v29, 7  ;;  %v5231_v25 = vld [vmem:[#allocation5 + $0x1c0] sm:$0xff] }
 0x330   :  { %17885 = vst [vmem:[#allocation16_spill] sm:$0xff] %v15479_v12  ;;  %v11984_v24 = vpop.eup %11983  ;;  %11987 = vrcp.f32 %v1185_v36  ;;  %v17886_v53 = vrot.slane %v17852_v3, 7  ;;  %v766_v44 = vsel %vm14361_vm9, %v764_v31, %v765_v19  ;;  %v15494_v51 = vadd.f32 %v674_v57, %v574_v42  ;;  %v656_v36 = vpop.permute.xlu1 %655  ;;  %v5219_v12 = vld [vmem:[#allocation5 + $0x160] sm:$0xff] }
 0x331   :  { %820 = vrot.lane.b32.xlu1 %v778_v58, %s12214_s24  ;;  %v1195_v58 = vadd.f32 %v15485_v8, %v15481_v26  ;;  %v560_v61 = vadd.f32 %v15311_v30, %v17880_v1  ;;  %v15502_v4 = vmul.f32 %v11984_v24, %v4261_v17  ;;  %v565_v57 = vadd.f32 %v15313_v59, %v17872_v9 }
 0x332   :  { %v750_v62 = vsel %vm14361_vm9, %v748_v5, %v17886_v53  ;;  %v781_v42 = vsel %vm14361_vm9, %v779_v41, %v17398_v52  ;;  %v738_v30 = vsel %vm14361_vm9, %v736_v7, %v17397_v46  ;;  %v767_v31 = vrot.slane %v765_v19, 4  ;;  %v5223_v19 = vld [vmem:[#allocation5 + $0x180] sm:$0xff]  ;;  %v5224_v46 = vld [vmem:[#allocation5 + $0x188] sm:$0xff] }
 0x333   :  { %v11986_v50 = vpop.eup %11985  ;;  %812 = vrot.lane.b32.xlu0 %v766_v44, %s12214_s24  ;;  %11989 = vrcp.f32 %v1195_v58  ;;  %v17887_v59 = vrot.slane %v17852_v3, 5  ;;  %v15521_v53 = vadd.f32 %v646_v2, %v560_v61  ;;  %v15523_v41 = vadd.f32 %v656_v36, %v565_v57  ;;  %v5236_v44 = vld [vmem:[#allocation5 + $0x1e8] sm:$0xff]  ;;  %v5227_v7 = vld [vmem:[#allocation5 + $0x1a0] sm:$0xff] }
 0x334   :  { %v15504_v5 = vmul.f32 %v11986_v50, %v4262_v39  ;;  %v5235_v39 = vld [vmem:[#allocation5 + $0x1e0] sm:$0xff]  ;;  %v5228_v52 = vld [vmem:[#allocation5 + $0x1a8] sm:$0xff]  ;;  %v17890_v32 = vrot.slane %v17855_v27, 5  ;;  %v17891_v2 = vrot.slane %v17877_v11, 7  ;;  %v17892_v57 = vrot.slane %v17856_v0, 5 }
 0x335   :  { %802 = vrot.lane.b32.xlu1 %v750_v62, %s12214_s24  ;;  %v462_v24 = vrot.slane %v17887_v59, 4  ;;  %17888 = vst [vmem:[#allocation22_spill] sm:$0xff] %v15521_v53  ;;  %17889 = vst [vmem:[#allocation71_spill] sm:$0xff] %v15523_v41  ;;  %v5232_v62 = vld [vmem:[#allocation5 + $0x1c8] sm:$0xff]  ;;  %v10542_v50 = vcombine.low %v5231_v25, %v5235_v39  ;;  %v10543_v58 = vcombine.high %v5231_v25, %v5235_v39  ;;  %v17894_v41 = vrot.slane %v17852_v3, 6  ;;  %v5215_v53 = vld [vmem:[#allocation5 + $0x140] sm:$0xff] }
 0x336   :  { %v493_v17 = vrot.slane %v17890_v32, 4  ;;  %v10544_v59 = vcombine.low %v5232_v62, %v5236_v44  ;;  %v10545_v61 = vcombine.high %v5232_v62, %v5236_v44  ;;  %v769_v36 = vsel %vm14361_vm9, %v767_v31, %v17891_v2  ;;  %v5216_v62 = vld [vmem:[#allocation5 + $0x148] sm:$0xff] }
 0x337   :  { %794 = vrot.lane.b32.xlu0 %v738_v30, %s12214_s24  ;;  %v464_v30 = vsel %vm14121_vm14, %v462_v24, %v17892_v57  ;;  %v606_v25 = vrot.slane %v17894_v41, 4  ;;  %6138 = vmatprep.subr.bf16.mxu0 %v10543_v58  ;;  %v10535_v39 = vcombine.high %v5223_v19, %v5227_v7  ;;  %v10537_v32 = vcombine.high %v5224_v46, %v5228_v52  ;;  %v5220_v44 = vld [vmem:[#allocation5 + $0x168] sm:$0xff] }
 0x338   :  { %v1145_v31 = vsub.f32 %v15449_v15, %v15453_v18  ;;  %v1155_v24 = vsub.f32 %v15481_v26, %v15485_v8  ;;  %6220 = vmatprep.subr.bf16.mxu1 %v10545_v61  ;;  %6139 = vmatpush1.bf16.msra.mxu0 %v10542_v50  ;;  %v10534_v41 = vcombine.low %v5223_v19, %v5227_v7  ;;  %v17895_v58 = vrot.slane %v17857_v49, 5  ;;  %v5207_v50 = vld [vmem:[#allocation5 + $0x100] sm:$0xff] }
 0x339   :  { %822 = vrot.lane.b32.xlu1 %v781_v42, %s12214_s24  ;;  %6221 = vmatpush1.bf16.msra.mxu1 %v10544_v59  ;;  %v10527_v57 = vcombine.high %v5215_v53, %v5219_v12  ;;  %v17897_v18 = vrot.slane %v17855_v27, 6  ;;  %v17898_v8 = vrot.slane %v17852_v3, 7  ;;  %v10529_v7 = vcombine.high %v5216_v62, %v5220_v44  ;;  %v5211_v61 = vld [vmem:[#allocation5 + $0x120] sm:$0xff]  ;;  %v5208_v59 = vld [vmem:[#allocation5 + $0x108] sm:$0xff] }
 0x33a   :  { %v495_v2 = vsel %vm14121_vm14, %v493_v17, %v17895_v58  ;;  %6140 = vmatprep.subr.bf16.mxu0 %v10535_v39  ;;  %6222 = vmatprep.subr.bf16.mxu1 %v10537_v32  ;;  %v1165_v39 = vmul.f32 %v1145_v31, %v15344_v60  ;;  %v10526_v58 = vcombine.low %v5215_v53, %v5219_v12  ;;  %v17900_v32 = vrot.slane %v17873_v29, 5  ;;  %v5199_v53 = vld [vmem:[#allocation5 + $0xc0] sm:$0xff] }
 0x33b   :  { %515 = vrot.lane.b32.xlu0 %v464_v30, %s12221_s16  ;;  %v17896_v30 = vrot.slane %v17856_v0, 6  ;;  %v637_v26 = vrot.slane %v17897_v18, 4  ;;  %v751_v19 = vrot.slane %v17898_v8, 4  ;;  %v10528_v8 = vcombine.low %v5216_v62, %v5220_v44  ;;  %v5203_v31 = vld [vmem:[#allocation5 + $0xe0] sm:$0xff] }
 0x33c   :  { %6141 = vmatpush1.bf16.msra.mxu0 %v10534_v41  ;;  %v450_v18 = vrot.slane %v17900_v32, 4  ;;  %v17902_v60 = vrot.slane %v17856_v0, 7  ;;  %v17903_v62 = vrot.slane %v17857_v49, 7  ;;  %v17908_v32 = vrot.slane %v17861_v38, 5 }
 0x33d   :  { %814 = vrot.lane.b32.xlu1 %v769_v36, %s12214_s24  ;;  %v10536_v36 = vcombine.low %v5224_v46, %v5228_v52  ;;  %v608_v15 = vsel %vm14280_vm7, %v606_v25, %v17896_v30  ;;  %v11988_v17 = vpop.eup %11987  ;;  %v17899_v52 = vrot.slane %v17855_v27, 7  ;;  %v5212_v25 = vld [vmem:[#allocation5 + $0x128] sm:$0xff]  ;;  %v1175_v30 = vmul.f32 %v1155_v24, %v15365_v63  ;;  %6142 = vmatprep.subr.bf16.mxu0 %v10527_v57 }
 0x33e   :  { %v17901_v27 = vrot.slane %v17857_v49, 6  ;;  %v753_v12 = vsel %vm14361_vm9, %v751_v19, %v17902_v60  ;;  %v10521_v63 = vcombine.high %v5208_v59, %v5212_v25  ;;  %v5204_v57 = vld [vmem:[#allocation5 + $0xe8] sm:$0xff]  ;;  %v10511_v60 = vcombine.high %v5199_v53, %v5203_v31  ;;  %v15591_v49 = vld [vmem:[#allocation5 + $0x80] sm:$0xff] }
 0x33f   :  { %659 = vrot.lane.b32.xlu0 %v608_v15, %s12220_s0  ;;  %v782_v46 = vrot.slane %v17899_v52, 4  ;;  %6223 = vmatpush1.bf16.msra.mxu1 %v10536_v36  ;;  %v1225_v15 = vmul.f32 %v11988_v17, %v1165_v39  ;;  %v5200_v36 = vld [vmem:[#allocation5 + $0xc8] sm:$0xff] }
 0x340   :  { %v11990_v3 = vpop.eup %11989  ;;  %v639_v52 = vsel %vm14280_vm7, %v637_v26, %v17901_v27  ;;  %6224 = vmatprep.subr.bf16.mxu1 %v10529_v7  ;;  %v17904_v27 = vrot.slane %v17877_v11, 5  ;;  %v17905_v26 = vld [vmem:[#allocation62_spill] sm:$0xff]  ;;  %v17906_v7 = vld [vmem:[#allocation103_spill] sm:$0xff]  ;;  %6143 = vmatpush1.bf16.msra.mxu0 %v10526_v58 }
 0x341   :  { %535 = vrot.lane.b32.xlu1 %v495_v2, %s12221_s16  ;;  %v10519_v2 = vcombine.high %v5207_v50, %v5211_v61  ;;  %v1235_v24 = vmul.f32 %v11990_v3, %v1175_v30  ;;  %v784_v44 = vsel %vm14361_vm9, %v782_v46, %v17903_v62  ;;  %v10444_v19 = vrot.slane %v17905_v26, 9 }
 0x342   :  { %v481_v41 = vrot.slane %v17904_v27, 4  ;;  %v10445_v17 = vrot.slane %v17906_v7, 9  ;;  %v17907_v3 = vrot.slane %v17873_v29, 6  ;;  %v10518_v30 = vcombine.low %v5207_v50, %v5211_v61 }
 0x343   :  { %804 = vrot.lane.b32.xlu0 %v753_v12, %s12214_s24  ;;  %6225 = vmatpush1.bf16.msra.mxu1 %v10528_v8  ;;  %v10520_v46 = vcombine.low %v5208_v59, %v5212_v25  ;;  %v17909_v12 = vrot.slane %v17877_v11, 6  ;;  %v10513_v27 = vcombine.high %v5200_v36, %v5204_v57  ;;  %v1363_v50 = vsel %vm1236_vm5, %v1225_v15, -inf  ;;  %v5196_v8 = vld [vmem:[#allocation5 + $0xa8] sm:$0xff] }
 0x344   :  { %v594_v39 = vrot.slane %v17907_v3, 4  ;;  %6144 = vmatprep.subr.bf16.mxu0 %v10519_v2  ;;  %6226 = vmatprep.subr.bf16.mxu1 %v10521_v63  ;;  %v5195_v3 = vld [vmem:[#allocation5 + $0xa0] sm:$0xff]  ;;  %v1370_v61 = vsel %vm1236_vm5, %v1235_v24, -inf  ;;  %v17910_v59 = vrot.slane %v17858_v54, 5  ;;  %v10446_v58 = vrot.slane %v17905_v26, 10 }
 0x345   :  { %679 = vrot.lane.b32.xlu1 %v639_v52, %s12220_s0  ;;  %v452_v52 = vsel %vm14121_vm14, %v450_v18, %v17908_v32  ;;  %v625_v62 = vrot.slane %v17909_v12, 4  ;;  %v5192_v18 = vld [vmem:[#allocation5 + $0x88] sm:$0xff]  ;;  %v1364_v2 = vrot.slane %v1363_v50, 4  ;;  %v1371_v63 = vrot.slane %v1370_v61, 4  ;;  %6145 = vmatpush1.bf16.msra.mxu0 %v10518_v30 }
 0x346   :  { %v483_v25 = vsel %vm14121_vm14, %v481_v41, %v17910_v59  ;;  %v17911_v32 = vrot.slane %v17880_v1, 5  ;;  %v17912_v24 = vrot.slane %v17847_v14, 5  ;;  %v10510_v12 = vcombine.low %v5199_v53, %v5203_v31  ;;  %6146 = vmatprep.subr.bf16.mxu0 %v10511_v60 }
 0x347   :  { %507 = vrot.lane.b32.xlu0 %v452_v52, %s12221_s16  ;;  %v17913_v52 = vrot.slane %v17861_v38, 6  ;;  %6227 = vmatpush1.bf16.msra.mxu1 %v10520_v46  ;;  %v10512_v59 = vcombine.low %v5200_v36, %v5204_v57  ;;  %v10503_v0 = vcombine.high %v15591_v49, %v5195_v3  ;;  %v1372_v9 = vmax.f32 %v1370_v61, %v1371_v63  ;;  %v5184_v57 = vld [vmem:[#allocation5 + $0x48] sm:$0xff] }
 0x348   :  { %v440_v15 = vsel %vm14121_vm14, %v10444_v19, %v17911_v32  ;;  %v17914_v19 = vrot.slane %v17858_v54, 6  ;;  %v10447_v42 = vrot.slane %v17906_v7, 10  ;;  %6228 = vmatprep.subr.bf16.mxu1 %v10513_v27  ;;  %v1365_v30 = vmax.f32 %v1363_v50, %v1364_v2  ;;  %v5188_v46 = vld [vmem:[#allocation5 + $0x68] sm:$0xff] }
 0x349   :  { %824 = vrot.lane.b32.xlu1 %v784_v44, %s12214_s24  ;;  %v471_v44 = vsel %vm14121_vm14, %v10445_v17, %v17912_v24  ;;  %v596_v41 = vsel %vm14280_vm7, %v594_v39, %v17913_v52  ;;  %v10505_v17 = vcombine.high %v5192_v18, %v5196_v8  ;;  %v15620_v24 = vld [vmem:[#allocation5 + $0x40] sm:$0xff]  ;;  %v17915_v53 = vrot.slane %v17880_v1, 6  ;;  %6147 = vmatpush1.bf16.msra.mxu0 %v10510_v12 }
 0x34a   :  { %v627_v32 = vsel %vm14280_vm7, %v625_v62, %v17914_v19  ;;  %v5187_v39 = vld [vmem:[#allocation5 + $0x60] sm:$0xff]  ;;  %v10502_v36 = vcombine.low %v15591_v49, %v5195_v3  ;;  %v1373_v60 = vrot.slane %v1372_v9, 2  ;;  %v4457_v62 = vsel %vm4456_vm10, %v15230_v43, -inf  ;;  %6148 = vmatprep.subr.bf16.mxu0 %v10503_v0 }
 0x34b   :  { %499 = vrot.lane.b32.xlu0 %v440_v15, %s12221_s16  ;;  %v584_v31 = vsel %vm14280_vm7, %v10446_v58, %v17915_v53  ;;  %v4458_v27 = vrot.slane %v4457_v62, 4  ;;  %v4464_v50 = vsel %vm4456_vm10, %v15302_v21, -inf  ;;  %v4670_v61 = vsel %vm4456_vm10, %v15153_v16, -inf  ;;  %6229 = vmatpush1.bf16.msra.mxu1 %v10512_v59  ;;  %v15638_v15 = vld [vmem:[#allocation5] sm:$0xff]  ;;  %v5180_v59 = vld [vmem:[#allocation5 + $0x28] sm:$0xff] }
 0x34c   :  { %v10504_v49 = vcombine.low %v5192_v18, %v5196_v8  ;;  %v10495_v3 = vcombine.high %v15620_v24, %v5187_v39  ;;  %v4465_v58 = vrot.slane %v4464_v50, 4  ;;  %v4671_v2 = vrot.slane %v4670_v61, 4  ;;  %6230 = vmatprep.subr.bf16.mxu1 %v10505_v17  ;;  %v15640_v52 = vld [vmem:[#allocation5 + $0x20] sm:$0xff]  ;;  %v5176_v8 = vld [vmem:[#allocation5 + $0x8] sm:$0xff] }
 0x34d   :  { %527 = vrot.lane.b32.xlu1 %v483_v25, %s12221_s16  ;;  %v4677_v25 = vsel %vm4456_vm10, %v15190_v55, -inf  ;;  %v10497_v43 = vcombine.high %v5184_v57, %v5188_v46  ;;  %v1366_v63 = vrot.slane %v1365_v30, 2  ;;  %v4459_v21 = vmax.f32 %v4457_v62, %v4458_v27  ;;  %6149 = vmatpush1.bf16.msra.mxu0 %v10502_v36 }
 0x34e   :  { %v4678_v12 = vrot.slane %v4677_v25, 4  ;;  %v17916_v16 = vrot.slane %v17847_v14, 6  ;;  %v17917_v0 = vrot.slane %v17873_v29, 7  ;;  %v4466_v19 = vmax.f32 %v4464_v50, %v4465_v58  ;;  %6150 = vmatprep.subr.bf16.mxu0 %v10495_v3  ;;  %v5299_v50 = vld [vmem:[#allocation5 + $0x3e0] sm:$0xff] }
 0x34f   :  { %651 = vrot.lane.b32.xlu0 %v596_v41, %s12220_s0  ;;  %v4672_v17 = vmax.f32 %v4670_v61, %v4671_v2  ;;  %v10494_v53 = vcombine.low %v15620_v24, %v5187_v39  ;;  %v1374_v62 = vmax.f32 %v1372_v9, %v1373_v60  ;;  %v4460_v27 = vrot.slane %v4459_v21, 2  ;;  %6231 = vmatpush1.bf16.msra.mxu1 %v10504_v49  ;;  %v5300_v60 = vld [vmem:[#allocation5 + $0x3e8] sm:$0xff] }
 0x350   :  { %v615_v55 = vsel %vm14280_vm7, %v10447_v42, %v17916_v16  ;;  %v739_v18 = vrot.slane %v17917_v0, 4  ;;  %v10496_v41 = vcombine.low %v5184_v57, %v5188_v46  ;;  %v10487_v35 = vcombine.high %v15638_v15, %v15640_v52  ;;  %6232 = vmatprep.subr.bf16.mxu1 %v10497_v43  ;;  %v5296_v46 = vld [vmem:[#allocation5 + $0x3c8] sm:$0xff] }
 0x351   :  { %519 = vrot.lane.b32.xlu1 %v471_v44, %s12221_s16  ;;  %v4679_v44 = vmax.f32 %v4677_v25, %v4678_v12  ;;  %v4467_v42 = vrot.slane %v4466_v19, 2  ;;  %v4673_v16 = vrot.slane %v4672_v17, 2  ;;  %v1367_v0 = vmax.f32 %v1365_v30, %v1366_v63  ;;  %6151 = vmatpush1.bf16.msra.mxu0 %v10494_v53 }
 0x352   :  { %v10489_v29 = vcombine.high %v5176_v8, %v5180_v59  ;;  %v4461_v61 = vmax.f32 %v4459_v21, %v4460_v27  ;;  %v17918_v9 = vrot.slane %v17861_v38, 7  ;;  %v17919_v39 = vrot.slane %v17877_v11, 7  ;;  %6152 = vmatprep.subr.bf16.mxu0 %v10487_v35  ;;  %v15862_v38 = vld [vmem:[#allocation5 + $0x1b8] sm:$0xff] }
 0x353   :  { %v4680_v36 = vrot.slane %v4679_v44, 2  ;;  %643 = vrot.lane.b32.xlu0 %v584_v31, %s12220_s0  ;;  %v4468_v30 = vmax.f32 %v4466_v19, %v4467_v42  ;;  %v4674_v25 = vmax.f32 %v4672_v17, %v4673_v16  ;;  %v1375_v49 = vrot.slane %v1374_v62, 1  ;;  %6233 = vmatpush1.bf16.msra.mxu1 %v10496_v41  ;;  %v5287_v19 = vld [vmem:[#allocation5 + $0x380] sm:$0xff] }
 0x354   :  { %v741_v24 = vsel %vm14361_vm9, %v739_v18, %v17918_v9  ;;  %v770_v57 = vrot.slane %v17919_v39, 4  ;;  %v10486_v3 = vcombine.low %v15638_v15, %v15640_v52  ;;  %v10488_v31 = vcombine.low %v5176_v8, %v5180_v59  ;;  %6234 = vmatprep.subr.bf16.mxu1 %v10489_v29  ;;  %v5291_v17 = vld [vmem:[#allocation5 + $0x3a0] sm:$0xff]  ;;  %v5288_v8 = vld [vmem:[#allocation5 + $0x388] sm:$0xff] }
 0x355   :  { %671 = vrot.lane.b32.xlu1 %v627_v32, %s12220_s0  ;;  %v4462_v32 = vrot.slane %v4461_v61, 1  ;;  %v4681_v58 = vmax.f32 %v4679_v44, %v4680_v36  ;;  %v10607_v2 = vcombine.high %v5295_v45, %v5299_v50  ;;  %v4469_v43 = vrot.slane %v4468_v30, 1  ;;  %v5292_v59 = vld [vmem:[#allocation5 + $0x3a8] sm:$0xff] }
 0x356   :  { %v4675_v63 = vrot.slane %v4674_v25, 1  ;;  %v10448_v21 = vrot.slane %v17905_v26, 11  ;;  %v1368_v12 = vrot.slane %v1367_v0, 1  ;;  %v10609_v18 = vcombine.high %v5296_v46, %v5300_v60  ;;  %6153 = vmatpush1.bf16.msra.mxu0 %v10486_v3  ;;  %v15943_v26 = vld [vmem:[#allocation5 + $0xf8] sm:$0xff] }
 0x357   :  { %v4682_v53 = vrot.slane %v4681_v58, 1  ;;  %796 = vrot.lane.b32.xlu0 %v741_v24, %s12214_s24  ;;  %v17920_v15 = vrot.slane %v17858_v54, 7  ;;  %v4463_v27 = vmax.f32 %v4461_v61, %v4462_v32  ;;  %v4470_v44 = vmax.f32 %v4468_v30, %v4469_v43  ;;  %6235 = vmatpush1.bf16.msra.mxu1 %v10488_v31 }
 0x358   :  { %v1376_v41 = vmax.f32 %v1374_v62, %v1375_v49  ;;  %v10606_v29 = vcombine.low %v5295_v45, %v5299_v50  ;;  %v4676_v35 = vmax.f32 %v4674_v25, %v4675_v63  ;;  %v10449_v16 = vrot.slane %v17906_v7, 11  ;;  %6154 = vmatprep.subr.bf16.mxu0 %v10607_v2  ;;  %6236 = vmatprep.subr.bf16.mxu1 %v10609_v18  ;;  %v5279_v50 = vld [vmem:[#allocation5 + $0x340] sm:$0xff]  ;;  %v15869_v7 = vld [vmem:[#allocation5 + $0x50] sm:$0xff] }
 0x359   :  { %663 = vrot.lane.b32.xlu1 %v615_v55, %s12220_s0  ;;  %v772_v52 = vsel %vm14361_vm9, %v770_v57, %v17920_v15  ;;  %v4683_v42 = vmax.f32 %v4681_v58, %v4682_v53  ;;  %v10608_v55 = vcombine.low %v5296_v46, %v5300_v60  ;;  %v10599_v36 = vcombine.high %v5287_v19, %v5291_v17  ;;  %v5283_v57 = vld [vmem:[#allocation5 + $0x360] sm:$0xff]  ;;  %v5280_v46 = vld [vmem:[#allocation5 + $0x348] sm:$0xff] }
 0x35a   :  { %v15672_v9 = vsel %vm1379_vm1, %v4470_v44, %v4463_v27  ;;  %v17921_v24 = vrot.slane %v17880_v1, 7  ;;  %v1369_v39 = vmax.f32 %v1367_v0, %v1368_v12  ;;  %v10601_v62 = vcombine.high %v5288_v8, %v5292_v59  ;;  %v5284_v60 = vld [vmem:[#allocation5 + $0x368] sm:$0xff]  ;;  %6155 = vmatpush2.bf16.msra.mxu0 %v10606_v29  ;;  %v5271_v63 = vld [vmem:[#allocation5 + $0x300] sm:$0xff]  ;;  %v15860_v1 = vld [vmem:[#allocation5 + $0x198] sm:$0xff]  ;;  %17943 = vst [vmem:[#allocation41_spill] sm:$0xff] %v15869_v7 }
 0x35b   :  { %v15679_v45 = vsel %vm1379_vm1, %v4683_v42, %v4676_v35  ;;  %v17922_v30 = vcombine.low %v15442_v20, %v15444_v22  ;;  %v10598_v49 = vcombine.low %v5287_v19, %v5291_v17  ;;  %6237 = vmatpush2.bf16.msra.mxu1 %v10608_v55  ;;  %6156 = vmatprep.subr.bf16.mxu0 %v10599_v36  ;;  %v17924_v43 = vrot.slane %v17847_v14, 7  ;;  %v5272_v12 = vld [vmem:[#allocation5 + $0x308] sm:$0xff]  ;;  %v5263_v53 = vld [vmem:[#allocation5 + $0x2c0] sm:$0xff]  ;;  %v15926_v7 = vld [vmem:[#allocation5 + $0x3f0] sm:$0xff] }
 0x35c   :  { %v729_v61 = vsel %vm14361_vm9, %v10448_v21, %v17921_v24  ;;  %v1428_v0 = vsel %vm1379_vm1, %v1376_v41, %v1369_v39  ;;  %v10600_v3 = vcombine.low %v5288_v8, %v5292_v59  ;;  %v10591_v32 = vcombine.high %v5279_v50, %v5283_v57  ;;  %6238 = vmatprep.subr.bf16.mxu1 %v10601_v62  ;;  %v5275_v21 = vld [vmem:[#allocation5 + $0x320] sm:$0xff]  ;;  %v5264_v59 = vld [vmem:[#allocation5 + $0x2c8] sm:$0xff] }
 0x35d   :  { %816 = vrot.lane.b32.xlu1 %v772_v52, %s12214_s24  ;;  %788 = vrot.lane.b32.xlu0 %v729_v61, %s12214_s24  ;;  %v4855_v25 = vrot.slane %v17922_v30, %v17627_v23  ;;  %v4862_v58 = vrot.slane %v17866_v37, %v17627_v23  ;;  %v17923_v31 = vcombine.low %v15502_v4, %v15504_v5  ;;  %v5276_v37 = vld [vmem:[#allocation5 + $0x328] sm:$0xff]  ;;  %v5267_v15 = vld [vmem:[#allocation5 + $0x2e0] sm:$0xff]  ;;  %vm1432_vm14 = vcmask 261120  }
 0x35e   :  { %v760_v22 = vsel %vm14361_vm9, %v10449_v16, %v17924_v43  ;;  %v10593_v20 = vcombine.high %v5280_v46, %v5284_v60  ;;  %6157 = vmatpush2.bf16.msra.mxu0 %v10598_v49  ;;  %v10590_v18 = vcombine.low %v5279_v50, %v5283_v57  ;;  %v4878_v4 = vrot.slane %v15084_v56, %v17627_v23  ;;  %v5268_v27 = vld [vmem:[#allocation5 + $0x2e8] sm:$0xff]  ;;  %v5255_v55 = vld [vmem:[#allocation5 + $0x280] sm:$0xff] }
 0x35f   :  { %v4871_v2 = vrot.slane %v17923_v31, %v17627_v23  ;;  %v4863_v19 = vcombine.low %v4855_v25, %v4862_v58  ;;  %6239 = vmatpush2.bf16.msra.mxu1 %v10600_v3  ;;  %6158 = vmatprep.subr.bf16.mxu0 %v10591_v32  ;;  %v10592_v40 = vcombine.low %v5280_v46, %v5284_v60  ;;  %v5259_v36 = vld [vmem:[#allocation5 + $0x2a0] sm:$0xff]  ;;  %v5256_v24 = vld [vmem:[#allocation5 + $0x288] sm:$0xff]  ;;  %vm1434_vm7 = vcmask 523264  }
 0x360   :  { %v10583_v5 = vcombine.high %v5271_v63, %v5275_v21  ;;  %6240 = vmatprep.subr.bf16.mxu1 %v10593_v20  ;;  %v10585_v17 = vcombine.high %v5272_v12, %v5276_v37  ;;  %v10582_v41 = vcombine.low %v5271_v63, %v5275_v21  ;;  %v10584_v23 = vcombine.low %v5272_v12, %v5276_v37  ;;  %v5260_v61 = vld [vmem:[#allocation5 + $0x2a8] sm:$0xff]  ;;  %v5251_v49 = vld [vmem:[#allocation5 + $0x260] sm:$0xff] }
 0x361   :  { %808 = vrot.lane.b32.xlu1 %v760_v22, %s12214_s24  ;;  %1429 = vrot.lane.b32.xlu0 %v1428_v0, %s12214_s24  ;;  %v4879_v52 = vcombine.low %v4871_v2, %v4878_v4  ;;  %v4882_v8 = vsel %vm4456_vm10, %v4863_v19, -inf  ;;  %v10575_v56 = vcombine.high %v5263_v53, %v5267_v15  ;;  %v10577_v16 = vcombine.high %v5264_v59, %v5268_v27  ;;  %v5247_v0 = vld [vmem:[#allocation5 + $0x240] sm:$0xff]  ;;  %v5248_v3 = vld [vmem:[#allocation5 + $0x248] sm:$0xff] }
 0x362   :  { %v4883_v44 = vrot.slane %v4882_v8, 4  ;;  %6159 = vmatpush2.bf16.msra.mxu0 %v10590_v18  ;;  %v10574_v50 = vcombine.low %v5263_v53, %v5267_v15  ;;  %v10576_v57 = vcombine.low %v5264_v59, %v5268_v27  ;;  %v10567_v46 = vcombine.high %v5255_v55, %v5259_v36  ;;  %v5252_v32 = vld [vmem:[#allocation5 + $0x268] sm:$0xff]  ;;  %v5239_v21 = vld [vmem:[#allocation5 + $0x200] sm:$0xff] }
 0x363   :  { %v4889_v29 = vsel %vm4456_vm10, %v4879_v52, -inf  ;;  %6241 = vmatpush2.bf16.msra.mxu1 %v10592_v40  ;;  %6160 = vmatprep.subr.bf16.mxu0 %v10583_v5  ;;  %v10569_v25 = vcombine.high %v5256_v24, %v5260_v61  ;;  %v10566_v2 = vcombine.low %v5255_v55, %v5259_v36  ;;  %v10568_v43 = vcombine.low %v5256_v24, %v5260_v61  ;;  %v5243_v12 = vld [vmem:[#allocation5 + $0x220] sm:$0xff]  ;;  %v5240_v37 = vld [vmem:[#allocation5 + $0x208] sm:$0xff]  ;;  %v11187_v5 = vpop.permute.xlu0 %11186 }
 0x364   :  { %v4884_v35 = vmax.f32 %v4882_v8, %v4883_v44  ;;  %v4890_v42 = vrot.slane %v4889_v29, 4  ;;  %6242 = vmatprep.subr.bf16.mxu1 %v10585_v17  ;;  %v10559_v22 = vcombine.high %v5247_v0, %v5251_v49  ;;  %v10561_v63 = vcombine.high %v5248_v3, %v5252_v32  ;;  %v5244_v18 = vld [vmem:[#allocation5 + $0x228] sm:$0xff]  ;;  %v5327_v59 = vld [vmem:[#allocation5 + $0x4c0] sm:$0xff] }
 0x365   :  { %v10558_v40 = vcombine.low %v5247_v0, %v5251_v49  ;;  %v10560_v17 = vcombine.low %v5248_v3, %v5252_v32  ;;  %v10551_v15 = vcombine.high %v5239_v21, %v5243_v12  ;;  %v10553_v8 = vcombine.high %v5240_v37, %v5244_v18  ;;  %v5331_v27 = vld [vmem:[#allocation5 + $0x4e0] sm:$0xff]  ;;  %v5328_v44 = vld [vmem:[#allocation5 + $0x4c8] sm:$0xff] }
 0x366   :  { %v4885_v39 = vrot.slane %v4884_v35, 2  ;;  %v4891_v62 = vmax.f32 %v4889_v29, %v4890_v42  ;;  %6161 = vmatpush2.bf16.msra.mxu0 %v10582_v41  ;;  %v5332_v41 = vld [vmem:[#allocation5 + $0x4e8] sm:$0xff]  ;;  %v11189_v29 = vunpack.i.h.bf16 %v11187_v5  ;;  %v10639_v55 = vcombine.high %v5327_v59, %v5331_v27 }
 0x367   :  { %6243 = vmatpush2.bf16.msra.mxu1 %v10584_v23  ;;  %6162 = vmatprep.subr.bf16.mxu0 %v10575_v56  ;;  %v11188_v23 = vunpack.i.l.bf16 %v11187_v5  ;;  %v10550_v56 = vcombine.low %v5239_v21, %v5243_v12  ;;  %v10641_v36 = vcombine.high %v5328_v44, %v5332_v41  ;;  %vm1436_vm9 = vcmask 785408   ;;  %v5320_v0 = vld [vmem:[#allocation5 + $0x488] sm:$0xff]  ;;  %v5315_v21 = vld [vmem:[#allocation5 + $0x460] sm:$0xff] }
 0x368   :  { %v4886_v60 = vmax.f32 %v4884_v35, %v4885_v39  ;;  %v4892_v30 = vrot.slane %v4891_v62, 2  ;;  %6244 = vmatprep.subr.bf16.mxu1 %v10577_v16  ;;  %v10552_v16 = vcombine.low %v5240_v37, %v5244_v18  ;;  %v5002_v61 = vsel %vm1432_vm14, %v15672_v9, %v11189_v29  ;;  %v5324_v49 = vld [vmem:[#allocation5 + $0x4a8] sm:$0xff] }
 0x369   :  { %v5005_v39 = vsel %vm1432_vm14, %v15679_v45, %v11188_v23  ;;  %v5312_v12 = vld [vmem:[#allocation5 + $0x448] sm:$0xff] }
 0x36a   :  { %v4887_v58 = vrot.slane %v4886_v60, 1  ;;  %v4893_v31 = vmax.f32 %v4891_v62, %v4892_v30  ;;  %6163 = vmatpush2.bf16.msra.mxu0 %v10574_v50  ;;  %v5319_v30 = vld [vmem:[#allocation5 + $0x480] sm:$0xff]  ;;  %v5316_v37 = vld [vmem:[#allocation5 + $0x468] sm:$0xff] }
 0x36b   :  { %6245 = vmatpush2.bf16.msra.mxu1 %v10576_v57  ;;  %6164 = vmatprep.subr.bf16.mxu0 %v10567_v46  ;;  %v11192_v53 = vpop.permute.xlu1 %11191  ;;  %v10625_v5 = vcombine.high %v5312_v12, %v5316_v37 }
 0x36c   :  { %v4894_v20 = vrot.slane %v4893_v31, 1  ;;  %6246 = vmatprep.subr.bf16.mxu1 %v10569_v25  ;;  %v4888_v19 = vmax.f32 %v4886_v60, %v4887_v58  ;;  %v11194_v35 = vunpack.i.h.bf16 %v11192_v53  ;;  %v11193_v42 = vunpack.i.l.bf16 %v11192_v53  ;;  %v5323_v25 = vld [vmem:[#allocation5 + $0x4a0] sm:$0xff] }
 0x36e   :  { %v4895_v4 = vmax.f32 %v4893_v31, %v4894_v20  ;;  %6165 = vmatpush2.bf16.msra.mxu0 %v10566_v2  ;;  %v5003_v62 = vsel %vm1434_vm7, %v5002_v61, %v11194_v35  ;;  %v5006_v50 = vsel %vm1434_vm7, %v5005_v39, %v11193_v42  ;;  %v10638_v31 = vcombine.low %v5327_v59, %v5331_v27  ;;  %v5308_v59 = vld [vmem:[#allocation5 + $0x428] sm:$0xff]  ;;  %v15739_v42 = vld [vmem:[#allocation5 + $0x1f0] sm:$0xff] }
 0x36f   :  { %6247 = vmatpush2.bf16.msra.mxu1 %v10568_v43  ;;  %6166 = vmatprep.subr.bf16.mxu0 %v10559_v22  ;;  %v10640_v2 = vcombine.low %v5328_v44, %v5332_v41  ;;  %v10631_v22 = vcombine.high %v5319_v30, %v5323_v25  ;;  %v10633_v20 = vcombine.high %v5320_v0, %v5324_v49  ;;  %v17926_v27 = vmov 0  }
 0x370   :  { %v15705_v52 = vsel %vm1379_vm1, %v4895_v4, %v4888_v19  ;;  %6248 = vmatprep.subr.bf16.mxu1 %v10561_v63  ;;  %v15707_v24 = vpop.permute.xlu1 %675  ;;  %v5311_v63 = vld [vmem:[#allocation5 + $0x440] sm:$0xff]  ;;  %v10630_v19 = vcombine.low %v5319_v30, %v5323_v25  ;;  %v10632_v4 = vcombine.low %v5320_v0, %v5324_v49  ;;  %v10624_v41 = vcombine.low %v5312_v12, %v5316_v37  ;;  %v15787_v12 = vld [vmem:[#allocation5 + $0x490] sm:$0xff] }
 0x371   :  { %v10622_v44 = vcombine.low %v5311_v63, %v5315_v21  ;;  %v15756_v30 = vadd.f32 %v15350_v6, %v17732_v28  ;;  %v15760_v25 = vadd.f32 %v15381_v47, %v17744_v48  ;;  %v17927_v0 = vld [vmem:[#allocation19_spill] sm:$0xff]  ;;  %v15789_v37 = vld [vmem:[#allocation5 + $0x4b0] sm:$0xff] }
 0x372   :  { %6167 = vmatpush2.bf16.msra.mxu0 %v10558_v40  ;;  %v10623_v40 = vcombine.high %v5311_v63, %v5315_v21  ;;  %v15764_v49 = vadd.f32 %v17927_v0, %v17754_v10  ;;  %v17932_v63 = vld [vmem:[#allocation80_spill] sm:$0xff]  ;;  %v15871_v0 = vld [vmem:[#allocation5 + $0x70] sm:$0xff] }
 0x373   :  { %6249 = vmatpush2.bf16.msra.mxu1 %v10560_v17  ;;  %6168 = vmatprep.subr.bf16.mxu0 %v10551_v15  ;;  %v5303_v17 = vld [vmem:[#allocation5 + $0x400] sm:$0xff]  ;;  %17944 = vst [vmem:[#allocation49_spill] sm:$0xff] %v15871_v0  ;;  %v15924_v0 = vld [vmem:[#allocation5 + $0x3d0] sm:$0xff] }
 0x374   :  { %6250 = vmatprep.subr.bf16.mxu1 %v10553_v8  ;;  %v5307_v15 = vld [vmem:[#allocation5 + $0x420] sm:$0xff]  ;;  %v5304_v8 = vld [vmem:[#allocation5 + $0x408] sm:$0xff] }
 0x375   :  { %v10615_v29 = vcombine.high %v5303_v17, %v5307_v15  ;;  %v10617_v23 = vcombine.high %v5304_v8, %v5308_v59  ;;  %v10614_v61 = vcombine.low %v5303_v17, %v5307_v15  ;;  %v10616_v39 = vcombine.low %v5304_v8, %v5308_v59  ;;  %v15796_v8 = vld [vmem:[#allocation5 + $0x170] sm:$0xff]  ;;  %v17940_v17 = vld [vmem:[#allocation100_spill] sm:$0xff] }
 0x376   :  { %6169 = vmatpush2.bf16.msra.mxu0 %v10550_v56  ;;  %v15735_v56 = vld [vmem:[#allocation5 + $0x1d0] sm:$0xff] }
 0x377   :  { %v11197_v57 = vpop.permute.xlu0 %11196  ;;  %6251 = vmatpush2.bf16.msra.mxu1 %v10552_v16  ;;  %6187 = vmatprep.subr.bf16.mxu0 %v10639_v55  ;;  %v15741_v16 = vld [vmem:[#allocation5 + $0x4d0] sm:$0xff] }
 0x378   :  { %v11199_v46 = vunpack.i.h.bf16 %v11197_v57  ;;  %v11198_v60 = vunpack.i.l.bf16 %v11197_v57  ;;  %6269 = vmatprep.subr.bf16.mxu1 %v10641_v36  ;;  %v15743_v55 = vld [vmem:[#allocation5 + $0x4f0] sm:$0xff] }
 0x379   :  { %v15723_v43 = vpop.permute.xlu1 %657  ;;  %v15798_v59 = vld [vmem:[#allocation5 + $0x450] sm:$0xff] }
 0x37a   :  { %v5004_v9 = vsel %vm1436_vm9, %v5003_v62, %v11199_v46  ;;  %v5007_v45 = vsel %vm1436_vm9, %v5006_v50, %v11198_v60  ;;  %v10547_v62 = vcombine.high %v15735_v56, %v15739_v42  ;;  %v10643_v50 = vcombine.high %v15741_v16, %v15743_v55  ;;  %v15835_v15 = vld [vmem:[#allocation5 + $0xf0] sm:$0xff] }
 0x37b   :  { %v15717_v3 = vpack.c.bf16 %v5004_v9, %v5004_v9  ;;  %v15719_v32 = vpack.c.bf16 %v5007_v45, %v5007_v45  ;;  %v15752_v46 = vadd.f32 %v15348_v13, %v17847_v14  ;;  %v15767_v13 = vld [vmem:[#allocation5 + $0x190] sm:$0xff] }
 0x37c   :  { %v15721_v58 = vpop.permute.xlu0 %665  ;;  %v15769_v9 = vld [vmem:[#allocation5 + $0x1b0] sm:$0xff] }
 0x37d   :  { %17925 = vst [vmem:[#allocation46_spill] sm:$0xff] %v15717_v3  ;;  %6170 = vmatprep.mubr.bf16.mxu0 %v15719_v32  ;;  %6252 = vmatprep.mubr.bf16.mxu1 %v15719_v32  ;;  %v17928_v45 = vld [vmem:[#allocation105_spill] sm:$0xff] }
 0x37e   :  { %6171 = vmatmul.mubr.bf16.vlgmr.msra.gmra.mxu0 %v15717_v3  ;;  %6253 = vmatmul.mubr.bf16.vlgmr.msra.gmra.mxu1 %v15717_v3  ;;  %v15731_v53 = vpop.permute.xlu1 %677  ;;  %v15892_v3 = vld [vmem:[#allocation5 + $0x10] sm:$0xff] }
 0x37f   :  { %6188 = vmatpush1.bf16.msra.mxu0 %v10638_v31  ;;  %6270 = vmatpush1.bf16.msra.mxu1 %v10640_v2  ;;  %v17929_v31 = vld [vmem:[#allocation23_spill] sm:$0xff] }
 0x380   :  { %v15729_v18 = vpop.permute.xlu0 %647  ;;  %6189 = vmatprep.subr.bf16.mxu0 %v10631_v22  ;;  %6271 = vmatprep.subr.bf16.mxu1 %v10633_v20  ;;  %v15773_v6 = vadd.f32 %v17929_v31, %v17928_v45  ;;  %v17930_v2 = vld [vmem:[#allocation35_spill] sm:$0xff]  ;;  %v17931_v22 = vld [vmem:[#allocation40_spill] sm:$0xff]  ;;  %v15820_v31 = vld [vmem:[#allocation5 + $0x410] sm:$0xff] }
 0x381   :  { %6211 = vmatprep.mubr.bf16.mxu0 %v17926_v27  ;;  %6293 = vmatprep.mubr.bf16.mxu1 %v17926_v27  ;;  %v15777_v47 = vadd.f32 %v17930_v2, %v17763_v34  ;;  %v15781_v20 = vadd.f32 %v17931_v22, %v17854_v33  ;;  %v15822_v2 = vld [vmem:[#allocation5 + $0x430] sm:$0xff] }
 0x382   :  { %v819_v36 = vpop.permute.xlu1 %818 }
 0x383   :  { %6190 = vmatpush1.bf16.msra.mxu0 %v10630_v19  ;;  %6272 = vmatpush1.bf16.msra.mxu1 %v10632_v4  ;;  %v863_v57 = vadd.f32 %v819_v36, %v15494_v51  ;;  %v883_v51 = vrot.slane %v17732_v28, 4  ;;  %v17933_v28 = vld [vmem:[#allocation70_spill] sm:$0xff] }
 0x384   :  { %6191 = vmatprep.subr.bf16.mxu0 %v10623_v40  ;;  %6273 = vmatprep.subr.bf16.mxu1 %v10625_v5  ;;  %v15737_v35 = vpop.permute.xlu0 %667  ;;  %v15785_v21 = vadd.f32 %v17933_v28, %v17932_v63  ;;  %v15791_v19 = vld [vmem:[#allocation5 + $0x150] sm:$0xff] }
 0x385   :  { %v923_v4 = vadd.f32 %v883_v51, %v863_v57  ;;  %v17935_v40 = vld [vmem:[#allocation98_spill] sm:$0xff]  ;;  %v17938_v57 = vld [vmem:[#allocation84_spill] sm:$0xff] }
 0x386   :  { %17934 = vst [vmem:[#allocation33_spill] sm:$0xff] %v15785_v21  ;;  %v873_v5 = vrot.slane %v17935_v40, 4  ;;  %v15818_v51 = vld [vmem:[#allocation5 + $0x130] sm:$0xff]  ;;  %v15846_v40 = vld [vmem:[#allocation5 + $0x1f8] sm:$0xff] }
 0x387   :  { %6192 = vmatpush1.bf16.msra.mxu0 %v10622_v44  ;;  %6274 = vmatpush1.bf16.msra.mxu1 %v10624_v41  ;;  %v15800_v44 = vld [vmem:[#allocation5 + $0x470] sm:$0xff] }
 0x388   :  { %6193 = vmatprep.subr.bf16.mxu0 %v10615_v29  ;;  %6275 = vmatprep.subr.bf16.mxu1 %v10617_v23  ;;  %v15833_v36 = vld [vmem:[#allocation5 + $0xd0] sm:$0xff]  ;;  %v15838_v23 = vadd.f32 %v17938_v57, %v923_v4  ;;  %v17951_v4 = vld [vmem:[#allocation96_spill] sm:$0xff] }
 0x389   :  { %v799_v60 = vpop.permute.xlu0 %798  ;;  %v15848_v29 = vld [vmem:[#allocation5 + $0x90] sm:$0xff] }
 0x38a   :  { %17939 = vst [vmem:[#allocation82_spill] sm:$0xff] %v15838_v23  ;;  %17941 = vst [vmem:[#allocation68_spill] sm:$0xff] %v15848_v29  ;;  %v971_v41 = vand.u32 2147483647, %v15838_v23  ;;  %v15909_v29 = vld [vmem:[#allocation5 + $0x118] sm:$0xff] }
 0x38b   :  { %6194 = vmatpush1.bf16.msra.mxu0 %v10614_v61  ;;  %6276 = vmatpush1.bf16.msra.mxu1 %v10616_v39  ;;  %v15809_v61 = vld [vmem:[#allocation5 + $0x110] sm:$0xff]  ;;  %v17936_v39 = vld [vmem:[#allocation16_spill] sm:$0xff] }
 0x38c   :  { %6302 = vmatprep.subr.bf16.mxu0 %v10547_v62  ;;  %6351 = vmatprep.subr.bf16.mxu1 %v10643_v50  ;;  %v853_v62 = vadd.f32 %v799_v60, %v17936_v39  ;;  %v15844_v50 = vld [vmem:[#allocation5 + $0x1d8] sm:$0xff]  ;;  %v15858_v60 = vld [vmem:[#allocation5 + $0xb0] sm:$0xff] }
 0x38d   :  { %17942 = vst [vmem:[#allocation37_spill] sm:$0xff] %v15858_v60  ;;  %v17950_v21 = vld [vmem:[#allocation22_spill] sm:$0xff] }
 0x38e   :  { %v913_v14 = vadd.f32 %v873_v5, %v853_v62  ;;  %v15881_v62 = vld [vmem:[#allocation5 + $0x158] sm:$0xff]  ;;  %v15894_v5 = vld [vmem:[#allocation5 + $0x30] sm:$0xff] }
 0x38f   :  { %v15941_v60 = vld [vmem:[#allocation5 + $0xd8] sm:$0xff] }
 0x390   :  { %v15914_v63 = vadd.f32 %v17938_v57, %v913_v14  ;;  %v17952_v14 = vcombine.low %v15741_v16, %v15743_v55  ;;  %v991_v16 = vsub.f32 0.0, %v971_v41  ;;  %v17954_v55 = vrot.slane %v17744_v48, 4 }
 0x391   :  { %v714_v41 = vadd.f32 %v15721_v58, %v15752_v46  ;;  %v17958_v58 = vcombine.low %v15767_v13, %v15769_v9  ;;  %v17973_v46 = vcombine.low %v15809_v61, %v15818_v51 }
 0x392   :  { %v15824_v22 = vpop.permute.xlu0 %649  ;;  %17948 = vst [vmem:[#allocation61_spill] sm:$0xff] %v15914_v63 }
 0x393   :  { %17937 = vst [vmem:[#allocation88_spill] sm:$0xff] %v15824_v22  ;;  %v17949_v22 = vcombine.low %v15735_v56, %v15739_v42  ;;  %v17953_v56 = vcombine.high %v15767_v13, %v15769_v9  ;;  %v719_v42 = vadd.f32 %v15707_v24, %v15756_v30  ;;  %v17957_v24 = vld [vmem:[#allocation71_spill] sm:$0xff]  ;;  %v16010_v13 = vld [vmem:[#allocation5 + $0x350] sm:$0xff] }
 0x394   :  { %v15988_v9 = vld [vmem:[#allocation5 + $0x98] sm:$0xff] }
 0x397   :  { %v5000_v39 = vpop.permute.xlu1 %4999 }
 0x398   :  { %v5008_v54 = vsel %vm1432_vm14, %v15705_v52, %v5000_v39  ;;  %v15883_v39 = vld [vmem:[#allocation5 + $0x178] sm:$0xff] }
 0x399   :  { %v15873_v28 = vpack.c.bf16 %v5008_v54, %v5008_v54  ;;  %v791_v23 = vpop.permute.xlu0 %790 }
 0x39a   :  { %v849_v54 = vadd.f32 %v791_v23, %v17950_v21  ;;  %v15963_v21 = vld [vmem:[#allocation5 + $0x390] sm:$0xff] }
 0x39b   :  { %17945 = vst [vmem:[#allocation24_spill] sm:$0xff] %v15873_v28  ;;  %v15896_v52 = vpop.permute.xlu1 %669  ;;  %10646 = vmatmul.mubr.msk.bf16.vlgmr.msra.gmra.mxu0 %vm1434_vm7, %v15873_v28  ;;  %10647 = vmatmul.mubr.msk.bf16.vlgmr.msra.gmra.mxu1 %vm1434_vm7, %v15873_v28  ;;  %v15965_v23 = vld [vmem:[#allocation5 + $0x3b0] sm:$0xff] }
 0x39c   :  { %17946 = vst [vmem:[#allocation39_spill] sm:$0xff] %v15896_v52  ;;  %v15911_v52 = vld [vmem:[#allocation5 + $0x138] sm:$0xff]  ;;  %6303 = vmatpush1.bf16.msra.mxu0 %v17949_v22  ;;  %6334 = vmatprep.mubr.bf16.mxu0 %v15719_v32  ;;  %v961_v22 = vand.u32 2147483647, %v15914_v63 }
 0x39d   :  { %6352 = vmatpush1.bf16.msra.mxu1 %v17952_v14  ;;  %6304 = vmatprep.subr.bf16.mxu0 %v17953_v56  ;;  %v909_v14 = vadd.f32 %v17954_v55, %v849_v54  ;;  %v17955_v56 = vcombine.high %v15787_v12, %v15789_v37  ;;  %v811_v54 = vpop.permute.xlu0 %810  ;;  %v710_v55 = vadd.f32 %v15723_v43, %v15764_v49  ;;  %v1026_v49 = vmul.f32 1.442695, %v991_v16 }
 0x39e   :  { %6375 = vmatprep.mubr.bf16.mxu1 %v17926_v27  ;;  %v859_v63 = vadd.f32 %v811_v54, %v714_v41  ;;  %v15994_v43 = vadd.f32 %v15731_v53, %v15777_v47  ;;  %v705_v54 = vadd.f32 %v15729_v18, %v15760_v25  ;;  %v981_v41 = vsub.f32 0.0, %v961_v22 }
 0x39f   :  { %6353 = vmatprep.subr.bf16.mxu1 %v17955_v56  ;;  %v801_v48 = vpop.permute.xlu1 %800  ;;  %v15969_v27 = vadd.f32 %v17938_v57, %v909_v14  ;;  %v17959_v56 = vcombine.low %v15787_v12, %v15789_v37  ;;  %v17960_v14 = vcombine.high %v15791_v19, %v15796_v8  ;;  %v17962_v37 = vcombine.high %v15798_v59, %v15800_v44 }
 0x3a0   :  { %v854_v30 = vadd.f32 %v801_v48, %v17957_v24  ;;  %6305 = vmatpush1.bf16.msra.mxu0 %v17958_v58  ;;  %v15990_v58 = vld [vmem:[#allocation5 + $0xb8] sm:$0xff]  ;;  %v17964_v24 = vrot.slane %v17928_v45, 4  ;;  %v17968_v22 = vcombine.low %v15798_v59, %v15800_v44  ;;  %11991 = vpow2.f32 %v1026_v49 }
 0x3a1   :  { %17956 = vst [vmem:[#allocation44_spill] sm:$0xff] %v15969_v27  ;;  %6354 = vmatpush1.bf16.msra.mxu1 %v17959_v56  ;;  %6306 = vmatprep.subr.bf16.mxu0 %v17960_v14  ;;  %v957_v12 = vand.u32 2147483647, %v15969_v27  ;;  %v17963_v56 = vrot.slane %v17754_v10, 4  ;;  %v793_v16 = vpop.permute.xlu0 %792  ;;  %v16014_v48 = vld [vmem:[#allocation5 + $0x58] sm:$0xff]  ;;  %v17965_v10 = vcombine.low %v15791_v19, %v15796_v8  ;;  %v17972_v59 = vrot.slane %v17763_v34, 4 }
 0x3a2   :  { %6355 = vmatprep.subr.bf16.mxu1 %v17962_v37  ;;  %v919_v53 = vadd.f32 %v17964_v24, %v859_v63  ;;  %v16012_v37 = vld [vmem:[#allocation5 + $0x370] sm:$0xff]  ;;  %v16023_v45 = vld [vmem:[#allocation5 + $0x78] sm:$0xff]  ;;  %v850_v24 = vadd.f32 %v793_v16, %v705_v54  ;;  %v17976_v34 = vcombine.high %v15833_v36, %v15835_v15 }
 0x3a3   :  { %v914_v14 = vadd.f32 %v17963_v56, %v854_v30  ;;  %v821_v47 = vpop.permute.xlu1 %820  ;;  %17966 = vst [vmem:[#allocation54_spill] sm:$0xff] %v16023_v45  ;;  %v16025_v63 = vld [vmem:[#allocation5 + $0x310] sm:$0xff]  ;;  %v17969_v56 = vcombine.high %v15809_v61, %v15818_v51  ;;  %v977_v18 = vsub.f32 0.0, %v957_v12  ;;  %v715_v12 = vadd.f32 %v15737_v35, %v15773_v6 }
 0x3a4   :  { %v864_v27 = vadd.f32 %v821_v47, %v719_v42  ;;  %6307 = vmatpush1.bf16.msra.mxu0 %v17965_v10  ;;  %v16027_v30 = vld [vmem:[#allocation5 + $0x330] sm:$0xff]  ;;  %v16032_v42 = vld [vmem:[%s17166_s3] ss:$0 sm:$0xff]  ;;  %v16038_v8 = vadd.f32 %v17938_v57, %v919_v53  ;;  %v1006_v10 = vmul.f32 1.442695, %v981_v41  ;;  %v17974_v47 = vrot.slane %v17854_v33, 4 }
 0x3a5   :  { %v16035_v19 = vadd.f32 %v16032_v42, %v914_v14  ;;  %6356 = vmatpush1.bf16.msra.mxu1 %v17968_v22  ;;  %6308 = vmatprep.subr.bf16.mxu0 %v17969_v56  ;;  %v17971_v14 = vcombine.high %v15820_v31, %v15822_v2  ;;  %v813_v16 = vpop.permute.xlu0 %812  ;;  %v16061_v56 = vld [vmem:[#allocation5 + $0x18] sm:$0xff]  ;;  %v17977_v35 = vcombine.high %v15844_v50, %v15846_v40  ;;  %v16091_v6 = vld [vmem:[#allocation5 + $0x2d0] sm:$0xff] }
 0x3a6   :  { %17967 = vst [vmem:[#allocation42_spill] sm:$0xff] %v16038_v8  ;;  %v967_v53 = vand.u32 2147483647, %v16038_v8  ;;  %v924_v25 = vadd.f32 %v17972_v59, %v864_v27  ;;  %v910_v45 = vadd.f32 %v17974_v47, %v850_v24  ;;  %v17975_v8 = vcombine.low %v15820_v31, %v15822_v2  ;;  %v16093_v31 = vld [vmem:[#allocation5 + $0x2f0] sm:$0xff] }
 0x3a7   :  { %6357 = vmatprep.subr.bf16.mxu1 %v17971_v14  ;;  %v962_v44 = vand.u32 2147483647, %v16035_v19  ;;  %v803_v54 = vpop.permute.xlu1 %802  ;;  %v16063_v14 = vld [vmem:[#allocation5 + $0x38] sm:$0xff]  ;;  %v998_v27 = vmul.f32 1.442695, %v977_v18  ;;  %11993 = vpow2.f32 %v1006_v10  ;;  %v18010_v22 = vcombine.low %v15909_v29, %v15911_v52 }
 0x3a8   :  { %6309 = vmatpush1.bf16.msra.mxu0 %v17973_v46  ;;  %v855_v41 = vadd.f32 %v803_v54, %v710_v55  ;;  %v987_v61 = vsub.f32 0.0, %v967_v53  ;;  %v16084_v51 = vadd.f32 %v16032_v42, %v924_v25  ;;  %v16096_v55 = vadd.f32 %v16032_v42, %v910_v45  ;;  %v16214_v45 = vld [vmem:[#allocation5 + $0x210] sm:$0xff] }
 0x3a9   :  { %v982_v49 = vsub.f32 0.0, %v962_v44  ;;  %6358 = vmatpush1.bf16.msra.mxu1 %v17975_v8  ;;  %6310 = vmatprep.subr.bf16.mxu0 %v17976_v34  ;;  %v17978_v46 = vrot.slane %v17940_v17, 4  ;;  %v860_v25 = vadd.f32 %v813_v16, %v715_v12  ;;  %v17979_v53 = vcombine.low %v15833_v36, %v15835_v15  ;;  %v795_v59 = vpop.permute.xlu0 %794  ;;  %v17980_v44 = vld [vmem:[#allocation88_spill] sm:$0xff] }
 0x3aa   :  { %6384 = vmatprep.subr.bf16.mxu1 %v17977_v35  ;;  %v1018_v24 = vmul.f32 1.442695, %v987_v61  ;;  %v972_v47 = vand.u32 2147483647, %v16084_v51  ;;  %v706_v54 = vadd.f32 %v17980_v44, %v15781_v20  ;;  %v958_v10 = vand.u32 2147483647, %v16096_v55 }
 0x3ab   :  { %v1008_v2 = vmul.f32 1.442695, %v982_v49  ;;  %v915_v18 = vadd.f32 %v17978_v46, %v855_v41  ;;  %v823_v8 = vpop.permute.xlu1 %822  ;;  %v17981_v16 = vcombine.low %v15844_v50, %v15846_v40  ;;  %v17982_v12 = vld [vmem:[#allocation80_spill] sm:$0xff]  ;;  %v17985_v61 = vld [vmem:[#allocation37_spill] sm:$0xff]  ;;  %v17987_v50 = vcombine.high %v15860_v1, %v15862_v38  ;;  %v17989_v40 = vld [vmem:[#allocation39_spill] sm:$0xff] }
 0x3ac   :  { %10648 = vmatmul.mubr.msk.bf16.vlgmr.msra.gmra.mxu1 %vm1434_vm7, %v15873_v28  ;;  %6311 = vmatpush1.bf16.msra.mxu0 %v17979_v53  ;;  %v992_v36 = vsub.f32 0.0, %v972_v47  ;;  %v17983_v41 = vrot.slane %v17982_v12, 4  ;;  %v17984_v34 = vld [vmem:[#allocation68_spill] sm:$0xff]  ;;  %v978_v46 = vsub.f32 0.0, %v958_v10  ;;  %v851_v47 = vadd.f32 %v795_v59, %v706_v54  ;;  %v17995_v59 = vld [vmem:[#allocation41_spill] sm:$0xff] }
 0x3ad   :  { %11995 = vpow2.f32 %v1008_v2  ;;  %6385 = vmatpush1.bf16.msra.mxu1 %v17981_v16  ;;  %6416 = vmatprep.mubr.bf16.mxu1 %v15719_v32  ;;  %v16118_v49 = vadd.f32 %v17938_v57, %v915_v18  ;;  %v17986_v35 = vcombine.high %v17984_v34, %v17985_v61  ;;  %v17988_v32 = vld [vmem:[#allocation33_spill] sm:$0xff]  ;;  %v17990_v16 = vcombine.low %v17984_v34, %v17985_v61  ;;  %v16150_v34 = vld [vmem:[#allocation5 + $0x3f8] sm:$0xff] }
 0x3ae   :  { %11997 = vpow2.f32 %v998_v27  ;;  %v920_v20 = vadd.f32 %v17983_v41, %v860_v25  ;;  %6386 = vmatprep.subr.bf16.mxu1 %v17987_v50  ;;  %v716_v2 = vadd.f32 %v17989_v40, %v17988_v32  ;;  %v865_v27 = vadd.f32 %v823_v8, %v15994_v43  ;;  %v17991_v41 = vld [vmem:[#allocation13_spill] sm:$0xff] }
 0x3af   :  { %6312 = vmatprep.subr.bf16.mxu0 %v17986_v35  ;;  %v815_v18 = vpop.permute.xlu1 %814  ;;  %11999 = vpow2.f32 %v1018_v24  ;;  %v1028_v53 = vmul.f32 1.442695, %v992_v36  ;;  %v963_v25 = vand.u32 2147483647, %v16118_v49  ;;  %v1000_v12 = vmul.f32 1.442695, %v978_v46  ;;  %v11992_v46 = vpop.eup %11991 }
 0x3b0   :  { %v16133_v44 = vadd.f32 %v16032_v42, %v920_v20  ;;  %6313 = vmatpush1.bf16.msra.mxu0 %v17990_v16  ;;  %v17992_v35 = vrot.slane %v17991_v41, 4  ;;  %v17993_v10 = vrot.slane %v17951_v4, 4  ;;  %v861_v8 = vadd.f32 %v815_v18, %v716_v2  ;;  %v17996_v54 = vld [vmem:[#allocation49_spill] sm:$0xff]  ;;  %v16148_v20 = vld [vmem:[#allocation5 + $0x3d8] sm:$0xff] }
 0x3b1   :  { %v17994_v24 = vcombine.low %v15860_v1, %v15862_v38  ;;  %v17997_v36 = vcombine.high %v17995_v59, %v17996_v54  ;;  %12001 = vpow2.f32 %v1028_v53  ;;  %v983_v61 = vsub.f32 0.0, %v963_v25  ;;  %v16158_v1 = vld [vmem:[#allocation5 + $0x290] sm:$0xff] }
 0x3b2   :  { %v925_v50 = vadd.f32 %v17992_v35, %v865_v27  ;;  %v911_v43 = vadd.f32 %v17993_v10, %v851_v47  ;;  %v968_v32 = vand.u32 2147483647, %v16133_v44  ;;  %v17998_v40 = vcombine.high %v15881_v62, %v15883_v39  ;;  %v16160_v2 = vld [vmem:[#allocation5 + $0x2b0] sm:$0xff]  ;;  %v16171_v35 = vpop.permute.xlu0 %515 }
 0x3b3   :  { %6387 = vmatpush1.bf16.msra.mxu1 %v17994_v24  ;;  %6314 = vmatprep.subr.bf16.mxu0 %v17997_v36  ;;  %12003 = vpow2.f32 %v1000_v12  ;;  %v17999_v18 = vrot.slane %v17877_v11, 4  ;;  %v18000_v25 = vld [vmem:[#allocation82_spill] sm:$0xff]  ;;  %v18001_v10 = vcombine.low %v17995_v59, %v17996_v54  ;;  %v18002_v59 = vcombine.low %v15881_v62, %v15883_v39 }
 0x3b4   :  { %6388 = vmatprep.subr.bf16.mxu1 %v17998_v40  ;;  %v16163_v27 = vadd.f32 %v17938_v57, %v925_v50  ;;  %v16166_v47 = vadd.f32 %v17938_v57, %v911_v43  ;;  %vm1091_vm10 = vcmp.ge.f32.partialorder %v18000_v25, 0.0  ;;  %v988_v16 = vsub.f32 0.0, %v968_v32  ;;  %v16180_v43 = vld [vmem:[#allocation5 + $0x398] sm:$0xff] }
 0x3b5   :  { %v921_v53 = vadd.f32 %v17999_v18, %v861_v8  ;;  %6315 = vmatpush1.bf16.msra.mxu0 %v18001_v10  ;;  %v16182_v24 = vld [vmem:[#allocation5 + $0x3b8] sm:$0xff]  ;;  %v16184_v8 = vld [vmem:[#allocation5 + $0x250] sm:$0xff]  ;;  %v18003_v54 = vcombine.high %v15892_v3, %v15894_v5  ;;  %v1051_v15 = vadd.f32 1.0, %v11992_v46  ;;  %v1010_v50 = vmul.f32 1.442695, %v983_v61  ;;  %v11994_v18 = vpop.eup %11993 }
 0x3b6   :  { %v973_v36 = vand.u32 2147483647, %v16163_v27  ;;  %v959_v32 = vand.u32 2147483647, %v16166_v47  ;;  %v16198_v10 = vld [vmem:[#allocation5 + $0x270] sm:$0xff]  ;;  %v16200_v12 = vld [vmem:[#allocation5 + $0x358] sm:$0xff]  ;;  %v18005_v39 = vcombine.high %v15909_v29, %v15911_v52 }
 0x3b7   :  { %6389 = vmatpush1.bf16.msra.mxu1 %v18002_v59  ;;  %6316 = vmatprep.subr.bf16.mxu0 %v18003_v54  ;;  %v1020_v38 = vmul.f32 1.442695, %v988_v16  ;;  %v16203_v62 = vadd.f32 %v17938_v57, %v921_v53  ;;  %v16208_v59 = vld [vmem:[#allocation5 + $0x378] sm:$0xff]  ;;  %v1111_v54 = vmul.f32 %v11992_v46, %v11992_v46  ;;  %v16216_v61 = vld [vmem:[#allocation5 + $0x230] sm:$0xff]  ;;  %v18007_v16 = vcombine.low %v15892_v3, %v15894_v5 }
 0x3b8   :  { %6390 = vmatprep.subr.bf16.mxu1 %v18005_v39  ;;  %v993_v40 = vsub.f32 0.0, %v973_v36  ;;  %18006 = vst [vmem:[#allocation52_spill] sm:$0xff] %v16216_v61  ;;  %v979_v57 = vsub.f32 0.0, %v959_v32  ;;  %v16224_v36 = vld [vmem:[#allocation5 + $0x318] sm:$0xff]  ;;  %v16244_v29 = vmul.f32 %v1051_v15, %v1051_v15  ;;  %v18015_v5 = vcombine.low %v15924_v0, %v15926_v7  ;;  %v536_v61 = vpop.permute.xlu1 %535 }
 0x3b9   :  { %18004 = vst [vmem:[#allocation93_spill] sm:$0xff] %v16203_v62  ;;  %12005 = vpow2.f32 %v1020_v38  ;;  %v969_v53 = vand.u32 2147483647, %v16203_v62  ;;  %6317 = vmatpush1.bf16.msra.mxu0 %v18007_v16  ;;  %18008 = vst [vmem:[#allocation63_spill] sm:$0xff] %v16224_v36  ;;  %v16226_v39 = vld [vmem:[#allocation5 + $0x338] sm:$0xff]  ;;  %v18011_v38 = vcombine.high %v15924_v0, %v15926_v7  ;;  %v16257_v28 = vsel %vm1091_vm10, %v1111_v54, 1.0 }
 0x3ba   :  { %18009 = vst [vmem:[#allocation60_spill] sm:$0xff] %v16226_v39  ;;  %v1030_v33 = vmul.f32 1.442695, %v993_v40  ;;  %v16240_v16 = vld [vmem:[#allocation5 + $0x2d8] sm:$0xff]  ;;  %v11996_v46 = vpop.eup %11995  ;;  %12007 = vpow2.f32 %v1010_v50  ;;  %v1002_v52 = vmul.f32 1.442695, %v979_v57  ;;  %v18018_v7 = vcombine.low %v15941_v60, %v15943_v26 }
 0x3bb   :  { %6391 = vmatpush1.bf16.msra.mxu1 %v18010_v22  ;;  %6318 = vmatprep.subr.bf16.mxu0 %v18011_v38  ;;  %18012 = vst [vmem:[#allocation99_spill] sm:$0xff] %v16240_v16  ;;  %v16242_v40 = vld [vmem:[#allocation5 + $0x2f8] sm:$0xff]  ;;  %v660_v22 = vpop.permute.xlu0 %659  ;;  %v18014_v38 = vcombine.high %v15941_v60, %v15943_v26  ;;  %v11998_v11 = vpop.eup %11997  ;;  %v989_v15 = vsub.f32 0.0, %v969_v53  ;;  %v18016_v62 = vld [vmem:[#allocation61_spill] sm:$0xff]  ;;  %v18017_v50 = vld [vmem:[#allocation44_spill] sm:$0xff]  ;;  %v1102_v57 = vmul.f32 %v11996_v46, %v11996_v46  ;;  %v1041_v26 = vadd.f32 1.0, %v11994_v18 }
 0x3bc   :  { %18013 = vst [vmem:[#allocation73_spill] sm:$0xff] %v16242_v40  ;;  %v16251_v3 = vld [vmem:[#allocation5 + $0x4d8] sm:$0xff]  ;;  %v12000_v53 = vpop.eup %11999  ;;  %vm1081_vm6 = vcmp.ge.f32.partialorder %v18016_v62, 0.0  ;;  %vm1077_vm0 = vcmp.ge.f32.partialorder %v18017_v50, 0.0  ;;  %12009 = vpow2.f32 %v1030_v33  ;;  %v18019_v0 = vcombine.high %v15963_v21, %v15965_v23 }
 0x3bd   :  { %6392 = vmatprep.subr.bf16.mxu1 %v18014_v38  ;;  %v16253_v32 = vld [vmem:[#allocation5 + $0x4f8] sm:$0xff]  ;;  %v1042_v38 = vadd.f32 1.0, %v11996_v46  ;;  %6319 = vmatpush2.bf16.msra.mxu0 %v18015_v5  ;;  %v1191_v25 = vadd.f32 %v16257_v28, %v16244_v29  ;;  %v1037_v54 = vadd.f32 1.0, %v11998_v11  ;;  %v1097_v4 = vmul.f32 %v11998_v11, %v11998_v11 }
 0x3be   :  { %6320 = vmatprep.subr.bf16.mxu0 %v18019_v0  ;;  %12011 = vpow2.f32 %v1002_v52  ;;  %v18020_v33 = vcombine.high %v15988_v9, %v15990_v58  ;;  %v12002_v46 = vpop.eup %12001  ;;  %v1101_v60 = vmul.f32 %v11994_v18, %v11994_v18  ;;  %v567_v0 = vadd.f32 %v16171_v35, %v17940_v17 }
 0x3bf   :  { %6393 = vmatpush1.bf16.msra.mxu1 %v18018_v7  ;;  %v1022_v7 = vmul.f32 1.442695, %v989_v15  ;;  %v16289_v16 = vmul.f32 %v1042_v38, %v1042_v38  ;;  %vm1082_vm2 = vcmp.ge.f32.partialorder %v16035_v19, 0.0  ;;  %v1052_v5 = vadd.f32 1.0, %v12002_v46  ;;  %v805_v11 = vpop.permute.xlu0 %804 }
 0x3c0   :  { %6394 = vmatprep.subr.bf16.mxu1 %v18020_v33  ;;  %v12004_v40 = vpop.eup %12003  ;;  %v1112_v39 = vmul.f32 %v12002_v46, %v12002_v46  ;;  %v18021_v52 = vcombine.low %v15963_v21, %v15965_v23  ;;  %v16295_v33 = vsel %vm1082_vm2, %v1102_v57, 1.0  ;;  %v711_v15 = vadd.f32 %v660_v22, %v567_v0  ;;  %v18024_v23 = vld [vmem:[#allocation54_spill] sm:$0xff] }
 0x3c1   :  { %v1038_v36 = vadd.f32 1.0, %v12004_v40  ;;  %v1098_v18 = vmul.f32 %v12004_v40, %v12004_v40  ;;  %v18022_v17 = vcombine.low %v15988_v9, %v15990_v58  ;;  %v18023_v35 = vcombine.high %v16010_v13, %v16012_v37  ;;  %v680_v58 = vpop.permute.xlu1 %679 }
 0x3c2   :  { %6321 = vmatpush2.bf16.msra.mxu0 %v18021_v52  ;;  %v16303_v38 = vmul.f32 %v1037_v54, %v1037_v54  ;;  %v16307_v46 = vsel %vm1077_vm0, %v1097_v4, 1.0  ;;  %v1047_v21 = vadd.f32 1.0, %v12000_v53  ;;  %vm1092_vm4 = vcmp.ge.f32.partialorder %v16084_v51, 0.0 }
 0x3c3   :  { %6395 = vmatpush1.bf16.msra.mxu1 %v18022_v17  ;;  %6322 = vmatprep.subr.bf16.mxu0 %v18023_v35  ;;  %v18025_v40 = vcombine.high %v16014_v48, %v18024_v23  ;;  %v1107_v22 = vmul.f32 %v12000_v53, %v12000_v53  ;;  %v16313_v9 = vmul.f32 %v1052_v5, %v1052_v5  ;;  %12013 = vpow2.f32 %v1022_v7  ;;  %v18027_v5 = vld [vmem:[#allocation42_spill] sm:$0xff] }
 0x3c4   :  { %v856_v57 = vadd.f32 %v805_v11, %v711_v15  ;;  %v1182_v54 = vadd.f32 %v16295_v33, %v16289_v16  ;;  %v16317_v0 = vsel %vm1092_vm4, %v1112_v39, 1.0  ;;  %v16319_v4 = vmul.f32 %v1038_v36, %v1038_v36  ;;  %v18028_v11 = vld [vmem:[#allocation101_spill] sm:$0xff] }
 0x3c5   :  { %6396 = vmatprep.subr.bf16.mxu1 %v18025_v40  ;;  %vm1078_vm11 = vcmp.ge.f32.partialorder %v16096_v55, 0.0  ;;  %v18026_v52 = vcombine.low %v16010_v13, %v16012_v37  ;;  %v16325_v53 = vmul.f32 %v1041_v26, %v1041_v26  ;;  %vm1087_vm12 = vcmp.ge.f32.partialorder %v18027_v5, 0.0 }
 0x3c6   :  { %v12006_v17 = vpop.eup %12005  ;;  %v16328_v7 = vsel %vm1078_vm11, %v1098_v18, 1.0  ;;  %v18029_v15 = vrot.slane %v18028_v11, 4  ;;  %v18030_v36 = vcombine.low %v16014_v48, %v18024_v23  ;;  %v16337_v39 = vsel %vm1081_vm6, %v1101_v60, 1.0 }
 0x3c7   :  { %6323 = vmatpush2.bf16.msra.mxu0 %v18026_v52  ;;  %v1177_v13 = vadd.f32 %v16307_v46, %v16303_v38  ;;  %v16341_v37 = vmul.f32 %v1047_v21, %v1047_v21  ;;  %vm1088_vm8 = vcmp.ge.f32.partialorder %v16133_v44, 0.0  ;;  %v18031_v26 = vcombine.high %v16025_v63, %v16027_v30  ;;  %v12008_v48 = vpop.eup %12007 }
 0x3c8   :  { %v916_v35 = vadd.f32 %v18029_v15, %v856_v57  ;;  %6397 = vmatpush1.bf16.msra.mxu1 %v18030_v36  ;;  %v18032_v18 = vcombine.high %v16061_v56, %v16063_v14  ;;  %v16350_v23 = vsel %vm1087_vm12, %v1107_v22, 1.0  ;;  %v1192_v60 = vadd.f32 %v16317_v0, %v16313_v9 }
 0x3c9   :  { %6324 = vmatprep.subr.bf16.mxu0 %v18031_v26  ;;  %v1048_v40 = vadd.f32 1.0, %v12006_v17  ;;  %v1108_v57 = vmul.f32 %v12006_v17, %v12006_v17  ;;  %12015 = vrcp.f32 %v1182_v54  ;;  %v1178_v21 = vadd.f32 %v16328_v7, %v16319_v4  ;;  %v825_v17 = vpop.permute.xlu1 %824  ;;  %v16371_v26 = vpop.permute.xlu0 %507 }
 0x3ca   :  { %6398 = vmatprep.subr.bf16.mxu1 %v18032_v18  ;;  %v577_v52 = vadd.f32 %v536_v61, %v17991_v41  ;;  %v16358_v11 = vadd.f32 %v16032_v42, %v916_v35  ;;  %v18033_v15 = vcombine.low %v16025_v63, %v16027_v30  ;;  %12017 = vrcp.f32 %v1191_v25  ;;  %v12010_v30 = vpop.eup %12009 }
 0x3cb   :  { %v1181_v22 = vadd.f32 %v16337_v39, %v16325_v53  ;;  %v16365_v36 = vmul.f32 %v1048_v40, %v1048_v40  ;;  %v16369_v54 = vsel %vm1088_vm8, %v1108_v57, 1.0  ;;  %v18034_v41 = vcombine.low %v16061_v56, %v16063_v14  ;;  %v12012_v40 = vpop.eup %12011 }
 0x3cc   :  { %6325 = vmatpush2.bf16.msra.mxu0 %v18033_v15  ;;  %v18035_v63 = vcombine.high %v16091_v6, %v16093_v31  ;;  %12019 = vrcp.f32 %v1177_v13  ;;  %v1187_v25 = vadd.f32 %v16350_v23, %v16341_v37  ;;  %v1043_v61 = vadd.f32 1.0, %v12008_v48 }
 0x3cd   :  { %6399 = vmatpush1.bf16.msra.mxu1 %v18034_v41  ;;  %v721_v35 = vadd.f32 %v680_v58, %v577_v52  ;;  %v18036_v18 = vcombine.high %v16148_v20, %v16150_v34  ;;  %12021 = vrcp.f32 %v1192_v60  ;;  %v1103_v57 = vmul.f32 %v12008_v48, %v12008_v48 }
 0x3ce   :  { %6326 = vmatprep.subr.bf16.mxu0 %v18035_v63  ;;  %v1188_v56 = vadd.f32 %v16369_v54, %v16365_v36  ;;  %v964_v14 = vand.u32 2147483647, %v16358_v11  ;;  %12023 = vrcp.f32 %v1178_v21  ;;  %v1039_v15 = vadd.f32 1.0, %v12012_v40 }
 0x3cf   :  { %6400 = vmatprep.subr.bf16.mxu1 %v18036_v18  ;;  %v866_v13 = vadd.f32 %v825_v17, %v721_v35  ;;  %v18037_v41 = vcombine.low %v16091_v6, %v16093_v31  ;;  %v10645_v58 = vcombine.high %v16251_v3, %v16253_v32  ;;  %12025 = vrcp.f32 %v1181_v22  ;;  %v16409_v35 = vld [vmem:[#allocation5 + $0x298] sm:$0xff] }
 0x3d0   :  { %v1053_v52 = vadd.f32 1.0, %v12010_v30  ;;  %v1099_v63 = vmul.f32 %v12012_v40, %v12012_v40  ;;  %v984_v60 = vsub.f32 0.0, %v964_v14  ;;  %v18038_v48 = vcombine.low %v16148_v20, %v16150_v34  ;;  %v16407_v34 = vpop.permute.xlu0 %499  ;;  %v18041_v40 = vld [vmem:[#allocation20_spill] sm:$0xff] }
 0x3d1   :  { %6327 = vmatpush2.bf16.msra.mxu0 %v18037_v41  ;;  %v18039_v21 = vcombine.high %v16158_v1, %v16160_v2  ;;  %12027 = vrcp.f32 %v1187_v25  ;;  %v16398_v17 = vmul.f32 %v1043_v61, %v1043_v61  ;;  %vm1083_vm13 = vcmp.ge.f32.partialorder %v16118_v49, 0.0  ;;  %v16411_v25 = vld [vmem:[#allocation5 + $0x2b8] sm:$0xff]  ;;  %v12014_v61 = vpop.eup %12013 }
 0x3d2   :  { %6401 = vmatpush2.bf16.msra.mxu1 %v18038_v48  ;;  %v1113_v6 = vmul.f32 %v12010_v30, %v12010_v30  ;;  %v18040_v31 = vcombine.high %v16180_v43, %v16182_v24  ;;  %v16404_v22 = vsel %vm1083_vm13, %v1103_v57, 1.0  ;;  %12029 = vrcp.f32 %v1188_v56 }
 0x3d3   :  { %6328 = vmatprep.subr.bf16.mxu0 %v18039_v21  ;;  %vm1093_vm15 = vcmp.ge.f32.partialorder %v16163_v27, 0.0  ;;  %v1012_v20 = vmul.f32 1.442695, %v984_v60  ;;  %v1142_v30 = vsub.f32 %v16289_v16, %v16295_v33  ;;  %v16415_v18 = vmul.f32 %v1039_v15, %v1039_v15  ;;  %v16433_v15 = vld [vmem:[#allocation5 + $0x498] sm:$0xff] }
 0x3d4   :  { %6402 = vmatprep.subr.bf16.mxu1 %v18040_v31  ;;  %vm1079_vm3 = vcmp.ge.f32.partialorder %v16166_v47, 0.0  ;;  %v18042_v57 = vrot.slane %v18041_v40, 4  ;;  %v18043_v14 = vcombine.low %v16158_v1, %v16160_v2  ;;  %v16423_v41 = vmul.f32 %v1053_v52, %v1053_v52  ;;  %v18047_v31 = vld [vmem:[#allocation93_spill] sm:$0xff] }
 0x3d5   :  { %v16425_v60 = vsel %vm1079_vm3, %v1099_v63, 1.0  ;;  %v1049_v48 = vadd.f32 1.0, %v12014_v61  ;;  %v1109_v21 = vmul.f32 %v12014_v61, %v12014_v61  ;;  %v18044_v16 = vcombine.low %v16180_v43, %v16182_v24 }
 0x3d6   :  { %v926_v56 = vadd.f32 %v18042_v57, %v866_v13  ;;  %6329 = vmatpush2.bf16.msra.mxu0 %v18043_v14  ;;  %v18045_v33 = vcombine.high %v16184_v8, %v16198_v10  ;;  %v16435_v13 = vld [vmem:[#allocation5 + $0x4b8] sm:$0xff]  ;;  %v1183_v1 = vadd.f32 %v16404_v22, %v16398_v17  ;;  %v16441_v2 = vsel %vm1093_vm15, %v1113_v6, 1.0 }
 0x3d7   :  { %6403 = vmatpush2.bf16.msra.mxu1 %v18044_v16  ;;  %12031 = vpow2.f32 %v1012_v20  ;;  %v18046_v43 = vcombine.high %v16200_v12, %v16208_v59  ;;  %v1137_v52 = vsub.f32 %v16303_v38, %v16307_v46  ;;  %v16450_v63 = vmul.f32 %v1049_v48, %v1049_v48  ;;  %v12016_v46 = vpop.eup %12015 }
 0x3d8   :  { %6330 = vmatprep.subr.bf16.mxu0 %v18045_v33  ;;  %vm1089_vm10 = vcmp.ge.f32.partialorder %v18047_v31, 0.0  ;;  %v10573_v61 = vcombine.high %v16409_v35, %v16411_v25  ;;  %v1179_v6 = vadd.f32 %v16425_v60, %v16415_v18  ;;  %v16460_v40 = vadd.f32 %v16032_v42, %v926_v56  ;;  %v652_v56 = vpop.permute.xlu0 %651  ;;  %v18054_v33 = vld [vmem:[#allocation60_spill] sm:$0xff] }
 0x3d9   :  { %6404 = vmatprep.subr.bf16.mxu1 %v18046_v43  ;;  %v16457_v20 = vsel %vm1089_vm10, %v1109_v21, 1.0  ;;  %v18048_v57 = vcombine.low %v16184_v8, %v16198_v10  ;;  %v1151_v14 = vsub.f32 %v16244_v29, %v16257_v28  ;;  %v1162_v48 = vmul.f32 %v1142_v30, %v16035_v19  ;;  %v12018_v10 = vpop.eup %12017  ;;  %v18050_v29 = vld [vmem:[#allocation96_spill] sm:$0xff]  ;;  %v18053_v30 = vld [vmem:[#allocation63_spill] sm:$0xff] }
 0x3da   :  { %v1152_v21 = vsub.f32 %v16313_v9, %v16317_v0  ;;  %v1193_v42 = vadd.f32 %v16441_v2, %v16423_v41  ;;  %v18049_v8 = vcombine.low %v16200_v12, %v16208_v59  ;;  %v1138_v16 = vsub.f32 %v16319_v4, %v16328_v7  ;;  %v18051_v9 = vld [vmem:[#allocation52_spill] sm:$0xff]  ;;  %v16488_v12 = vld [vmem:[#allocation5 + $0x458] sm:$0xff] }
 0x3db   :  { %6331 = vmatpush2.bf16.msra.mxu0 %v18048_v57  ;;  %12033 = vrcp.f32 %v1183_v1  ;;  %v974_v28 = vand.u32 2147483647, %v16460_v40  ;;  %v563_v19 = vadd.f32 %v16371_v26, %v18050_v29  ;;  %v18052_v0 = vcombine.high %v16214_v45, %v18051_v9  ;;  %v16490_v59 = vld [vmem:[#allocation5 + $0x478] sm:$0xff]  ;;  %v12020_v57 = vpop.eup %12019 }
 0x3dc   :  { %6405 = vmatpush2.bf16.msra.mxu1 %v18049_v8  ;;  %v18055_v43 = vcombine.high %v18053_v30, %v18054_v33  ;;  %v1141_v4 = vsub.f32 %v16325_v53, %v16337_v39  ;;  %v1157_v7 = vmul.f32 %v1137_v52, %v18017_v50  ;;  %v1147_v26 = vsub.f32 %v16341_v37, %v16350_v23  ;;  %v12022_v8 = vpop.eup %12021 }
 0x3dd   :  { %6332 = vmatprep.subr.bf16.mxu0 %v18052_v0  ;;  %v1189_v1 = vadd.f32 %v16457_v20, %v16450_v63  ;;  %v1222_v29 = vmul.f32 %v12016_v46, %v1162_v48  ;;  %12035 = vrcp.f32 %v1179_v6  ;;  %v994_v0 = vsub.f32 0.0, %v974_v28  ;;  %v12024_v38 = vpop.eup %12023  ;;  %v18058_v46 = vld [vmem:[#allocation99_spill] sm:$0xff] }
 0x3de   :  { %6406 = vmatprep.subr.bf16.mxu1 %v18055_v43  ;;  %v16499_v43 = vadd.f32 %v652_v56, %v563_v19  ;;  %v18056_v24 = vcombine.low %v16214_v45, %v18051_v9  ;;  %v1148_v50 = vsub.f32 %v16365_v36, %v16369_v54  ;;  %12037 = vrcp.f32 %v1193_v42  ;;  %v12026_v23 = vpop.eup %12025  ;;  %v18059_v36 = vld [vmem:[#allocation73_spill] sm:$0xff]  ;;  %v18061_v42 = vld [vmem:[#allocation82_spill] sm:$0xff] }
 0x3df   :  { %v18057_v53 = vcombine.low %v18053_v30, %v18054_v33  ;;  %v10637_v39 = vcombine.high %v16433_v15, %v16435_v13  ;;  %v10629_v37 = vcombine.high %v16488_v12, %v16490_v59  ;;  %v1217_v52 = vmul.f32 %v12020_v57, %v1157_v7  ;;  %v12028_v48 = vpop.eup %12027 }
 0x3e0   :  { %6333 = vmatpush2.bf16.msra.mxu0 %v18056_v24  ;;  %v1172_v45 = vmul.f32 %v1152_v21, %v16084_v51  ;;  %v1158_v24 = vmul.f32 %v1138_v16, %v16096_v55  ;;  %v1032_v6 = vmul.f32 1.442695, %v994_v0  ;;  %v18060_v54 = vcombine.high %v18058_v46, %v18059_v36  ;;  %v18062_v51 = vld [vmem:[#allocation46_spill] sm:$0xff]  ;;  %v12030_v16 = vpop.eup %12029 }
 0x3e1   :  { %6407 = vmatpush2.bf16.msra.mxu1 %v18057_v53  ;;  %6433 = vmatprep.subr.bf16.mxu0 %v10645_v58  ;;  %v1171_v56 = vmul.f32 %v1151_v14, %v18061_v42  ;;  %v1161_v28 = vmul.f32 %v1141_v4, %v18016_v62  ;;  %v1167_v19 = vmul.f32 %v1147_v26, %v18027_v5  ;;  %12039 = vrcp.f32 %v1189_v1  ;;  %v5250_v55 = vld [vmem:[#allocation5 + $0x258] sm:$0xff] }
 0x3e2   :  { %6408 = vmatprep.subr.bf16.mxu1 %v18060_v54  ;;  %v5254_v21 = vld [vmem:[#allocation5 + $0x278] sm:$0xff]  ;;  %v1321_v9 = vsel %vm1236_vm5, %v1222_v29, -inf  ;;  %v1232_v30 = vmul.f32 %v12022_v8, %v1172_v45  ;;  %v1218_v33 = vmul.f32 %v12024_v38, %v1158_v24  ;;  %12041 = vpow2.f32 %v1032_v6 }
 0x3e3   :  { %6335 = vmatmul.mubr.bf16.vlgmr.msra.gmra.mxu0 %v18062_v51  ;;  %v18063_v58 = vcombine.low %v16251_v3, %v16253_v32  ;;  %v18064_v14 = vmov 0   ;;  %v1231_v62 = vmul.f32 %v12018_v10, %v1171_v56  ;;  %v1221_v57 = vmul.f32 %v12026_v23, %v1161_v28  ;;  %v16564_v45 = vld [vmem:[#allocation5 + $0x238] sm:$0xff] }
 0x3e4   :  { %6457 = vmatprep.mubr.bf16.mxu0 %v18064_v14  ;;  %v1168_v5 = vmul.f32 %v1148_v50, %v16133_v44  ;;  %v18065_v4 = vcombine.low %v18058_v46, %v18059_v36  ;;  %v1251_v7 = vsel %vm1236_vm5, %v1217_v52, -inf  ;;  %v1227_v26 = vmul.f32 %v12028_v48, %v1167_v19  ;;  %v12032_v38 = vpop.eup %12031  ;;  %v16562_v52 = vld [vmem:[#allocation5 + $0x218] sm:$0xff] }
 0x3e5   :  { %6434 = vmatpush1.bf16.msra.mxu0 %v18063_v58  ;;  %v10564_v3 = vcombine.low %v5250_v55, %v5254_v21  ;;  %v10565_v32 = vcombine.high %v5250_v55, %v5254_v21  ;;  %v1322_v1 = vrot.slane %v1321_v9, 4  ;;  %v1143_v10 = vsub.f32 %v16398_v17, %v16404_v22 }
 0x3e6   :  { %6409 = vmatpush2.bf16.msra.mxu1 %v18065_v4  ;;  %6435 = vmatprep.subr.bf16.mxu0 %v10637_v39  ;;  %v1228_v44 = vmul.f32 %v12030_v16, %v1168_v5  ;;  %v10628_v8 = vcombine.low %v16488_v12, %v16490_v59  ;;  %v1328_v29 = vsel %vm1236_vm5, %v1232_v30, -inf  ;;  %v1265_v0 = vsel %vm1236_vm5, %v1218_v33, -inf }
 0x3e7   :  { %6410 = vmatprep.subr.bf16.mxu1 %v10573_v61  ;;  %v1044_v50 = vadd.f32 1.0, %v12032_v38  ;;  %v1104_v53 = vmul.f32 %v12032_v38, %v12032_v38  ;;  %v18066_v61 = vcombine.low %v16433_v15, %v16435_v13  ;;  %v16548_v39 = vsel %vm1236_vm5, %v1231_v62, -inf }
 0x3e8   :  { %v1307_v23 = vsel %vm1236_vm5, %v1221_v57, -inf  ;;  %v1252_v17 = vrot.slane %v1251_v7, 4  ;;  %vm1084_vm6 = vcmp.ge.f32.partialorder %v16358_v11, 0.0  ;;  %v18067_v22 = vcombine.low %v16409_v35, %v16411_v25  ;;  %v12034_v24 = vpop.eup %12033 }
 0x3e9   :  { %6436 = vmatpush1.bf16.msra.mxu0 %v18066_v61  ;;  %v1258_v12 = vsel %vm1236_vm5, %v1227_v26, -inf  ;;  %v1139_v59 = vsub.f32 %v16415_v18, %v16425_v60  ;;  %v16558_v15 = vmul.f32 %v1044_v50, %v1044_v50  ;;  %v16560_v13 = vsel %vm1084_vm6, %v1104_v53, 1.0  ;;  %v5306_v61 = vld [vmem:[#allocation5 + $0x418] sm:$0xff] }
 0x3ea   :  { %6411 = vmatpush2.bf16.msra.mxu1 %v18067_v22  ;;  %6437 = vmatprep.subr.bf16.mxu0 %v10629_v37  ;;  %v1329_v6 = vrot.slane %v1328_v29, 4  ;;  %v1266_v46 = vrot.slane %v1265_v0, 4  ;;  %v1272_v35 = vsel %vm1236_vm5, %v1228_v44, -inf  ;;  %v1153_v25 = vsub.f32 %v16423_v41, %v16441_v2  ;;  %v12036_v54 = vpop.eup %12035 }
 0x3eb   :  { %6412 = vmatprep.subr.bf16.mxu1 %v10565_v32  ;;  %v16569_v37 = vmax.f32 %v1321_v9, %v1322_v1  ;;  %v1163_v18 = vmul.f32 %v1143_v10, %v16118_v49  ;;  %v1149_v60 = vsub.f32 %v16450_v63, %v16457_v20  ;;  %v1184_v36 = vadd.f32 %v16560_v13, %v16558_v15  ;;  %v12038_v41 = vpop.eup %12037 }
 0x3ec   :  { %v1308_v48 = vrot.slane %v1307_v23, 4  ;;  %v1259_v42 = vrot.slane %v1258_v12, 4  ;;  %v1253_v56 = vmax.f32 %v1251_v7, %v1252_v17  ;;  %v10556_v28 = vcombine.low %v16562_v52, %v16564_v45 }
 0x3ed   :  { %6438 = vmatpush1.bf16.msra.mxu0 %v10628_v8  ;;  %v1223_v2 = vmul.f32 %v12034_v24, %v1163_v18  ;;  %v1273_v19 = vrot.slane %v1272_v35, 4  ;;  %v1159_v49 = vmul.f32 %v1139_v59, %v16166_v47  ;;  %12043 = vrcp.f32 %v1184_v36 }
 0x3ee   :  { %6413 = vmatpush2.bf16.msra.mxu1 %v10564_v3  ;;  %v1315_v63 = vrot.slane %v16548_v39, 4  ;;  %v1330_v20 = vmax.f32 %v1328_v29, %v1329_v6  ;;  %v1267_v55 = vmax.f32 %v1265_v0, %v1266_v46  ;;  %v1173_v21 = vmul.f32 %v1153_v25, %v16163_v27  ;;  %v12040_v16 = vpop.eup %12039 }
 0x3ef   :  { %v1324_v9 = vrot.slane %v16569_v37, 2  ;;  %v1219_v30 = vmul.f32 %v12036_v54, %v1159_v49  ;;  %v1169_v33 = vmul.f32 %v1149_v60, %v18047_v31  ;;  %vm1094_vm0 = vcmp.ge.f32.partialorder %v16460_v40, 0.0  ;;  %v12042_v58 = vpop.eup %12041 }
 0x3f0   :  { %v1233_v62 = vmul.f32 %v12038_v41, %v1173_v21  ;;  %v1254_v57 = vrot.slane %v1253_v56, 2  ;;  %v1260_v5 = vmax.f32 %v1258_v12, %v1259_v42  ;;  %v1309_v47 = vmax.f32 %v1307_v23, %v1308_v48  ;;  %v5310_v23 = vld [vmem:[#allocation5 + $0x438] sm:$0xff] }
 0x3f1   :  { %v16585_v4 = vsel %vm1236_vm5, %v1223_v2, -inf  ;;  %v1274_v7 = vmax.f32 %v1272_v35, %v1273_v19  ;;  %v1054_v26 = vadd.f32 1.0, %v12042_v58  ;;  %v1114_v3 = vmul.f32 %v12042_v58, %v12042_v58 }
 0x3f2   :  { %v1331_v27 = vrot.slane %v1330_v20, 2  ;;  %v1268_v32 = vrot.slane %v1267_v55, 2  ;;  %v1255_v38 = vmax.f32 %v1253_v56, %v1254_v57  ;;  %v1261_v1 = vrot.slane %v1260_v5, 2 }
 0x3f3   :  { %v1279_v10 = vsel %vm1236_vm5, %v1219_v30, -inf  ;;  %v1229_v31 = vmul.f32 %v12040_v16, %v1169_v33  ;;  %v16588_v44 = vmul.f32 %v1054_v26, %v1054_v26  ;;  %v16592_v8 = vsel %vm1094_vm0, %v1114_v3, 1.0  ;;  %v5164_v26 = vld [vmem:[#allocation2 + $0x4c0] sm:$0xff] }
 0x3f4   :  { %v16595_v29 = vsel %vm1236_vm5, %v1233_v62, -inf  ;;  %v1256_v0 = vrot.slane %v1255_v38, 1  ;;  %v1262_v50 = vmax.f32 %v1260_v5, %v1261_v1  ;;  %v1310_v53 = vrot.slane %v1309_v47, 2  ;;  %v18068_v62 = vld [vmem:[#allocation24_spill] sm:$0xff] }
 0x3f5   :  { %v1275_v17 = vrot.slane %v1274_v7, 2  ;;  %v1144_v22 = vsub.f32 %v16558_v15, %v16560_v13  ;;  %v1194_v12 = vadd.f32 %v16592_v8, %v16588_v44  ;;  %v1316_v59 = vmax.f32 %v16548_v39, %v1315_v63  ;;  %v5168_v3 = vld [vmem:[#allocation2 + $0x4e0] sm:$0xff] }
 0x3f6   :  { %v1280_v24 = vrot.slane %v1279_v10, 4  ;;  %v1263_v6 = vrot.slane %v1262_v50, 1  ;;  %v1311_v46 = vmax.f32 %v1309_v47, %v1310_v53  ;;  %v10557_v35 = vcombine.high %v16562_v52, %v16564_v45 }
 0x3f7   :  { %v1286_v25 = vsel %vm1236_vm5, %v1229_v31, -inf  ;;  %12045 = vrcp.f32 %v1194_v12  ;;  %v1317_v18 = vrot.slane %v1316_v59, 2  ;;  %v10620_v60 = vcombine.low %v5306_v61, %v5310_v23 }
 0x3f8   :  { %v1257_v36 = vmax.f32 %v1255_v38, %v1256_v0  ;;  %v1264_v54 = vmax.f32 %v1262_v50, %v1263_v6  ;;  %v1312_v48 = vrot.slane %v1311_v46, 1  ;;  %6414 = vmatprep.subr.bf16.mxu1 %v10557_v35  ;;  %v10621_v15 = vcombine.high %v5306_v61, %v5310_v23  ;;  %v16620_v0 = vpop.permute.xlu1 %527 }
 0x3f9   :  { %v1164_v13 = vmul.f32 %v1144_v22, %v16358_v11  ;;  %v1318_v42 = vmax.f32 %v1316_v59, %v1317_v18  ;;  %6415 = vmatpush2.bf16.msra.mxu1 %v10556_v28  ;;  %v1269_v39 = vmax.f32 %v1267_v55, %v1268_v32  ;;  %v1276_v56 = vmax.f32 %v1274_v7, %v1275_v17  ;;  %v16625_v17 = vpop.permute.xlu0 %643 }
 0x3fa   :  { %v12044_v41 = vpop.eup %12043  ;;  %v1287_v2 = vrot.slane %v1286_v25, 4  ;;  %v1384_v52 = vsel %vm1379_vm1, %v1264_v54, %v1257_v36  ;;  %6439 = vmatprep.subr.bf16.mxu0 %v10621_v15  ;;  %v1325_v45 = vmax.f32 %v16569_v37, %v1324_v9  ;;  %v1332_v19 = vmax.f32 %v1330_v20, %v1331_v27  ;;  %v5156_v36 = vld [vmem:[#allocation2 + $0x480] sm:$0xff] }
 0x3fb   :  { %v1224_v49 = vmul.f32 %v12044_v41, %v1164_v13  ;;  %v1313_v63 = vmax.f32 %v1311_v46, %v1312_v48  ;;  %v1319_v21 = vrot.slane %v1318_v42, 1  ;;  %6440 = vmatpush1.bf16.msra.mxu0 %v10620_v60  ;;  %v1277_v16 = vrot.slane %v1276_v56, 1  ;;  %v5160_v54 = vld [vmem:[#allocation2 + $0x4a0] sm:$0xff] }
 0x3fc   :  { %v1281_v30 = vmax.f32 %v1279_v10, %v1280_v24  ;;  %6417 = vmatmul.mubr.bf16.vlgmr.msra.gmra.mxu1 %v18062_v51  ;;  %v1270_v55 = vrot.slane %v1269_v39, 1  ;;  %v1333_v33 = vrot.slane %v1332_v19, 1  ;;  %v1336_v58 = vrot.slane %v16585_v4, 4  ;;  %v16630_v60 = vpop.permute.xlu1 %519  ;;  %v5148_v41 = vld [vmem:[#allocation2 + $0x440] sm:$0xff] }
 0x3fd   :  { %v1349_v11 = vsel %vm1236_vm5, %v1224_v49, -inf  ;;  %v1320_v28 = vmax.f32 %v1318_v42, %v1319_v21  ;;  %7342 = vmatprep.mubr.bf16.mxu1 %v18064_v14  ;;  %v1343_v37 = vrot.slane %v16595_v29, 4  ;;  %v1326_v9 = vrot.slane %v1325_v45, 1  ;;  %v16632_v13 = vpop.permute.xlu0 %796 }
 0x3fe   :  { %v1350_v20 = vrot.slane %v1349_v11, 4  ;;  %10649 = vmatmul.mubr.msk.bf16.vlgmr.msra.gmra.mxu0 %vm1434_vm7, %v18068_v62  ;;  %v1288_v57 = vmax.f32 %v1286_v25, %v1287_v2  ;;  %v1154_v51 = vsub.f32 %v16588_v44, %v16592_v8  ;;  %v1278_v47 = vmax.f32 %v1276_v56, %v1277_v16  ;;  %v5152_v2 = vld [vmem:[#allocation2 + $0x460] sm:$0xff] }
 0x3ff   :  { %v1406_v5 = vsel %vm1379_vm1, %v1320_v28, %v1313_v63  ;;  %v1282_v27 = vrot.slane %v1281_v30, 2  ;;  %v1271_v38 = vmax.f32 %v1269_v39, %v1270_v55  ;;  %v1334_v1 = vmax.f32 %v1332_v19, %v1333_v33  ;;  %v5140_v63 = vld [vmem:[#allocation2 + $0x400] sm:$0xff] }
 0x400   :  { %v11200_v7 = vpack.i.bf16 %v1384_v52, %v1406_v5  ;;  %v1351_v32 = vmax.f32 %v1349_v11, %v1350_v20  ;;  %v1337_v10 = vmax.f32 %v16585_v4, %v1336_v58  ;;  %v1344_v31 = vmax.f32 %v16595_v29, %v1343_v37  ;;  %v5068_v11 = vld [vmem:[#allocation2 + $0x1c0] sm:$0xff]  ;;  %v16635_v20 = vpop.permute.xlu1 %671 }
 0x401   :  { %v1327_v50 = vmax.f32 %v1325_v45, %v1326_v9  ;;  %v1289_v44 = vrot.slane %v1288_v57, 2  ;;  %v1174_v8 = vmul.f32 %v1154_v51, %v16460_v40  ;;  %v1390_v53 = vsel %vm1379_vm1, %v1278_v47, %v1271_v38  ;;  %v5072_v28 = vld [vmem:[#allocation2 + $0x1e0] sm:$0xff] }
 0x402   :  { %11201 = vrot.lane.b32.xlu1 %v11200_v7, %s12214_s24  ;;  %v10802_v61 = vcombine.low %v5164_v26, %v5168_v3  ;;  %v10803_v12 = vcombine.high %v5164_v26, %v5168_v3  ;;  %v1352_v59 = vrot.slane %v1351_v32, 2  ;;  %v1283_v24 = vmax.f32 %v1281_v30, %v1282_v27  ;;  %v5144_v30 = vld [vmem:[#allocation2 + $0x420] sm:$0xff]  ;;  %v5069_v27 = vld [vmem:[#allocation2 + $0x1c8] sm:$0xff] }
 0x403   :  { %v1412_v22 = vsel %vm1379_vm1, %v1334_v1, %v1327_v50  ;;  %v1338_v6 = vrot.slane %v1337_v10, 2  ;;  %v1345_v46 = vrot.slane %v1344_v31, 2  ;;  %v1290_v25 = vmax.f32 %v1288_v57, %v1289_v44  ;;  %v5060_v51 = vld [vmem:[#allocation2 + $0x180] sm:$0xff]  ;;  %v5073_v1 = vld [vmem:[#allocation2 + $0x1e8] sm:$0xff] }
 0x404   :  { %v12046_v23 = vpop.eup %12045  ;;  %v11205_v29 = vpack.i.bf16 %v1390_v53, %v1412_v22  ;;  %7318 = vmatprep.subr.bf16.mxu1 %v10803_v12  ;;  %v1284_v40 = vrot.slane %v1283_v24, 1  ;;  %v1353_v48 = vmax.f32 %v1351_v32, %v1352_v59  ;;  %v10794_v19 = vcombine.low %v5156_v36, %v5160_v54  ;;  %v5064_v5 = vld [vmem:[#allocation2 + $0x1a0] sm:$0xff]  ;;  %v16637_v32 = vpop.permute.xlu0 %788 }
 0x405   :  { %v1234_v4 = vmul.f32 %v12046_v23, %v1174_v8  ;;  %7319 = vmatpush1.bf16.msra.mxu1 %v10802_v61  ;;  %v1291_v15 = vrot.slane %v1290_v25, 1  ;;  %v1339_v56 = vmax.f32 %v1337_v10, %v1338_v6  ;;  %v1346_v45 = vmax.f32 %v1344_v31, %v1345_v46  ;;  %v5052_v10 = vld [vmem:[#allocation2 + $0x140] sm:$0xff]  ;;  %v5065_v46 = vld [vmem:[#allocation2 + $0x1a8] sm:$0xff] }
 0x406   :  { %11206 = vrot.lane.b32.xlu0 %v11205_v29, %s12220_s0  ;;  %v1285_v39 = vmax.f32 %v1283_v24, %v1284_v40  ;;  %v10795_v49 = vcombine.high %v5156_v36, %v5160_v54  ;;  %v1354_v55 = vrot.slane %v1353_v48, 1  ;;  %v10787_v37 = vcombine.high %v5148_v41, %v5152_v2  ;;  %v5056_v31 = vld [vmem:[#allocation2 + $0x160] sm:$0xff]  ;;  %v664_v29 = vpop.permute.xlu1 %663 }
 0x407   :  { %v1356_v35 = vsel %vm1236_vm5, %v1234_v4, -inf  ;;  %v1292_v52 = vmax.f32 %v1290_v25, %v1291_v15  ;;  %v1340_v16 = vrot.slane %v1339_v56, 1  ;;  %v1347_v33 = vrot.slane %v1346_v45, 1  ;;  %v5061_v4 = vld [vmem:[#allocation2 + $0x188] sm:$0xff]  ;;  %v5048_v40 = vld [vmem:[#allocation2 + $0x120] sm:$0xff] }
 0x408   :  { %v1357_v18 = vrot.slane %v1356_v35, 4  ;;  %7320 = vmatprep.subr.bf16.mxu1 %v10795_v49  ;;  %v10786_v57 = vcombine.low %v5148_v41, %v5152_v2  ;;  %v10779_v7 = vcombine.high %v5140_v63, %v5144_v30  ;;  %v10706_v26 = vcombine.low %v5068_v11, %v5072_v28  ;;  %v1430_v24 = vpop.permute.xlu0 %1429  ;;  %v5053_v15 = vld [vmem:[#allocation2 + $0x148] sm:$0xff]  ;;  %v5040_v41 = vld [vmem:[#allocation2 + $0xe0] sm:$0xff] }
 0x409   :  { %v1396_v58 = vsel %vm1379_vm1, %v1292_v52, %v1285_v39  ;;  %v1341_v62 = vmax.f32 %v1339_v56, %v1340_v16  ;;  %7321 = vmatpush1.bf16.msra.mxu1 %v10794_v19  ;;  %v1348_v47 = vmax.f32 %v1346_v45, %v1347_v33  ;;  %v10707_v3 = vcombine.high %v5068_v11, %v5072_v28  ;;  %v5057_v39 = vld [vmem:[#allocation2 + $0x168] sm:$0xff]  ;;  %v5036_v56 = vld [vmem:[#allocation2 + $0xc0] sm:$0xff]  ;;  %v18069_v11 = vld [vmem:[#allocation106_spill] sm:$0xff] }
 0x40a   :  { %v1358_v42 = vmax.f32 %v1356_v35, %v1357_v18  ;;  %7322 = vmatprep.subr.bf16.mxu1 %v10787_v37  ;;  %v1355_v50 = vmax.f32 %v1353_v48, %v1354_v55  ;;  %v10778_v8 = vcombine.low %v5140_v63, %v5144_v30  ;;  %v10699_v53 = vcombine.high %v5060_v51, %v5064_v5  ;;  %v5044_v35 = vld [vmem:[#allocation2 + $0x100] sm:$0xff]  ;;  %v817_v2 = vpop.permute.xlu1 %816  ;;  %v5045_v49 = vld [vmem:[#allocation2 + $0x108] sm:$0xff]  ;;  %v18070_v55 = vld [vmem:[#allocation62_spill] sm:$0xff] }
 0x40b   :  { %v1418_v44 = vsel %vm1379_vm1, %v1348_v47, %v1341_v62  ;;  %7269 = vmatprep.subr.bf16.mxu0 %v10707_v3  ;;  %v10698_v22 = vcombine.low %v5060_v51, %v5064_v5  ;;  %v10709_v12 = vcombine.high %v5069_v27, %v5073_v1  ;;  %v10691_v59 = vcombine.high %v5052_v10, %v5056_v31  ;;  %v5028_v16 = vld [vmem:[#allocation2 + $0x80] sm:$0xff]  ;;  %v5037_v51 = vld [vmem:[#allocation2 + $0xc8] sm:$0xff] }
 0x40c   :  { %v1359_v21 = vrot.slane %v1358_v42, 2  ;;  %v11210_v23 = vpack.i.bf16 %v1396_v58, %v1418_v44  ;;  %7270 = vmatpush1.bf16.msra.mxu0 %v10706_v26  ;;  %v10708_v36 = vcombine.low %v5069_v27, %v5073_v1  ;;  %v10690_v54 = vcombine.low %v5052_v10, %v5056_v31  ;;  %v5032_v30 = vld [vmem:[#allocation2 + $0xa0] sm:$0xff]  ;;  %v5041_v26 = vld [vmem:[#allocation2 + $0xe8] sm:$0xff] }
 0x40d   :  { %7323 = vmatpush1.bf16.msra.mxu1 %v10786_v57  ;;  %7271 = vmatprep.subr.bf16.mxu0 %v10699_v53  ;;  %v10701_v48 = vcombine.high %v5061_v4, %v5065_v46  ;;  %v10700_v52 = vcombine.low %v5061_v4, %v5065_v46  ;;  %v10682_v45 = vcombine.low %v5044_v35, %v5048_v40  ;;  %v5024_v3 = vld [vmem:[#allocation2 + $0x60] sm:$0xff] }
 0x40e   :  { %v1360_v9 = vmax.f32 %v1358_v42, %v1359_v21  ;;  %7324 = vmatprep.subr.bf16.mxu1 %v10779_v7  ;;  %11211 = vrot.lane.b32.xlu1 %v11210_v23, %s12221_s16  ;;  %v10683_v42 = vcombine.high %v5044_v35, %v5048_v40  ;;  %v10693_v19 = vcombine.high %v5053_v15, %v5057_v39  ;;  %v5049_v21 = vld [vmem:[#allocation2 + $0x128] sm:$0xff]  ;;  %v809_v7 = vpop.permute.xlu1 %808  ;;  %v5012_v23 = vld [vmem:[#allocation2] sm:$0xff] }
 0x40f   :  { %v10675_v63 = vcombine.high %v5036_v56, %v5040_v41  ;;  %v573_v28 = vadd.f32 %v16620_v0, %v18069_v11  ;;  %v559_v33 = vadd.f32 %v16407_v34, %v18070_v55  ;;  %v10692_v58 = vcombine.low %v5053_v15, %v5057_v39  ;;  %v5020_v0 = vld [vmem:[#allocation2 + $0x40] sm:$0xff]  ;;  %v18075_v35 = vld [vmem:[#allocation17_spill] sm:$0xff] }
 0x410   :  { %v1361_v38 = vrot.slane %v1360_v9, 1  ;;  %7272 = vmatpush1.bf16.msra.mxu0 %v10698_v22  ;;  %v10674_v37 = vcombine.low %v5036_v56, %v5040_v41  ;;  %v10685_v57 = vcombine.high %v5045_v49, %v5049_v21  ;;  %v10667_v5 = vcombine.high %v5028_v16, %v5032_v30  ;;  %v5136_v15 = vld [vmem:[#allocation2 + $0x3e0] sm:$0xff] }
 0x411   :  { %7325 = vmatpush1.bf16.msra.mxu1 %v10778_v8  ;;  %7273 = vmatprep.subr.bf16.mxu0 %v10691_v59  ;;  %v717_v47 = vadd.f32 %v16635_v20, %v573_v28  ;;  %v703_v34 = vadd.f32 %v16625_v17, %v559_v33  ;;  %v10684_v1 = vcombine.low %v5045_v49, %v5049_v21  ;;  %v18072_v8 = vld [vmem:[#allocation83_spill] sm:$0xff]  ;;  %v18074_v59 = vld [vmem:[#allocation97_spill] sm:$0xff]  ;;  %v868_v40 = vrot.slane %v18075_v35, 4 }
 0x412   :  { %v1362_v61 = vmax.f32 %v1360_v9, %v1361_v38  ;;  %7351 = vmatprep.subr.bf16.mxu1 %v10709_v12  ;;  %v18071_v9 = vld [vmem:[#allocation103_spill] sm:$0xff]  ;;  %v10666_v10 = vcombine.low %v5028_v16, %v5032_v30  ;;  %v10677_v31 = vcombine.high %v5037_v51, %v5041_v26  ;;  %v10659_v44 = vcombine.high %v5020_v0, %v5024_v3  ;;  %v18073_v12 = vld [vmem:[#allocation104_spill] sm:$0xff] }
 0x413   :  { %v569_v62 = vadd.f32 %v16630_v60, %v18071_v9  ;;  %v862_v38 = vadd.f32 %v817_v2, %v717_v47  ;;  %v852_v20 = vadd.f32 %v16632_v13, %v16499_v43  ;;  %v882_v53 = vrot.slane %v18072_v8, 4  ;;  %v5016_v17 = vld [vmem:[#allocation2 + $0x20] sm:$0xff]  ;;  %v5021_v13 = vld [vmem:[#allocation2 + $0x48] sm:$0xff] }
 0x414   :  { %v1424_v6 = vsel %vm1379_vm1, %v1362_v61, %v1355_v50  ;;  %7274 = vmatpush1.bf16.msra.mxu0 %v10690_v54  ;;  %v5029_v50 = vld [vmem:[#allocation2 + $0x88] sm:$0xff]  ;;  %v848_v22 = vadd.f32 %v16637_v32, %v703_v34  ;;  %v878_v4 = vrot.slane %v18073_v12, 4  ;;  %v10658_v46 = vcombine.low %v5020_v0, %v5024_v3  ;;  %v5132_v32 = vld [vmem:[#allocation2 + $0x3c0] sm:$0xff] }
 0x415   :  { %v1441_v25 = vsel %vm1432_vm14, %v1424_v6, %v1430_v24  ;;  %7275 = vmatprep.subr.bf16.mxu0 %v10683_v42  ;;  %v713_v27 = vadd.f32 %v664_v29, %v569_v62  ;;  %v5033_v61 = vld [vmem:[#allocation2 + $0xa8] sm:$0xff]  ;;  %v872_v29 = vrot.slane %v18074_v59, 4  ;;  %v922_v24 = vadd.f32 %v882_v53, %v862_v38  ;;  %v12124_v39 = vld [vmem:[%s17166_s3] ss:$0 sm:$0xff] }
 0x416   :  { %v16643_v18 = vpack.c.bf16 %v1441_v25, %v1441_v25  ;;  %v10676_v6 = vcombine.low %v5037_v51, %v5041_v26  ;;  %v10669_v43 = vcombine.high %v5029_v50, %v5033_v61  ;;  %v908_v42 = vadd.f32 %v868_v40, %v848_v22  ;;  %v5017_v21 = vld [vmem:[#allocation2 + $0x28] sm:$0xff]  ;;  %v5124_v16 = vld [vmem:[#allocation2 + $0x380] sm:$0xff] }
 0x417   :  { %v858_v60 = vadd.f32 %v809_v7, %v713_v27  ;;  %v912_v54 = vadd.f32 %v872_v29, %v852_v20  ;;  %v16665_v56 = vadd.f32 %v12124_v39, %v922_v24  ;;  %v10668_v41 = vcombine.low %v5029_v50, %v5033_v61  ;;  %v5128_v30 = vld [vmem:[#allocation2 + $0x3a0] sm:$0xff]  ;;  %v5133_v9 = vld [vmem:[#allocation2 + $0x3c8] sm:$0xff] }
 0x418   :  { %10810 = vmatmul.mubr.msk.bf16.vlgmr.msra.gmra.mxu1 %vm1434_vm7, %v16643_v18  ;;  %7276 = vmatpush1.bf16.msra.mxu0 %v10682_v45  ;;  %v10650_v2 = vcombine.low %v5012_v23, %v5016_v17  ;;  %v10771_v49 = vcombine.high %v5132_v32, %v5136_v15  ;;  %v16671_v11 = vadd.f32 %v12124_v39, %v908_v42  ;;  %v5137_v51 = vld [vmem:[#allocation2 + $0x3e8] sm:$0xff]  ;;  %v5120_v47 = vld [vmem:[#allocation2 + $0x360] sm:$0xff] }
 0x419   :  { %7352 = vmatpush1.bf16.msra.mxu1 %v10708_v36  ;;  %7277 = vmatprep.subr.bf16.mxu0 %v10675_v63  ;;  %v918_v25 = vadd.f32 %v878_v4, %v858_v60  ;;  %v10651_v36 = vcombine.high %v5012_v23, %v5016_v17  ;;  %v16669_v63 = vadd.f32 %v12124_v39, %v912_v54  ;;  %v970_v28 = vand.u32 2147483647, %v16665_v56  ;;  %v5125_v38 = vld [vmem:[#allocation2 + $0x388] sm:$0xff]  ;;  %v5112_v50 = vld [vmem:[#allocation2 + $0x320] sm:$0xff] }
 0x41a   :  { %7353 = vmatprep.subr.bf16.mxu1 %v10701_v48  ;;  %v5025_v48 = vld [vmem:[#allocation2 + $0x68] sm:$0xff]  ;;  %v10770_v33 = vcombine.low %v5132_v32, %v5136_v15  ;;  %v10763_v62 = vcombine.high %v5124_v16, %v5128_v30  ;;  %v956_v7 = vand.u32 2147483647, %v16671_v11  ;;  %v10762_v3 = vcombine.low %v5124_v16, %v5128_v30  ;;  %v5100_v59 = vld [vmem:[#allocation2 + $0x2c0] sm:$0xff] }
 0x41b   :  { %v10661_v45 = vcombine.high %v5021_v13, %v5025_v48  ;;  %v10660_v55 = vcombine.low %v5021_v13, %v5025_v48  ;;  %v990_v26 = vsub.f32 0.0, %v970_v28  ;;  %v10773_v27 = vcombine.high %v5133_v9, %v5137_v51  ;;  %v5129_v60 = vld [vmem:[#allocation2 + $0x3a8] sm:$0xff]  ;;  %v5104_v29 = vld [vmem:[#allocation2 + $0x2e0] sm:$0xff] }
 0x41c   :  { %7278 = vmatpush1.bf16.msra.mxu0 %v10674_v37  ;;  %v10772_v8 = vcombine.low %v5133_v9, %v5137_v51  ;;  %v10765_v23 = vcombine.high %v5125_v38, %v5129_v60  ;;  %v5117_v17 = vld [vmem:[#allocation2 + $0x348] sm:$0xff]  ;;  %v5092_v13 = vld [vmem:[#allocation2 + $0x280] sm:$0xff]  ;;  %v10738_v48 = vcombine.low %v5100_v59, %v5104_v29  ;;  %vm1090_vm2 = vcmp.ge.f32.partialorder %v16665_v56, 0.0 }
 0x41d   :  { %7354 = vmatpush1.bf16.msra.mxu1 %v10700_v52  ;;  %7279 = vmatprep.subr.bf16.mxu0 %v10667_v5  ;;  %v16667_v52 = vadd.f32 %v12124_v39, %v918_v25  ;;  %v5116_v5 = vld [vmem:[#allocation2 + $0x340] sm:$0xff]  ;;  %v1024_v20 = vmul.f32 1.442695, %v990_v26  ;;  %v5121_v4 = vld [vmem:[#allocation2 + $0x368] sm:$0xff]  ;;  %v10739_v25 = vcombine.high %v5100_v59, %v5104_v29  ;;  %vm1080_vm11 = vcmp.ge.f32.partialorder %v16669_v63, 0.0 }
 0x41e   :  { %7355 = vmatprep.subr.bf16.mxu1 %v10693_v19  ;;  %v5013_v19 = vld [vmem:[#allocation2 + $0x8] sm:$0xff]  ;;  %v10754_v53 = vcombine.low %v5116_v5, %v5120_v47  ;;  %v10757_v35 = vcombine.high %v5117_v17, %v5121_v4  ;;  %v10756_v54 = vcombine.low %v5117_v17, %v5121_v4  ;;  %v5076_v28 = vld [vmem:[#allocation2 + $0x200] sm:$0xff]  ;;  %vm1076_vm12 = vcmp.ge.f32.partialorder %v16671_v11, 0.0 }
 0x41f   :  { %v10653_v37 = vcombine.high %v5013_v19, %v5017_v21  ;;  %v10652_v0 = vcombine.low %v5013_v19, %v5017_v21  ;;  %12047 = vpow2.f32 %v1024_v20  ;;  %v5109_v40 = vld [vmem:[#allocation2 + $0x308] sm:$0xff]  ;;  %vm1086_vm4 = vcmp.ge.f32.partialorder %v16667_v52, 0.0 }
 0x420   :  { %7280 = vmatpush1.bf16.msra.mxu0 %v10666_v10  ;;  %v5101_v15 = vld [vmem:[#allocation2 + $0x2c8] sm:$0xff] }
 0x421   :  { %7356 = vmatpush1.bf16.msra.mxu1 %v10692_v58  ;;  %7281 = vmatprep.subr.bf16.mxu0 %v10659_v44  ;;  %v966_v58 = vand.u32 2147483647, %v16667_v52  ;;  %v976_v44 = vsub.f32 0.0, %v956_v7  ;;  %v5105_v39 = vld [vmem:[#allocation2 + $0x2e8] sm:$0xff] }
 0x422   :  { %7357 = vmatprep.subr.bf16.mxu1 %v10685_v57  ;;  %v960_v57 = vand.u32 2147483647, %v16669_v63  ;;  %v5093_v21 = vld [vmem:[#allocation2 + $0x288] sm:$0xff] }
 0x423   :  { %v986_v34 = vsub.f32 0.0, %v966_v58  ;;  %v996_v24 = vmul.f32 1.442695, %v976_v44  ;;  %v5097_v30 = vld [vmem:[#allocation2 + $0x2a8] sm:$0xff] }
 0x424   :  { %7282 = vmatpush1.bf16.msra.mxu0 %v10658_v46  ;;  %v980_v10 = vsub.f32 0.0, %v960_v57  ;;  %v10733_v9 = vcombine.high %v5093_v21, %v5097_v30  ;;  %v16679_v7 = vld [vmem:[#allocation2 + $0x4e8] sm:$0xff] }
 0x425   :  { %7358 = vmatpush1.bf16.msra.mxu1 %v10684_v1  ;;  %7283 = vmatprep.subr.bf16.mxu0 %v10651_v36  ;;  %v10755_v1 = vcombine.high %v5116_v5, %v5120_v47  ;;  %v1016_v61 = vmul.f32 1.442695, %v986_v34  ;;  %v5096_v36 = vld [vmem:[#allocation2 + $0x2a0] sm:$0xff]  ;;  %v5089_v5 = vld [vmem:[#allocation2 + $0x268] sm:$0xff] }
 0x426   :  { %7359 = vmatprep.subr.bf16.mxu1 %v10677_v31  ;;  %v5108_v31 = vld [vmem:[#allocation2 + $0x300] sm:$0xff]  ;;  %v1004_v12 = vmul.f32 1.442695, %v980_v10  ;;  %v10731_v42 = vcombine.high %v5092_v13, %v5096_v36  ;;  %v10730_v19 = vcombine.low %v5092_v13, %v5096_v36  ;;  %v16677_v47 = vld [vmem:[#allocation2 + $0x4c8] sm:$0xff]  ;;  %v16694_v36 = vld [vmem:[#allocation2 + $0x4d0] sm:$0xff] }
 0x427   :  { %v10747_v22 = vcombine.high %v5108_v31, %v5112_v50  ;;  %v10746_v46 = vcombine.low %v5108_v31, %v5112_v50  ;;  %12049 = vpow2.f32 %v1016_v61  ;;  %v10805_v20 = vcombine.high %v16677_v47, %v16679_v7  ;;  %v5077_v61 = vld [vmem:[#allocation2 + $0x208] sm:$0xff] }
 0x428   :  { %7284 = vmatpush1.bf16.msra.mxu0 %v10650_v2  ;;  %12051 = vpow2.f32 %v1004_v12  ;;  %v5088_v2 = vld [vmem:[#allocation2 + $0x260] sm:$0xff] }
 0x429   :  { %7360 = vmatpush1.bf16.msra.mxu1 %v10676_v6  ;;  %7285 = vmatprep.subr.bf16.mxu0 %v10771_v49  ;;  %v10764_v6 = vcombine.low %v5125_v38, %v5129_v60  ;;  %12053 = vpow2.f32 %v996_v24  ;;  %v10741_v49 = vcombine.high %v5101_v15, %v5105_v39  ;;  %v10732_v38 = vcombine.low %v5093_v21, %v5097_v30 }
 0x42a   :  { %7361 = vmatprep.subr.bf16.mxu1 %v10669_v43  ;;  %v5113_v43 = vld [vmem:[#allocation2 + $0x328] sm:$0xff] }
 0x42b   :  { %v10749_v32 = vcombine.high %v5109_v40, %v5113_v43 }
 0x42c   :  { %7286 = vmatpush2.bf16.msra.mxu0 %v10770_v33  ;;  %v10740_v33 = vcombine.low %v5101_v15, %v5105_v39 }
 0x42d   :  { %7362 = vmatpush1.bf16.msra.mxu1 %v10668_v41  ;;  %7287 = vmatprep.subr.bf16.mxu0 %v10763_v62  ;;  %v5084_v41 = vld [vmem:[#allocation2 + $0x240] sm:$0xff]  ;;  %v5085_v62 = vld [vmem:[#allocation2 + $0x248] sm:$0xff] }
 0x42e   :  { %7363 = vmatprep.subr.bf16.mxu1 %v10661_v45  ;;  %v10748_v45 = vcombine.low %v5109_v40, %v5113_v43  ;;  %v10723_v16 = vcombine.high %v5084_v41, %v5088_v2  ;;  %v10722_v58 = vcombine.low %v5084_v41, %v5088_v2  ;;  %v10725_v44 = vcombine.high %v5085_v62, %v5089_v5 }
 0x42f   :  { %v10724_v24 = vcombine.low %v5085_v62, %v5089_v5 }
 0x430   :  { %7288 = vmatpush2.bf16.msra.mxu0 %v10762_v3 }
 0x431   :  { %7364 = vmatpush1.bf16.msra.mxu1 %v10660_v55  ;;  %7289 = vmatprep.subr.bf16.mxu0 %v10755_v1  ;;  %v5080_v55 = vld [vmem:[#allocation2 + $0x220] sm:$0xff] }
 0x432   :  { %7365 = vmatprep.subr.bf16.mxu1 %v10653_v37  ;;  %v12048_v37 = vpop.eup %12047  ;;  %v10715_v57 = vcombine.high %v5076_v28, %v5080_v55  ;;  %v10714_v1 = vcombine.low %v5076_v28, %v5080_v55 }
 0x433   :  { %v1110_v10 = vmul.f32 %v12048_v37, %v12048_v37 }
 0x434   :  { %7290 = vmatpush2.bf16.msra.mxu0 %v10754_v53  ;;  %v12050_v51 = vpop.eup %12049 }
 0x435   :  { %7366 = vmatpush1.bf16.msra.mxu1 %v10652_v0  ;;  %7291 = vmatprep.subr.bf16.mxu0 %v10747_v22  ;;  %v12052_v26 = vpop.eup %12051  ;;  %v1046_v60 = vadd.f32 1.0, %v12050_v51  ;;  %v1106_v53 = vmul.f32 %v12050_v51, %v12050_v51 }
 0x436   :  { %7367 = vmatprep.subr.bf16.mxu1 %v10773_v27  ;;  %v12054_v34 = vpop.eup %12053  ;;  %v1050_v27 = vadd.f32 1.0, %v12048_v37  ;;  %v1100_v17 = vmul.f32 %v12052_v26, %v12052_v26 }
 0x437   :  { %v1036_v22 = vadd.f32 1.0, %v12054_v34  ;;  %v1096_v29 = vmul.f32 %v12054_v34, %v12054_v34  ;;  %v1126_v13 = vsel %vm1086_vm4, %v1106_v53, 1.0 }
 0x438   :  { %7292 = vmatpush2.bf16.msra.mxu0 %v10746_v46  ;;  %v1070_v59 = vmul.f32 %v1050_v27, %v1050_v27  ;;  %v1066_v46 = vmul.f32 %v1046_v60, %v1046_v60 }
 0x439   :  { %7368 = vmatpush2.bf16.msra.mxu1 %v10772_v8  ;;  %7293 = vmatprep.subr.bf16.mxu0 %v10739_v25  ;;  %v1040_v8 = vadd.f32 1.0, %v12052_v26 }
 0x43a   :  { %7369 = vmatprep.subr.bf16.mxu1 %v10765_v23  ;;  %v5081_v23 = vld [vmem:[#allocation2 + $0x228] sm:$0xff]  ;;  %v1186_v41 = vadd.f32 %v1126_v13, %v1066_v46  ;;  %v1146_v21 = vsub.f32 %v1066_v46, %v1126_v13 }
 0x43b   :  { %v10717_v25 = vcombine.high %v5077_v61, %v5081_v23  ;;  %v1060_v43 = vmul.f32 %v1040_v8, %v1040_v8  ;;  %v10716_v39 = vcombine.low %v5077_v61, %v5081_v23 }
 0x43c   :  { %7294 = vmatpush2.bf16.msra.mxu0 %v10738_v48  ;;  %v1120_v48 = vsel %vm1080_vm11, %v1100_v17, 1.0  ;;  %v1166_v26 = vmul.f32 %v1146_v21, %v16667_v52 }
 0x43d   :  { %7370 = vmatpush2.bf16.msra.mxu1 %v10764_v6  ;;  %7295 = vmatprep.subr.bf16.mxu0 %v10731_v42  ;;  %v1130_v6 = vsel %vm1090_vm2, %v1110_v10, 1.0  ;;  %v1116_v42 = vsel %vm1076_vm12, %v1096_v29, 1.0  ;;  %v1140_v55 = vsub.f32 %v1060_v43, %v1120_v48  ;;  %vm10410_vm12 = vcmask 517120  }
 0x43e   :  { %7371 = vmatprep.subr.bf16.mxu1 %v10757_v35  ;;  %v16681_v0 = vpop.f32.mrf.mxu0  ;;  %v16683_v3 = vpop.f32.mrf.mxu1  ;;  %v1190_v15 = vadd.f32 %v1130_v6, %v1070_v59 }
 0x440   :  { %7296 = vmatpush2.bf16.msra.mxu0 %v10730_v19  ;;  %v16685_v31 = vpop.f32.mrf.mxu0  ;;  %v16687_v50 = vpop.f32.mrf.mxu1  ;;  %12055 = vrcp.f32 %v1190_v15 }
 0x441   :  { %7372 = vmatpush2.bf16.msra.mxu1 %v10756_v54  ;;  %7297 = vmatprep.subr.bf16.mxu0 %v10723_v16  ;;  %v16696_v54 = vld [vmem:[#allocation2 + $0x4f0] sm:$0xff]  ;;  %12057 = vrcp.f32 %v1186_v41 }
 0x442   :  { %7373 = vmatprep.subr.bf16.mxu1 %v10749_v32  ;;  %v6176_v12 = vpop.f32.mrf.mxu0  ;;  %v6258_v4 = vpop.f32.mrf.mxu1  ;;  %v1056_v32 = vmul.f32 %v1036_v22, %v1036_v22  ;;  %v10807_v2 = vcombine.high %v16694_v36, %v16696_v54 }
 0x444   :  { %7298 = vmatpush2.bf16.msra.mxu0 %v10722_v58  ;;  %v6177_v35 = vpop.f32.mrf.mxu0  ;;  %v6259_v40 = vpop.f32.mrf.mxu1  ;;  %v1176_v19 = vadd.f32 %v1116_v42, %v1056_v32 }
 0x445   :  { %7374 = vmatpush2.bf16.msra.mxu1 %v10748_v45  ;;  %7299 = vmatprep.subr.bf16.mxu0 %v10715_v57  ;;  %v1180_v45 = vadd.f32 %v1120_v48, %v1060_v43 }
 0x446   :  { %7375 = vmatprep.subr.bf16.mxu1 %v10741_v49  ;;  %v1150_v49 = vsub.f32 %v1070_v59, %v1130_v6 }
 0x447   :  { %12059 = vrcp.f32 %v1180_v45 }
 0x448   :  { %7300 = vmatpush2.bf16.msra.mxu0 %v10714_v1  ;;  %12061 = vrcp.f32 %v1176_v19  ;;  %v1170_v5 = vmul.f32 %v1150_v49, %v16665_v56 }
 0x449   :  { %7376 = vmatpush2.bf16.msra.mxu1 %v10740_v33  ;;  %7400 = vmatprep.subr.bf16.mxu0 %v10805_v20  ;;  %v1136_v33 = vsub.f32 %v1056_v32, %v1116_v42 }
 0x44a   :  { %7377 = vmatprep.subr.bf16.mxu1 %v10733_v9 }
 0x44b   :  { %v1156_v60 = vmul.f32 %v1136_v33, %v16671_v11 }
 0x44d   :  { %7378 = vmatpush2.bf16.msra.mxu1 %v10732_v38  ;;  %v12056_v28 = vpop.eup %12055 }
 0x44e   :  { %7379 = vmatprep.subr.bf16.mxu1 %v10725_v44  ;;  %v12058_v9 = vpop.eup %12057  ;;  %v1230_v10 = vmul.f32 %v12056_v28, %v1170_v5 }
 0x44f   :  { %v1226_v44 = vmul.f32 %v12058_v9, %v1166_v26 }
 0x450   :  { %v1300_v52 = vsel %vm1236_vm5, %v1230_v10, -inf }
 0x451   :  { %7380 = vmatpush2.bf16.msra.mxu1 %v10724_v24  ;;  %v1301_v23 = vrot.slane %v1300_v52, 4 }
 0x452   :  { %7381 = vmatprep.subr.bf16.mxu1 %v10717_v25 }
 0x453   :  { %v1302_v12 = vmax.f32 %v1300_v52, %v1301_v23 }
 0x454   :  { %v12060_v51 = vpop.eup %12059 }
 0x455   :  { %7382 = vmatpush2.bf16.msra.mxu1 %v10716_v39  ;;  %v12062_v38 = vpop.eup %12061  ;;  %v1303_v6 = vrot.slane %v1302_v12, 2 }
 0x456   :  { %7482 = vmatprep.subr.bf16.mxu1 %v10807_v2  ;;  %v1216_v53 = vmul.f32 %v12062_v38, %v1156_v60  ;;  %v5161_v60 = vld [vmem:[#allocation2 + $0x4a8] sm:$0xff] }
 0x457   :  { %v1304_v48 = vmax.f32 %v1302_v12, %v1303_v6  ;;  %v5154_v12 = vld [vmem:[#allocation2 + $0x470] sm:$0xff] }
 0x458   :  { %v1237_v61 = vsel %vm1236_vm5, %v1216_v53, -inf  ;;  %v5146_v6 = vld [vmem:[#allocation2 + $0x430] sm:$0xff] }
 0x459   :  { %v1305_v39 = vrot.slane %v1304_v48, 1 }
 0x45b   :  { %v6213_v16 = vpop.f32.mrf.mxu0  ;;  %v6295_v30 = vpop.f32.mrf.mxu1  ;;  %v1306_v21 = vmax.f32 %v1304_v48, %v1305_v39  ;;  %v5071_v48 = vld [vmem:[#allocation2 + $0x1d8] sm:$0xff] }
 0x45c   :  { %v16702_v58 = vadd.f32 %v6213_v16, %v16681_v0  ;;  %v16705_v37 = vadd.f32 %v6295_v30, %v16683_v3  ;;  %v1160_v3 = vmul.f32 %v1140_v55, %v16669_v63  ;;  %v1238_v63 = vrot.slane %v1237_v61, 4 }
 0x45d   :  { %v6215_v62 = vpop.f32.mrf.mxu0  ;;  %v6297_v57 = vpop.f32.mrf.mxu1 }
 0x45e   :  { %v16710_v34 = vadd.f32 %v6215_v62, %v16685_v31  ;;  %v16713_v27 = vadd.f32 %v6297_v57, %v16687_v50  ;;  %v1220_v56 = vmul.f32 %v12060_v51, %v1160_v3  ;;  %v1244_v31 = vsel %vm1236_vm5, %v1226_v44, -inf  ;;  %v5158_v44 = vld [vmem:[#allocation2 + $0x490] sm:$0xff] }
 0x45f   :  { %v6217_v0 = vpop.f32.mrf.mxu0  ;;  %v6299_v1 = vpop.f32.mrf.mxu1  ;;  %v1245_v17 = vrot.slane %v1244_v31, 4  ;;  %v1239_v29 = vmax.f32 %v1237_v61, %v1238_v63  ;;  %v5150_v63 = vld [vmem:[#allocation2 + $0x450] sm:$0xff] }
 0x460   :  { %v1293_v50 = vsel %vm1236_vm5, %v1220_v56, -inf  ;;  %v5157_v1 = vld [vmem:[#allocation2 + $0x488] sm:$0xff] }
 0x461   :  { %v6218_v20 = vpop.f32.mrf.mxu0  ;;  %v6300_v8 = vpop.f32.mrf.mxu1  ;;  %v1294_v22 = vrot.slane %v1293_v50, 4  ;;  %v1246_v4 = vmax.f32 %v1244_v31, %v1245_v17  ;;  %v1240_v25 = vrot.slane %v1239_v29, 2  ;;  %v10804_v31 = vcombine.low %v16677_v47, %v16679_v7  ;;  %v5149_v17 = vld [vmem:[#allocation2 + $0x448] sm:$0xff] }
 0x462   :  { %v5162_v20 = vld [vmem:[#allocation2 + $0x4b0] sm:$0xff]  ;;  %v10797_v61 = vcombine.high %v5157_v1, %v5161_v60  ;;  %v10796_v47 = vcombine.low %v5157_v1, %v5161_v60  ;;  %v5047_v1 = vld [vmem:[#allocation2 + $0x118] sm:$0xff] }
 0x463   :  { %v1295_v59 = vmax.f32 %v1293_v50, %v1294_v22  ;;  %v1247_v46 = vrot.slane %v1246_v4, 2  ;;  %v1241_v32 = vmax.f32 %v1239_v29, %v1240_v25  ;;  %v10806_v50 = vcombine.low %v16694_v36, %v16696_v54  ;;  %v5153_v22 = vld [vmem:[#allocation2 + $0x468] sm:$0xff]  ;;  %v5142_v29 = vld [vmem:[#allocation2 + $0x410] sm:$0xff] }
 0x464   :  { %v10799_v23 = vcombine.high %v5158_v44, %v5162_v20  ;;  %v10798_v7 = vcombine.low %v5158_v44, %v5162_v20  ;;  %v10789_v36 = vcombine.high %v5149_v17, %v5153_v22  ;;  %v10791_v54 = vcombine.high %v5150_v63, %v5154_v12 }
 0x465   :  { %v1296_v40 = vrot.slane %v1295_v59, 2  ;;  %v1248_v13 = vmax.f32 %v1246_v4, %v1247_v46  ;;  %v1242_v41 = vrot.slane %v1241_v32, 1  ;;  %v5141_v4 = vld [vmem:[#allocation2 + $0x408] sm:$0xff]  ;;  %v10788_v46 = vcombine.low %v5149_v17, %v5153_v22 }
 0x466   :  { %v10783_v25 = vcombine.high %v5142_v29, %v5146_v6 }
 0x467   :  { %v1297_v15 = vmax.f32 %v1295_v59, %v1296_v40  ;;  %v1249_v42 = vrot.slane %v1248_v13, 1  ;;  %v1243_v28 = vmax.f32 %v1241_v32, %v1242_v41  ;;  %v5145_v59 = vld [vmem:[#allocation2 + $0x428] sm:$0xff]  ;;  %v5075_v32 = vld [vmem:[#allocation2 + $0x1f8] sm:$0xff] }
 0x468   :  { %v10781_v40 = vcombine.high %v5141_v4, %v5145_v59  ;;  %v10713_v41 = vcombine.high %v5071_v48, %v5075_v32 }
 0x469   :  { %v1298_v2 = vrot.slane %v1297_v15, 1  ;;  %v1250_v49 = vmax.f32 %v1248_v13, %v1249_v42  ;;  %v5074_v13 = vld [vmem:[#allocation2 + $0x1f0] sm:$0xff]  ;;  %v10782_v42 = vcombine.low %v5142_v29, %v5146_v6 }
 0x46b   :  { %v1299_v55 = vmax.f32 %v1297_v15, %v1298_v2  ;;  %v1380_v62 = vsel %vm1379_vm1, %v1250_v49, %v1243_v28  ;;  %v10780_v15 = vcombine.low %v5141_v4, %v5145_v59  ;;  %v5062_v2 = vld [vmem:[#allocation2 + $0x190] sm:$0xff]  ;;  %v5067_v49 = vld [vmem:[#allocation2 + $0x1b8] sm:$0xff] }
 0x46c   :  { %v16721_v11 = vpop.f32.mrf.mxu1  ;;  %v5031_v4 = vld [vmem:[#allocation2 + $0x98] sm:$0xff] }
 0x46d   :  { %v1402_v57 = vsel %vm1379_vm1, %v1306_v21, %v1299_v55  ;;  %v5054_v55 = vld [vmem:[#allocation2 + $0x150] sm:$0xff]  ;;  %v5035_v59 = vld [vmem:[#allocation2 + $0xb8] sm:$0xff] }
 0x46e   :  { %v16723_v24 = vpop.f32.mrf.mxu1 }
 0x470   :  { %v6381_v35 = vpop.f32.mrf.mxu1 }
 0x471   :  { %v10790_v35 = vcombine.low %v5150_v63, %v5154_v12 }
 0x472   :  { %v6382_v43 = vpop.f32.mrf.mxu1 }
 0x473   :  { %v5070_v43 = vld [vmem:[#allocation2 + $0x1d0] sm:$0xff] }
 0x474   :  { %v11202_v45 = vpop.permute.xlu1 %11201  ;;  %v10711_v39 = vcombine.high %v5070_v43, %v5074_v13  ;;  %v10710_v21 = vcombine.low %v5070_v43, %v5074_v13  ;;  %v5027_v43 = vld [vmem:[#allocation2 + $0x78] sm:$0xff] }
 0x475   :  { %v11204_v16 = vunpack.i.h.bf16 %v11202_v45  ;;  %v11203_v30 = vunpack.i.l.bf16 %v11202_v45  ;;  %v5066_v45 = vld [vmem:[#allocation2 + $0x1b0] sm:$0xff] }
 0x477   :  { %v1433_v5 = vsel %vm1432_vm14, %v1380_v62, %v11204_v16  ;;  %v1438_v26 = vsel %vm1432_vm14, %v1402_v57, %v11203_v30  ;;  %v10712_v16 = vcombine.low %v5071_v48, %v5075_v32  ;;  %v10703_v30 = vcombine.high %v5062_v2, %v5066_v45  ;;  %v5059_v62 = vld [vmem:[#allocation2 + $0x178] sm:$0xff] }
 0x478   :  { %v11207_v19 = vpop.permute.xlu0 %11206  ;;  %v10702_v57 = vcombine.low %v5062_v2, %v5066_v45  ;;  %v10672_v48 = vcombine.low %v5031_v4, %v5035_v59  ;;  %v5019_v2 = vld [vmem:[#allocation2 + $0x38] sm:$0xff] }
 0x479   :  { %v11209_v33 = vunpack.i.h.bf16 %v11207_v19  ;;  %v11208_v9 = vunpack.i.l.bf16 %v11207_v19  ;;  %v5063_v19 = vld [vmem:[#allocation2 + $0x198] sm:$0xff] }
 0x47a   :  { %v10705_v28 = vcombine.high %v5063_v19, %v5067_v49 }
 0x47b   :  { %v1435_v3 = vsel %vm1434_vm7, %v1433_v5, %v11209_v33  ;;  %v1439_v10 = vsel %vm1434_vm7, %v1438_v26, %v11208_v9  ;;  %v5058_v33 = vld [vmem:[#allocation2 + $0x170] sm:$0xff]  ;;  %v5055_v9 = vld [vmem:[#allocation2 + $0x158] sm:$0xff] }
 0x47c   :  { %v10695_v5 = vcombine.high %v5054_v55, %v5058_v33  ;;  %v10697_v26 = vcombine.high %v5055_v9, %v5059_v62  ;;  %v10696_v44 = vcombine.low %v5055_v9, %v5059_v62 }
 0x480   :  { %v11212_v51 = vpop.permute.xlu1 %11211 }
 0x481   :  { %v11214_v38 = vunpack.i.h.bf16 %v11212_v51  ;;  %v11213_v0 = vunpack.i.l.bf16 %v11212_v51  ;;  %v10704_v51 = vcombine.low %v5063_v19, %v5067_v49 }
 0x483   :  { %v1437_v8 = vsel %vm1436_vm9, %v1435_v3, %v11214_v38  ;;  %v1440_v56 = vsel %vm1436_vm9, %v1439_v10, %v11213_v0  ;;  %v5046_v38 = vld [vmem:[#allocation2 + $0x110] sm:$0xff]  ;;  %v5051_v3 = vld [vmem:[#allocation2 + $0x138] sm:$0xff]  ;;  %v10694_v10 = vcombine.low %v5054_v55, %v5058_v33 }
 0x484   :  { %v16733_v53 = vpack.c.bf16 %v1437_v8, %v1437_v8  ;;  %v16735_v52 = vpack.c.bf16 %v1440_v56, %v1440_v56  ;;  %v5050_v0 = vld [vmem:[#allocation2 + $0x130] sm:$0xff]  ;;  %v10689_v56 = vcombine.high %v5047_v1, %v5051_v3  ;;  %v10688_v12 = vcombine.low %v5047_v1, %v5051_v3  ;;  %v5139_v55 = vld [vmem:[#allocation2 + $0x3f8] sm:$0xff] }
 0x485   :  { %v10687_v20 = vcombine.high %v5046_v38, %v5050_v0  ;;  %v10686_v22 = vcombine.low %v5046_v38, %v5050_v0  ;;  %v5131_v38 = vld [vmem:[#allocation2 + $0x3b8] sm:$0xff] }
 0x486   :  { %7301 = vmatprep.mubr.bf16.mxu0 %v16735_v52  ;;  %7383 = vmatprep.mubr.bf16.mxu1 %v16735_v52 }
 0x487   :  { %7302 = vmatmul.mubr.bf16.vlgmr.msra.gmra.mxu0 %v16733_v53  ;;  %7384 = vmatmul.mubr.bf16.vlgmr.msra.gmra.mxu1 %v16733_v53 }
 0x488   :  { %7401 = vmatpush1.bf16.msra.mxu0 %v10804_v31  ;;  %7483 = vmatpush1.bf16.msra.mxu1 %v10806_v50  ;;  %v5042_v31 = vld [vmem:[#allocation2 + $0xf0] sm:$0xff] }
 0x489   :  { %7402 = vmatprep.subr.bf16.mxu0 %v10797_v61  ;;  %7484 = vmatprep.subr.bf16.mxu1 %v10799_v23  ;;  %v5039_v61 = vld [vmem:[#allocation2 + $0xd8] sm:$0xff] }
 0x48a   :  { %7424 = vmatprep.mubr.bf16.mxu0 %v18064_v14  ;;  %7506 = vmatprep.mubr.bf16.mxu1 %v18064_v14  ;;  %v5043_v23 = vld [vmem:[#allocation2 + $0xf8] sm:$0xff] }
 0x48c   :  { %7403 = vmatpush1.bf16.msra.mxu0 %v10796_v47  ;;  %7485 = vmatpush1.bf16.msra.mxu1 %v10798_v7  ;;  %v5030_v7 = vld [vmem:[#allocation2 + $0x90] sm:$0xff] }
 0x48d   :  { %7404 = vmatprep.subr.bf16.mxu0 %v10789_v36  ;;  %7486 = vmatprep.subr.bf16.mxu1 %v10791_v54  ;;  %v5034_v36 = vld [vmem:[#allocation2 + $0xb0] sm:$0xff] }
 0x48e   :  { %v10671_v6 = vcombine.high %v5030_v7, %v5034_v36  ;;  %v10670_v13 = vcombine.low %v5030_v7, %v5034_v36 }
 0x490   :  { %7405 = vmatpush1.bf16.msra.mxu0 %v10788_v46  ;;  %7487 = vmatpush1.bf16.msra.mxu1 %v10790_v35  ;;  %v10673_v46 = vcombine.high %v5031_v4, %v5035_v59  ;;  %v5022_v35 = vld [vmem:[#allocation2 + $0x50] sm:$0xff]  ;;  %v5115_v4 = vld [vmem:[#allocation2 + $0x338] sm:$0xff] }
 0x491   :  { %7406 = vmatprep.subr.bf16.mxu0 %v10781_v40  ;;  %7488 = vmatprep.subr.bf16.mxu1 %v10783_v25  ;;  %v5026_v40 = vld [vmem:[#allocation2 + $0x70] sm:$0xff]  ;;  %v5023_v25 = vld [vmem:[#allocation2 + $0x58] sm:$0xff] }
 0x492   :  { %v10663_v32 = vcombine.high %v5022_v35, %v5026_v40  ;;  %v10662_v45 = vcombine.low %v5022_v35, %v5026_v40  ;;  %v10664_v19 = vcombine.low %v5023_v25, %v5027_v43 }
 0x494   :  { %7407 = vmatpush1.bf16.msra.mxu0 %v10780_v15  ;;  %7489 = vmatpush1.bf16.msra.mxu1 %v10782_v42  ;;  %v10665_v15 = vcombine.high %v5023_v25, %v5027_v43  ;;  %v5014_v42 = vld [vmem:[#allocation2 + $0x10] sm:$0xff] }
 0x495   :  { %7433 = vmatprep.subr.bf16.mxu0 %v10711_v39  ;;  %7515 = vmatprep.subr.bf16.mxu1 %v10713_v41  ;;  %v5018_v39 = vld [vmem:[#allocation2 + $0x30] sm:$0xff]  ;;  %v5015_v41 = vld [vmem:[#allocation2 + $0x18] sm:$0xff] }
 0x496   :  { %v10655_v49 = vcombine.high %v5014_v42, %v5018_v39  ;;  %v10654_v33 = vcombine.low %v5014_v42, %v5018_v39  ;;  %v10656_v9 = vcombine.low %v5015_v41, %v5019_v2  ;;  %v5102_v25 = vld [vmem:[#allocation2 + $0x2d0] sm:$0xff] }
 0x497   :  { %10811 = vmatmul.mubr.msk.bf16.vlgmr.msra.gmra.mxu0 %vm1434_vm7, %v16643_v18  ;;  %10812 = vmatmul.mubr.msk.bf16.vlgmr.msra.gmra.mxu1 %vm1434_vm7, %v16643_v18  ;;  %v5106_v43 = vld [vmem:[#allocation2 + $0x2f0] sm:$0xff] }
 0x498   :  { %7434 = vmatpush1.bf16.msra.mxu0 %v10710_v21  ;;  %7465 = vmatprep.mubr.bf16.mxu0 %v16735_v52  ;;  %v10657_v21 = vcombine.high %v5015_v41, %v5019_v2  ;;  %v10743_v39 = vcombine.high %v5102_v25, %v5106_v43  ;;  %v5094_v2 = vld [vmem:[#allocation2 + $0x290] sm:$0xff] }
 0x499   :  { %7516 = vmatpush1.bf16.msra.mxu1 %v10712_v16  ;;  %7547 = vmatprep.mubr.bf16.mxu1 %v16735_v52  ;;  %v5038_v52 = vld [vmem:[#allocation2 + $0xd0] sm:$0xff] }
 0x49a   :  { %7435 = vmatprep.subr.bf16.mxu0 %v10703_v30  ;;  %7517 = vmatprep.subr.bf16.mxu1 %v10705_v28  ;;  %v10679_v47 = vcombine.high %v5038_v52, %v5042_v31  ;;  %v10678_v29 = vcombine.low %v5038_v52, %v5042_v31  ;;  %v5134_v16 = vld [vmem:[#allocation2 + $0x3d0] sm:$0xff]  ;;  %v5135_v28 = vld [vmem:[#allocation2 + $0x3d8] sm:$0xff] }
 0x49b   :  { %v5138_v30 = vld [vmem:[#allocation2 + $0x3f0] sm:$0xff]  ;;  %v10776_v1 = vcombine.low %v5135_v28, %v5139_v55  ;;  %v5123_v52 = vld [vmem:[#allocation2 + $0x378] sm:$0xff] }
 0x49c   :  { %7436 = vmatpush1.bf16.msra.mxu0 %v10702_v57  ;;  %v10775_v62 = vcombine.high %v5134_v16, %v5138_v30  ;;  %v10777_v57 = vcombine.high %v5135_v28, %v5139_v55  ;;  %v10774_v0 = vcombine.low %v5134_v16, %v5138_v30  ;;  %v5086_v55 = vld [vmem:[#allocation2 + $0x250] sm:$0xff] }
 0x49d   :  { %7518 = vmatpush1.bf16.msra.mxu1 %v10704_v51  ;;  %7437 = vmatprep.subr.bf16.mxu0 %v10695_v5  ;;  %v5126_v51 = vld [vmem:[#allocation2 + $0x390] sm:$0xff] }
 0x49e   :  { %7519 = vmatprep.subr.bf16.mxu1 %v10697_v26  ;;  %v5130_v5 = vld [vmem:[#allocation2 + $0x3b0] sm:$0xff]  ;;  %v5127_v26 = vld [vmem:[#allocation2 + $0x398] sm:$0xff] }
 0x49f   :  { %v10767_v3 = vcombine.high %v5126_v51, %v5130_v5  ;;  %v10766_v31 = vcombine.low %v5126_v51, %v5130_v5 }
 0x4a0   :  { %7438 = vmatpush1.bf16.msra.mxu0 %v10694_v10  ;;  %v10769_v10 = vcombine.high %v5127_v26, %v5131_v38 }
 0x4a1   :  { %7520 = vmatpush1.bf16.msra.mxu1 %v10696_v44  ;;  %7439 = vmatprep.subr.bf16.mxu0 %v10687_v20  ;;  %v5122_v44 = vld [vmem:[#allocation2 + $0x370] sm:$0xff] }
 0x4a2   :  { %7521 = vmatprep.subr.bf16.mxu1 %v10689_v56  ;;  %v5119_v56 = vld [vmem:[#allocation2 + $0x358] sm:$0xff] }
 0x4a3   :  { %v6336_v60 = vpop.f32.mrf.mxu0 }
 0x4a4   :  { %v16754_v8 = vadd.f32 %v16721_v11, %v6336_v60  ;;  %v10681_v11 = vcombine.high %v5039_v61, %v5043_v23  ;;  %7440 = vmatpush1.bf16.msra.mxu0 %v10686_v22  ;;  %v5118_v60 = vld [vmem:[#allocation2 + $0x350] sm:$0xff] }
 0x4a5   :  { %v6338_v50 = vpop.f32.mrf.mxu0  ;;  %7522 = vmatpush1.bf16.msra.mxu1 %v10688_v12  ;;  %7441 = vmatprep.subr.bf16.mxu0 %v10679_v47  ;;  %v10759_v22 = vcombine.high %v5118_v60, %v5122_v44  ;;  %v10761_v12 = vcombine.high %v5119_v56, %v5123_v52  ;;  %v5110_v47 = vld [vmem:[#allocation2 + $0x310] sm:$0xff] }
 0x4a6   :  { %v16757_v17 = vadd.f32 %v16723_v24, %v6338_v50  ;;  %v10680_v24 = vcombine.low %v5039_v61, %v5043_v23  ;;  %7523 = vmatprep.subr.bf16.mxu1 %v10681_v11  ;;  %v10768_v23 = vcombine.low %v5127_v26, %v5131_v38  ;;  %v5114_v11 = vld [vmem:[#allocation2 + $0x330] sm:$0xff] }
 0x4a7   :  { %v6340_v63 = vpop.f32.mrf.mxu0  ;;  %v10751_v35 = vcombine.high %v5110_v47, %v5114_v11  ;;  %v5078_v38 = vld [vmem:[#allocation2 + $0x210] sm:$0xff] }
 0x4a8   :  { %7442 = vmatpush1.bf16.msra.mxu0 %v10678_v29  ;;  %v10758_v29 = vcombine.low %v5118_v60, %v5122_v44 }
 0x4a9   :  { %v6341_v54 = vpop.f32.mrf.mxu0  ;;  %7524 = vmatpush1.bf16.msra.mxu1 %v10680_v24  ;;  %7443 = vmatprep.subr.bf16.mxu0 %v10671_v6 }
 0x4aa   :  { %7525 = vmatprep.subr.bf16.mxu1 %v10673_v46  ;;  %v5111_v54 = vld [vmem:[#allocation2 + $0x318] sm:$0xff]  ;;  %v10760_v46 = vcombine.low %v5119_v56, %v5123_v52 }
 0x4ab   :  { %v10753_v40 = vcombine.high %v5111_v54, %v5115_v4  ;;  %v10752_v42 = vcombine.low %v5111_v54, %v5115_v4  ;;  %v5167_v56 = vld [vmem:[#allocation2 + $0x4d8] sm:$0xff] }
 0x4ac   :  { %7444 = vmatpush1.bf16.msra.mxu0 %v10670_v13  ;;  %v5171_v52 = vld [vmem:[#allocation2 + $0x4f8] sm:$0xff] }
 0x4ad   :  { %7526 = vmatpush1.bf16.msra.mxu1 %v10672_v48  ;;  %7445 = vmatprep.subr.bf16.mxu0 %v10663_v32  ;;  %v5103_v48 = vld [vmem:[#allocation2 + $0x2d8] sm:$0xff] }
 0x4ae   :  { %7527 = vmatprep.subr.bf16.mxu1 %v10665_v15  ;;  %v5107_v32 = vld [vmem:[#allocation2 + $0x2f8] sm:$0xff]  ;;  %v10750_v15 = vcombine.low %v5110_v47, %v5114_v11  ;;  %v10808_v47 = vcombine.low %v5167_v56, %v5171_v52 }
 0x4af   :  { %v10745_v41 = vcombine.high %v5103_v48, %v5107_v32  ;;  %v10744_v16 = vcombine.low %v5103_v48, %v5107_v32  ;;  %v5155_v54 = vld [vmem:[#allocation2 + $0x478] sm:$0xff]  ;;  %v11287_v48 = vld [vmem:[#allocation7 + $0xe0] ss:$16 sps:$4 sm:$0xff]  }
 0x4b0   :  { %7446 = vmatpush1.bf16.msra.mxu0 %v10662_v45  ;;  %v5098_v45 = vld [vmem:[#allocation2 + $0x2b0] sm:$0xff] }
 0x4b1   :  { %7528 = vmatpush1.bf16.msra.mxu1 %v10664_v19  ;;  %7447 = vmatprep.subr.bf16.mxu0 %v10655_v49  ;;  %v5095_v19 = vld [vmem:[#allocation2 + $0x298] sm:$0xff]  ;;  %v10735_v30 = vcombine.high %v5094_v2, %v5098_v45  ;;  %v11290_v32 = vld [vmem:[#allocation7 + $0xc0] ss:$16 sps:$4 sm:$0xff]  }
 0x4b2   :  { %7529 = vmatprep.subr.bf16.mxu1 %v10657_v21  ;;  %v5099_v49 = vld [vmem:[#allocation2 + $0x2b8] sm:$0xff]  ;;  %v10742_v21 = vcombine.low %v5102_v25, %v5106_v43 }
 0x4b3   :  { %v10737_v28 = vcombine.high %v5095_v19, %v5099_v49  ;;  %v10736_v51 = vcombine.low %v5095_v19, %v5099_v49  ;;  %v11313_v19 = vld [vmem:[#allocation7 + $0x2a4] ss:$16 sps:$4 sm:$0xff]   ;;  %v11296_v49 = vld [vmem:[#allocation7 + $0x80] ss:$16 sps:$4 sm:$0xff]  }
 0x4b4   :  { %7448 = vmatpush1.bf16.msra.mxu0 %v10654_v33  ;;  %v5090_v33 = vld [vmem:[#allocation2 + $0x270] sm:$0xff] }
 0x4b5   :  { %7530 = vmatpush1.bf16.msra.mxu1 %v10656_v9  ;;  %7449 = vmatprep.subr.bf16.mxu0 %v10775_v62  ;;  %v5087_v9 = vld [vmem:[#allocation2 + $0x258] sm:$0xff]  ;;  %v10727_v5 = vcombine.high %v5086_v55, %v5090_v33 }
 0x4b6   :  { %7531 = vmatprep.subr.bf16.mxu1 %v10777_v57  ;;  %v5091_v62 = vld [vmem:[#allocation2 + $0x278] sm:$0xff]  ;;  %v10734_v57 = vcombine.low %v5094_v2, %v5098_v45  ;;  %v11305_v2 = vld [vmem:[#allocation7 + $0x2c0] ss:$16 sps:$4 sm:$0xff]   ;;  %v11298_v45 = vld [vmem:[#allocation7 + $0x84] ss:$16 sps:$4 sm:$0xff]  }
 0x4b7   :  { %v10729_v26 = vcombine.high %v5087_v9, %v5091_v62  ;;  %v10728_v60 = vcombine.low %v5087_v9, %v5091_v62  ;;  %v11316_v9 = vld [vmem:[#allocation7 + $0x24] ss:$16 sps:$4 sm:$0xff]   ;;  %v11323_v62 = vld [vmem:[#allocation7 + $0x260] ss:$16 sps:$4 sm:$0xff]  }
 0x4b8   :  { %7450 = vmatpush2.bf16.msra.mxu0 %v10774_v0  ;;  %v5082_v0 = vld [vmem:[#allocation2 + $0x230] sm:$0xff] }
 0x4b9   :  { %7532 = vmatpush2.bf16.msra.mxu1 %v10776_v1  ;;  %7451 = vmatprep.subr.bf16.mxu0 %v10767_v3  ;;  %v5079_v1 = vld [vmem:[#allocation2 + $0x218] sm:$0xff]  ;;  %v10719_v44 = vcombine.high %v5078_v38, %v5082_v0 }
 0x4ba   :  { %7533 = vmatprep.subr.bf16.mxu1 %v10769_v10  ;;  %v5083_v3 = vld [vmem:[#allocation2 + $0x238] sm:$0xff]  ;;  %v10726_v10 = vcombine.low %v5086_v55, %v5090_v33  ;;  %v11319_v55 = vld [vmem:[#allocation7 + $0x284] ss:$16 sps:$4 sm:$0xff]   ;;  %v11308_v33 = vld [vmem:[#allocation7 + $0x40] ss:$16 sps:$4 sm:$0xff]  }
 0x4bc   :  { %v6418_v20 = vpop.f32.mrf.mxu1  ;;  %7452 = vmatpush2.bf16.msra.mxu0 %v10766_v31  ;;  %v10718_v31 = vcombine.low %v5078_v38, %v5082_v0  ;;  %v11329_v38 = vld [vmem:[#allocation7 + $0x240] ss:$16 sps:$4 sm:$0xff]   ;;  %v11337_v0 = vld [vmem:[#allocation7 + $0x224] ss:$16 sps:$4 sm:$0xff]  }
 0x4bd   :  { %7534 = vmatpush2.bf16.msra.mxu1 %v10768_v23  ;;  %7453 = vmatprep.subr.bf16.mxu0 %v10759_v22  ;;  %v5159_v23 = vld [vmem:[#allocation2 + $0x498] sm:$0xff] }
 0x4be   :  { %v6459_v50 = vpop.f32.mrf.mxu0  ;;  %v6420_v61 = vpop.f32.mrf.mxu1  ;;  %7535 = vmatprep.subr.bf16.mxu1 %v10761_v12  ;;  %v5163_v22 = vld [vmem:[#allocation2 + $0x4b8] sm:$0xff] }
 0x4bf   :  { %v16759_v63 = vadd.f32 %v6459_v50, %v6418_v20  ;;  %v10721_v20 = vcombine.high %v5079_v1, %v5083_v3  ;;  %v10720_v50 = vcombine.low %v5079_v1, %v5083_v3  ;;  %v10801_v11 = vcombine.high %v5159_v23, %v5163_v22  ;;  %v11320_v1 = vld [vmem:[#allocation7] ss:$16 sps:$4 sm:$0xff]   ;;  %v11328_v3 = vld [vmem:[#allocation7 + $0x1e4] ss:$16 sps:$4 sm:$0xff]  }
 0x4c0   :  { %v6461_v7 = vpop.f32.mrf.mxu0  ;;  %v6422_v36 = vpop.f32.mrf.mxu1  ;;  %7454 = vmatpush2.bf16.msra.mxu0 %v10758_v29  ;;  %v10800_v29 = vcombine.low %v5159_v23, %v5163_v22  ;;  %v11355_v23 = vld [vmem:[#allocation7 + $0x3c4] ss:$16 sps:$4 sm:$0xff]   ;;  %v11338_v22 = vld [vmem:[#allocation7 + $0x1a0] ss:$16 sps:$4 sm:$0xff]  }
 0x4c1   :  { %v16761_v59 = vadd.f32 %v6461_v7, %v6420_v61  ;;  %7536 = vmatpush2.bf16.msra.mxu1 %v10760_v46  ;;  %7455 = vmatprep.subr.bf16.mxu0 %v10751_v35  ;;  %v10809_v61 = vcombine.high %v5167_v56, %v5171_v52  ;;  %v5151_v36 = vld [vmem:[#allocation2 + $0x458] sm:$0xff]  ;;  %v11341_v56 = vld [vmem:[#allocation7 + $0x200] ss:$16 sps:$4 sm:$0xff]   ;;  %v11349_v52 = vld [vmem:[#allocation7 + $0x3e4] ss:$16 sps:$4 sm:$0xff]  }
 0x4c2   :  { %v6463_v24 = vpop.f32.mrf.mxu0  ;;  %v6423_v6 = vpop.f32.mrf.mxu1  ;;  %7537 = vmatprep.subr.bf16.mxu1 %v10753_v40  ;;  %v5143_v46 = vld [vmem:[#allocation2 + $0x418] sm:$0xff]  ;;  %v10792_v40 = vcombine.low %v5151_v36, %v5155_v54 }
 0x4c3   :  { %v10793_v24 = vcombine.high %v5151_v36, %v5155_v54  ;;  %v5147_v35 = vld [vmem:[#allocation2 + $0x438] sm:$0xff]  ;;  %v11361_v36 = vld [vmem:[#allocation7 + $0x3a4] ss:$16 sps:$4 sm:$0xff]   ;;  %v11344_v54 = vld [vmem:[#allocation7 + $0x180] ss:$16 sps:$4 sm:$0xff]  }
 0x4c4   :  { %v6464_v13 = vpop.f32.mrf.mxu0  ;;  %7456 = vmatpush2.bf16.msra.mxu0 %v10750_v15  ;;  %v10785_v25 = vcombine.high %v5143_v46, %v5147_v35  ;;  %v10784_v43 = vcombine.low %v5143_v46, %v5147_v35  ;;  %v11299_v15 = vld [vmem:[#allocation7 + $0x2e0] ss:$16 sps:$4 sm:$0xff]   ;;  %v11358_v46 = vld [vmem:[#allocation7 + $0x144] ss:$16 sps:$4 sm:$0xff]  }
 0x4c5   :  { %7538 = vmatpush2.bf16.msra.mxu1 %v10752_v42  ;;  %7457 = vmatprep.subr.bf16.mxu0 %v10743_v39  ;;  %v11289_v13 = vld [vmem:[#allocation7 + $0xe4] ss:$16 sps:$4 sm:$0xff]   ;;  %v11365_v35 = vld [vmem:[#allocation7 + $0x380] ss:$16 sps:$4 sm:$0xff]  }
 0x4c6   :  { %7539 = vmatprep.subr.bf16.mxu1 %v10745_v41  ;;  %v11301_v42 = vld [vmem:[#allocation7 + $0x2e4] ss:$16 sps:$4 sm:$0xff]   ;;  %v11293_v41 = vld [vmem:[#allocation7 + $0xa0] ss:$16 sps:$4 sm:$0xff]  }
 0x4c7   :  { %v11307_v39 = vld [vmem:[#allocation7 + $0x2c4] ss:$16 sps:$4 sm:$0xff]  }
 0x4c8   :  { %7458 = vmatpush2.bf16.msra.mxu0 %v10742_v21  ;;  %v11304_v21 = vld [vmem:[#allocation7 + $0x64] ss:$16 sps:$4 sm:$0xff]  }
 0x4c9   :  { %7540 = vmatpush2.bf16.msra.mxu1 %v10744_v16  ;;  %7459 = vmatprep.subr.bf16.mxu0 %v10735_v30  ;;  %v11302_v16 = vld [vmem:[#allocation7 + $0x60] ss:$16 sps:$4 sm:$0xff]   ;;  %v11310_v30 = vld [vmem:[#allocation7 + $0x44] ss:$16 sps:$4 sm:$0xff]  }
 0x4ca   :  { %7541 = vmatprep.subr.bf16.mxu1 %v10737_v28  ;;  %v11317_v28 = vld [vmem:[#allocation7 + $0x280] ss:$16 sps:$4 sm:$0xff]  }
 0x4cc   :  { %7460 = vmatpush2.bf16.msra.mxu0 %v10734_v57  ;;  %v11325_v57 = vld [vmem:[#allocation7 + $0x264] ss:$16 sps:$4 sm:$0xff]  }
 0x4cd   :  { %7542 = vmatpush2.bf16.msra.mxu1 %v10736_v51  ;;  %7461 = vmatprep.subr.bf16.mxu0 %v10727_v5  ;;  %v11331_v51 = vld [vmem:[#allocation7 + $0x244] ss:$16 sps:$4 sm:$0xff]   ;;  %v11314_v5 = vld [vmem:[#allocation7 + $0x20] ss:$16 sps:$4 sm:$0xff]  }
 0x4ce   :  { %7543 = vmatprep.subr.bf16.mxu1 %v10729_v26  ;;  %v11322_v26 = vld [vmem:[#allocation7 + $0x4] ss:$16 sps:$4 sm:$0xff]  }
 0x4d0   :  { %7462 = vmatpush2.bf16.msra.mxu0 %v10726_v10  ;;  %v11335_v10 = vld [vmem:[#allocation7 + $0x220] ss:$16 sps:$4 sm:$0xff]  }
 0x4d1   :  { %7544 = vmatpush2.bf16.msra.mxu1 %v10728_v60  ;;  %7463 = vmatprep.subr.bf16.mxu0 %v10719_v44  ;;  %v11343_v60 = vld [vmem:[#allocation7 + $0x204] ss:$16 sps:$4 sm:$0xff]   ;;  %v11326_v44 = vld [vmem:[#allocation7 + $0x1e0] ss:$16 sps:$4 sm:$0xff]  }
 0x4d2   :  { %7545 = vmatprep.subr.bf16.mxu1 %v10721_v20  ;;  %v11334_v20 = vld [vmem:[#allocation7 + $0x1c4] ss:$16 sps:$4 sm:$0xff]  }
 0x4d4   :  { %7464 = vmatpush2.bf16.msra.mxu0 %v10718_v31  ;;  %v11332_v31 = vld [vmem:[#allocation7 + $0x1c0] ss:$16 sps:$4 sm:$0xff]  }
 0x4d5   :  { %7546 = vmatpush2.bf16.msra.mxu1 %v10720_v50  ;;  %7564 = vmatprep.subr.bf16.mxu0 %v10809_v61  ;;  %v11340_v50 = vld [vmem:[#allocation7 + $0x1a4] ss:$16 sps:$4 sm:$0xff]   ;;  %v11347_v61 = vld [vmem:[#allocation7 + $0x3e0] ss:$16 sps:$4 sm:$0xff]  }
 0x4d6   :  { %9366 = vmatprep.subr.bf16.mxu1 %v11301_v42  ;;  %v11368_v42 = vld [vmem:[#allocation7 + $0x100] ss:$16 sps:$4 sm:$0xff]  }
 0x4d7   :  { %7466 = vmatmul.mubr.bf16.vlgmr.msra.gmra.mxu0 %v16733_v53 }
 0x4d8   :  { %v16763_v12 = vpop.f32.mrf.mxu1  ;;  %7548 = vmatmul.mubr.bf16.vlgmr.msra.gmra.mxu1 %v16733_v53  ;;  %7565 = vmatpush1.bf16.msra.mxu0 %v10808_v47  ;;  %v11292_v53 = vld [vmem:[#allocation7 + $0xc4] ss:$16 sps:$4 sm:$0xff]  }
 0x4d9   :  { %7566 = vmatprep.subr.bf16.mxu0 %v10801_v11  ;;  %7588 = vmatprep.mubr.bf16.mxu0 %v18064_v14  ;;  %v11295_v14 = vld [vmem:[#allocation7 + $0xa4] ss:$16 sps:$4 sm:$0xff]   ;;  %v11353_v11 = vld [vmem:[#allocation7 + $0x3c0] ss:$16 sps:$4 sm:$0xff]  }
 0x4da   :  { %v16765_v7 = vpop.f32.mrf.mxu1  ;;  %9367 = vmatpush1.bf16.msra.mxu1 %v11299_v15  ;;  %v11346_v47 = vld [vmem:[#allocation7 + $0x184] ss:$16 sps:$4 sm:$0xff]  }
 0x4db   :  { %9368 = vmatprep.subr.bf16.mxu1 %v11307_v39  ;;  %v11379_v15 = vld [vmem:[#allocation7 + $0x324] ss:$16 sps:$4 sm:$0xff]   ;;  %v11377_v39 = vld [vmem:[#allocation7 + $0x320] ss:$16 sps:$4 sm:$0xff]  }
 0x4dc   :  { %v7348_v4 = vpop.f32.mrf.mxu1  ;;  %7567 = vmatpush1.bf16.msra.mxu0 %v10800_v29  ;;  %v11359_v29 = vld [vmem:[#allocation7 + $0x3a0] ss:$16 sps:$4 sm:$0xff]  }
 0x4dd   :  { %7568 = vmatprep.subr.bf16.mxu0 %v10793_v24  ;;  %v11352_v4 = vld [vmem:[#allocation7 + $0x164] ss:$16 sps:$4 sm:$0xff]  }
 0x4de   :  { %v7349_v6 = vpop.f32.mrf.mxu1  ;;  %9369 = vmatpush1.bf16.msra.mxu1 %v11305_v2  ;;  %v11367_v24 = vld [vmem:[#allocation7 + $0x384] ss:$16 sps:$4 sm:$0xff]  }
 0x4df   :  { %9370 = vmatprep.subr.bf16.mxu1 %v11313_v19  ;;  %v11350_v6 = vld [vmem:[#allocation7 + $0x160] ss:$16 sps:$4 sm:$0xff]   ;;  %v11382_v2 = vld [vmem:[#allocation7 + $0x304] ss:$16 sps:$4 sm:$0xff]  }
 0x4e0   :  { %7569 = vmatpush1.bf16.msra.mxu0 %v10792_v40  ;;  %v11373_v40 = vld [vmem:[#allocation7 + $0x364] ss:$16 sps:$4 sm:$0xff]  }
 0x4e1   :  { %7570 = vmatprep.subr.bf16.mxu0 %v10785_v25  ;;  %v11356_v25 = vld [vmem:[#allocation7 + $0x140] ss:$16 sps:$4 sm:$0xff]   ;;  %v11397_v19 = vld [vmem:[#allocation7 + $0x6e4] ss:$16 sps:$4 sm:$0xff]  }
 0x4e4   :  { %7571 = vmatpush1.bf16.msra.mxu0 %v10784_v43  ;;  %v11364_v43 = vld [vmem:[#allocation7 + $0x124] ss:$16 sps:$4 sm:$0xff]  }
 0x4e5   :  { %9325 = vmatprep.subr.bf16.mxu0 %v11289_v13  ;;  %v11371_v13 = vld [vmem:[#allocation7 + $0x360] ss:$16 sps:$4 sm:$0xff]  }
 0x4e7   :  { %10813 = vmatmul.mubr.msk.bf16.vlgmr.msra.gmra.mxu0 %vm1434_vm7, %v16643_v18  ;;  %v11311_v18 = vld [vmem:[#allocation7 + $0x2a0] ss:$16 sps:$4 sm:$0xff]  }
 0x4e8   :  { %9326 = vmatpush1.bf16.msra.mxu0 %v11287_v48  ;;  %9371 = vmatpush1.bf16.msra.mxu1 %v11311_v18  ;;  %v11376_v48 = vld [vmem:[#allocation7 + $0x344] ss:$16 sps:$4 sm:$0xff]  }
 0x4e9   :  { %9327 = vmatprep.subr.bf16.mxu0 %v11292_v53  ;;  %9372 = vmatprep.subr.bf16.mxu1 %v11319_v55  ;;  %v11362_v53 = vld [vmem:[#allocation7 + $0x120] ss:$16 sps:$4 sm:$0xff]  }
 0x4ec   :  { %9328 = vmatpush1.bf16.msra.mxu0 %v11290_v32  ;;  %9373 = vmatpush1.bf16.msra.mxu1 %v11317_v28  ;;  %v11370_v32 = vld [vmem:[#allocation7 + $0x104] ss:$16 sps:$4 sm:$0xff]  }
 0x4ed   :  { %9329 = vmatprep.subr.bf16.mxu0 %v11295_v14  ;;  %9374 = vmatprep.subr.bf16.mxu1 %v11325_v57  ;;  %v11374_v14 = vld [vmem:[#allocation7 + $0x340] ss:$16 sps:$4 sm:$0xff]  }
 0x4f0   :  { %9330 = vmatpush1.bf16.msra.mxu0 %v11293_v41  ;;  %9375 = vmatpush1.bf16.msra.mxu1 %v11323_v62  ;;  %v11385_v41 = vld [vmem:[#allocation7 + $0x4e4] ss:$16 sps:$4 sm:$0xff]  }
 0x4f1   :  { %9331 = vmatprep.subr.bf16.mxu0 %v11298_v45  ;;  %9376 = vmatprep.subr.bf16.mxu1 %v11331_v51  ;;  %v11380_v45 = vld [vmem:[#allocation7 + $0x300] ss:$16 sps:$4 sm:$0xff]  }
 0x4f4   :  { %9332 = vmatpush1.bf16.msra.mxu0 %v11296_v49  ;;  %9377 = vmatpush1.bf16.msra.mxu1 %v11329_v38  ;;  %v18076_v49 = vld [vmem:[#allocation12_spill] sm:$0xff] }
 0x4f5   :  { %9333 = vmatprep.subr.bf16.mxu0 %v11304_v21  ;;  %9378 = vmatprep.subr.bf16.mxu1 %v11337_v0  ;;  %v16773_v18 = vsub.s32 0, %v18076_v49  ;;  %v16778_v21 = vld [vmem:[%s17171_s8] sm:$0xff] }
 0x4f8   :  { %9334 = vmatpush1.bf16.msra.mxu0 %v11302_v16  ;;  %9379 = vmatpush1.bf16.msra.mxu1 %v11335_v10  ;;  %v16781_v16 = vsub.s32 1, %v18076_v49 }
 0x4f9   :  { %9335 = vmatprep.subr.bf16.mxu0 %v11310_v30  ;;  %9380 = vmatprep.subr.bf16.mxu1 %v11343_v60 }
 0x4fc   :  { %9336 = vmatpush1.bf16.msra.mxu0 %v11308_v33  ;;  %9381 = vmatpush1.bf16.msra.mxu1 %v11341_v56  ;;  %v7602_v33 = vrot.slane %v16778_v21, %v16773_v18  ;;  %v7609_v56 = vsub.s32 2, %v18076_v49 }
 0x4fd   :  { %9337 = vmatprep.subr.bf16.mxu0 %v11316_v9  ;;  %9382 = vmatprep.subr.bf16.mxu1 %v11349_v52 }
 0x500   :  { %9338 = vmatpush1.bf16.msra.mxu0 %v11314_v5  ;;  %9383 = vmatpush2.bf16.msra.mxu1 %v11347_v61  ;;  %v7606_v5 = vrot.slane %v16778_v21, %v16781_v16 }
 0x501   :  { %9339 = vmatprep.subr.bf16.mxu0 %v11322_v26  ;;  %9384 = vmatprep.subr.bf16.mxu1 %v11355_v23 }
 0x504   :  { %9340 = vmatpush1.bf16.msra.mxu0 %v11320_v1  ;;  %9385 = vmatpush2.bf16.msra.mxu1 %v11353_v11 }
 0x505   :  { %9341 = vmatprep.subr.bf16.mxu0 %v11328_v3  ;;  %9386 = vmatprep.subr.bf16.mxu1 %v11361_v36 }
 0x508   :  { %9342 = vmatpush2.bf16.msra.mxu0 %v11326_v44  ;;  %9387 = vmatpush2.bf16.msra.mxu1 %v11359_v29 }
 0x509   :  { %9343 = vmatprep.subr.bf16.mxu0 %v11334_v20  ;;  %9388 = vmatprep.subr.bf16.mxu1 %v11367_v24 }
 0x50c   :  { %9344 = vmatpush2.bf16.msra.mxu0 %v11332_v31  ;;  %9389 = vmatpush2.bf16.msra.mxu1 %v11365_v35  ;;  %v7613_v31 = vsub.s32 3, %v18076_v49 }
 0x50d   :  { %9345 = vmatprep.subr.bf16.mxu0 %v11340_v50  ;;  %9390 = vmatprep.subr.bf16.mxu1 %v11373_v40 }
 0x50e   :  { %v7614_v11 = vrot.slane %v16778_v21, %v7613_v31 }
 0x510   :  { %9346 = vmatpush2.bf16.msra.mxu0 %v11338_v22  ;;  %9391 = vmatpush2.bf16.msra.mxu1 %v11371_v13 }
 0x511   :  { %9347 = vmatprep.subr.bf16.mxu0 %v11346_v47  ;;  %9392 = vmatprep.subr.bf16.mxu1 %v11376_v48 }
 0x514   :  { %9348 = vmatpush2.bf16.msra.mxu0 %v11344_v54  ;;  %9393 = vmatpush2.bf16.msra.mxu1 %v11374_v14 }
 0x515   :  { %9349 = vmatprep.subr.bf16.mxu0 %v11352_v4  ;;  %9394 = vmatprep.subr.bf16.mxu1 %v11379_v15 }
 0x518   :  { %9350 = vmatpush2.bf16.msra.mxu0 %v11350_v6  ;;  %9395 = vmatpush2.bf16.msra.mxu1 %v11377_v39 }
 0x519   :  { %9351 = vmatprep.subr.bf16.mxu0 %v11358_v46  ;;  %9396 = vmatprep.subr.bf16.mxu1 %v11382_v2 }
 0x51c   :  { %9352 = vmatpush2.bf16.msra.mxu0 %v11356_v25  ;;  %9397 = vmatpush2.bf16.msra.mxu1 %v11380_v45 }
 0x51d   :  { %9353 = vmatprep.subr.bf16.mxu0 %v11364_v43  ;;  %9448 = vmatprep.subr.bf16.mxu1 %v11397_v19 }
 0x520   :  { %9354 = vmatpush2.bf16.msra.mxu0 %v11362_v53 }
 0x521   :  { %9355 = vmatprep.subr.bf16.mxu0 %v11370_v32 }
 0x524   :  { %9356 = vmatpush2.bf16.msra.mxu0 %v11368_v42 }
 0x525   :  { %9407 = vmatprep.subr.bf16.mxu0 %v11385_v41 }
 0x547   :  { %v7303_v30 = vpop.f32.mrf.mxu0  ;;  %v7385_v28 = vpop.f32.mrf.mxu1 }
 0x548   :  { %v7304_v55 = vadd.f32 %v7303_v30, %v16702_v58  ;;  %v7386_v50 = vadd.f32 %v7385_v28, %v16705_v37 }
 0x549   :  { %v7305_v9 = vpop.f32.mrf.mxu0  ;;  %v7387_v62 = vpop.f32.mrf.mxu1 }
 0x54a   :  { %v7345_v57 = vadd.f32 %v16763_v12, %v7304_v55  ;;  %v7306_v51 = vadd.f32 %v7305_v9, %v16710_v34  ;;  %v7388_v22 = vadd.f32 %v7387_v62, %v16713_v27 }
 0x54b   :  { %v7307_v26 = vpop.f32.mrf.mxu0  ;;  %v7389_v38 = vpop.f32.mrf.mxu1 }
 0x54c   :  { %v16790_v0 = vadd.f32 %v7602_v33, %v7345_v57  ;;  %v7347_v1 = vadd.f32 %v16765_v7, %v7306_v51  ;;  %v7610_v7 = vrot.slane %v16778_v21, %v7609_v56 }
 0x54d   :  { %v7308_v3 = vpop.f32.mrf.mxu0  ;;  %v7390_v58 = vpop.f32.mrf.mxu1 }
 0x54e   :  { %v7647_v10 = vand.u32 2147483647, %v16790_v0  ;;  %v16794_v60 = vadd.f32 %v7606_v5, %v7347_v1  ;;  %vm7695_vm1 = vcmp.ge.f32.partialorder %v16790_v0, 0.0 }
 0x550   :  { %v7655_v44 = vsub.f32 0.0, %v7647_v10  ;;  %v7648_v12 = vand.u32 2147483647, %v16794_v60  ;;  %vm7696_vm5 = vcmp.ge.f32.partialorder %v16794_v60, 0.0 }
 0x552   :  { %v7663_v20 = vmul.f32 1.442695, %v7655_v44  ;;  %v7656_v34 = vsub.f32 0.0, %v7648_v12 }
 0x554   :  { %12063 = vpow2.f32 %v7663_v20  ;;  %v7665_v52 = vmul.f32 1.442695, %v7656_v34 }
 0x556   :  { %12065 = vpow2.f32 %v7665_v52 }
 0x557   :  { %v7426_v61 = vpop.f32.mrf.mxu0  ;;  %v16803_v23 = vpop.f32.mrf.mxu1 }
 0x558   :  { %v7427_v47 = vadd.f32 %v7426_v61, %v7386_v50 }
 0x559   :  { %v7428_v36 = vpop.f32.mrf.mxu0  ;;  %v16809_v54 = vpop.f32.mrf.mxu1 }
 0x55a   :  { %v16811_v4 = vadd.f32 %v7610_v7, %v7427_v47  ;;  %v7429_v37 = vadd.f32 %v7428_v36, %v7388_v22  ;;  %v11383_v22 = vld [vmem:[#allocation7 + $0x4e0] ss:$16 sps:$4 sm:$0xff]  }
 0x55b   :  { %v7430_v29 = vpop.f32.mrf.mxu0  ;;  %v7512_v24 = vpop.f32.mrf.mxu1 }
 0x55c   :  { %v7649_v6 = vand.u32 2147483647, %v16811_v4  ;;  %v16814_v46 = vadd.f32 %v7614_v11, %v7429_v37  ;;  %vm7697_vm14 = vcmp.ge.f32.partialorder %v16811_v4, 0.0  ;;  %v11388_v11 = vld [vmem:[#allocation7 + $0x4c4] ss:$16 sps:$4 sm:$0xff]  }
 0x55d   :  { %v7431_v35 = vpop.f32.mrf.mxu0  ;;  %v7513_v40 = vpop.f32.mrf.mxu1  ;;  %v11391_v37 = vld [vmem:[#allocation7 + $0x4a4] ss:$16 sps:$4 sm:$0xff]   ;;  %v11389_v29 = vld [vmem:[#allocation7 + $0x4a0] ss:$16 sps:$4 sm:$0xff]  }
 0x55e   :  { %v7657_v27 = vsub.f32 0.0, %v7649_v6  ;;  %v7650_v25 = vand.u32 2147483647, %v16814_v46  ;;  %vm7698_vm7 = vcmp.ge.f32.partialorder %v16814_v46, 0.0  ;;  %v11394_v35 = vld [vmem:[#allocation7 + $0x484] ss:$16 sps:$4 sm:$0xff]  }
 0x560   :  { %v7667_v43 = vmul.f32 1.442695, %v7657_v27  ;;  %v7658_v13 = vsub.f32 0.0, %v7650_v25 }
 0x561   :  { %v12064_v48 = vpop.eup %12063 }
 0x562   :  { %v7679_v53 = vadd.f32 1.0, %v12064_v48  ;;  %v7703_v32 = vmul.f32 %v12064_v48, %v12064_v48  ;;  %12067 = vpow2.f32 %v7667_v43  ;;  %v7669_v14 = vmul.f32 1.442695, %v7658_v13  ;;  %v11392_v13 = vld [vmem:[#allocation7 + $0x480] ss:$16 sps:$4 sm:$0xff]  }
 0x563   :  { %v12066_v15 = vpop.eup %12065  ;;  %v11400_v48 = vld [vmem:[#allocation7 + $0x464] ss:$16 sps:$4 sm:$0xff]  }
 0x564   :  { %v7687_v42 = vmul.f32 %v7679_v53, %v7679_v53  ;;  %v7711_v39 = vsel %vm7695_vm1, %v7703_v32, 1.0  ;;  %12069 = vpow2.f32 %v7669_v14  ;;  %v7680_v41 = vadd.f32 1.0, %v12066_v15  ;;  %v11395_v32 = vld [vmem:[#allocation7 + $0x6e0] ss:$16 sps:$4 sm:$0xff]  }
 0x565   :  { %v7704_v2 = vmul.f32 %v12066_v15, %v12066_v15  ;;  %v11403_v15 = vld [vmem:[#allocation7 + $0x6c4] ss:$16 sps:$4 sm:$0xff]  }
 0x566   :  { %v7735_v45 = vadd.f32 %v7711_v39, %v7687_v42  ;;  %v7688_v19 = vmul.f32 %v7680_v41, %v7680_v41  ;;  %v7719_v57 = vsub.f32 %v7687_v42, %v7711_v39  ;;  %v11401_v42 = vld [vmem:[#allocation7 + $0x6c0] ss:$16 sps:$4 sm:$0xff]   ;;  %v11409_v39 = vld [vmem:[#allocation7 + $0x6a4] ss:$16 sps:$4 sm:$0xff]  }
 0x567   :  { %v7712_v30 = vsel %vm7696_vm5, %v7704_v2, 1.0  ;;  %v11404_v41 = vld [vmem:[#allocation7 + $0x440] ss:$16 sps:$4 sm:$0xff]   ;;  %v11412_v2 = vld [vmem:[#allocation7 + $0x424] ss:$16 sps:$4 sm:$0xff]  }
 0x568   :  { %12071 = vrcp.f32 %v7735_v45  ;;  %v7736_v28 = vadd.f32 %v7712_v30, %v7688_v19  ;;  %v7720_v51 = vsub.f32 %v7688_v19, %v7712_v30  ;;  %v7727_v12 = vmul.f32 %v7719_v57, %v16790_v0  ;;  %v11386_v0 = vld [vmem:[#allocation7 + $0x4c0] ss:$16 sps:$4 sm:$0xff]   ;;  %v11415_v19 = vld [vmem:[#allocation7 + $0x684] ss:$16 sps:$4 sm:$0xff]  }
 0x569   :  { %v11407_v45 = vld [vmem:[#allocation7 + $0x6a0] ss:$16 sps:$4 sm:$0xff]  }
 0x56a   :  { %12073 = vrcp.f32 %v7736_v28  ;;  %v7728_v34 = vmul.f32 %v7720_v51, %v16794_v60  ;;  %v11410_v30 = vld [vmem:[#allocation7 + $0x420] ss:$16 sps:$4 sm:$0xff]   ;;  %v11418_v28 = vld [vmem:[#allocation7 + $0x404] ss:$16 sps:$4 sm:$0xff]  }
 0x56b   :  { %v11416_v57 = vld [vmem:[#allocation7 + $0x400] ss:$16 sps:$4 sm:$0xff]  }
 0x56f   :  { %v12068_v55 = vpop.eup %12067 }
 0x570   :  { %v7681_v33 = vadd.f32 1.0, %v12068_v55  ;;  %v7705_v9 = vmul.f32 %v12068_v55, %v12068_v55  ;;  %v7617_v55 = vsub.s32 4, %v18076_v49 }
 0x571   :  { %v12070_v62 = vpop.eup %12069 }
 0x572   :  { %v7689_v5 = vmul.f32 %v7681_v33, %v7681_v33  ;;  %v7713_v26 = vsel %vm7697_vm14, %v7705_v9, 1.0  ;;  %v7682_v38 = vadd.f32 1.0, %v12070_v62  ;;  %v7706_v1 = vmul.f32 %v12070_v62, %v12070_v62  ;;  %v11413_v33 = vld [vmem:[#allocation7 + $0x680] ss:$16 sps:$4 sm:$0xff]   ;;  %v11421_v9 = vld [vmem:[#allocation7 + $0x664] ss:$16 sps:$4 sm:$0xff]  }
 0x573   :  { %v7621_v62 = vsub.s32 5, %v18076_v49 }
 0x574   :  { %v7737_v3 = vadd.f32 %v7713_v26, %v7689_v5  ;;  %v7690_v58 = vmul.f32 %v7682_v38, %v7682_v38  ;;  %v7714_v10 = vsel %vm7698_vm7, %v7706_v1, 1.0  ;;  %v7721_v36 = vsub.f32 %v7689_v5, %v7713_v26  ;;  %v11424_v5 = vld [vmem:[#allocation7 + $0x5e4] ss:$16 sps:$4 sm:$0xff]  }
 0x575   :  { %v12072_v44 = vpop.eup %12071  ;;  %v7618_v38 = vrot.slane %v16778_v21, %v7617_v55  ;;  %v11443_v55 = vld [vmem:[#allocation7 + $0x7e0] ss:$16 sps:$4 sm:$0xff]  }
 0x576   :  { %12075 = vrcp.f32 %v7737_v3  ;;  %v7738_v20 = vadd.f32 %v7714_v10, %v7690_v58  ;;  %v7751_v50 = vmul.f32 %v12072_v44, %v7727_v12  ;;  %v7722_v60 = vsub.f32 %v7690_v58, %v7714_v10  ;;  %v11419_v3 = vld [vmem:[#allocation7 + $0x660] ss:$16 sps:$4 sm:$0xff]   ;;  %v11427_v10 = vld [vmem:[#allocation7 + $0x644] ss:$16 sps:$4 sm:$0xff]  }
 0x577   :  { %v12074_v52 = vpop.eup %12073  ;;  %v7729_v6 = vmul.f32 %v7721_v36, %v16811_v4  ;;  %v11398_v4 = vld [vmem:[#allocation7 + $0x460] ss:$16 sps:$4 sm:$0xff]  }
 0x578   :  { %12077 = vrcp.f32 %v7738_v20  ;;  %v7752_v7 = vmul.f32 %v12074_v52, %v7728_v34  ;;  %v16825_v47 = vpack.c.bf16 %v7751_v50, %v7751_v50  ;;  %v7730_v40 = vmul.f32 %v7722_v60, %v16814_v46  ;;  %v11406_v46 = vld [vmem:[#allocation7 + $0x444] ss:$16 sps:$4 sm:$0xff]   ;;  %v11422_v52 = vld [vmem:[#allocation7 + $0x5e0] ss:$16 sps:$4 sm:$0xff]  }
 0x579   :  { %v7622_v20 = vrot.slane %v16778_v21, %v7621_v62 }
 0x57a   :  { %v16823_v61 = vpack.c.bf16 %v7752_v7, %v7752_v7 }
 0x57c   :  { %9357 = vmatprep.mubr.bf16.mxu0 %v16823_v61 }
 0x57d   :  { %9358 = vmatmul.mubr.bf16.vlgmr.msra.gmra.mxu0 %v16825_v47 }
 0x57e   :  { %9408 = vmatpush1.bf16.msra.mxu0 %v11383_v22 }
 0x57f   :  { %9409 = vmatprep.subr.bf16.mxu0 %v11388_v11 }
 0x582   :  { %9410 = vmatpush1.bf16.msra.mxu0 %v11386_v0  ;;  %v11425_v0 = vld [vmem:[#allocation7 + $0x640] ss:$16 sps:$4 sm:$0xff]  }
 0x583   :  { %v12076_v24 = vpop.eup %12075  ;;  %9411 = vmatprep.subr.bf16.mxu0 %v11391_v37 }
 0x584   :  { %v7753_v25 = vmul.f32 %v12076_v24, %v7729_v6  ;;  %v11436_v24 = vld [vmem:[#allocation7 + $0x5a4] ss:$16 sps:$4 sm:$0xff]  }
 0x585   :  { %v12078_v27 = vpop.eup %12077 }
 0x586   :  { %v7754_v43 = vmul.f32 %v12078_v27, %v7730_v40  ;;  %9412 = vmatpush1.bf16.msra.mxu0 %v11389_v29  ;;  %v16833_v14 = vpack.c.bf16 %v7753_v25, %v7753_v25  ;;  %v11428_v29 = vld [vmem:[#allocation7 + $0x5c0] ss:$16 sps:$4 sm:$0xff]   ;;  %v11439_v40 = vld [vmem:[#allocation7 + $0x604] ss:$16 sps:$4 sm:$0xff]  }
 0x587   :  { %9413 = vmatprep.subr.bf16.mxu0 %v11394_v35 }
 0x588   :  { %v16831_v53 = vpack.c.bf16 %v7754_v43, %v7754_v43  ;;  %v7625_v43 = vsub.s32 6, %v18076_v49 }
 0x58a   :  { %9398 = vmatprep.mubr.bf16.mxu1 %v16831_v53  ;;  %9414 = vmatpush1.bf16.msra.mxu0 %v11392_v13  ;;  %v11434_v13 = vld [vmem:[#allocation7 + $0x5a0] ss:$16 sps:$4 sm:$0xff]  }
 0x58b   :  { %9399 = vmatmul.mubr.bf16.vlgmr.msra.gmra.mxu1 %v16833_v14  ;;  %9415 = vmatprep.subr.bf16.mxu0 %v11400_v48  ;;  %v11442_v48 = vld [vmem:[#allocation7 + $0x584] ss:$16 sps:$4 sm:$0xff]  }
 0x58c   :  { %9449 = vmatpush1.bf16.msra.mxu1 %v11395_v32 }
 0x58d   :  { %9450 = vmatprep.subr.bf16.mxu1 %v11403_v15  ;;  %v7629_v15 = vsub.s32 7, %v18076_v49 }
 0x58e   :  { %9416 = vmatpush1.bf16.msra.mxu0 %v11398_v4  ;;  %v11437_v4 = vld [vmem:[#allocation7 + $0x600] ss:$16 sps:$4 sm:$0xff]  }
 0x58f   :  { %9417 = vmatprep.subr.bf16.mxu0 %v11406_v46  ;;  %v11445_v46 = vld [vmem:[#allocation7 + $0x7e4] ss:$16 sps:$4 sm:$0xff]  }
 0x590   :  { %9451 = vmatpush1.bf16.msra.mxu1 %v11401_v42 }
 0x591   :  { %9452 = vmatprep.subr.bf16.mxu1 %v11409_v39  ;;  %v7626_v39 = vrot.slane %v16778_v21, %v7625_v43  ;;  %v11472_v43 = vld [vmem:[#allocation7 + $0xec] ss:$16 sps:$4 sm:$0xff]  }
 0x592   :  { %9418 = vmatpush1.bf16.msra.mxu0 %v11404_v41  ;;  %v11440_v41 = vld [vmem:[#allocation7 + $0x580] ss:$16 sps:$4 sm:$0xff]  }
 0x593   :  { %9419 = vmatprep.subr.bf16.mxu0 %v11412_v2 }
 0x594   :  { %9453 = vmatpush1.bf16.msra.mxu1 %v11407_v45  ;;  %v11448_v45 = vld [vmem:[#allocation7 + $0x564] ss:$16 sps:$4 sm:$0xff]  }
 0x595   :  { %9454 = vmatprep.subr.bf16.mxu1 %v11415_v19 }
 0x596   :  { %9420 = vmatpush1.bf16.msra.mxu0 %v11410_v30 }
 0x597   :  { %v7467_v51 = vpop.f32.mrf.mxu0  ;;  %9421 = vmatprep.subr.bf16.mxu0 %v11418_v28  ;;  %v7630_v28 = vrot.slane %v16778_v21, %v7629_v15  ;;  %v11473_v15 = vld [vmem:[#allocation7 + $0x740] ss:$16 sps:$4 sm:$0xff]  }
 0x598   :  { %v7468_v26 = vadd.f32 %v7467_v51, %v16754_v8  ;;  %v7549_v1 = vpop.f32.mrf.mxu1  ;;  %9455 = vmatpush1.bf16.msra.mxu1 %v11413_v33  ;;  %v11430_v8 = vld [vmem:[#allocation7 + $0x5c4] ss:$16 sps:$4 sm:$0xff]  }
 0x599   :  { %v7469_v58 = vpop.f32.mrf.mxu0  ;;  %9456 = vmatprep.subr.bf16.mxu1 %v11421_v9  ;;  %v7550_v42 = vadd.f32 %v7549_v1, %v16759_v63  ;;  %v11451_v9 = vld [vmem:[#allocation7 + $0x7c4] ss:$16 sps:$4 sm:$0xff]  }
 0x59a   :  { %v7509_v44 = vadd.f32 %v16803_v23, %v7468_v26  ;;  %v7470_v12 = vadd.f32 %v7469_v58, %v16757_v17  ;;  %v7551_v34 = vpop.f32.mrf.mxu1  ;;  %9422 = vmatpush1.bf16.msra.mxu0 %v11416_v57  ;;  %v11433_v23 = vld [vmem:[#allocation7 + $0x624] ss:$16 sps:$4 sm:$0xff]   ;;  %v11446_v57 = vld [vmem:[#allocation7 + $0x560] ss:$16 sps:$4 sm:$0xff]  }
 0x59b   :  { %v7471_v50 = vpop.f32.mrf.mxu0  ;;  %9423 = vmatprep.subr.bf16.mxu0 %v11424_v5  ;;  %v7552_v19 = vadd.f32 %v7551_v34, %v16761_v59  ;;  %v11454_v5 = vld [vmem:[#allocation7 + $0x544] ss:$16 sps:$4 sm:$0xff]   ;;  %v11449_v59 = vld [vmem:[#allocation7 + $0x7c0] ss:$16 sps:$4 sm:$0xff]  }
 0x59c   :  { %v16844_v7 = vadd.f32 %v7618_v38, %v7509_v44  ;;  %v7511_v22 = vadd.f32 %v16809_v54, %v7470_v12  ;;  %v7553_v11 = vpop.f32.mrf.mxu1  ;;  %9457 = vmatpush1.bf16.msra.mxu1 %v11419_v3  ;;  %v11431_v54 = vld [vmem:[#allocation7 + $0x620] ss:$16 sps:$4 sm:$0xff]   ;;  %v11457_v1 = vld [vmem:[#allocation7 + $0x7a4] ss:$16 sps:$4 sm:$0xff]  }
 0x59d   :  { %v7472_v36 = vpop.f32.mrf.mxu0  ;;  %9458 = vmatprep.subr.bf16.mxu1 %v11427_v10  ;;  %v11452_v10 = vld [vmem:[#allocation7 + $0x540] ss:$16 sps:$4 sm:$0xff]   ;;  %v11460_v44 = vld [vmem:[#allocation7 + $0x524] ss:$16 sps:$4 sm:$0xff]  }
 0x59e   :  { %v7651_v17 = vand.u32 2147483647, %v16844_v7  ;;  %v16848_v37 = vadd.f32 %v7622_v20, %v7511_v22  ;;  %v7554_v60 = vpop.f32.mrf.mxu1  ;;  %9424 = vmatpush2.bf16.msra.mxu0 %v11422_v52  ;;  %v11455_v34 = vld [vmem:[#allocation7 + $0x7a0] ss:$16 sps:$4 sm:$0xff]   ;;  %v11463_v50 = vld [vmem:[#allocation7 + $0x784] ss:$16 sps:$4 sm:$0xff]  }
 0x59f   :  { %9425 = vmatprep.subr.bf16.mxu0 %v11430_v8  ;;  %vm7699_vm9 = vcmp.ge.f32.partialorder %v16844_v7, 0.0 }
 0x5a0   :  { %v7659_v6 = vsub.f32 0.0, %v7651_v17  ;;  %v7652_v35 = vand.u32 2147483647, %v16848_v37  ;;  %9459 = vmatpush1.bf16.msra.mxu1 %v11425_v0  ;;  %v11458_v0 = vld [vmem:[#allocation7 + $0x520] ss:$16 sps:$4 sm:$0xff]   ;;  %vm7700_vm8 = vcmp.ge.f32.partialorder %v16848_v37, 0.0 }
 0x5a1   :  { %9460 = vmatprep.subr.bf16.mxu1 %v11433_v23  ;;  %v11466_v23 = vld [vmem:[#allocation7 + $0x504] ss:$16 sps:$4 sm:$0xff]  }
 0x5a2   :  { %v7671_v27 = vmul.f32 1.442695, %v7659_v6  ;;  %v7660_v25 = vsub.f32 0.0, %v7652_v35  ;;  %9426 = vmatpush2.bf16.msra.mxu0 %v11428_v29  ;;  %v11461_v29 = vld [vmem:[#allocation7 + $0x780] ss:$16 sps:$4 sm:$0xff]  }
 0x5a3   :  { %9427 = vmatprep.subr.bf16.mxu0 %v11436_v24  ;;  %v11469_v6 = vld [vmem:[#allocation7 + $0x764] ss:$16 sps:$4 sm:$0xff]  }
 0x5a4   :  { %12079 = vpow2.f32 %v7671_v27  ;;  %v7673_v32 = vmul.f32 1.442695, %v7660_v25  ;;  %9461 = vmatpush1.bf16.msra.mxu1 %v11431_v54 }
 0x5a5   :  { %9462 = vmatprep.subr.bf16.mxu1 %v11439_v40  ;;  %v11464_v40 = vld [vmem:[#allocation7 + $0x500] ss:$16 sps:$4 sm:$0xff]  }
 0x5a6   :  { %12081 = vpow2.f32 %v7673_v32  ;;  %9428 = vmatpush2.bf16.msra.mxu0 %v11434_v13  ;;  %v11467_v13 = vld [vmem:[#allocation7 + $0x760] ss:$16 sps:$4 sm:$0xff]   ;;  %v11475_v32 = vld [vmem:[#allocation7 + $0x744] ss:$16 sps:$4 sm:$0xff]  }
 0x5a7   :  { %v7590_v2 = vpop.f32.mrf.mxu0  ;;  %9429 = vmatprep.subr.bf16.mxu0 %v11442_v48 }
 0x5a8   :  { %v7591_v30 = vadd.f32 %v7590_v2, %v7550_v42  ;;  %9463 = vmatpush1.bf16.msra.mxu1 %v11437_v4  ;;  %v11481_v4 = vld [vmem:[#allocation7 + $0x724] ss:$16 sps:$4 sm:$0xff]  }
 0x5a9   :  { %v7592_v33 = vpop.f32.mrf.mxu0  ;;  %9464 = vmatprep.subr.bf16.mxu1 %v11445_v46 }
 0x5aa   :  { %v16857_v62 = vadd.f32 %v7626_v39, %v7591_v30  ;;  %v7593_v63 = vadd.f32 %v7592_v33, %v7552_v19  ;;  %9430 = vmatpush2.bf16.msra.mxu0 %v11440_v41  ;;  %v11479_v41 = vld [vmem:[#allocation7 + $0x720] ss:$16 sps:$4 sm:$0xff]   ;;  %v11487_v30 = vld [vmem:[#allocation7 + $0x704] ss:$16 sps:$4 sm:$0xff]  }
 0x5ab   :  { %v7594_v51 = vpop.f32.mrf.mxu0  ;;  %9431 = vmatprep.subr.bf16.mxu0 %v11448_v45 }
 0x5ac   :  { %v7653_v26 = vand.u32 2147483647, %v16857_v62  ;;  %v16860_v38 = vadd.f32 %v7630_v28, %v7593_v63  ;;  %9465 = vmatpush2.bf16.msra.mxu1 %v11443_v55  ;;  %vm7701_vm13 = vcmp.ge.f32.partialorder %v16857_v62, 0.0 }
 0x5ad   :  { %v7595_v21 = vpop.f32.mrf.mxu0  ;;  %9466 = vmatprep.subr.bf16.mxu1 %v11451_v9 }
 0x5ae   :  { %v7661_v3 = vsub.f32 0.0, %v7653_v26  ;;  %v7654_v58 = vand.u32 2147483647, %v16860_v38  ;;  %9432 = vmatpush2.bf16.msra.mxu0 %v11446_v57  ;;  %vm7702_vm15 = vcmp.ge.f32.partialorder %v16860_v38, 0.0  ;;  %v11493_v21 = vld [vmem:[#allocation7 + $0x2ec] ss:$16 sps:$4 sm:$0xff]  }
 0x5af   :  { %9433 = vmatprep.subr.bf16.mxu0 %v11454_v5  ;;  %v11485_v5 = vld [vmem:[#allocation7 + $0x700] ss:$16 sps:$4 sm:$0xff]  }
 0x5b0   :  { %v7675_v12 = vmul.f32 1.442695, %v7661_v3  ;;  %v7662_v20 = vsub.f32 0.0, %v7654_v58  ;;  %9467 = vmatpush2.bf16.msra.mxu1 %v11449_v59 }
 0x5b1   :  { %v12080_v52 = vpop.eup %12079  ;;  %9468 = vmatprep.subr.bf16.mxu1 %v11457_v1 }
 0x5b2   :  { %v7683_v8 = vadd.f32 1.0, %v12080_v52  ;;  %v7707_v22 = vmul.f32 %v12080_v52, %v12080_v52  ;;  %12083 = vpow2.f32 %v7675_v12  ;;  %v7677_v11 = vmul.f32 1.442695, %v7662_v20  ;;  %9434 = vmatpush2.bf16.msra.mxu0 %v11452_v10  ;;  %v11470_v20 = vld [vmem:[#allocation7 + $0xe8] ss:$16 sps:$4 sm:$0xff]  }
 0x5b3   :  { %v12082_v36 = vpop.eup %12081  ;;  %9435 = vmatprep.subr.bf16.mxu0 %v11460_v44  ;;  %v11478_v52 = vld [vmem:[#allocation7 + $0xcc] ss:$16 sps:$4 sm:$0xff]  }
 0x5b4   :  { %v7691_v17 = vmul.f32 %v7683_v8, %v7683_v8  ;;  %v7715_v60 = vsel %vm7699_vm9, %v7707_v22, 1.0  ;;  %12085 = vpow2.f32 %v7677_v11  ;;  %9469 = vmatpush2.bf16.msra.mxu1 %v11455_v34  ;;  %v7684_v24 = vadd.f32 1.0, %v12082_v36  ;;  %v11482_v22 = vld [vmem:[#allocation7 + $0xa8] ss:$16 sps:$4 sm:$0xff]  }
 0x5b5   :  { %9470 = vmatprep.subr.bf16.mxu1 %v11463_v50  ;;  %v7708_v35 = vmul.f32 %v12082_v36, %v12082_v36  ;;  %v11484_v50 = vld [vmem:[#allocation7 + $0xac] ss:$16 sps:$4 sm:$0xff]  }
 0x5b6   :  { %v7739_v54 = vadd.f32 %v7715_v60, %v7691_v17  ;;  %9436 = vmatpush2.bf16.msra.mxu0 %v11458_v0  ;;  %v7692_v27 = vmul.f32 %v7684_v24, %v7684_v24  ;;  %v7723_v45 = vsub.f32 %v7691_v17, %v7715_v60  ;;  %v11490_v36 = vld [vmem:[#allocation7 + $0x8c] ss:$16 sps:$4 sm:$0xff]  }
 0x5b7   :  { %9437 = vmatprep.subr.bf16.mxu0 %v11466_v23  ;;  %v7716_v25 = vsel %vm7700_vm8, %v7708_v35, 1.0  ;;  %v11491_v35 = vld [vmem:[#allocation7 + $0x2e8] ss:$16 sps:$4 sm:$0xff]  }
 0x5b8   :  { %12087 = vrcp.f32 %v7739_v54  ;;  %9471 = vmatpush2.bf16.msra.mxu1 %v11461_v29  ;;  %v7740_v48 = vadd.f32 %v7716_v25, %v7692_v27  ;;  %v7724_v19 = vsub.f32 %v7692_v27, %v7716_v25  ;;  %v7731_v59 = vmul.f32 %v7723_v45, %v16844_v7  ;;  %v11476_v7 = vld [vmem:[#allocation7 + $0xc8] ss:$16 sps:$4 sm:$0xff]   ;;  %v11505_v25 = vld [vmem:[#allocation7 + $0x2ac] ss:$16 sps:$4 sm:$0xff]  }
 0x5b9   :  { %9472 = vmatprep.subr.bf16.mxu1 %v11469_v6  ;;  %v11488_v29 = vld [vmem:[#allocation7 + $0x88] ss:$16 sps:$4 sm:$0xff]  }
 0x5ba   :  { %9438 = vmatpush2.bf16.msra.mxu0 %v11464_v40  ;;  %12089 = vrcp.f32 %v7740_v48  ;;  %v7732_v3 = vmul.f32 %v7724_v19, %v16848_v37  ;;  %v11499_v40 = vld [vmem:[#allocation7 + $0x2cc] ss:$16 sps:$4 sm:$0xff]   ;;  %v11497_v27 = vld [vmem:[#allocation7 + $0x2c8] ss:$16 sps:$4 sm:$0xff]  }
 0x5bb   :  { %9489 = vmatprep.subr.bf16.mxu0 %v11472_v43  ;;  %v11500_v43 = vld [vmem:[#allocation7 + $0x48] ss:$16 sps:$4 sm:$0xff]   ;;  %v11526_v19 = vld [vmem:[#allocation7 + $0x1cc] ss:$16 sps:$4 sm:$0xff]  }
 0x5bc   :  { %9473 = vmatpush2.bf16.msra.mxu1 %v11467_v13  ;;  %v11508_v13 = vld [vmem:[#allocation7 + $0x2c] ss:$16 sps:$4 sm:$0xff]   ;;  %v11503_v48 = vld [vmem:[#allocation7 + $0x2a8] ss:$16 sps:$4 sm:$0xff]  }
 0x5bd   :  { %9474 = vmatprep.subr.bf16.mxu1 %v11475_v32  ;;  %v11511_v32 = vld [vmem:[#allocation7 + $0x28c] ss:$16 sps:$4 sm:$0xff]   ;;  %v11518_v45 = vld [vmem:[#allocation7 + $0x1e8] ss:$16 sps:$4 sm:$0xff]  }
 0x5bf   :  { %v12084_v46 = vpop.eup %12083 }
 0x5c0   :  { %v7685_v42 = vadd.f32 1.0, %v12084_v46  ;;  %v7709_v39 = vmul.f32 %v12084_v46, %v12084_v46  ;;  %9475 = vmatpush2.bf16.msra.mxu1 %v11473_v15  ;;  %v11506_v15 = vld [vmem:[#allocation7 + $0x28] ss:$16 sps:$4 sm:$0xff]  }
 0x5c1   :  { %v12086_v2 = vpop.eup %12085  ;;  %9476 = vmatprep.subr.bf16.mxu1 %v11481_v4  ;;  %v11514_v4 = vld [vmem:[#allocation7 + $0xc] ss:$16 sps:$4 sm:$0xff]   ;;  %v11509_v46 = vld [vmem:[#allocation7 + $0x288] ss:$16 sps:$4 sm:$0xff]  }
 0x5c2   :  { %v7693_v28 = vmul.f32 %v7685_v42, %v7685_v42  ;;  %v7717_v55 = vsel %vm7701_vm13, %v7709_v39, 1.0  ;;  %v7686_v33 = vadd.f32 1.0, %v12086_v2  ;;  %v7710_v9 = vmul.f32 %v12086_v2, %v12086_v2  ;;  %v11517_v42 = vld [vmem:[#allocation7 + $0x26c] ss:$16 sps:$4 sm:$0xff]  }
 0x5c3   :  { %v11520_v39 = vld [vmem:[#allocation7 + $0x1ec] ss:$16 sps:$4 sm:$0xff]  }
 0x5c4   :  { %v7741_v63 = vadd.f32 %v7717_v55, %v7693_v28  ;;  %v7694_v57 = vmul.f32 %v7686_v33, %v7686_v33  ;;  %v7718_v51 = vsel %vm7702_vm15, %v7710_v9, 1.0  ;;  %9477 = vmatpush2.bf16.msra.mxu1 %v11479_v41  ;;  %v7725_v37 = vsub.f32 %v7693_v28, %v7717_v55  ;;  %v11515_v41 = vld [vmem:[#allocation7 + $0x268] ss:$16 sps:$4 sm:$0xff]   ;;  %v11523_v2 = vld [vmem:[#allocation7 + $0x24c] ss:$16 sps:$4 sm:$0xff]  }
 0x5c5   :  { %v12088_v26 = vpop.eup %12087  ;;  %9478 = vmatprep.subr.bf16.mxu1 %v11487_v30  ;;  %v11521_v30 = vld [vmem:[#allocation7 + $0x248] ss:$16 sps:$4 sm:$0xff]   ;;  %v11529_v28 = vld [vmem:[#allocation7 + $0x22c] ss:$16 sps:$4 sm:$0xff]  }
 0x5c6   :  { %12091 = vrcp.f32 %v7741_v63  ;;  %v7742_v1 = vadd.f32 %v7718_v51, %v7694_v57  ;;  %v7755_v10 = vmul.f32 %v12088_v26, %v7731_v59  ;;  %v7726_v8 = vsub.f32 %v7694_v57, %v7718_v51  ;;  %v11524_v55 = vld [vmem:[#allocation7 + $0x1c8] ss:$16 sps:$4 sm:$0xff]   ;;  %v11532_v33 = vld [vmem:[#allocation7 + $0x1ac] ss:$16 sps:$4 sm:$0xff]  }
 0x5c7   :  { %v12090_v58 = vpop.eup %12089  ;;  %v7733_v0 = vmul.f32 %v7725_v37, %v16857_v62  ;;  %v11494_v62 = vld [vmem:[#allocation7 + $0x68] ss:$16 sps:$4 sm:$0xff]   ;;  %v11535_v63 = vld [vmem:[#allocation7 + $0x20c] ss:$16 sps:$4 sm:$0xff]  }
 0x5c8   :  { %12093 = vrcp.f32 %v7742_v1  ;;  %v7756_v44 = vmul.f32 %v12090_v58, %v7732_v3  ;;  %9479 = vmatpush2.bf16.msra.mxu1 %v11485_v5  ;;  %v16871_v34 = vpack.c.bf16 %v7755_v10, %v7755_v10  ;;  %v7734_v23 = vmul.f32 %v7726_v8, %v16860_v38  ;;  %v11502_v38 = vld [vmem:[#allocation7 + $0x4c] ss:$16 sps:$4 sm:$0xff]   ;;  %v11527_v9 = vld [vmem:[#allocation7 + $0x228] ss:$16 sps:$4 sm:$0xff]  }
 0x5c9   :  { %9530 = vmatprep.subr.bf16.mxu1 %v11493_v21  ;;  %v11530_v57 = vld [vmem:[#allocation7 + $0x1a8] ss:$16 sps:$4 sm:$0xff]   ;;  %v11538_v51 = vld [vmem:[#allocation7 + $0x18c] ss:$16 sps:$4 sm:$0xff]  }
 0x5ca   :  { %v16869_v12 = vpack.c.bf16 %v7756_v44, %v7756_v44  ;;  %v11533_v5 = vld [vmem:[#allocation7 + $0x208] ss:$16 sps:$4 sm:$0xff]   ;;  %v11541_v26 = vld [vmem:[#allocation7 + $0x3ec] ss:$16 sps:$4 sm:$0xff]  }
 0x5cb   :  { %v11536_v59 = vld [vmem:[#allocation7 + $0x188] ss:$16 sps:$4 sm:$0xff]   ;;  %v11544_v21 = vld [vmem:[#allocation7 + $0x16c] ss:$16 sps:$4 sm:$0xff]  }
 0x5cc   :  { %9439 = vmatprep.mubr.bf16.mxu0 %v16869_v12  ;;  %v11539_v1 = vld [vmem:[#allocation7 + $0x3e8] ss:$16 sps:$4 sm:$0xff]   ;;  %v11547_v3 = vld [vmem:[#allocation7 + $0x3cc] ss:$16 sps:$4 sm:$0xff]  }
 0x5cd   :  { %9440 = vmatmul.mubr.bf16.vlgmr.msra.gmra.mxu0 %v16871_v34  ;;  %v11542_v58 = vld [vmem:[#allocation7 + $0x168] ss:$16 sps:$4 sm:$0xff]   ;;  %v11550_v10 = vld [vmem:[#allocation7 + $0x14c] ss:$16 sps:$4 sm:$0xff]  }
 0x5ce   :  { %9490 = vmatpush1.bf16.msra.mxu0 %v11470_v20  ;;  %9521 = vmatprep.mubr.bf16.mxu0 %v16823_v61  ;;  %v11496_v61 = vld [vmem:[#allocation7 + $0x6c] ss:$16 sps:$4 sm:$0xff]   ;;  %v11545_v44 = vld [vmem:[#allocation7 + $0x3c8] ss:$16 sps:$4 sm:$0xff]  }
 0x5cf   :  { %9491 = vmatprep.subr.bf16.mxu0 %v11478_v52  ;;  %v11553_v20 = vld [vmem:[#allocation7 + $0x3ac] ss:$16 sps:$4 sm:$0xff]   ;;  %v11548_v52 = vld [vmem:[#allocation7 + $0x148] ss:$16 sps:$4 sm:$0xff]  }
 0x5d0   :  { %v11551_v37 = vld [vmem:[#allocation7 + $0x3a8] ss:$16 sps:$4 sm:$0xff]  }
 0x5d1   :  { %v11554_v8 = vld [vmem:[#allocation7 + $0x128] ss:$16 sps:$4 sm:$0xff]  }
 0x5d2   :  { %9492 = vmatpush1.bf16.msra.mxu0 %v11476_v7  ;;  %v11556_v7 = vld [vmem:[#allocation7 + $0x12c] ss:$16 sps:$4 sm:$0xff]  }
 0x5d3   :  { %v12092_v11 = vpop.eup %12091  ;;  %9493 = vmatprep.subr.bf16.mxu0 %v11484_v50  ;;  %v11559_v50 = vld [vmem:[#allocation7 + $0x38c] ss:$16 sps:$4 sm:$0xff]  }
 0x5d4   :  { %v7757_v60 = vmul.f32 %v12092_v11, %v7733_v0  ;;  %v11557_v11 = vld [vmem:[#allocation7 + $0x388] ss:$16 sps:$4 sm:$0xff]   ;;  %v11565_v0 = vld [vmem:[#allocation7 + $0x36c] ss:$16 sps:$4 sm:$0xff]  }
 0x5d5   :  { %v12094_v17 = vpop.eup %12093 }
 0x5d6   :  { %9494 = vmatpush1.bf16.msra.mxu0 %v11482_v22  ;;  %v7758_v24 = vmul.f32 %v12094_v17, %v7734_v23  ;;  %v16880_v54 = vpack.c.bf16 %v7757_v60, %v7757_v60  ;;  %v11562_v22 = vld [vmem:[#allocation7 + $0x10c] ss:$16 sps:$4 sm:$0xff]   ;;  %v11563_v17 = vld [vmem:[#allocation7 + $0x368] ss:$16 sps:$4 sm:$0xff]  }
 0x5d7   :  { %9495 = vmatprep.subr.bf16.mxu0 %v11490_v36  ;;  %v11560_v36 = vld [vmem:[#allocation7 + $0x108] ss:$16 sps:$4 sm:$0xff]   ;;  %v11568_v23 = vld [vmem:[#allocation7 + $0x4ec] ss:$16 sps:$4 sm:$0xff]  }
 0x5d8   :  { %v16878_v6 = vpack.c.bf16 %v7758_v24, %v7758_v24  ;;  %v11571_v60 = vld [vmem:[#allocation7 + $0x34c] ss:$16 sps:$4 sm:$0xff]  }
 0x5d9   :  { %v11574_v24 = vld [vmem:[#allocation7 + $0x4cc] ss:$16 sps:$4 sm:$0xff]  }
 0x5da   :  { %9496 = vmatpush1.bf16.msra.mxu0 %v11488_v29  ;;  %9480 = vmatprep.mubr.bf16.mxu1 %v16878_v6  ;;  %v11566_v29 = vld [vmem:[#allocation7 + $0x4e8] ss:$16 sps:$4 sm:$0xff]  }
 0x5db   :  { %9481 = vmatmul.mubr.bf16.vlgmr.msra.gmra.mxu1 %v16880_v54  ;;  %9497 = vmatprep.subr.bf16.mxu0 %v11496_v61  ;;  %v11569_v61 = vld [vmem:[#allocation7 + $0x348] ss:$16 sps:$4 sm:$0xff]  }
 0x5dc   :  { %9531 = vmatpush1.bf16.msra.mxu1 %v11491_v35  ;;  %9562 = vmatprep.mubr.bf16.mxu1 %v16831_v53  ;;  %v11512_v53 = vld [vmem:[#allocation7 + $0x8] ss:$16 sps:$4 sm:$0xff]   ;;  %v11577_v35 = vld [vmem:[#allocation7 + $0x32c] ss:$16 sps:$4 sm:$0xff]  }
 0x5dd   :  { %9532 = vmatprep.subr.bf16.mxu1 %v11499_v40  ;;  %v11572_v40 = vld [vmem:[#allocation7 + $0x4c8] ss:$16 sps:$4 sm:$0xff]  }
 0x5de   :  { %9498 = vmatpush1.bf16.msra.mxu0 %v11494_v62  ;;  %v11580_v62 = vld [vmem:[#allocation7 + $0x4ac] ss:$16 sps:$4 sm:$0xff]  }
 0x5df   :  { %9499 = vmatprep.subr.bf16.mxu0 %v11502_v38  ;;  %v11575_v38 = vld [vmem:[#allocation7 + $0x328] ss:$16 sps:$4 sm:$0xff]  }
 0x5e0   :  { %9533 = vmatpush1.bf16.msra.mxu1 %v11497_v27  ;;  %v11583_v27 = vld [vmem:[#allocation7 + $0x30c] ss:$16 sps:$4 sm:$0xff]  }
 0x5e1   :  { %9534 = vmatprep.subr.bf16.mxu1 %v11505_v25  ;;  %v11578_v25 = vld [vmem:[#allocation7 + $0x4a8] ss:$16 sps:$4 sm:$0xff]  }
 0x5e2   :  { %9500 = vmatpush1.bf16.msra.mxu0 %v11500_v43  ;;  %v11586_v43 = vld [vmem:[#allocation7 + $0x48c] ss:$16 sps:$4 sm:$0xff]  }
 0x5e3   :  { %9501 = vmatprep.subr.bf16.mxu0 %v11508_v13  ;;  %v11581_v13 = vld [vmem:[#allocation7 + $0x308] ss:$16 sps:$4 sm:$0xff]  }
 0x5e4   :  { %9535 = vmatpush1.bf16.msra.mxu1 %v11503_v48  ;;  %v11584_v48 = vld [vmem:[#allocation7 + $0x488] ss:$16 sps:$4 sm:$0xff]  }
 0x5e5   :  { %9536 = vmatprep.subr.bf16.mxu1 %v11511_v32  ;;  %v11592_v32 = vld [vmem:[#allocation7 + $0x46c] ss:$16 sps:$4 sm:$0xff]  }
 0x5e6   :  { %9502 = vmatpush1.bf16.msra.mxu0 %v11506_v15  ;;  %v11595_v15 = vld [vmem:[#allocation7 + $0x6cc] ss:$16 sps:$4 sm:$0xff]  }
 0x5e7   :  { %9503 = vmatprep.subr.bf16.mxu0 %v11514_v4  ;;  %v11590_v4 = vld [vmem:[#allocation7 + $0x468] ss:$16 sps:$4 sm:$0xff]  }
 0x5e8   :  { %9537 = vmatpush1.bf16.msra.mxu1 %v11509_v46  ;;  %v11598_v46 = vld [vmem:[#allocation7 + $0x44c] ss:$16 sps:$4 sm:$0xff]  }
 0x5e9   :  { %9538 = vmatprep.subr.bf16.mxu1 %v11517_v42  ;;  %v11593_v42 = vld [vmem:[#allocation7 + $0x6c8] ss:$16 sps:$4 sm:$0xff]  }
 0x5ea   :  { %9504 = vmatpush1.bf16.msra.mxu0 %v11512_v53  ;;  %v11601_v53 = vld [vmem:[#allocation7 + $0x6ac] ss:$16 sps:$4 sm:$0xff]  }
 0x5eb   :  { %9505 = vmatprep.subr.bf16.mxu0 %v11520_v39  ;;  %v11596_v39 = vld [vmem:[#allocation7 + $0x448] ss:$16 sps:$4 sm:$0xff]  }
 0x5ec   :  { %9539 = vmatpush1.bf16.msra.mxu1 %v11515_v41  ;;  %v11604_v41 = vld [vmem:[#allocation7 + $0x42c] ss:$16 sps:$4 sm:$0xff]  }
 0x5ed   :  { %9540 = vmatprep.subr.bf16.mxu1 %v11523_v2  ;;  %v11599_v2 = vld [vmem:[#allocation7 + $0x6a8] ss:$16 sps:$4 sm:$0xff]  }
 0x5ee   :  { %9506 = vmatpush2.bf16.msra.mxu0 %v11518_v45  ;;  %v11607_v45 = vld [vmem:[#allocation7 + $0x68c] ss:$16 sps:$4 sm:$0xff]  }
 0x5ef   :  { %9507 = vmatprep.subr.bf16.mxu0 %v11526_v19  ;;  %v11602_v19 = vld [vmem:[#allocation7 + $0x428] ss:$16 sps:$4 sm:$0xff]  }
 0x5f0   :  { %9541 = vmatpush1.bf16.msra.mxu1 %v11521_v30  ;;  %v11605_v30 = vld [vmem:[#allocation7 + $0x688] ss:$16 sps:$4 sm:$0xff]  }
 0x5f1   :  { %9542 = vmatprep.subr.bf16.mxu1 %v11529_v28  ;;  %v11613_v28 = vld [vmem:[#allocation7 + $0x66c] ss:$16 sps:$4 sm:$0xff]  }
 0x5f2   :  { %9508 = vmatpush2.bf16.msra.mxu0 %v11524_v55  ;;  %v11616_v55 = vld [vmem:[#allocation7 + $0x5ec] ss:$16 sps:$4 sm:$0xff]  }
 0x5f3   :  { %9509 = vmatprep.subr.bf16.mxu0 %v11532_v33  ;;  %v11611_v33 = vld [vmem:[#allocation7 + $0x668] ss:$16 sps:$4 sm:$0xff]  }
 0x5f4   :  { %9543 = vmatpush1.bf16.msra.mxu1 %v11527_v9  ;;  %v11619_v9 = vld [vmem:[#allocation7 + $0x64c] ss:$16 sps:$4 sm:$0xff]  }
 0x5f5   :  { %9544 = vmatprep.subr.bf16.mxu1 %v11535_v63  ;;  %v11614_v63 = vld [vmem:[#allocation7 + $0x5e8] ss:$16 sps:$4 sm:$0xff]  }
 0x5f6   :  { %9510 = vmatpush2.bf16.msra.mxu0 %v11530_v57  ;;  %v11622_v57 = vld [vmem:[#allocation7 + $0x5cc] ss:$16 sps:$4 sm:$0xff]  }
 0x5f7   :  { %9511 = vmatprep.subr.bf16.mxu0 %v11538_v51  ;;  %v11617_v51 = vld [vmem:[#allocation7 + $0x648] ss:$16 sps:$4 sm:$0xff]  }
 0x5f8   :  { %9545 = vmatpush1.bf16.msra.mxu1 %v11533_v5  ;;  %v11625_v5 = vld [vmem:[#allocation7 + $0x62c] ss:$16 sps:$4 sm:$0xff]  }
 0x5f9   :  { %9546 = vmatprep.subr.bf16.mxu1 %v11541_v26  ;;  %v11620_v26 = vld [vmem:[#allocation7 + $0x5c8] ss:$16 sps:$4 sm:$0xff]  }
 0x5fa   :  { %9512 = vmatpush2.bf16.msra.mxu0 %v11536_v59  ;;  %v11628_v59 = vld [vmem:[#allocation7 + $0x5ac] ss:$16 sps:$4 sm:$0xff]  }
 0x5fb   :  { %9513 = vmatprep.subr.bf16.mxu0 %v11544_v21  ;;  %v11623_v21 = vld [vmem:[#allocation7 + $0x628] ss:$16 sps:$4 sm:$0xff]  }
 0x5fc   :  { %9547 = vmatpush2.bf16.msra.mxu1 %v11539_v1  ;;  %v11631_v1 = vld [vmem:[#allocation7 + $0x60c] ss:$16 sps:$4 sm:$0xff]  }
 0x5fd   :  { %9548 = vmatprep.subr.bf16.mxu1 %v11547_v3  ;;  %v11626_v3 = vld [vmem:[#allocation7 + $0x5a8] ss:$16 sps:$4 sm:$0xff]  }
 0x5fe   :  { %9514 = vmatpush2.bf16.msra.mxu0 %v11542_v58  ;;  %v11634_v58 = vld [vmem:[#allocation7 + $0x58c] ss:$16 sps:$4 sm:$0xff]  }
 0x5ff   :  { %9515 = vmatprep.subr.bf16.mxu0 %v11550_v10  ;;  %v11629_v10 = vld [vmem:[#allocation7 + $0x608] ss:$16 sps:$4 sm:$0xff]  }
 0x600   :  { %9549 = vmatpush2.bf16.msra.mxu1 %v11545_v44  ;;  %v11637_v44 = vld [vmem:[#allocation7 + $0x7ec] ss:$16 sps:$4 sm:$0xff]  }
 0x601   :  { %9550 = vmatprep.subr.bf16.mxu1 %v11553_v20  ;;  %v11632_v20 = vld [vmem:[#allocation7 + $0x588] ss:$16 sps:$4 sm:$0xff]  }
 0x602   :  { %9516 = vmatpush2.bf16.msra.mxu0 %v11548_v52  ;;  %v11640_v52 = vld [vmem:[#allocation7 + $0x56c] ss:$16 sps:$4 sm:$0xff]  }
 0x603   :  { %9517 = vmatprep.subr.bf16.mxu0 %v11556_v7  ;;  %v11635_v7 = vld [vmem:[#allocation7 + $0x7e8] ss:$16 sps:$4 sm:$0xff]  }
 0x604   :  { %9551 = vmatpush2.bf16.msra.mxu1 %v11551_v37  ;;  %v11643_v37 = vld [vmem:[#allocation7 + $0x7cc] ss:$16 sps:$4 sm:$0xff]  }
 0x605   :  { %9552 = vmatprep.subr.bf16.mxu1 %v11559_v50  ;;  %v11638_v50 = vld [vmem:[#allocation7 + $0x568] ss:$16 sps:$4 sm:$0xff]  }
 0x606   :  { %9518 = vmatpush2.bf16.msra.mxu0 %v11554_v8  ;;  %v11646_v8 = vld [vmem:[#allocation7 + $0x54c] ss:$16 sps:$4 sm:$0xff]  }
 0x607   :  { %9519 = vmatprep.subr.bf16.mxu0 %v11562_v22  ;;  %v11641_v22 = vld [vmem:[#allocation7 + $0x7c8] ss:$16 sps:$4 sm:$0xff]  }
 0x608   :  { %9553 = vmatpush2.bf16.msra.mxu1 %v11557_v11 }
 0x609   :  { %9554 = vmatprep.subr.bf16.mxu1 %v11565_v0  ;;  %v11649_v0 = vld [vmem:[#allocation7 + $0x7ac] ss:$16 sps:$4 sm:$0xff]  }
 0x60a   :  { %9520 = vmatpush2.bf16.msra.mxu0 %v11560_v36  ;;  %v11644_v36 = vld [vmem:[#allocation7 + $0x548] ss:$16 sps:$4 sm:$0xff]  }
 0x60b   :  { %9571 = vmatprep.subr.bf16.mxu0 %v11568_v23 }
 0x60c   :  { %9555 = vmatpush2.bf16.msra.mxu1 %v11563_v17  ;;  %v11652_v17 = vld [vmem:[#allocation7 + $0x52c] ss:$16 sps:$4 sm:$0xff]  }
 0x60d   :  { %9522 = vmatmul.mubr.bf16.vlgmr.msra.gmra.mxu0 %v16825_v47  ;;  %9556 = vmatprep.subr.bf16.mxu1 %v11571_v60  ;;  %v11589_v47 = vld [vmem:[#allocation7 + $0x6ec] ss:$16 sps:$4 sm:$0xff]   ;;  %v11647_v60 = vld [vmem:[#allocation7 + $0x7a8] ss:$16 sps:$4 sm:$0xff]  }
 0x60e   :  { %9572 = vmatpush1.bf16.msra.mxu0 %v11566_v29  ;;  %9603 = vmatprep.mubr.bf16.mxu0 %v16869_v12  ;;  %v11587_v12 = vld [vmem:[#allocation7 + $0x6e8] ss:$16 sps:$4 sm:$0xff]  }
 0x60f   :  { %9573 = vmatprep.subr.bf16.mxu0 %v11574_v24  ;;  %v11655_v24 = vld [vmem:[#allocation7 + $0x78c] ss:$16 sps:$4 sm:$0xff]  }
 0x610   :  { %9557 = vmatpush2.bf16.msra.mxu1 %v11569_v61  ;;  %v11650_v61 = vld [vmem:[#allocation7 + $0x528] ss:$16 sps:$4 sm:$0xff]  }
 0x611   :  { %9558 = vmatprep.subr.bf16.mxu1 %v11577_v35  ;;  %v16892_v35 = vld [vmem:[%s17173_s10] sm:$0xf] }
 0x612   :  { %9574 = vmatpush1.bf16.msra.mxu0 %v11572_v40 }
 0x613   :  { %9575 = vmatprep.subr.bf16.mxu0 %v11580_v62  ;;  %v11658_v62 = vld [vmem:[#allocation7 + $0x50c] ss:$16 sps:$4 sm:$0xff]  }
 0x614   :  { %9559 = vmatpush2.bf16.msra.mxu1 %v11575_v38  ;;  %v11653_v38 = vld [vmem:[#allocation7 + $0x788] ss:$16 sps:$4 sm:$0xff]  }
 0x615   :  { %9560 = vmatprep.subr.bf16.mxu1 %v11583_v27  ;;  %v11661_v27 = vld [vmem:[#allocation7 + $0x76c] ss:$16 sps:$4 sm:$0xff]  }
 0x616   :  { %9576 = vmatpush1.bf16.msra.mxu0 %v11578_v25  ;;  %v8028_v25 = vrot.slane %v16892_v35, %v16773_v18 }
 0x617   :  { %9577 = vmatprep.subr.bf16.mxu0 %v11586_v43  ;;  %v11656_v43 = vld [vmem:[#allocation7 + $0x508] ss:$16 sps:$4 sm:$0xff]  }
 0x618   :  { %9561 = vmatpush2.bf16.msra.mxu1 %v11581_v13  ;;  %v11673_v13 = vld [vmem:[%s17174_s11 + $0x74] ss:$8 sps:$4 sm:$0xff]  }
 0x619   :  { %9612 = vmatprep.subr.bf16.mxu1 %v11589_v47  ;;  %v8032_v47 = vrot.slane %v16892_v35, %v16781_v16 }
 0x61a   :  { %9578 = vmatpush1.bf16.msra.mxu0 %v11584_v48  ;;  %v11659_v48 = vld [vmem:[#allocation7 + $0x768] ss:$16 sps:$4 sm:$0xff]  }
 0x61b   :  { %9563 = vmatmul.mubr.bf16.vlgmr.msra.gmra.mxu1 %v16833_v14  ;;  %9579 = vmatprep.subr.bf16.mxu0 %v11592_v32  ;;  %v11610_v14 = vld [vmem:[#allocation7 + $0x40c] ss:$16 sps:$4 sm:$0xff]  }
 0x61c   :  { %9613 = vmatpush1.bf16.msra.mxu1 %v11587_v12  ;;  %9644 = vmatprep.mubr.bf16.mxu1 %v16878_v6  ;;  %v11608_v6 = vld [vmem:[#allocation7 + $0x408] ss:$16 sps:$4 sm:$0xff]   ;;  %v11664_v32 = vld [vmem:[#allocation7 + $0x74c] ss:$16 sps:$4 sm:$0xff]  }
 0x61d   :  { %9614 = vmatprep.subr.bf16.mxu1 %v11595_v15  ;;  %v11671_v15 = vld [vmem:[%s17174_s11 + $0x70] ss:$8 sps:$4 sm:$0xff]  }
 0x61e   :  { %9580 = vmatpush1.bf16.msra.mxu0 %v11590_v4 }
 0x61f   :  { %9581 = vmatprep.subr.bf16.mxu0 %v11598_v46  ;;  %v11676_v46 = vld [vmem:[%s17174_s11 + $0x64] ss:$8 sps:$4 sm:$0xff]  }
 0x620   :  { %9615 = vmatpush1.bf16.msra.mxu1 %v11593_v42 }
 0x621   :  { %9616 = vmatprep.subr.bf16.mxu1 %v11601_v53 }
 0x622   :  { %9582 = vmatpush1.bf16.msra.mxu0 %v11596_v39  ;;  %v11662_v39 = vld [vmem:[#allocation7 + $0x748] ss:$16 sps:$4 sm:$0xff]  }
 0x623   :  { %9583 = vmatprep.subr.bf16.mxu0 %v11604_v41 }
 0x624   :  { %9617 = vmatpush1.bf16.msra.mxu1 %v11599_v2  ;;  %v11667_v2 = vld [vmem:[#allocation7 + $0x72c] ss:$16 sps:$4 sm:$0xff]  }
 0x625   :  { %9618 = vmatprep.subr.bf16.mxu1 %v11607_v45 }
 0x626   :  { %9584 = vmatpush1.bf16.msra.mxu0 %v11602_v19  ;;  %v11674_v19 = vld [vmem:[%s17174_s11 + $0x60] ss:$8 sps:$4 sm:$0xff]  }
 0x627   :  { %9585 = vmatprep.subr.bf16.mxu0 %v11610_v14 }
 0x628   :  { %9619 = vmatpush1.bf16.msra.mxu1 %v11605_v30  ;;  %v11679_v30 = vld [vmem:[%s17174_s11 + $0x54] ss:$8 sps:$4 sm:$0xff]  }
 0x629   :  { %9620 = vmatprep.subr.bf16.mxu1 %v11613_v28  ;;  %v11665_v28 = vld [vmem:[#allocation7 + $0x728] ss:$16 sps:$4 sm:$0xff]  }
 0x62a   :  { %9586 = vmatpush1.bf16.msra.mxu0 %v11608_v6 }
 0x62b   :  { %9587 = vmatprep.subr.bf16.mxu0 %v11616_v55  ;;  %v11677_v55 = vld [vmem:[%s17174_s11 + $0x50] ss:$8 sps:$4 sm:$0xff]  }
 0x62c   :  { %9621 = vmatpush1.bf16.msra.mxu1 %v11611_v33  ;;  %v11682_v33 = vld [vmem:[%s17174_s11 + $0x44] ss:$8 sps:$4 sm:$0xff]  }
 0x62d   :  { %9622 = vmatprep.subr.bf16.mxu1 %v11619_v9  ;;  %v11668_v9 = vld [vmem:[#allocation7 + $0x708] ss:$16 sps:$4 sm:$0xff]  }
 0x62e   :  { %9588 = vmatpush2.bf16.msra.mxu0 %v11614_v63  ;;  %v11680_v63 = vld [vmem:[%s17174_s11 + $0x40] ss:$8 sps:$4 sm:$0xff]  }
 0x62f   :  { %9589 = vmatprep.subr.bf16.mxu0 %v11622_v57  ;;  %v11685_v57 = vld [vmem:[%s17174_s11 + $0x34] ss:$8 sps:$4 sm:$0xff]  }
 0x630   :  { %9623 = vmatpush1.bf16.msra.mxu1 %v11617_v51  ;;  %v11683_v51 = vld [vmem:[%s17174_s11 + $0x30] ss:$8 sps:$4 sm:$0xff]  }
 0x631   :  { %9624 = vmatprep.subr.bf16.mxu1 %v11625_v5  ;;  %v11688_v5 = vld [vmem:[%s17174_s11 + $0x24] ss:$8 sps:$4 sm:$0xff]  }
 0x632   :  { %9590 = vmatpush2.bf16.msra.mxu0 %v11620_v26  ;;  %v11686_v26 = vld [vmem:[%s17174_s11 + $0x20] ss:$8 sps:$4 sm:$0xff]  }
 0x633   :  { %9591 = vmatprep.subr.bf16.mxu0 %v11628_v59  ;;  %v11691_v59 = vld [vmem:[%s17174_s11 + $0x14] ss:$8 sps:$4 sm:$0xff]  }
 0x634   :  { %9625 = vmatpush1.bf16.msra.mxu1 %v11623_v21  ;;  %v11694_v21 = vld [vmem:[%s17174_s11 + $0x4] ss:$8 sps:$4 sm:$0xff]  }
 0x635   :  { %9626 = vmatprep.subr.bf16.mxu1 %v11631_v1  ;;  %v11692_v1 = vld [vmem:[%s17174_s11] ss:$8 sps:$4 sm:$0xff]  }
 0x636   :  { %9592 = vmatpush2.bf16.msra.mxu0 %v11626_v3  ;;  %v11697_v3 = vld [vmem:[%s17174_s11 + $0xf4] ss:$8 sps:$4 sm:$0xff]  }
 0x637   :  { %9593 = vmatprep.subr.bf16.mxu0 %v11634_v58  ;;  %v11695_v58 = vld [vmem:[%s17174_s11 + $0xf0] ss:$8 sps:$4 sm:$0xff]  }
 0x638   :  { %9627 = vmatpush1.bf16.msra.mxu1 %v11629_v10  ;;  %v11700_v10 = vld [vmem:[%s17174_s11 + $0xe4] ss:$8 sps:$4 sm:$0xff]  }
 0x639   :  { %9628 = vmatprep.subr.bf16.mxu1 %v11637_v44  ;;  %v11698_v44 = vld [vmem:[%s17174_s11 + $0xe0] ss:$8 sps:$4 sm:$0xff]  }
 0x63a   :  { %9594 = vmatpush2.bf16.msra.mxu0 %v11632_v20  ;;  %v11703_v20 = vld [vmem:[%s17174_s11 + $0xd4] ss:$8 sps:$4 sm:$0xff]  }
 0x63b   :  { %9595 = vmatprep.subr.bf16.mxu0 %v11640_v52  ;;  %v11701_v52 = vld [vmem:[%s17174_s11 + $0xd0] ss:$8 sps:$4 sm:$0xff]  }
 0x63c   :  { %9629 = vmatpush2.bf16.msra.mxu1 %v11635_v7  ;;  %v11706_v7 = vld [vmem:[%s17174_s11 + $0xc4] ss:$8 sps:$4 sm:$0xff]  }
 0x63d   :  { %v9359_v11 = vpop.f32.mrf.mxu0  ;;  %9630 = vmatprep.subr.bf16.mxu1 %v11643_v37  ;;  %v11704_v37 = vld [vmem:[%s17174_s11 + $0xc0] ss:$8 sps:$4 sm:$0xff]  }
 0x63e   :  { %9596 = vmatpush2.bf16.msra.mxu0 %v11638_v50  ;;  %v9360_v12 = vadd.f32 %v9359_v11, %v8028_v25  ;;  %v11709_v50 = vld [vmem:[%s17174_s11 + $0xb4] ss:$8 sps:$4 sm:$0xff]   ;;  %v11710_v11 = vld [vmem:[%s17174_s11 + $0xa0] ss:$8 sps:$4 sm:$0xff]  }
 0x63f   :  { %v9361_v23 = vpop.f32.mrf.mxu0  ;;  %9597 = vmatprep.subr.bf16.mxu0 %v11646_v8  ;;  %v11707_v8 = vld [vmem:[%s17174_s11 + $0xb0] ss:$8 sps:$4 sm:$0xff]   ;;  %v11727_v25 = vld [vmem:[%s17174_s11 + $0x154] ss:$8 sps:$4 sm:$0xff]  }
 0x640   :  { %9631 = vmatpush2.bf16.msra.mxu1 %v11641_v22  ;;  %v9362_v42 = vadd.f32 %v9361_v23, %v8032_v47  ;;  %v11712_v22 = vld [vmem:[%s17174_s11 + $0xa4] ss:$8 sps:$4 sm:$0xff]   ;;  %v11728_v47 = vld [vmem:[%s17174_s11 + $0x140] ss:$8 sps:$4 sm:$0xff]  }
 0x641   :  { %v9363_v29 = vpop.f32.mrf.mxu0  ;;  %9632 = vmatprep.subr.bf16.mxu1 %v11649_v0  ;;  %v11715_v0 = vld [vmem:[%s17174_s11 + $0x94] ss:$8 sps:$4 sm:$0xff]   ;;  %v11718_v23 = vld [vmem:[%s17174_s11 + $0x84] ss:$8 sps:$4 sm:$0xff]  }
 0x642   :  { %9598 = vmatpush2.bf16.msra.mxu0 %v11644_v36  ;;  %v11713_v36 = vld [vmem:[%s17174_s11 + $0x90] ss:$8 sps:$4 sm:$0xff]  }
 0x643   :  { %v9364_v40 = vpop.f32.mrf.mxu0  ;;  %9599 = vmatprep.subr.bf16.mxu0 %v11652_v17  ;;  %v11716_v17 = vld [vmem:[%s17174_s11 + $0x80] ss:$8 sps:$4 sm:$0xff]   ;;  %v11719_v29 = vld [vmem:[%s17174_s11 + $0x170] ss:$8 sps:$4 sm:$0xff]  }
 0x644   :  { %9633 = vmatpush2.bf16.msra.mxu1 %v11647_v60 }
 0x645   :  { %9634 = vmatprep.subr.bf16.mxu1 %v11655_v24  ;;  %v11721_v24 = vld [vmem:[%s17174_s11 + $0x174] ss:$8 sps:$4 sm:$0xff]  }
 0x646   :  { %9600 = vmatpush2.bf16.msra.mxu0 %v11650_v61 }
 0x647   :  { %9601 = vmatprep.subr.bf16.mxu0 %v11658_v62  ;;  %v11722_v62 = vld [vmem:[%s17174_s11 + $0x160] ss:$8 sps:$4 sm:$0xff]  }
 0x648   :  { %9635 = vmatpush2.bf16.msra.mxu1 %v11653_v38  ;;  %v11724_v38 = vld [vmem:[%s17174_s11 + $0x164] ss:$8 sps:$4 sm:$0xff]  }
 0x649   :  { %9636 = vmatprep.subr.bf16.mxu1 %v11661_v27 }
 0x64a   :  { %9602 = vmatpush2.bf16.msra.mxu0 %v11656_v43  ;;  %v11725_v43 = vld [vmem:[%s17174_s11 + $0x150] ss:$8 sps:$4 sm:$0xff]  }
 0x64b   :  { %v9400_v4 = vpop.f32.mrf.mxu1  ;;  %10109 = vmatprep.subr.bf16.mxu0 %v11673_v13  ;;  %v11730_v13 = vld [vmem:[%s17174_s11 + $0x144] ss:$8 sps:$4 sm:$0xff]  }
 0x64c   :  { %v16907_v53 = vadd.f32 %v9400_v4, %v9360_v12  ;;  %9637 = vmatpush2.bf16.msra.mxu1 %v11659_v48 }
 0x64d   :  { %9604 = vmatmul.mubr.bf16.vlgmr.msra.gmra.mxu0 %v16871_v34  ;;  %v9402_v41 = vpop.f32.mrf.mxu1  ;;  %9638 = vmatprep.subr.bf16.mxu1 %v11664_v32  ;;  %v11670_v34 = vld [vmem:[#allocation7 + $0x70c] ss:$16 sps:$4 sm:$0xff]  }
 0x64e   :  { %v16910_v45 = vadd.f32 %v9402_v41, %v9362_v42  ;;  %10110 = vmatpush1.bf16.msra.mxu0 %v11671_v15 }
 0x64f   :  { %v9404_v14 = vpop.f32.mrf.mxu1  ;;  %10111 = vmatprep.subr.bf16.mxu0 %v11676_v46 }
 0x650   :  { %9639 = vmatpush2.bf16.msra.mxu1 %v11662_v39 }
 0x651   :  { %v9405_v6 = vpop.f32.mrf.mxu1  ;;  %9640 = vmatprep.subr.bf16.mxu1 %v11667_v2 }
 0x652   :  { %10112 = vmatpush1.bf16.msra.mxu0 %v11674_v19 }
 0x653   :  { %10113 = vmatprep.subr.bf16.mxu0 %v11679_v30 }
 0x654   :  { %9641 = vmatpush2.bf16.msra.mxu1 %v11665_v28 }
 0x655   :  { %9642 = vmatprep.subr.bf16.mxu1 %v11670_v34 }
 0x656   :  { %10114 = vmatpush1.bf16.msra.mxu0 %v11677_v55 }
 0x657   :  { %10115 = vmatprep.subr.bf16.mxu0 %v11682_v33 }
 0x658   :  { %9643 = vmatpush2.bf16.msra.mxu1 %v11668_v9 }
 0x659   :  { %10150 = vmatprep.subr.bf16.mxu1 %v11721_v24 }
 0x65a   :  { %10116 = vmatpush1.bf16.msra.mxu0 %v11680_v63 }
 0x65b   :  { %9645 = vmatmul.mubr.bf16.vlgmr.msra.gmra.mxu1 %v16880_v54  ;;  %10117 = vmatprep.subr.bf16.mxu0 %v11685_v57  ;;  %v11689_v54 = vld [vmem:[%s17174_s11 + $0x10] ss:$8 sps:$4 sm:$0xff]  }
 0x65c   :  { %10151 = vmatpush1.bf16.msra.mxu1 %v11719_v29  ;;  %v11745_v29 = vld [vmem:[%s17174_s11 + $0x1f4] ss:$8 sps:$4 sm:$0xff]  }
 0x65d   :  { %10152 = vmatprep.subr.bf16.mxu1 %v11724_v38  ;;  %v11751_v38 = vld [vmem:[%s17174_s11 + $0x1d4] ss:$8 sps:$4 sm:$0xff]  }
 0x65e   :  { %10118 = vmatpush1.bf16.msra.mxu0 %v11683_v51 }
 0x65f   :  { %10119 = vmatprep.subr.bf16.mxu0 %v11688_v5 }
 0x660   :  { %10153 = vmatpush1.bf16.msra.mxu1 %v11722_v62  ;;  %v11746_v62 = vld [vmem:[%s17174_s11 + $0x1e0] ss:$8 sps:$4 sm:$0xff]  }
 0x661   :  { %10154 = vmatprep.subr.bf16.mxu1 %v11727_v25 }
 0x662   :  { %10120 = vmatpush1.bf16.msra.mxu0 %v11686_v26 }
 0x663   :  { %10121 = vmatprep.subr.bf16.mxu0 %v11691_v59 }
 0x664   :  { %10155 = vmatpush1.bf16.msra.mxu1 %v11725_v43  ;;  %v11749_v43 = vld [vmem:[%s17174_s11 + $0x1d0] ss:$8 sps:$4 sm:$0xff]  }
 0x665   :  { %10156 = vmatprep.subr.bf16.mxu1 %v11730_v13  ;;  %v11754_v13 = vld [vmem:[%s17174_s11 + $0x1c4] ss:$8 sps:$4 sm:$0xff]  }
 0x666   :  { %10122 = vmatpush1.bf16.msra.mxu0 %v11689_v54 }
 0x667   :  { %10123 = vmatprep.subr.bf16.mxu0 %v11694_v21 }
 0x668   :  { %10157 = vmatpush1.bf16.msra.mxu1 %v11728_v47 }
 0x66a   :  { %10124 = vmatpush1.bf16.msra.mxu0 %v11692_v1 }
 0x66b   :  { %10125 = vmatprep.subr.bf16.mxu0 %v11697_v3 }
 0x66e   :  { %10126 = vmatpush2.bf16.msra.mxu0 %v11695_v58  ;;  %v11731_v58 = vld [vmem:[%s17174_s11 + $0x130] ss:$8 sps:$4 sm:$0xff]  }
 0x66f   :  { %10127 = vmatprep.subr.bf16.mxu0 %v11700_v10  ;;  %v11733_v10 = vld [vmem:[%s17174_s11 + $0x134] ss:$8 sps:$4 sm:$0xff]  }
 0x670   :  { %10158 = vmatprep.subr.bf16.mxu1 %v11733_v10 }
 0x671   :  { %10159 = vmatpush1.bf16.msra.mxu1 %v11731_v58 }
 0x672   :  { %10128 = vmatpush2.bf16.msra.mxu0 %v11698_v44 }
 0x673   :  { %10129 = vmatprep.subr.bf16.mxu0 %v11703_v20 }
 0x676   :  { %10130 = vmatpush2.bf16.msra.mxu0 %v11701_v52  ;;  %v11736_v52 = vld [vmem:[%s17174_s11 + $0x124] ss:$8 sps:$4 sm:$0xff]  }
 0x677   :  { %10131 = vmatprep.subr.bf16.mxu0 %v11706_v7  ;;  %10160 = vmatprep.subr.bf16.mxu1 %v11736_v52 }
 0x67a   :  { %10132 = vmatpush2.bf16.msra.mxu0 %v11704_v37  ;;  %v11734_v37 = vld [vmem:[%s17174_s11 + $0x120] ss:$8 sps:$4 sm:$0xff]  }
 0x67b   :  { %10133 = vmatprep.subr.bf16.mxu0 %v11709_v50  ;;  %10161 = vmatpush1.bf16.msra.mxu1 %v11734_v37 }
 0x67e   :  { %10134 = vmatpush2.bf16.msra.mxu0 %v11707_v8  ;;  %v11739_v8 = vld [vmem:[%s17174_s11 + $0x114] ss:$8 sps:$4 sm:$0xff]  }
 0x67f   :  { %10135 = vmatprep.subr.bf16.mxu0 %v11712_v22  ;;  %10162 = vmatprep.subr.bf16.mxu1 %v11739_v8 }
 0x682   :  { %10136 = vmatpush2.bf16.msra.mxu0 %v11710_v11 }
 0x683   :  { %10137 = vmatprep.subr.bf16.mxu0 %v11715_v0  ;;  %v11737_v0 = vld [vmem:[%s17174_s11 + $0x110] ss:$8 sps:$4 sm:$0xff]  }
 0x684   :  { %10163 = vmatpush1.bf16.msra.mxu1 %v11737_v0 }
 0x686   :  { %10138 = vmatpush2.bf16.msra.mxu0 %v11713_v36  ;;  %v11742_v36 = vld [vmem:[%s17174_s11 + $0x104] ss:$8 sps:$4 sm:$0xff]  }
 0x687   :  { %10139 = vmatprep.subr.bf16.mxu0 %v11718_v23  ;;  %10164 = vmatprep.subr.bf16.mxu1 %v11742_v36 }
 0x68a   :  { %10140 = vmatpush2.bf16.msra.mxu0 %v11716_v17 }
 0x68d   :  { %v9441_v60 = vpop.f32.mrf.mxu0 }
 0x68e   :  { %v9442_v48 = vadd.f32 %v9441_v60, %v16907_v53  ;;  %v11740_v60 = vld [vmem:[%s17174_s11 + $0x100] ss:$8 sps:$4 sm:$0xff]  }
 0x68f   :  { %v9443_v61 = vpop.f32.mrf.mxu0  ;;  %10165 = vmatpush1.bf16.msra.mxu1 %v11740_v60 }
 0x690   :  { %v9444_v12 = vadd.f32 %v9443_v61, %v16910_v45  ;;  %v11743_v61 = vld [vmem:[%s17174_s11 + $0x1f0] ss:$8 sps:$4 sm:$0xff]   ;;  %10166 = vmatprep.subr.bf16.mxu1 %v11745_v29 }
 0x691   :  { %v9445_v40 = vpop.f32.mrf.mxu0 }
 0x692   :  { %v11748_v40 = vld [vmem:[%s17174_s11 + $0x1e4] ss:$8 sps:$4 sm:$0xff]  }
 0x693   :  { %v9446_v27 = vpop.f32.mrf.mxu0  ;;  %10167 = vmatpush2.bf16.msra.mxu1 %v11743_v61 }
 0x694   :  { %10168 = vmatprep.subr.bf16.mxu1 %v11748_v40 }
 0x697   :  { %10169 = vmatpush2.bf16.msra.mxu1 %v11746_v62 }
 0x698   :  { %10170 = vmatprep.subr.bf16.mxu1 %v11751_v38 }
 0x69b   :  { %v9482_v32 = vpop.f32.mrf.mxu1  ;;  %10171 = vmatpush2.bf16.msra.mxu1 %v11749_v43 }
 0x69c   :  { %v9483_v15 = vadd.f32 %v9482_v32, %v9442_v48  ;;  %v11752_v32 = vld [vmem:[%s17174_s11 + $0x1c0] ss:$8 sps:$4 sm:$0xff]   ;;  %10172 = vmatprep.subr.bf16.mxu1 %v11754_v13  ;;  %v11767_v13 = vld [vmem:[%s17176_s13 + $0x78] sm:$0xff]  }
 0x69d   :  { %v9484_v4 = vpop.f32.mrf.mxu1  ;;  %11151 = vmatprep.subr.bf16.mxu0 %v11767_v13 }
 0x69e   :  { %v9653_v46 = vand.u32 2147483647, %v9483_v15  ;;  %v9485_v42 = vadd.f32 %v9484_v4, %v9444_v12  ;;  %vm9677_vm3 = vcmp.ge.f32.partialorder %v9483_v15, 0.0  ;;  %v11757_v12 = vld [vmem:[%s17174_s11 + $0x1b4] ss:$8 sps:$4 sm:$0xff]  }
 0x69f   :  { %v9486_v39 = vpop.f32.mrf.mxu1  ;;  %10173 = vmatpush2.bf16.msra.mxu1 %v11752_v32  ;;  %v11760_v4 = vld [vmem:[%s17174_s11 + $0x1a4] ss:$8 sps:$4 sm:$0xff]   ;;  %v11770_v32 = vld [vmem:[%s17176_s13 + $0x30] sm:$0xff]  }
 0x6a0   :  { %v9657_v41 = vsub.f32 0.0, %v9653_v46  ;;  %v9654_v2 = vand.u32 2147483647, %v9485_v42  ;;  %vm9678_vm10 = vcmp.ge.f32.partialorder %v9485_v42, 0.0  ;;  %10174 = vmatprep.subr.bf16.mxu1 %v11757_v12  ;;  %v11758_v46 = vld [vmem:[%s17174_s11 + $0x1a0] ss:$8 sps:$4 sm:$0xff]  }
 0x6a1   :  { %v9487_v19 = vpop.f32.mrf.mxu1  ;;  %v11761_v39 = vld [vmem:[%s17174_s11 + $0x190] ss:$8 sps:$4 sm:$0xff]   ;;  %v11771_v12 = vld [vmem:[%s17176_s13 + $0x68] sm:$0xff]  }
 0x6a2   :  { %v9661_v14 = vmul.f32 1.442695, %v9657_v41  ;;  %v9658_v30 = vsub.f32 0.0, %v9654_v2  ;;  %v11766_v41 = vld [vmem:[%s17174_s11 + $0x184] ss:$8 sps:$4 sm:$0xff]  }
 0x6a3   :  { %v11764_v2 = vld [vmem:[%s17174_s11 + $0x180] ss:$8 sps:$4 sm:$0xff]  }
 0x6a4   :  { %12095 = vpow2.f32 %v9661_v14  ;;  %v9663_v28 = vmul.f32 1.442695, %v9658_v30 }
 0x6a6   :  { %12097 = vpow2.f32 %v9663_v28  ;;  %v8036_v28 = vrot.slane %v16892_v35, %v7609_v56 }
 0x6b1   :  { %v12096_v6 = vpop.eup %12095 }
 0x6b2   :  { %v9669_v53 = vadd.f32 1.0, %v12096_v6  ;;  %v9681_v34 = vmul.f32 %v12096_v6, %v12096_v6 }
 0x6b3   :  { %v12098_v55 = vpop.eup %12097 }
 0x6b4   :  { %v9673_v45 = vmul.f32 %v9669_v53, %v9669_v53  ;;  %v9685_v33 = vsel %vm9677_vm3, %v9681_v34, 1.0  ;;  %v9670_v9 = vadd.f32 1.0, %v12098_v55  ;;  %v9682_v63 = vmul.f32 %v12098_v55, %v12098_v55 }
 0x6b5   :  { %v8040_v53 = vrot.slane %v16892_v35, %v7613_v31 }
 0x6b6   :  { %v9697_v57 = vadd.f32 %v9685_v33, %v9673_v45  ;;  %v9674_v51 = vmul.f32 %v9670_v9, %v9670_v9  ;;  %v9686_v5 = vsel %vm9678_vm10, %v9682_v63, 1.0  ;;  %v9689_v59 = vsub.f32 %v9673_v45, %v9685_v33 }
 0x6b8   :  { %12099 = vrcp.f32 %v9697_v57  ;;  %v9698_v26 = vadd.f32 %v9686_v5, %v9674_v51  ;;  %v9690_v54 = vsub.f32 %v9674_v51, %v9686_v5  ;;  %v9693_v1 = vmul.f32 %v9689_v59, %v9483_v15  ;;  %v11755_v15 = vld [vmem:[%s17174_s11 + $0x1b0] ss:$8 sps:$4 sm:$0xff]  }
 0x6b9   :  { %10175 = vmatpush2.bf16.msra.mxu1 %v11755_v15  ;;  %v11772_v15 = vld [vmem:[%s17176_s13 + $0x28] sm:$0xff]  }
 0x6ba   :  { %12101 = vrcp.f32 %v9698_v26  ;;  %v9694_v3 = vmul.f32 %v9690_v54, %v9485_v42  ;;  %10176 = vmatprep.subr.bf16.mxu1 %v11760_v4  ;;  %v11763_v42 = vld [vmem:[%s17174_s11 + $0x194] ss:$8 sps:$4 sm:$0xff]   ;;  %v11773_v4 = vld [vmem:[%s17176_s13 + $0x60] sm:$0xff]  }
 0x6bd   :  { %10177 = vmatpush2.bf16.msra.mxu1 %v11758_v46  ;;  %v11774_v46 = vld [vmem:[%s17176_s13 + $0x20] sm:$0xff]  }
 0x6be   :  { %10178 = vmatprep.subr.bf16.mxu1 %v11763_v42  ;;  %v11775_v42 = vld [vmem:[%s17176_s13 + $0x58] sm:$0xff]  }
 0x6c1   :  { %10179 = vmatpush2.bf16.msra.mxu1 %v11761_v39  ;;  %v11776_v39 = vld [vmem:[%s17176_s13 + $0x18] sm:$0xff]  }
 0x6c2   :  { %10180 = vmatprep.subr.bf16.mxu1 %v11766_v41  ;;  %v11777_v41 = vld [vmem:[%s17176_s13 + $0x50] sm:$0xff]  }
 0x6c5   :  { %v12100_v21 = vpop.eup %12099  ;;  %10181 = vmatpush2.bf16.msra.mxu1 %v11764_v2  ;;  %v11778_v2 = vld [vmem:[%s17176_s13 + $0x10] sm:$0xff]  }
 0x6c6   :  { %v9705_v20 = vmul.f32 %v12100_v21, %v9693_v1 }
 0x6c7   :  { %v12102_v44 = vpop.eup %12101 }
 0x6c8   :  { %v9706_v7 = vmul.f32 %v12102_v44, %v9694_v3  ;;  %v9709_v22 = vpack.c.bf16 %v9705_v20, %v9705_v20 }
 0x6ca   :  { %v9710_v50 = vpack.c.bf16 %v9706_v7, %v9706_v7 }
 0x6cc   :  { %10141 = vmatprep.mubr.bf16.mxu0 %v9710_v50 }
 0x6cd   :  { %v9523_v11 = vpop.f32.mrf.mxu0  ;;  %10142 = vmatmul.mubr.bf16.vlgmr.msra.gmra.mxu0 %v9709_v22 }
 0x6ce   :  { %v9524_v34 = vadd.f32 %v9523_v11, %v8036_v28  ;;  %v11782_v28 = vld [vmem:[%s17176_s13] sm:$0xff]  }
 0x6cf   :  { %v9525_v23 = vpop.f32.mrf.mxu0 }
 0x6d0   :  { %v9526_v55 = vadd.f32 %v9525_v23, %v8040_v53 }
 0x6d1   :  { %v9527_v17 = vpop.f32.mrf.mxu0 }
 0x6d3   :  { %v9528_v24 = vpop.f32.mrf.mxu0 }
 0x6db   :  { %v9564_v27 = vpop.f32.mrf.mxu1 }
 0x6dc   :  { %v9565_v45 = vadd.f32 %v9564_v27, %v9524_v34 }
 0x6dd   :  { %v9566_v25 = vpop.f32.mrf.mxu1 }
 0x6de   :  { %v9567_v33 = vadd.f32 %v9566_v25, %v9526_v55 }
 0x6df   :  { %v9568_v47 = vpop.f32.mrf.mxu1 }
 0x6e0   :  { %v11768_v47 = vld [vmem:[%s17176_s13 + $0x38] sm:$0xff]  }
 0x6e1   :  { %v9569_v48 = vpop.f32.mrf.mxu1  ;;  %11152 = vmatpush3.bf16.msra.mxu0 %v11768_v47 }
 0x6e2   :  { %v11769_v48 = vld [vmem:[%s17176_s13 + $0x70] sm:$0xff]  }
 0x6e3   :  { %11153 = vmatprep.subr.bf16.mxu0 %v11769_v48 }
 0x6e5   :  { %11154 = vmatpush3.bf16.msra.mxu0 %v11770_v32 }
 0x6e6   :  { %11155 = vmatprep.subr.bf16.mxu0 %v11771_v12 }
 0x6e9   :  { %11156 = vmatpush3.bf16.msra.mxu0 %v11772_v15 }
 0x6ea   :  { %11157 = vmatprep.subr.bf16.mxu0 %v11773_v4 }
 0x6ed   :  { %11158 = vmatpush3.bf16.msra.mxu0 %v11774_v46 }
 0x6ee   :  { %11159 = vmatprep.subr.bf16.mxu0 %v11775_v42 }
 0x6f1   :  { %11160 = vmatpush3.bf16.msra.mxu0 %v11776_v39 }
 0x6f2   :  { %11161 = vmatprep.subr.bf16.mxu0 %v11777_v41 }
 0x6f5   :  { %11162 = vmatpush3.bf16.msra.mxu0 %v11778_v2 }
 0x70d   :  { %v9605_v19 = vpop.f32.mrf.mxu0 }
 0x70e   :  { %v9606_v9 = vadd.f32 %v9605_v19, %v9565_v45  ;;  %v11779_v19 = vld [vmem:[%s17176_s13 + $0x48] sm:$0xff]  }
 0x70f   :  { %v9607_v14 = vpop.f32.mrf.mxu0  ;;  %11163 = vmatprep.subr.bf16.mxu0 %v11779_v19 }
 0x710   :  { %v9608_v57 = vadd.f32 %v9607_v14, %v9567_v33  ;;  %v11780_v14 = vld [vmem:[%s17176_s13 + $0x8] sm:$0xff]  }
 0x711   :  { %v9609_v30 = vpop.f32.mrf.mxu0  ;;  %11164 = vmatpush3.bf16.msra.mxu0 %v11780_v14 }
 0x712   :  { %v11781_v30 = vld [vmem:[%s17176_s13 + $0x40] sm:$0xff]  }
 0x713   :  { %v9610_v6 = vpop.f32.mrf.mxu0  ;;  %11165 = vmatprep.subr.bf16.mxu0 %v11781_v30 }
 0x714   :  { %v9777_v6 = vld [vmem:[%s17175_s12] sm:$0x3] }
 0x715   :  { %11166 = vmatpush3.bf16.msra.mxu0 %v11782_v28  ;;  %v9782_v53 = vrot.slane %v9777_v6, %v16773_v18  ;;  %v9786_v34 = vrot.slane %v9777_v6, %v16781_v16 }
 0x71b   :  { %v9646_v63 = vpop.f32.mrf.mxu1 }
 0x71c   :  { %v9647_v51 = vadd.f32 %v9646_v63, %v9606_v9 }
 0x71d   :  { %v9648_v5 = vpop.f32.mrf.mxu1 }
 0x71e   :  { %v9655_v26 = vand.u32 2147483647, %v9647_v51  ;;  %v9649_v59 = vadd.f32 %v9648_v5, %v9608_v57  ;;  %vm9679_vm6 = vcmp.ge.f32.partialorder %v9647_v51, 0.0 }
 0x71f   :  { %v9650_v54 = vpop.f32.mrf.mxu1 }
 0x720   :  { %v9659_v21 = vsub.f32 0.0, %v9655_v26  ;;  %v9656_v1 = vand.u32 2147483647, %v9649_v59  ;;  %vm9680_vm0 = vcmp.ge.f32.partialorder %v9649_v59, 0.0 }
 0x721   :  { %v9651_v56 = vpop.f32.mrf.mxu1 }
 0x722   :  { %v9665_v3 = vmul.f32 1.442695, %v9659_v21  ;;  %v9660_v58 = vsub.f32 0.0, %v9656_v1 }
 0x724   :  { %12103 = vpow2.f32 %v9665_v3  ;;  %v9667_v49 = vmul.f32 1.442695, %v9660_v58 }
 0x726   :  { %12105 = vpow2.f32 %v9667_v49 }
 0x731   :  { %v12104_v31 = vpop.eup %12103 }
 0x732   :  { %v9671_v35 = vadd.f32 1.0, %v12104_v31  ;;  %v9683_v10 = vmul.f32 %v12104_v31, %v12104_v31 }
 0x733   :  { %v12106_v44 = vpop.eup %12105 }
 0x734   :  { %v9675_v20 = vmul.f32 %v9671_v35, %v9671_v35  ;;  %v9687_v52 = vsel %vm9679_vm6, %v9683_v10, 1.0  ;;  %v9672_v7 = vadd.f32 1.0, %v12106_v44  ;;  %v9684_v37 = vmul.f32 %v12106_v44, %v12106_v44 }
 0x736   :  { %v9699_v50 = vadd.f32 %v9687_v52, %v9675_v20  ;;  %v9676_v8 = vmul.f32 %v9672_v7, %v9672_v7  ;;  %v9688_v22 = vsel %vm9680_vm0, %v9684_v37, 1.0  ;;  %v9691_v0 = vsub.f32 %v9675_v20, %v9687_v52 }
 0x738   :  { %12107 = vrcp.f32 %v9699_v50  ;;  %v9700_v11 = vadd.f32 %v9688_v22, %v9676_v8  ;;  %v9692_v36 = vsub.f32 %v9676_v8, %v9688_v22  ;;  %v9695_v17 = vmul.f32 %v9691_v0, %v9647_v51 }
 0x73a   :  { %12109 = vrcp.f32 %v9700_v11  ;;  %v9696_v60 = vmul.f32 %v9692_v36, %v9649_v59 }
 0x745   :  { %v12108_v23 = vpop.eup %12107 }
 0x746   :  { %v9707_v24 = vmul.f32 %v12108_v23, %v9695_v17 }
 0x747   :  { %v12110_v29 = vpop.eup %12109 }
 0x748   :  { %v9708_v61 = vmul.f32 %v12110_v29, %v9696_v60  ;;  %v9711_v62 = vpack.c.bf16 %v9707_v24, %v9707_v24  ;;  %v11134_v24 = vld [vmem:[%s17177_s14] ss:$0 sm:$0xff]  ;;  %s10418_s14 = sshll.u32 %s12222_s25, 4  ;;  %s10419_s14 = int_to_ptr.vmem [resolvable:$true] %s10418_s14 }
 0x749   :  { %s12185_s26 = scalar_lea.vmem %s10419_s14, 32  ;;  %p12190_p2 = scmp.lt.s32.totalorder %s10419_s14, %s10419_s14 }
 0x74a   :  { %v9712_v40 = vpack.c.bf16 %v9708_v61, %v9708_v61  ;;  %p12186_p1 = scmp.ne.s32.totalorder %s10419_s14, %s12185_s26  ;;  %p12191_p3 = scmp.lt.s32.totalorder %s12185_s26, %s12185_s26 }
 0x74c   :  { %10182 = vmatprep.mubr.bf16.mxu1 %v9712_v40  ;;  %p12192_p4 = por %p12191_p3, %p12190_p2 }
 0x74d   :  { %10183 = vmatmul.mubr.bf16.vlgmr.msra.gmra.mxu1 %v9711_v62 }
 0x74e   :  { %p12193_p5 = pnand %p12192_p4, %p12186_p1 }
 0x78d   :  { %v10143_v38 = vpop.f32.mrf.mxu0 }
 0x78e   :  { %v10144_v55 = vadd.f32 %v10143_v38, %v9782_v53 }
 0x78f   :  { %v10145_v27 = vpop.f32.mrf.mxu0 }
 0x790   :  { %v10146_v33 = vadd.f32 %v10145_v27, %v9786_v34 }
 0x791   :  { %v10147_v25 = vpop.f32.mrf.mxu0 }
 0x793   :  { %v10148_v43 = vpop.f32.mrf.mxu0 }
 0x80d   :  { %v10184_v45 = vpop.f32.mrf.mxu1 }
 0x80e   :  { %v10185_v9 = vadd.f32 %v10184_v45, %v10144_v55 }
 0x80f   :  { %v10186_v63 = vpop.f32.mrf.mxu1 }
 0x810   :  { %v10191_v57 = vand.u32 2147483647, %v10185_v9  ;;  %v10187_v51 = vadd.f32 %v10186_v63, %v10146_v33  ;;  %vm10203_vm2 = vcmp.ge.f32.partialorder %v10185_v9, 0.0 }
 0x811   :  { %v10188_v5 = vpop.f32.mrf.mxu1 }
 0x812   :  { %v10193_v26 = vsub.f32 0.0, %v10191_v57  ;;  %v10192_v59 = vand.u32 2147483647, %v10187_v51  ;;  %vm10204_vm4 = vcmp.ge.f32.partialorder %v10187_v51, 0.0 }
 0x813   :  { %v10189_v54 = vpop.f32.mrf.mxu1 }
 0x814   :  { %v10195_v21 = vmul.f32 1.442695, %v10193_v26  ;;  %v10194_v1 = vsub.f32 0.0, %v10192_v59 }
 0x816   :  { %12111 = vpow2.f32 %v10195_v21  ;;  %v10197_v56 = vmul.f32 1.442695, %v10194_v1 }
 0x818   :  { %12113 = vpow2.f32 %v10197_v56 }
 0x823   :  { %v12112_v3 = vpop.eup %12111 }
 0x824   :  { %v10199_v18 = vadd.f32 1.0, %v12112_v3  ;;  %v10205_v58 = vmul.f32 %v12112_v3, %v12112_v3 }
 0x825   :  { %v12114_v16 = vpop.eup %12113 }
 0x826   :  { %v10201_v49 = vmul.f32 %v10199_v18, %v10199_v18  ;;  %v10207_v31 = vsel %vm10203_vm2, %v10205_v58, 1.0  ;;  %v10200_v35 = vadd.f32 1.0, %v12114_v16  ;;  %v10206_v10 = vmul.f32 %v12114_v16, %v12114_v16 }
 0x828   :  { %v10213_v44 = vadd.f32 %v10207_v31, %v10201_v49  ;;  %v10202_v20 = vmul.f32 %v10200_v35, %v10200_v35  ;;  %v10208_v52 = vsel %vm10204_vm4, %v10206_v10, 1.0  ;;  %v10209_v37 = vsub.f32 %v10201_v49, %v10207_v31 }
 0x82a   :  { %12115 = vrcp.f32 %v10213_v44  ;;  %v10214_v7 = vadd.f32 %v10208_v52, %v10202_v20  ;;  %v10210_v50 = vsub.f32 %v10202_v20, %v10208_v52  ;;  %v10211_v22 = vmul.f32 %v10209_v37, %v10185_v9 }
 0x82c   :  { %12117 = vrcp.f32 %v10214_v7  ;;  %v10212_v11 = vmul.f32 %v10210_v50, %v10187_v51 }
 0x837   :  { %v12116_v8 = vpop.eup %12115 }
 0x838   :  { %v10217_v36 = vmul.f32 %v12116_v8, %v10211_v22 }
 0x839   :  { %v12118_v0 = vpop.eup %12117 }
 0x83a   :  { %v10218_v23 = vmul.f32 %v12118_v0, %v10212_v11  ;;  %v10219_v60 = vpack.c.bf16 %v10217_v36, %v10217_v36 }
 0x83c   :  { %v10220_v17 = vpack.c.bf16 %v10218_v23, %v10218_v23 }
 0x83e   :  { %10388 = vmatprep.mubr.bf16.mxu0 %v10220_v17 }
 0x83f   :  { %10389 = vmatmul.mubr.bf16.vlgmr.msra.gmra.mxu0 %v10219_v60 }
 0x8ff   :  { %v11167_v29 = vpop.f32.mrf.mxu0 }
 0x901   :  { %v11168_v61 = vpop.f32.mrf.mxu0 }
 0x902   :  { %v11169_v40 = vadd.f32 %v11168_v61, %v11167_v29 }
 0x903   :  { %v11170_v62 = vpop.f32.mrf.mxu0 }
 0x904   :  { %v10391_v38 = vadd.f32 %v11169_v40, %v11134_v24 }
 0x905   :  { %v11171_v27 = vpop.f32.mrf.mxu0 }
 0x906   :  { %v10396_v25 = vand.u32 2147483647, %v10391_v38  ;;  %vm10402_vm11 = vcmp.ge.f32.partialorder %v10391_v38, 0.0 }
 0x908   :  { %v10397_v43 = vsub.f32 0.0, %v10396_v25 }
 0x90a   :  { %v10398_v13 = vmul.f32 1.442695, %v10397_v43 }
 0x90c   :  { %12119 = vpow2.f32 %v10398_v13 }
 0x919   :  { %v12120_v47 = vpop.eup %12119 }
 0x91a   :  { %v10400_v48 = vadd.f32 1.0, %v12120_v47  ;;  %v10403_v32 = vmul.f32 %v12120_v47, %v12120_v47 }
 0x91c   :  { %v10401_v12 = vmul.f32 %v10400_v48, %v10400_v48  ;;  %v10404_v15 = vsel %vm10402_vm11, %v10403_v32, 1.0 }
 0x91e   :  { %v10407_v4 = vadd.f32 %v10404_v15, %v10401_v12  ;;  %v10405_v46 = vsub.f32 %v10401_v12, %v10404_v15 }
 0x920   :  { %12121 = vrcp.f32 %v10407_v4  ;;  %v10406_v42 = vmul.f32 %v10405_v46, %v10391_v38 }
 0x92d   :  { %v12122_v39 = vpop.eup %12121 }
 0x92e   :  { %v10409_v41 = vmul.f32 %v12122_v39, %v10406_v42 }
 0x930   :  { %10411 = vst.msk [vmem:[#allocation8] sm:$0x3] %vm10410_vm12, %v10409_v41 }
 0x931   :  { %12196 = shalt.err (!%p12193_p5)
}
 0x932   :  { %10421 = dma.vmem_to_hbm [thread:$0]  %s10419_s14, 32, %s17178_s15, [#allocation4]  }
 0x933   :  { %12209 = dma.done.wait [#allocation4], 32  }
 0x934   :  { %12210 = vsyncadd [#allocation4], 4294967264 }
 0x935   :  { %10425 = vsyncpa [#allocation3], 1 }
 0x936   :  { %10426 = vsyncpa [#allocation6], 1 }
 0x937   :  { %10427 = vsyncpa [#allocation4], 1 }

</bundles_post_ra>
